<compile_context>
chip_gen: v5e
topology: v5e:2x2
jax: 0.10.0
libtpu: 0.0.40
codegen_flags: <defaults>
</compile_context>

<pallas_src>
import functools

import jax
import jax.numpy as jnp
from jax.experimental import pallas as pl
from jax.experimental.pallas import tpu as pltpu


_BN_EPS = 1e-5
_LRELU_SLOPE = 0.2


# ---------------------------------------------------------------------------
# VMEM / tiling helpers
# ---------------------------------------------------------------------------
def _vmem_limit_bytes(estimate_bytes):
    """Scoped-VMEM limit: generous headroom over the real footprint but never
    above 48 MiB, so it is valid on v7x (64 MiB/TC) as well as v5e/v6e."""
    return int(min(max(int(estimate_bytes * 1.5) + (4 << 20), 16 << 20), 48 << 20))


def _pick_tk(M, K, N, budget_bytes=24 << 20):
    """K tile for the conv2 matmul.  Prefer whole-K (grid of one step); the
    budget accounts for double-buffered bf16 X/W tiles, the bf16 output block
    and the f32 scratch accumulator."""
    def footprint(tk):
        return 2 * (M * tk * 2 + tk * N * 2 + M * N * 2) + M * N * 4 + 4 * N * 4

    candidates = [K] + [d for d in range(128, K, 128) if K % d == 0]
    fitting = [tk for tk in candidates if footprint(tk) <= budget_bytes]
    if fitting:
        return max(fitting)
    return min(candidates, key=footprint)


# ---------------------------------------------------------------------------
# conv1: Y = LeakyReLU(X @ W + b), f32 matmul, bf16 output, M-parallel grid
# ---------------------------------------------------------------------------
def _conv_lrelu_kernel(x_ref, w_ref, b_ref, o_ref, *, slope):
    y = jnp.dot(x_ref[...], w_ref[...], preferred_element_type=jnp.float32)
    y = y + b_ref[...]
    y = jnp.maximum(y, slope * y)
    o_ref[...] = y.astype(o_ref.dtype)


def conv1_layer(col, w, b, *, m_split=2):
    M, K = col.shape
    Kw, N = w.shape
    assert K == Kw
    if M % m_split or (M // m_split) % 8:
        m_split = 1
    tm = M // m_split

    kernel = functools.partial(_conv_lrelu_kernel, slope=_LRELU_SLOPE)
    estimate = 2 * (tm * K * col.dtype.itemsize + K * N * w.dtype.itemsize
                    + tm * N * 2) + N * 4
    return pl.pallas_call(
        kernel,
        out_shape=jax.ShapeDtypeStruct((M, N), jnp.bfloat16),
        grid_spec=pltpu.PrefetchScalarGridSpec(
            num_scalar_prefetch=0,
            grid=(m_split,),
            in_specs=[
                pl.BlockSpec((tm, K), lambda i: (i, 0)),
                pl.BlockSpec((K, N), lambda i: (0, 0)),
                pl.BlockSpec((1, N), lambda i: (0, 0)),
            ],
            out_specs=pl.BlockSpec((tm, N), lambda i: (i, 0)),
        ),
        compiler_params=pltpu.CompilerParams(
            dimension_semantics=("parallel",),
            vmem_limit_bytes=_vmem_limit_bytes(estimate),
        ),
    )(col, w, b)


# ---------------------------------------------------------------------------
# conv2: Y = LeakyReLU(BN(X @ W)), bf16 inputs, f32 scratch accumulator over
# a K grid (whole-K at these shapes), bf16 output.  Bias dropped (BN cancels).
# ---------------------------------------------------------------------------
def _conv_bn_lrelu_kernel(x_ref, w_ref, g_ref, bt_ref, o_ref, acc_ref,
                          *, bn_eps, slope):
    k = pl.program_id(0)
    partial = jnp.dot(x_ref[...], w_ref[...], preferred_element_type=jnp.float32)

    @pl.when(k == 0)
    def _():
        acc_ref[...] = partial

    @pl.when(k > 0)
    def _():
        acc_ref[...] += partial

    @pl.when(k == pl.num_programs(0) - 1)
    def _():
        y = acc_ref[...]
        mean = jnp.mean(y, axis=0, keepdims=True)        # per-column batch stats
        var = jnp.mean((y - mean) ** 2, axis=0, keepdims=True)
        y = (y - mean) * jax.lax.rsqrt(var + bn_eps)
        y = y * g_ref[...] + bt_ref[...]
        y = jnp.maximum(y, slope * y)
        o_ref[...] = y.astype(o_ref.dtype)


def conv2_layer(col, w, gamma, beta):
    M, K = col.shape
    Kw, N = w.shape
    assert K == Kw
    tk = _pick_tk(M, K, N)
    assert K % tk == 0

    kernel = functools.partial(_conv_bn_lrelu_kernel,
                               bn_eps=_BN_EPS, slope=_LRELU_SLOPE)
    estimate = 2 * (M * tk * 2 + tk * N * 2 + M * N * 2) + M * N * 4 + 4 * N * 4
    return pl.pallas_call(
        kernel,
        out_shape=jax.ShapeDtypeStruct((M, N), jnp.bfloat16),
        grid_spec=pltpu.PrefetchScalarGridSpec(
            num_scalar_prefetch=0,
            grid=(K // tk,),
            in_specs=[
                pl.BlockSpec((M, tk), lambda k: (0, k)),
                pl.BlockSpec((tk, N), lambda k: (k, 0)),
                pl.BlockSpec((1, N), lambda k: (0, 0)),
                pl.BlockSpec((1, N), lambda k: (0, 0)),
            ],
            out_specs=pl.BlockSpec((M, N), lambda k: (0, 0)),
            scratch_shapes=[pltpu.VMEM((M, N), jnp.float32)],
        ),
        compiler_params=pltpu.CompilerParams(
            dimension_semantics=("arbitrary",),
            vmem_limit_bytes=_vmem_limit_bytes(estimate),
        ),
    )(col, w, gamma, beta)


# ---------------------------------------------------------------------------
# Fused FC head: out = (LeakyReLU(BN1d(X @ W1))) @ w2^T + b2
# Grid = (core_split "parallel", cols_per_core "arbitrary"): each column block
# (tn=128) computes fc1+BN+LeakyReLU and accumulates its exact fc2 partial
# (BN stats are per-column) into a per-core resident (M,1) f32 block.
# fc1 bias dropped (cancelled by BN).  W1 streams in ~1.6 MB pipelined tiles.
# ---------------------------------------------------------------------------
def _fc_head_kernel(x_ref, w1_ref, g_ref, bt_ref, w2_ref, o_ref,
                    *, bn_eps, slope):
    j = pl.program_id(1)
    z = jnp.dot(x_ref[...], w1_ref[...], preferred_element_type=jnp.float32)
    mean = jnp.mean(z, axis=0, keepdims=True)
    var = jnp.mean((z - mean) ** 2, axis=0, keepdims=True)
    z = (z - mean) * jax.lax.rsqrt(var + bn_eps)
    z = z * g_ref[...] + bt_ref[...]
    z = jnp.maximum(z, slope * z)
    # fc2 partial contribution of this column block: (M, 1), f32 throughout.
    partial = jnp.sum(z * w2_ref[...], axis=1, keepdims=True)

    @pl.when(j == 0)
    def _():
        o_ref[...] = partial[None, :, :]

    @pl.when(j > 0)
    def _():
        o_ref[...] += partial[None, :, :]


def fused_fc_head(x, w1, gamma, beta, w2, b2, *, n_split=8, core_split=2):
    M, K = x.shape
    Kw, N = w1.shape
    assert K == Kw
    if N % n_split or (N // n_split) % 128:
        n_split = 1
    if n_split % core_split:
        core_split = 1
    cols_per_core = n_split // core_split
    tn = N // n_split

    kernel = functools.partial(_fc_head_kernel, bn_eps=_BN_EPS,
                               slope=_LRELU_SLOPE)

    estimate = (M * K * x.dtype.itemsize
                + 2 * (K * tn * 2 + 3 * tn * 4)
                + M * tn * 4 + 2 * core_split * M * 4)
    partials = pl.pallas_call(
        kernel,
        out_shape=jax.ShapeDtypeStruct((core_split, M, 1), jnp.float32),
        grid_spec=pltpu.PrefetchScalarGridSpec(
            num_scalar_prefetch=0,
            grid=(core_split, cols_per_core),
            in_specs=[
                pl.BlockSpec((M, K), lambda c, j: (0, 0)),
                pl.BlockSpec((K, tn), lambda c, j: (0, c * cols_per_core + j)),
                pl.BlockSpec((1, tn), lambda c, j: (0, c * cols_per_core + j)),
                pl.BlockSpec((1, tn), lambda c, j: (0, c * cols_per_core + j)),
                pl.BlockSpec((1, tn), lambda c, j: (0, c * cols_per_core + j)),
            ],
            out_specs=pl.BlockSpec((1, M, 1), lambda c, j: (c, 0, 0)),
        ),
        compiler_params=pltpu.CompilerParams(
            dimension_semantics=("parallel", "arbitrary"),
            vmem_limit_bytes=_vmem_limit_bytes(estimate),
        ),
    )(x, w1, gamma, beta, w2)
    # Tiny (core_split, M, 1) -> (M, 1) reduction + scalar bias.
    return jnp.sum(partials, axis=0) + b2.reshape(1, 1)


# ---------------------------------------------------------------------------
# Glue: NHWC im2col (plain JAX).  Feature order is (kh, kw, cin), matching the
# weight layout produced once in prepare_params.  Runs in the input dtype, so
# bf16 activations stay bf16 (no separate cast pass).
# ---------------------------------------------------------------------------
def im2col_nhwc(x, kh, kw, stride, pad):
    N, H, W, C = x.shape
    xp = jnp.pad(x, ((0, 0), (pad, pad), (pad, pad), (0, 0)))
    OH = (H + 2 * pad - kh) // stride + 1
    OW = (W + 2 * pad - kw) // stride + 1
    cols = []
    for i in range(kh):
        for j in range(kw):
            cols.append(xp[:, i:i + stride * OH:stride, j:j + stride * OW:stride, :])
    col = jnp.stack(cols, axis=3)                    # (N, OH, OW, kh*kw, C)
    col = col.reshape(N * OH * OW, kh * kw * C)      # rows: (n, oh, ow)
    return col, OH, OW


# ---------------------------------------------------------------------------
# Parameters (deterministic, DCGAN-style init: conv/linear ~ N(0, 0.02),
# BN weight ~ N(1, 0.02), biases = 0) — mnist configuration, PyTorch layouts.
# ---------------------------------------------------------------------------
def init_params(key):
    ks = jax.random.split(key, 6)
    return {
        "conv1_w": 0.02 * jax.random.normal(ks[0], (64, 1, 4, 4), jnp.float32),
        "conv1_b": jnp.zeros((64,), jnp.float32),
        "conv2_w": 0.02 * jax.random.normal(ks[1], (128, 64, 4, 4), jnp.float32),
        "conv2_b": jnp.zeros((128,), jnp.float32),
        "bn2_gamma": 1.0 + 0.02 * jax.random.normal(ks[2], (128,), jnp.float32),
        "bn2_beta": jnp.zeros((128,), jnp.float32),
        "fc1_w": 0.02 * jax.random.normal(ks[3], (1024, 128 * 7 * 7), jnp.float32),
        "fc1_b": jnp.zeros((1024,), jnp.float32),
        "bn3_gamma": 1.0 + 0.02 * jax.random.normal(ks[4], (1024,), jnp.float32),
        "bn3_beta": jnp.zeros((1024,), jnp.float32),
        "fc2_w": 0.02 * jax.random.normal(ks[5], (1, 1024), jnp.float32),
        "fc2_b": jnp.zeros((1,), jnp.float32),
    }


def prepare_params(p):
    """One-time conversion of PyTorch-layout params into matmul-ready layouts.
    conv2/fc1 weights in bf16; conv1 kept f32 (K=16, N=64: no MXU win, and the
    cast would be pure overhead).  conv2/fc1 biases are dropped: they are
    exactly cancelled by the batch-stat BatchNorm that follows."""
    def conv_w(w, dtype):  # (Cout, Cin, KH, KW) -> (KH*KW*Cin, Cout)
        co, ci, kh, kw = w.shape
        return jnp.transpose(w, (2, 3, 1, 0)).reshape(kh * kw * ci, co).astype(dtype)

    # fc1_w columns are ordered (c, h, w) for a PyTorch NCHW flatten; permute
    # once to (h, w, c) so the NHWC activation flattens with no per-call
    # transpose, then transpose to (K_in, N_out).
    fc1 = p["fc1_w"].reshape(1024, 128, 7, 7)
    fc1 = jnp.transpose(fc1, (2, 3, 1, 0)).reshape(7 * 7 * 128, 1024)

    return {
        "conv1_w": conv_w(p["conv1_w"], jnp.float32),
        "conv1_b": p["conv1_b"].reshape(1, -1).astype(jnp.float32),
        "conv2_w": conv_w(p["conv2_w"], jnp.bfloat16),
        "bn2_gamma": p["bn2_gamma"].reshape(1, -1).astype(jnp.float32),
        "bn2_beta": p["bn2_beta"].reshape(1, -1).astype(jnp.float32),
        "fc1_w": fc1.astype(jnp.bfloat16),
        "bn3_gamma": p["bn3_gamma"].reshape(1, -1).astype(jnp.float32),
        "bn3_beta": p["bn3_beta"].reshape(1, -1).astype(jnp.float32),
        "fc2_w": p["fc2_w"].reshape(1, -1).astype(jnp.float32),   # (1, 1024)
        "fc2_b": p["fc2_b"].astype(jnp.float32),
    }


# ---------------------------------------------------------------------------
# Full forward pass (prepped params).  Public input layout is NCHW like torch.
# ---------------------------------------------------------------------------
def discriminator_forward(pp, x):
    N = x.shape[0]
    xh = jnp.transpose(x, (0, 2, 3, 1))                     # NCHW -> NHWC, once

    # conv1: Conv2d(1, 64, 4, 2, 1) + LeakyReLU(0.2)
    col1, oh1, ow1 = im2col_nhwc(xh, 4, 4, 2, 1)            # (N*14*14, 16) f32
    h1 = conv1_layer(col1, pp["conv1_w"], pp["conv1_b"])    # (N*14*14, 64) bf16
    h1 = h1.reshape(N, oh1, ow1, 64)                        # stays NHWC, bf16

    # conv2: Conv2d(64, 128, 4, 2, 1) + BatchNorm2d(128) + LeakyReLU(0.2)
    col2, oh2, ow2 = im2col_nhwc(h1, 4, 4, 2, 1)            # (N*7*7, 1024) bf16
    h2 = conv2_layer(col2, pp["conv2_w"],
                     pp["bn2_gamma"], pp["bn2_beta"])       # (N*7*7, 128) bf16
    h2 = h2.reshape(N, oh2 * ow2 * 128)                     # NHWC flatten (h, w, c)

    # fc1 (Linear 6272->1024 + BatchNorm1d + LeakyReLU) fused with fc2 (1024->1)
    out = fused_fc_head(h2, pp["fc1_w"],
                        pp["bn3_gamma"], pp["bn3_beta"],
                        pp["fc2_w"], pp["fc2_b"])
    return out


# ---------------------------------------------------------------------------
# Pure-JAX f32 reference (PyTorch-layout params) for the correctness check
# ---------------------------------------------------------------------------
def _reference_forward(params, x):
    def conv(x, w, b):
        y = jax.lax.conv_general_dilated(
            x, w, window_strides=(2, 2), padding=((1, 1), (1, 1)),
            dimension_numbers=("NCHW", "OIHW", "NCHW"))
        return y + b.reshape(1, -1, 1, 1)

    def lrelu(x):
        return jnp.where(x > 0, x, 0.2 * x)

    def bn(x, g, bt, axes):
        m = jnp.mean(x, axis=axes, keepdims=True)
        v = jnp.mean((x - m) ** 2, axis=axes, keepdims=True)
        return (x - m) * jax.lax.rsqrt(v + 1e-5) * g + bt

    N = x.shape[0]
    h = lrelu(conv(x, params["conv1_w"], params["conv1_b"]))
    h = conv(h, params["conv2_w"], params["conv2_b"])
    h = lrelu(bn(h, params["bn2_gamma"].reshape(1, -1, 1, 1),
                 params["bn2_beta"].reshape(1, -1, 1, 1), (0, 2, 3)))
    h = h.reshape(N, -1)
    h = h @ params["fc1_w"].T + params["fc1_b"]
    h = lrelu(bn(h, params["bn3_gamma"].reshape(1, -1),
                 params["bn3_beta"].reshape(1, -1), (0,)))
    return h @ params["fc2_w"].T + params["fc2_b"]


if __name__ == "__main__":
    key = jax.random.PRNGKey(0)
    pkey, xkey = jax.random.split(key)
    params = init_params(pkey)
    prepped = prepare_params(params)

    # mnist discriminator: input must be (N, 1, 28, 28) because the FC layer is
    # hard-coded to 128*7*7 features.  Batch 8 keeps BatchNorm1d batch
    # statistics well-conditioned for the bf16-vs-f32 comparison.
    x = jax.random.normal(xkey, (8, 1, 28, 28), jnp.float32)

    fwd = jax.jit(discriminator_forward)
    out = jax.block_until_ready(fwd(prepped, x))
    ref = jax.block_until_ready(_reference_forward(params, x))

    assert out.shape == (8, 1)
    assert bool(jnp.all(jnp.isfinite(out)))
    assert bool(jnp.allclose(out, ref, rtol=5e-2, atol=5e-2)), (
        f"max abs err {float(jnp.max(jnp.abs(out - ref)))}")
    print("KERNEL_OK")
</pallas_src>

<mosaic_0001>
module attributes {stable_mosaic.version = 11 : i64} {
  func.func @_conv_lrelu_kernel(%arg0: i32, %arg1: memref<784x16xf32, #tpu.memory_space<vmem>>, %arg2: memref<16x64xf32, #tpu.memory_space<vmem>>, %arg3: memref<1x64xf32, #tpu.memory_space<vmem>>, %arg4: memref<784x64xbf16, #tpu.memory_space<vmem>>) attributes {dimension_semantics = [#tpu.dimension_semantics<parallel>], iteration_bounds = array<i64: 2>, scalar_prefetch = 0 : i64, scratch_operands = 0 : i64, tpu.core_type = #tpu.core_type<tc>, window_params = [{transform_indices = @transform_0, window_bounds = array<i64: 784, 16>}, {pipeline_mode = #tpu.pipeline_mode<synchronous>, transform_indices = @transform_1, window_bounds = array<i64: 16, 64>}, {pipeline_mode = #tpu.pipeline_mode<synchronous>, transform_indices = @transform_2, window_bounds = array<i64: 1, 64>}, {transform_indices = @transform_3, window_bounds = array<i64: 784, 64>}]} {
    %c0 = arith.constant 0 : index
    %c0_0 = arith.constant 0 : index
    %0 = vector.load %arg1[%c0, %c0_0] : memref<784x16xf32, #tpu.memory_space<vmem>>, vector<784x16xf32>
    %c0_1 = arith.constant 0 : index
    %c0_2 = arith.constant 0 : index
    %1 = vector.load %arg2[%c0_1, %c0_2] : memref<16x64xf32, #tpu.memory_space<vmem>>, vector<16x64xf32>
    %cst = arith.constant dense<0.000000e+00> : vector<784x64xf32>
    %2 = tpu.matmul %0, %1, %cst {dimension_numbers = #tpu.dot_dimension_numbers<[1], [0], [0], [1], [0, 0, 1, 1], [], []>} : vector<784x16xf32>, vector<16x64xf32>, vector<784x64xf32> -> vector<784x64xf32>
    %c0_3 = arith.constant 0 : index
    %c0_4 = arith.constant 0 : index
    %3 = vector.load %arg3[%c0_3, %c0_4] : memref<1x64xf32, #tpu.memory_space<vmem>>, vector<1x64xf32>
    %4 = vector.broadcast %3 : vector<1x64xf32> to vector<784x64xf32>
    %5 = arith.addf %2, %4 : vector<784x64xf32>
    %cst_5 = arith.constant 2.000000e-01 : f32
    %6 = vector.broadcast %cst_5 : f32 to vector<784x64xf32>
    %7 = arith.mulf %6, %5 : vector<784x64xf32>
    %8 = arith.maximumf %5, %7 : vector<784x64xf32>
    %9 = arith.truncf %8 : vector<784x64xf32> to vector<784x64xbf16>
    %c0_6 = arith.constant 0 : index
    %c0_7 = arith.constant 0 : index
    %10 = vector.load %arg4[%c0_6, %c0_7] : memref<784x64xbf16, #tpu.memory_space<vmem>>, vector<784x64xbf16>
    tpu.vector_store %arg4[%c0_6, %c0_7], %9 {strides = array<i32>} : memref<784x64xbf16, #tpu.memory_space<vmem>>, vector<784x64xbf16>,
    return
  }
  func.func @transform_0(%arg0: i32) -> (i32, i32) {
    %c0_i32 = arith.constant 0 : i32
    %c0_i32_0 = arith.constant 0 : i32
    return %arg0, %c0_i32 : i32, i32
  }
  func.func @transform_1(%arg0: i32) -> (i32, i32) {
    %c0_i32 = arith.constant 0 : i32
    %c0_i32_0 = arith.constant 0 : i32
    %c0_i32_1 = arith.constant 0 : i32
    return %c0_i32, %c0_i32_0 : i32, i32
  }
  func.func @transform_2(%arg0: i32) -> (i32, i32) {
    %c0_i32 = arith.constant 0 : i32
    %c0_i32_0 = arith.constant 0 : i32
    %c0_i32_1 = arith.constant 0 : i32
    return %c0_i32, %c0_i32_0 : i32, i32
  }
  func.func @transform_3(%arg0: i32) -> (i32, i32) {
    %c0_i32 = arith.constant 0 : i32
    %c0_i32_0 = arith.constant 0 : i32
    return %arg0, %c0_i32 : i32, i32
  }
}

module attributes {stable_mosaic.version = 11 : i64} {
  func.func @_conv_bn_lrelu_kernel(%arg0: i32, %arg1: memref<392x1024xbf16, #tpu.memory_space<vmem>>, %arg2: memref<1024x128xbf16, #tpu.memory_space<vmem>>, %arg3: memref<1x128xf32, #tpu.memory_space<vmem>>, %arg4: memref<1x128xf32, #tpu.memory_space<vmem>>, %arg5: memref<392x128xbf16, #tpu.memory_space<vmem>>, %arg6: memref<392x128xf32, #tpu.memory_space<vmem>>) attributes {dimension_semantics = [#tpu.dimension_semantics<arbitrary>], iteration_bounds = array<i64: 1>, scalar_prefetch = 0 : i64, scratch_operands = 1 : i64, tpu.core_type = #tpu.core_type<tc>, window_params = [{transform_indices = @transform_0, window_bounds = array<i64: 392, 1024>}, {transform_indices = @transform_1, window_bounds = array<i64: 1024, 128>}, {pipeline_mode = #tpu.pipeline_mode<synchronous>, transform_indices = @transform_2, window_bounds = array<i64: 1, 128>}, {pipeline_mode = #tpu.pipeline_mode<synchronous>, transform_indices = @transform_3, window_bounds = array<i64: 1, 128>}, {pipeline_mode = #tpu.pipeline_mode<synchronous>, transform_indices = @transform_4, window_bounds = array<i64: 392, 128>}]} {
    %c0 = arith.constant 0 : index
    %c0_0 = arith.constant 0 : index
    %0 = vector.load %arg1[%c0, %c0_0] : memref<392x1024xbf16, #tpu.memory_space<vmem>>, vector<392x1024xbf16>
    %c0_1 = arith.constant 0 : index
    %c0_2 = arith.constant 0 : index
    %1 = vector.load %arg2[%c0_1, %c0_2] : memref<1024x128xbf16, #tpu.memory_space<vmem>>, vector<1024x128xbf16>
    %cst = arith.constant dense<0.000000e+00> : vector<392x128xf32>
    %2 = tpu.matmul %0, %1, %cst {dimension_numbers = #tpu.dot_dimension_numbers<[1], [0], [0], [1], [0, 0, 1, 1], [], []>} : vector<392x1024xbf16>, vector<1024x128xbf16>, vector<392x128xf32> -> vector<392x128xf32>
    %c0_i32 = arith.constant 0 : i32
    %3 = arith.cmpi eq, %arg0, %c0_i32 : i32
    %4 = arith.extui %3 : i1 to i32
    %c0_i32_3 = arith.constant 0 : i32
    %5 = arith.cmpi ne, %4, %c0_i32_3 : i32
    scf.if %5 {
      %c0_8 = arith.constant 0 : index
      %c0_9 = arith.constant 0 : index
      %12 = vector.load %arg6[%c0_8, %c0_9] : memref<392x128xf32, #tpu.memory_space<vmem>>, vector<392x128xf32>
      tpu.vector_store %arg6[%c0_8, %c0_9], %2 {strides = array<i32>} : memref<392x128xf32, #tpu.memory_space<vmem>>, vector<392x128xf32>,
    } else {
    }
    %c0_i32_4 = arith.constant 0 : i32
    %6 = arith.cmpi sgt, %arg0, %c0_i32_4 : i32
    %7 = arith.extui %6 : i1 to i32
    %c0_i32_5 = arith.constant 0 : i32
    %8 = arith.cmpi ne, %7, %c0_i32_5 : i32
    scf.if %8 {
      %c0_8 = arith.constant 0 : index
      %c0_9 = arith.constant 0 : index
      %12 = vector.load %arg6[%c0_8, %c0_9] : memref<392x128xf32, #tpu.memory_space<vmem>>, vector<392x128xf32>
      %13 = arith.addf %12, %2 : vector<392x128xf32>
      %c0_10 = arith.constant 0 : index
      %c0_11 = arith.constant 0 : index
      %14 = vector.load %arg6[%c0_10, %c0_11] : memref<392x128xf32, #tpu.memory_space<vmem>>, vector<392x128xf32>
      tpu.vector_store %arg6[%c0_10, %c0_11], %13 {strides = array<i32>} : memref<392x128xf32, #tpu.memory_space<vmem>>, vector<392x128xf32>,
    } else {
    }
    %c0_i32_6 = arith.constant 0 : i32
    %9 = arith.cmpi eq, %arg0, %c0_i32_6 : i32
    %10 = arith.extui %9 : i1 to i32
    %c0_i32_7 = arith.constant 0 : i32
    %11 = arith.cmpi ne, %10, %c0_i32_7 : i32
    scf.if %11 {
      %c0_8 = arith.constant 0 : index
      %c0_9 = arith.constant 0 : index
      %12 = vector.load %arg6[%c0_8, %c0_9] : memref<392x128xf32, #tpu.memory_space<vmem>>, vector<392x128xf32>
      %cst_10 = arith.constant dense<0.000000e+00> : vector<128xf32>
      %13 = vector.multi_reduction <add>, %12, %cst_10 [0] : vector<392x128xf32> to vector<128xf32>
      %14 = vector.shape_cast %13 : vector<128xf32> to vector<1x128xf32>
      %cst_11 = arith.constant 3.920000e+02 : f32
      %15 = vector.broadcast %cst_11 : f32 to vector<1x128xf32>
      %16 = arith.divf %14, %15 : vector<1x128xf32>
      %17 = vector.broadcast %16 : vector<1x128xf32> to vector<392x128xf32>
      %18 = arith.subf %12, %17 : vector<392x128xf32>
      %19 = arith.mulf %18, %18 : vector<392x128xf32>
      %cst_12 = arith.constant dense<0.000000e+00> : vector<128xf32>
      %20 = vector.multi_reduction <add>, %19, %cst_12 [0] : vector<392x128xf32> to vector<128xf32>
      %21 = vector.shape_cast %20 : vector<128xf32> to vector<1x128xf32>
      %cst_13 = arith.constant 3.920000e+02 : f32
      %22 = vector.broadcast %cst_13 : f32 to vector<1x128xf32>
      %23 = arith.divf %21, %22 : vector<1x128xf32>
      %24 = vector.broadcast %16 : vector<1x128xf32> to vector<392x128xf32>
      %25 = arith.subf %12, %24 : vector<392x128xf32>
      %cst_14 = arith.constant 9.99999974E-6 : f32
      %26 = vector.broadcast %cst_14 : f32 to vector<1x128xf32>
      %27 = arith.addf %23, %26 : vector<1x128xf32>
      %28 = math.rsqrt %27 : vector<1x128xf32>
      %29 = vector.broadcast %28 : vector<1x128xf32> to vector<392x128xf32>
      %30 = arith.mulf %25, %29 : vector<392x128xf32>
      %c0_15 = arith.constant 0 : index
      %c0_16 = arith.constant 0 : index
      %31 = vector.load %arg3[%c0_15, %c0_16] : memref<1x128xf32, #tpu.memory_space<vmem>>, vector<1x128xf32>
      %32 = vector.broadcast %31 : vector<1x128xf32> to vector<392x128xf32>
      %33 = arith.mulf %30, %32 : vector<392x128xf32>
      %c0_17 = arith.constant 0 : index
      %c0_18 = arith.constant 0 : index
      %34 = vector.load %arg4[%c0_17, %c0_18] : memref<1x128xf32, #tpu.memory_space<vmem>>, vector<1x128xf32>
      %35 = vector.broadcast %34 : vector<1x128xf32> to vector<392x128xf32>
      %36 = arith.addf %33, %35 : vector<392x128xf32>
      %cst_19 = arith.constant 2.000000e-01 : f32
      %37 = vector.broadcast %cst_19 : f32 to vector<392x128xf32>
      %38 = arith.mulf %37, %36 : vector<392x128xf32>
      %39 = arith.maximumf %36, %38 : vector<392x128xf32>
      %40 = arith.truncf %39 : vector<392x128xf32> to vector<392x128xbf16>
      %c0_20 = arith.constant 0 : index
      %c0_21 = arith.constant 0 : index
      %41 = vector.load %arg5[%c0_20, %c0_21] : memref<392x128xbf16, #tpu.memory_space<vmem>>, vector<392x128xbf16>
      tpu.vector_store %arg5[%c0_20, %c0_21], %40 {strides = array<i32>} : memref<392x128xbf16, #tpu.memory_space<vmem>>, vector<392x128xbf16>,
    } else {
    }
    return
  }
  func.func @transform_0(%arg0: i32) -> (i32, i32) {
    %c0_i32 = arith.constant 0 : i32
    %c0_i32_0 = arith.constant 0 : i32
    return %c0_i32, %arg0 : i32, i32
  }
  func.func @transform_1(%arg0: i32) -> (i32, i32) {
    %c0_i32 = arith.constant 0 : i32
    %c0_i32_0 = arith.constant 0 : i32
    return %arg0, %c0_i32 : i32, i32
  }
  func.func @transform_2(%arg0: i32) -> (i32, i32) {
    %c0_i32 = arith.constant 0 : i32
    %c0_i32_0 = arith.constant 0 : i32
    %c0_i32_1 = arith.constant 0 : i32
    return %c0_i32, %c0_i32_0 : i32, i32
  }
  func.func @transform_3(%arg0: i32) -> (i32, i32) {
    %c0_i32 = arith.constant 0 : i32
    %c0_i32_0 = arith.constant 0 : i32
    %c0_i32_1 = arith.constant 0 : i32
    return %c0_i32, %c0_i32_0 : i32, i32
  }
  func.func @transform_4(%arg0: i32) -> (i32, i32) {
    %c0_i32 = arith.constant 0 : i32
    %c0_i32_0 = arith.constant 0 : i32
    %c0_i32_1 = arith.constant 0 : i32
    return %c0_i32, %c0_i32_0 : i32, i32
  }
}

module attributes {stable_mosaic.version = 11 : i64} {
  func.func @_fc_head_kernel(%arg0: i32, %arg1: i32, %arg2: memref<8x6272xbf16, #tpu.memory_space<vmem>>, %arg3: memref<6272x128xbf16, #tpu.memory_space<vmem>>, %arg4: memref<1x128xf32, #tpu.memory_space<vmem>>, %arg5: memref<1x128xf32, #tpu.memory_space<vmem>>, %arg6: memref<1x128xf32, #tpu.memory_space<vmem>>, %arg7: memref<1x8x1xf32, #tpu.memory_space<vmem>>) attributes {dimension_semantics = [#tpu.dimension_semantics<parallel>, #tpu.dimension_semantics<arbitrary>], iteration_bounds = array<i64: 2, 4>, scalar_prefetch = 0 : i64, scratch_operands = 0 : i64, tpu.core_type = #tpu.core_type<tc>, window_params = [{pipeline_mode = #tpu.pipeline_mode<synchronous>, transform_indices = @transform_0, window_bounds = array<i64: 8, 6272>}, {transform_indices = @transform_1, window_bounds = array<i64: 6272, 128>}, {transform_indices = @transform_2, window_bounds = array<i64: 1, 128>}, {transform_indices = @transform_3, window_bounds = array<i64: 1, 128>}, {transform_indices = @transform_4, window_bounds = array<i64: 1, 128>}, {transform_indices = @transform_5, window_bounds = array<i64: 1, 8, 1>}]} {
    %c0 = arith.constant 0 : index
    %c0_0 = arith.constant 0 : index
    %0 = vector.load %arg2[%c0, %c0_0] : memref<8x6272xbf16, #tpu.memory_space<vmem>>, vector<8x6272xbf16>
    %c0_1 = arith.constant 0 : index
    %c0_2 = arith.constant 0 : index
    %1 = vector.load %arg3[%c0_1, %c0_2] : memref<6272x128xbf16, #tpu.memory_space<vmem>>, vector<6272x128xbf16>
    %cst = arith.constant dense<0.000000e+00> : vector<8x128xf32>
    %2 = tpu.matmul %0, %1, %cst {dimension_numbers = #tpu.dot_dimension_numbers<[1], [0], [0], [1], [0, 0, 1, 1], [], []>} : vector<8x6272xbf16>, vector<6272x128xbf16>, vector<8x128xf32> -> vector<8x128xf32>
    %cst_3 = arith.constant dense<0.000000e+00> : vector<128xf32>
    %3 = vector.multi_reduction <add>, %2, %cst_3 [0] : vector<8x128xf32> to vector<128xf32>
    %4 = vector.shape_cast %3 : vector<128xf32> to vector<1x128xf32>
    %cst_4 = arith.constant 8.000000e+00 : f32
    %5 = vector.broadcast %cst_4 : f32 to vector<1x128xf32>
    %6 = arith.divf %4, %5 : vector<1x128xf32>
    %7 = vector.broadcast %6 : vector<1x128xf32> to vector<8x128xf32>
    %8 = arith.subf %2, %7 : vector<8x128xf32>
    %9 = arith.mulf %8, %8 : vector<8x128xf32>
    %cst_5 = arith.constant dense<0.000000e+00> : vector<128xf32>
    %10 = vector.multi_reduction <add>, %9, %cst_5 [0] : vector<8x128xf32> to vector<128xf32>
    %11 = vector.shape_cast %10 : vector<128xf32> to vector<1x128xf32>
    %cst_6 = arith.constant 8.000000e+00 : f32
    %12 = vector.broadcast %cst_6 : f32 to vector<1x128xf32>
    %13 = arith.divf %11, %12 : vector<1x128xf32>
    %14 = vector.broadcast %6 : vector<1x128xf32> to vector<8x128xf32>
    %15 = arith.subf %2, %14 : vector<8x128xf32>
    %cst_7 = arith.constant 9.99999974E-6 : f32
    %16 = vector.broadcast %cst_7 : f32 to vector<1x128xf32>
    %17 = arith.addf %13, %16 : vector<1x128xf32>
    %18 = math.rsqrt %17 : vector<1x128xf32>
    %19 = vector.broadcast %18 : vector<1x128xf32> to vector<8x128xf32>
    %20 = arith.mulf %15, %19 : vector<8x128xf32>
    %c0_8 = arith.constant 0 : index
    %c0_9 = arith.constant 0 : index
    %21 = vector.load %arg4[%c0_8, %c0_9] : memref<1x128xf32, #tpu.memory_space<vmem>>, vector<1x128xf32>
    %22 = vector.broadcast %21 : vector<1x128xf32> to vector<8x128xf32>
    %23 = arith.mulf %20, %22 : vector<8x128xf32>
    %c0_10 = arith.constant 0 : index
    %c0_11 = arith.constant 0 : index
    %24 = vector.load %arg5[%c0_10, %c0_11] : memref<1x128xf32, #tpu.memory_space<vmem>>, vector<1x128xf32>
    %25 = vector.broadcast %24 : vector<1x128xf32> to vector<8x128xf32>
    %26 = arith.addf %23, %25 : vector<8x128xf32>
    %cst_12 = arith.constant 2.000000e-01 : f32
    %27 = vector.broadcast %cst_12 : f32 to vector<8x128xf32>
    %28 = arith.mulf %27, %26 : vector<8x128xf32>
    %29 = arith.maximumf %26, %28 : vector<8x128xf32>
    %c0_13 = arith.constant 0 : index
    %c0_14 = arith.constant 0 : index
    %30 = vector.load %arg6[%c0_13, %c0_14] : memref<1x128xf32, #tpu.memory_space<vmem>>, vector<1x128xf32>
    %31 = vector.broadcast %30 : vector<1x128xf32> to vector<8x128xf32>
    %32 = arith.mulf %29, %31 : vector<8x128xf32>
    %cst_15 = arith.constant dense<0.000000e+00> : vector<8xf32>
    %33 = vector.multi_reduction <add>, %32, %cst_15 [1] : vector<8x128xf32> to vector<8xf32>
    %34 = vector.shape_cast %33 : vector<8xf32> to vector<8x1xf32>
    %c0_i32 = arith.constant 0 : i32
    %35 = arith.cmpi eq, %arg1, %c0_i32 : i32
    %36 = arith.extui %35 : i1 to i32
    %c0_i32_16 = arith.constant 0 : i32
    %37 = arith.cmpi ne, %36, %c0_i32_16 : i32
    scf.if %37 {
      %41 = vector.shape_cast %34 : vector<8x1xf32> to vector<1x8x1xf32>
      %c0_19 = arith.constant 0 : index
      %c0_20 = arith.constant 0 : index
      %c0_21 = arith.constant 0 : index
      %42 = vector.load %arg7[%c0_19, %c0_20, %c0_21] : memref<1x8x1xf32, #tpu.memory_space<vmem>>, vector<1x8x1xf32>
      tpu.vector_store %arg7[%c0_19, %c0_20, %c0_21], %41 {strides = array<i32>} : memref<1x8x1xf32, #tpu.memory_space<vmem>>, vector<1x8x1xf32>,
    } else {
    }
    %c0_i32_17 = arith.constant 0 : i32
    %38 = arith.cmpi sgt, %arg1, %c0_i32_17 : i32
    %39 = arith.extui %38 : i1 to i32
    %c0_i32_18 = arith.constant 0 : i32
    %40 = arith.cmpi ne, %39, %c0_i32_18 : i32
    scf.if %40 {
      %c0_19 = arith.constant 0 : index
      %c0_20 = arith.constant 0 : index
      %c0_21 = arith.constant 0 : index
      %41 = vector.load %arg7[%c0_19, %c0_20, %c0_21] : memref<1x8x1xf32, #tpu.memory_space<vmem>>, vector<1x8x1xf32>
      %42 = vector.shape_cast %34 : vector<8x1xf32> to vector<1x8x1xf32>
      %43 = arith.addf %41, %42 : vector<1x8x1xf32>
      %c0_22 = arith.constant 0 : index
      %c0_23 = arith.constant 0 : index
      %c0_24 = arith.constant 0 : index
      %44 = vector.load %arg7[%c0_22, %c0_23, %c0_24] : memref<1x8x1xf32, #tpu.memory_space<vmem>>, vector<1x8x1xf32>
      tpu.vector_store %arg7[%c0_22, %c0_23, %c0_24], %43 {strides = array<i32>} : memref<1x8x1xf32, #tpu.memory_space<vmem>>, vector<1x8x1xf32>,
    } else {
    }
    return
  }
  func.func @transform_0(%arg0: i32, %arg1: i32) -> (i32, i32) {
    %c0_i32 = arith.constant 0 : i32
    %c0_i32_0 = arith.constant 0 : i32
    %c0_i32_1 = arith.constant 0 : i32
    return %c0_i32, %c0_i32_0 : i32, i32
  }
  func.func @transform_1(%arg0: i32, %arg1: i32) -> (i32, i32) {
    %c4_i32 = arith.constant 4 : i32
    %0 = arith.muli %arg0, %c4_i32 : i32
    %1 = arith.addi %0, %arg1 : i32
    %c0_i32 = arith.constant 0 : i32
    %c0_i32_0 = arith.constant 0 : i32
    return %c0_i32, %1 : i32, i32
  }
  func.func @transform_2(%arg0: i32, %arg1: i32) -> (i32, i32) {
    %c4_i32 = arith.constant 4 : i32
    %0 = arith.muli %arg0, %c4_i32 : i32
    %1 = arith.addi %0, %arg1 : i32
    %c0_i32 = arith.constant 0 : i32
    %c0_i32_0 = arith.constant 0 : i32
    return %c0_i32, %1 : i32, i32
  }
  func.func @transform_3(%arg0: i32, %arg1: i32) -> (i32, i32) {
    %c4_i32 = arith.constant 4 : i32
    %0 = arith.muli %arg0, %c4_i32 : i32
    %1 = arith.addi %0, %arg1 : i32
    %c0_i32 = arith.constant 0 : i32
    %c0_i32_0 = arith.constant 0 : i32
    return %c0_i32, %1 : i32, i32
  }
  func.func @transform_4(%arg0: i32, %arg1: i32) -> (i32, i32) {
    %c4_i32 = arith.constant 4 : i32
    %0 = arith.muli %arg0, %c4_i32 : i32
    %1 = arith.addi %0, %arg1 : i32
    %c0_i32 = arith.constant 0 : i32
    %c0_i32_0 = arith.constant 0 : i32
    return %c0_i32, %1 : i32, i32
  }
  func.func @transform_5(%arg0: i32, %arg1: i32) -> (i32, i32, i32) {
    %c0_i32 = arith.constant 0 : i32
    %c0_i32_0 = arith.constant 0 : i32
    %c0_i32_1 = arith.constant 0 : i32
    return %arg0, %c0_i32, %c0_i32_0 : i32, i32, i32
  }
}

</mosaic_0001>

<bundles_post_ra>
// kernel: discriminator_forward.3
= control target key start
LH: loop header
LB: loop body
LE: loop exit
PB: predicated region body
PF: predicated region fallthrough
CT: control target
= control target key end

     0   :  { %s1484_s12 = smov 0   ;;  %s2015_s0 = inlined_call_operand.vmem [shape: f32[1568,16], index: 0, kind: input, shape index: {}]   ;;  %s2016_s1 = inlined_call_operand.vmem [shape: f32[16,64], index: 1, kind: input, shape index: {}]   ;;  %s2017_s2 = inlined_call_operand.vmem [shape: f32[1,64], index: 2, kind: input, shape index: {}]   ;;  %s2018_s3 = inlined_call_operand.vmem [shape: bf16[1568,64], index: 3, kind: output, shape index: {}]  }
   0x1 LB: > { %s1333_s13 = sadd.s32 4294967295, %s1462_s12   ;;  %p1337_p0 = scmp.ge.s32.totalorder %s1462_s12, 1  ;;  %s1462_s12 = sphi %s1484_s12, %s13_s12  }
   0x2   : > { %p138_p1 = scmp.lt.s32.totalorder %s1462_s12, 3 }
   0x4   : > { %p139_p2 = pnand %p1337_p0, %p138_p1 }
   0x5   : > { %s162_s18 = smul.u32 (!%p139_p2), 98, %s1333_s13 }
   0x6   : > { %142 = sbr.rel (%p139_p2) target bundleno = 349 (0x15d), region = 32 }
   0x7   : > { %p163_p3 = scmp.lt.s32.totalorder (!%p139_p2), %s162_s18, 195 }
   0xb   : > { %v273_v0 = vld [vmem:[%s2016_s1 + $0x8] sm:$0xff]  ;;  %v272_v1 = vld [vmem:[%s2016_s1] sm:$0xff]  ;;  %s2020_s18 = smov (!%p163_p3, %s162_s18), 195  ;;  %vm278_vm0 = vcmask 130048   ;;  %vm1178_vm1 = vcmask 519168  }
   0xc   : > { %1441 = vmatpush.msra.mxu2 %v273_v0  ;;  %587 = vmatpush.msra.mxu0 %v273_v0  ;;  %s1338_s19 = sshll.u32 %s2020_s18, 3  ;;  %s1339_s25 = sshll.u32 %s2020_s18, 2 }
   0xd   : > { %1440 = vmatpush.msra.mxu1 %v273_v0  ;;  %1442 = vmatpush.msra.mxu3 %v273_v0  ;;  %s1504_s22 = scalar_lea.vmem %s2015_s0, %s1338_s19  ;;  %s1653_s28 = scalar_lea.vmem %s2018_s3, %s1339_s25 }
   0xe   : > { %1444 = vmatpush.msra.mxu2 %v272_v1  ;;  %588 = vmatpush.msra.mxu0 %v272_v1  ;;  %v224_v2 = vld [vmem:[%s1504_s22 + $0x190] sm:$0xff]  ;;  %v174_v3 = vld [vmem:[%s1504_s22] sm:$0xff]  ;;  %v199_v4 = vld [vmem:[%s1504_s22 + $0xc8] sm:$0xff] }
   0xf   : > { %1443 = vmatpush.msra.mxu1 %v272_v1  ;;  %1445 = vmatpush.msra.mxu3 %v272_v1  ;;  %v249_v5 = vld [vmem:[%s1504_s22 + $0x258] sm:$0xff]  ;;  %v175_v7 = vld [vmem:[%s1504_s22 + $0x8] sm:$0xff]  ;;  %v200_v8 = vld [vmem:[%s1504_s22 + $0xd0] sm:$0xff] }
  0x10   : > { %1390 = vmatmul.msk.f32.vlgmr.msra.gmra.mxu2 %vm278_vm0, %v224_v2  ;;  %1340 = vmatmul.msk.f32.vlgmr.msra.gmra.mxu0 %vm278_vm0, %v174_v3  ;;  %v225_v6 = vld [vmem:[%s1504_s22 + $0x198] sm:$0xff]  ;;  %v250_v9 = vld [vmem:[%s1504_s22 + $0x260] sm:$0xff]  ;;  %v176_v11 = vld [vmem:[%s1504_s22 + $0x10] sm:$0xff] }
  0x11   : > { %1365 = vmatmul.msk.f32.vlgmr.msra.gmra.mxu1 %vm278_vm0, %v199_v4  ;;  %1415 = vmatmul.msk.f32.vlgmr.msra.gmra.mxu3 %vm278_vm0, %v249_v5  ;;  %v226_v10 = vld [vmem:[%s1504_s22 + $0x1a0] sm:$0xff]  ;;  %v201_v12 = vld [vmem:[%s1504_s22 + $0xd8] sm:$0xff]  ;;  %v251_v13 = vld [vmem:[%s1504_s22 + $0x268] sm:$0xff] }
  0x12   : > { %v227_v14 = vld [vmem:[%s1504_s22 + $0x1a8] sm:$0xff]  ;;  %v177_v15 = vld [vmem:[%s1504_s22 + $0x18] sm:$0xff]  ;;  %v202_v16 = vld [vmem:[%s1504_s22 + $0xe0] sm:$0xff] }
  0x13   : > { %v252_v17 = vld [vmem:[%s1504_s22 + $0x270] sm:$0xff]  ;;  %v178_v19 = vld [vmem:[%s1504_s22 + $0x20] sm:$0xff]  ;;  %v203_v20 = vld [vmem:[%s1504_s22 + $0xe8] sm:$0xff] }
  0x14   : > { %v228_v18 = vld [vmem:[%s1504_s22 + $0x1b0] sm:$0xff]  ;;  %v253_v21 = vld [vmem:[%s1504_s22 + $0x278] sm:$0xff]  ;;  %v179_v23 = vld [vmem:[%s1504_s22 + $0x28] sm:$0xff] }
  0x15   : > { %v229_v22 = vld [vmem:[%s1504_s22 + $0x1b8] sm:$0xff]  ;;  %v204_v24 = vld [vmem:[%s1504_s22 + $0xf0] sm:$0xff]  ;;  %v254_v25 = vld [vmem:[%s1504_s22 + $0x280] sm:$0xff] }
  0x16   : > { %v230_v26 = vld [vmem:[%s1504_s22 + $0x1c0] sm:$0xff]  ;;  %v180_v27 = vld [vmem:[%s1504_s22 + $0x30] sm:$0xff]  ;;  %v205_v28 = vld [vmem:[%s1504_s22 + $0xf8] sm:$0xff] }
  0x17   : > { %v255_v29 = vld [vmem:[%s1504_s22 + $0x288] sm:$0xff]  ;;  %v181_v31 = vld [vmem:[%s1504_s22 + $0x38] sm:$0xff]  ;;  %v206_v32 = vld [vmem:[%s1504_s22 + $0x100] sm:$0xff] }
  0x18   : > { %1391 = vmatmul.msk.f32.gmra.mxu2 %vm278_vm0, %v225_v6  ;;  %1341 = vmatmul.msk.f32.gmra.mxu0 %vm278_vm0, %v175_v7  ;;  %v231_v30 = vld [vmem:[%s1504_s22 + $0x1c8] sm:$0xff]  ;;  %v256_v33 = vld [vmem:[%s1504_s22 + $0x290] sm:$0xff]  ;;  %v182_v35 = vld [vmem:[%s1504_s22 + $0x40] sm:$0xff] }
  0x19   : > { %1366 = vmatmul.msk.f32.gmra.mxu1 %vm278_vm0, %v200_v8  ;;  %1416 = vmatmul.msk.f32.gmra.mxu3 %vm278_vm0, %v250_v9  ;;  %v232_v34 = vld [vmem:[%s1504_s22 + $0x1d0] sm:$0xff]  ;;  %v207_v36 = vld [vmem:[%s1504_s22 + $0x108] sm:$0xff]  ;;  %v257_v37 = vld [vmem:[%s1504_s22 + $0x298] sm:$0xff] }
  0x1a   : > { %v233_v38 = vld [vmem:[%s1504_s22 + $0x1d8] sm:$0xff]  ;;  %v183_v39 = vld [vmem:[%s1504_s22 + $0x48] sm:$0xff]  ;;  %v208_v40 = vld [vmem:[%s1504_s22 + $0x110] sm:$0xff] }
  0x1b   : > { %v258_v41 = vld [vmem:[%s1504_s22 + $0x2a0] sm:$0xff]  ;;  %v184_v43 = vld [vmem:[%s1504_s22 + $0x50] sm:$0xff]  ;;  %v209_v44 = vld [vmem:[%s1504_s22 + $0x118] sm:$0xff] }
  0x1c   : > { %v234_v42 = vld [vmem:[%s1504_s22 + $0x1e0] sm:$0xff]  ;;  %v259_v45 = vld [vmem:[%s1504_s22 + $0x2a8] sm:$0xff]  ;;  %v185_v47 = vld [vmem:[%s1504_s22 + $0x58] sm:$0xff] }
  0x1d   : > { %v235_v46 = vld [vmem:[%s1504_s22 + $0x1e8] sm:$0xff]  ;;  %v210_v48 = vld [vmem:[%s1504_s22 + $0x120] sm:$0xff]  ;;  %v260_v49 = vld [vmem:[%s1504_s22 + $0x2b0] sm:$0xff] }
  0x1e   : > { %v236_v50 = vld [vmem:[%s1504_s22 + $0x1f0] sm:$0xff]  ;;  %v186_v51 = vld [vmem:[%s1504_s22 + $0x60] sm:$0xff]  ;;  %v211_v52 = vld [vmem:[%s1504_s22 + $0x128] sm:$0xff] }
  0x1f   : > { %v261_v53 = vld [vmem:[%s1504_s22 + $0x2b8] sm:$0xff]  ;;  %v187_v55 = vld [vmem:[%s1504_s22 + $0x68] sm:$0xff]  ;;  %v212_v56 = vld [vmem:[%s1504_s22 + $0x130] sm:$0xff] }
  0x20   : > { %1392 = vmatmul.msk.f32.gmra.mxu2 %vm278_vm0, %v226_v10  ;;  %1342 = vmatmul.msk.f32.gmra.mxu0 %vm278_vm0, %v176_v11  ;;  %v237_v54 = vld [vmem:[%s1504_s22 + $0x1f8] sm:$0xff]  ;;  %v262_v57 = vld [vmem:[%s1504_s22 + $0x2c0] sm:$0xff]  ;;  %v188_v59 = vld [vmem:[%s1504_s22 + $0x70] sm:$0xff] }
  0x21   : > { %1367 = vmatmul.msk.f32.gmra.mxu1 %vm278_vm0, %v201_v12  ;;  %1417 = vmatmul.msk.f32.gmra.mxu3 %vm278_vm0, %v251_v13  ;;  %v238_v58 = vld [vmem:[%s1504_s22 + $0x200] sm:$0xff]  ;;  %v213_v60 = vld [vmem:[%s1504_s22 + $0x138] sm:$0xff]  ;;  %v263_v61 = vld [vmem:[%s1504_s22 + $0x2c8] sm:$0xff] }
  0x22   : > { %v239_v62 = vld [vmem:[%s1504_s22 + $0x208] sm:$0xff]  ;;  %v189_v63 = vld [vmem:[%s1504_s22 + $0x78] sm:$0xff]  ;;  %v214_v0 = vld [vmem:[%s1504_s22 + $0x140] sm:$0xff] }
  0x23   : > { %v264_v1 = vld [vmem:[%s1504_s22 + $0x2d0] sm:$0xff]  ;;  %v1636_v2 = vld [vmem:[%s2017_s2] ss:$0 sm:$0xff]  ;;  %v215_v8 = vld [vmem:[%s1504_s22 + $0x148] sm:$0xff] }
  0x24   : > { %v240_v3 = vld [vmem:[%s1504_s22 + $0x210] sm:$0xff]  ;;  %v190_v5 = vld [vmem:[%s1504_s22 + $0x80] sm:$0xff]  ;;  %v265_v10 = vld [vmem:[%s1504_s22 + $0x2d8] sm:$0xff] }
  0x28   : > { %1393 = vmatmul.msk.f32.gmra.mxu2 %vm278_vm0, %v227_v14  ;;  %1343 = vmatmul.msk.f32.gmra.mxu0 %vm278_vm0, %v177_v15 }
  0x29   : > { %1368 = vmatmul.msk.f32.gmra.mxu1 %vm278_vm0, %v202_v16  ;;  %1418 = vmatmul.msk.f32.gmra.mxu3 %vm278_vm0, %v252_v17 }
  0x30   : > { %1394 = vmatmul.msk.f32.gmra.mxu2 %vm278_vm0, %v228_v18  ;;  %1344 = vmatmul.msk.f32.gmra.mxu0 %vm278_vm0, %v178_v19  ;;  %v241_v19 = vld [vmem:[%s1504_s22 + $0x218] sm:$0xff] }
  0x31   : > { %1369 = vmatmul.msk.f32.gmra.mxu1 %vm278_vm0, %v203_v20  ;;  %1419 = vmatmul.msk.f32.gmra.mxu3 %vm278_vm0, %v253_v21  ;;  %v191_v21 = vld [vmem:[%s1504_s22 + $0x88] sm:$0xff] }
  0x38   : > { %1395 = vmatmul.msk.f32.gmra.mxu2 %vm278_vm0, %v229_v22  ;;  %1345 = vmatmul.msk.f32.gmra.mxu0 %vm278_vm0, %v179_v23 }
  0x39   : > { %1370 = vmatmul.msk.f32.gmra.mxu1 %vm278_vm0, %v204_v24  ;;  %1420 = vmatmul.msk.f32.gmra.mxu3 %vm278_vm0, %v254_v25 }
  0x40   : > { %1396 = vmatmul.msk.f32.gmra.mxu2 %vm278_vm0, %v230_v26  ;;  %1346 = vmatmul.msk.f32.gmra.mxu0 %vm278_vm0, %v180_v27  ;;  %v216_v26 = vld [vmem:[%s1504_s22 + $0x150] sm:$0xff] }
  0x41   : > { %1371 = vmatmul.msk.f32.gmra.mxu1 %vm278_vm0, %v205_v28  ;;  %1421 = vmatmul.msk.f32.gmra.mxu3 %vm278_vm0, %v255_v29  ;;  %v266_v29 = vld [vmem:[%s1504_s22 + $0x2e0] sm:$0xff] }
  0x48   : > { %1397 = vmatmul.msk.f32.gmra.mxu2 %vm278_vm0, %v231_v30  ;;  %1347 = vmatmul.msk.f32.gmra.mxu0 %vm278_vm0, %v181_v31 }
  0x49   : > { %1372 = vmatmul.msk.f32.gmra.mxu1 %vm278_vm0, %v206_v32  ;;  %1422 = vmatmul.msk.f32.gmra.mxu3 %vm278_vm0, %v256_v33 }
  0x50   : > { %1398 = vmatmul.msk.f32.gmra.mxu2 %vm278_vm0, %v232_v34  ;;  %1348 = vmatmul.msk.f32.gmra.mxu0 %vm278_vm0, %v182_v35 }
  0x51   : > { %1373 = vmatmul.msk.f32.gmra.mxu1 %vm278_vm0, %v207_v36  ;;  %1423 = vmatmul.msk.f32.gmra.mxu3 %vm278_vm0, %v257_v37 }
  0x58   : > { %1399 = vmatmul.msk.f32.gmra.mxu2 %vm278_vm0, %v233_v38  ;;  %1349 = vmatmul.msk.f32.gmra.mxu0 %vm278_vm0, %v183_v39 }
  0x59   : > { %1374 = vmatmul.msk.f32.gmra.mxu1 %vm278_vm0, %v208_v40  ;;  %1424 = vmatmul.msk.f32.gmra.mxu3 %vm278_vm0, %v258_v41 }
  0x60   : > { %1400 = vmatmul.msk.f32.gmra.mxu2 %vm278_vm0, %v234_v42  ;;  %1350 = vmatmul.msk.f32.gmra.mxu0 %vm278_vm0, %v184_v43  ;;  %v242_v43 = vld [vmem:[%s1504_s22 + $0x220] sm:$0xff] }
  0x61   : > { %1375 = vmatmul.msk.f32.gmra.mxu1 %vm278_vm0, %v209_v44  ;;  %1425 = vmatmul.msk.f32.gmra.mxu3 %vm278_vm0, %v259_v45  ;;  %v192_v45 = vld [vmem:[%s1504_s22 + $0x90] sm:$0xff] }
  0x68   : > { %1401 = vmatmul.msk.f32.gmra.mxu2 %vm278_vm0, %v235_v46  ;;  %1351 = vmatmul.msk.f32.gmra.mxu0 %vm278_vm0, %v185_v47 }
  0x69   : > { %1376 = vmatmul.msk.f32.gmra.mxu1 %vm278_vm0, %v210_v48  ;;  %1426 = vmatmul.msk.f32.gmra.mxu3 %vm278_vm0, %v260_v49 }
  0x70   : > { %1402 = vmatmul.msk.f32.gmra.mxu2 %vm278_vm0, %v236_v50  ;;  %1352 = vmatmul.msk.f32.gmra.mxu0 %vm278_vm0, %v186_v51  ;;  %v217_v50 = vld [vmem:[%s1504_s22 + $0x158] sm:$0xff] }
  0x71   : > { %1377 = vmatmul.msk.f32.gmra.mxu1 %vm278_vm0, %v211_v52  ;;  %1427 = vmatmul.msk.f32.gmra.mxu3 %vm278_vm0, %v261_v53  ;;  %v267_v53 = vld [vmem:[%s1504_s22 + $0x2e8] sm:$0xff] }
  0x78   : > { %1403 = vmatmul.msk.f32.gmra.mxu2 %vm278_vm0, %v237_v54  ;;  %1353 = vmatmul.msk.f32.gmra.mxu0 %vm278_vm0, %v187_v55 }
  0x79   : > { %1378 = vmatmul.msk.f32.gmra.mxu1 %vm278_vm0, %v212_v56  ;;  %1428 = vmatmul.msk.f32.gmra.mxu3 %vm278_vm0, %v262_v57 }
  0x80   : > { %1404 = vmatmul.msk.f32.gmra.mxu2 %vm278_vm0, %v238_v58  ;;  %1354 = vmatmul.msk.f32.gmra.mxu0 %vm278_vm0, %v188_v59 }
  0x81   : > { %1379 = vmatmul.msk.f32.gmra.mxu1 %vm278_vm0, %v213_v60  ;;  %1429 = vmatmul.msk.f32.gmra.mxu3 %vm278_vm0, %v263_v61 }
  0x88   : > { %1405 = vmatmul.msk.f32.gmra.mxu2 %vm278_vm0, %v239_v62  ;;  %1355 = vmatmul.msk.f32.gmra.mxu0 %vm278_vm0, %v189_v63 }
  0x89   : > { %1380 = vmatmul.msk.f32.gmra.mxu1 %vm278_vm0, %v214_v0  ;;  %1430 = vmatmul.msk.f32.gmra.mxu3 %vm278_vm0, %v264_v1 }
  0x8d   : > { %v590_v4 = vpop.f32.mrf.mxu0 }
  0x8e   : > { %v591_v6 = vadd.f32 %v1636_v2, %v590_v4  ;;  %v665_v7 = vpop.f32.mrf.mxu1  ;;  %v243_v4 = vld [vmem:[%s1504_s22 + $0x228] sm:$0xff] }
  0x8f   : > { %v666_v9 = vadd.f32 %v1636_v2, %v665_v7 }
  0x90   : > { %1406 = vmatmul.msk.f32.gmra.mxu2 %vm278_vm0, %v240_v3  ;;  %v884_v11 = vmul.f32 0.2, %v591_v6  ;;  %1356 = vmatmul.msk.f32.gmra.mxu0 %vm278_vm0, %v190_v5 }
  0x91   : > { %v909_v12 = vmul.f32 0.2, %v666_v9  ;;  %1381 = vmatmul.msk.f32.gmra.mxu1 %vm278_vm0, %v215_v8  ;;  %1431 = vmatmul.msk.f32.gmra.mxu3 %vm278_vm0, %v265_v10 }
  0x92   : > { %v982_v13 = vmax.f32 %v591_v6, %v884_v11  ;;  %v193_v6 = vld [vmem:[%s1504_s22 + $0x98] sm:$0xff]  ;;  %v218_v11 = vld [vmem:[%s1504_s22 + $0x160] sm:$0xff] }
  0x93   : > { %v1007_v14 = vmax.f32 %v666_v9, %v909_v12  ;;  %v740_v15 = vpop.f32.mrf.mxu2 }
  0x94   : > { %v1080_v16 = vpack.c.bf16 %v982_v13, %v982_v13  ;;  %v741_v17 = vadd.f32 %v1636_v2, %v740_v15  ;;  %v815_v22 = vpop.f32.mrf.mxu3 }
  0x95   : > { %v1105_v18 = vpack.c.bf16 %v1007_v14, %v1007_v14  ;;  %v593_v20 = vpop.f32.mrf.mxu0  ;;  %v816_v27 = vadd.f32 %v1636_v2, %v815_v22  ;;  %v268_v14 = vld [vmem:[%s1504_s22 + $0x2f0] sm:$0xff] }
  0x96   : > { %1179 = vst.msk [vmem:[%s1653_s28] sm:$0xf] %vm1178_vm1, %v1080_v16  ;;  %v934_v23 = vmul.f32 0.2, %v741_v17  ;;  %v594_v24 = vadd.f32 %v1636_v2, %v593_v20  ;;  %v668_v25 = vpop.f32.mrf.mxu1 }
  0x97   : > { %1204 = vst.msk [vmem:[%s1653_s28 + $0x64] sm:$0xf] %vm1178_vm1, %v1105_v18  ;;  %v669_v28 = vadd.f32 %v1636_v2, %v668_v25  ;;  %v959_v32 = vmul.f32 0.2, %v816_v27 }
  0x98   : > { %v1032_v30 = vmax.f32 %v741_v17, %v934_v23  ;;  %1407 = vmatmul.msk.f32.gmra.mxu2 %vm278_vm0, %v241_v19  ;;  %v885_v31 = vmul.f32 0.2, %v594_v24  ;;  %1357 = vmatmul.msk.f32.gmra.mxu0 %vm278_vm0, %v191_v21 }
  0x99   : > { %v910_v33 = vmul.f32 0.2, %v669_v28  ;;  %1382 = vmatmul.msk.f32.gmra.mxu1 %vm278_vm0, %v216_v26  ;;  %v1057_v36 = vmax.f32 %v816_v27, %v959_v32  ;;  %1432 = vmatmul.msk.f32.gmra.mxu3 %vm278_vm0, %v266_v29 }
  0x9a   : > { %v1130_v34 = vpack.c.bf16 %v1032_v30, %v1032_v30  ;;  %v983_v35 = vmax.f32 %v594_v24, %v885_v31  ;;  %v194_v30 = vld [vmem:[%s1504_s22 + $0xa0] sm:$0xff] }
  0x9b   : > { %v1008_v37 = vmax.f32 %v669_v28, %v910_v33  ;;  %v743_v38 = vpop.f32.mrf.mxu2  ;;  %v1155_v41 = vpack.c.bf16 %v1057_v36, %v1057_v36  ;;  %v244_v28 = vld [vmem:[%s1504_s22 + $0x230] sm:$0xff] }
  0x9c   : > { %1229 = vst.msk [vmem:[%s1653_s28 + $0xc8] sm:$0xf] %vm1178_vm1, %v1130_v34  ;;  %v1081_v39 = vpack.c.bf16 %v983_v35, %v983_v35  ;;  %v744_v40 = vadd.f32 %v1636_v2, %v743_v38  ;;  %v818_v46 = vpop.f32.mrf.mxu3  ;;  %v219_v35 = vld [vmem:[%s1504_s22 + $0x168] sm:$0xff]  ;;  %v269_v38 = vld [vmem:[%s1504_s22 + $0x2f8] sm:$0xff] }
  0x9d   : > { %v1106_v42 = vpack.c.bf16 %v1008_v37, %v1008_v37  ;;  %v596_v44 = vpop.f32.mrf.mxu0  ;;  %v819_v51 = vadd.f32 %v1636_v2, %v818_v46  ;;  %1254 = vst.msk [vmem:[%s1653_s28 + $0x12c] sm:$0xf] %vm1178_vm1, %v1155_v41 }
  0x9e   : > { %1180 = vst.msk [vmem:[%s1653_s28 + $0x4] sm:$0xf] %vm1178_vm1, %v1081_v39  ;;  %v935_v47 = vmul.f32 0.2, %v744_v40  ;;  %v597_v48 = vadd.f32 %v1636_v2, %v596_v44  ;;  %v671_v49 = vpop.f32.mrf.mxu1 }
  0x9f   : > { %1205 = vst.msk [vmem:[%s1653_s28 + $0x68] sm:$0xf] %vm1178_vm1, %v1106_v42  ;;  %v672_v52 = vadd.f32 %v1636_v2, %v671_v49  ;;  %v960_v56 = vmul.f32 0.2, %v819_v51 }
  0xa0   : > { %v1033_v54 = vmax.f32 %v744_v40, %v935_v47  ;;  %1408 = vmatmul.msk.f32.gmra.mxu2 %vm278_vm0, %v242_v43  ;;  %v886_v55 = vmul.f32 0.2, %v597_v48  ;;  %1358 = vmatmul.msk.f32.gmra.mxu0 %vm278_vm0, %v192_v45 }
  0xa1   : > { %v911_v57 = vmul.f32 0.2, %v672_v52  ;;  %1383 = vmatmul.msk.f32.gmra.mxu1 %vm278_vm0, %v217_v50  ;;  %v1058_v60 = vmax.f32 %v819_v51, %v960_v56  ;;  %1433 = vmatmul.msk.f32.gmra.mxu3 %vm278_vm0, %v267_v53 }
  0xa2   : > { %v1131_v58 = vpack.c.bf16 %v1033_v54, %v1033_v54  ;;  %v984_v59 = vmax.f32 %v597_v48, %v886_v55  ;;  %v195_v54 = vld [vmem:[%s1504_s22 + $0xa8] sm:$0xff] }
  0xa3   : > { %v1009_v61 = vmax.f32 %v672_v52, %v911_v57  ;;  %v746_v62 = vpop.f32.mrf.mxu2  ;;  %v1156_v1 = vpack.c.bf16 %v1058_v60, %v1058_v60  ;;  %v245_v52 = vld [vmem:[%s1504_s22 + $0x238] sm:$0xff] }
  0xa4   : > { %1230 = vst.msk [vmem:[%s1653_s28 + $0xcc] sm:$0xf] %vm1178_vm1, %v1131_v58  ;;  %v1082_v63 = vpack.c.bf16 %v984_v59, %v984_v59  ;;  %v747_v0 = vadd.f32 %v1636_v2, %v746_v62  ;;  %v821_v7 = vpop.f32.mrf.mxu3  ;;  %v220_v59 = vld [vmem:[%s1504_s22 + $0x170] sm:$0xff]  ;;  %v270_v62 = vld [vmem:[%s1504_s22 + $0x300] sm:$0xff] }
  0xa5   : > { %v1107_v3 = vpack.c.bf16 %v1009_v61, %v1009_v61  ;;  %v599_v5 = vpop.f32.mrf.mxu0  ;;  %v822_v12 = vadd.f32 %v1636_v2, %v821_v7  ;;  %1255 = vst.msk [vmem:[%s1653_s28 + $0x130] sm:$0xf] %vm1178_vm1, %v1156_v1 }
  0xa6   : > { %1181 = vst.msk [vmem:[%s1653_s28 + $0x8] sm:$0xf] %vm1178_vm1, %v1082_v63  ;;  %v936_v8 = vmul.f32 0.2, %v747_v0  ;;  %v600_v9 = vadd.f32 %v1636_v2, %v599_v5  ;;  %v674_v10 = vpop.f32.mrf.mxu1 }
  0xa7   : > { %1206 = vst.msk [vmem:[%s1653_s28 + $0x6c] sm:$0xf] %vm1178_vm1, %v1107_v3  ;;  %v675_v13 = vadd.f32 %v1636_v2, %v674_v10  ;;  %v961_v17 = vmul.f32 0.2, %v822_v12 }
  0xa8   : > { %v1034_v15 = vmax.f32 %v747_v0, %v936_v8  ;;  %1409 = vmatmul.msk.f32.gmra.mxu2 %vm278_vm0, %v243_v4  ;;  %v887_v16 = vmul.f32 0.2, %v600_v9  ;;  %1359 = vmatmul.msk.f32.gmra.mxu0 %vm278_vm0, %v193_v6 }
  0xa9   : > { %v912_v18 = vmul.f32 0.2, %v675_v13  ;;  %1384 = vmatmul.msk.f32.gmra.mxu1 %vm278_vm0, %v218_v11  ;;  %v1059_v21 = vmax.f32 %v822_v12, %v961_v17  ;;  %1434 = vmatmul.msk.f32.gmra.mxu3 %vm278_vm0, %v268_v14 }
  0xaa   : > { %v1132_v19 = vpack.c.bf16 %v1034_v15, %v1034_v15  ;;  %v985_v20 = vmax.f32 %v600_v9, %v887_v16  ;;  %v196_v15 = vld [vmem:[%s1504_s22 + $0xb0] sm:$0xff] }
  0xab   : > { %v1010_v22 = vmax.f32 %v675_v13, %v912_v18  ;;  %v749_v23 = vpop.f32.mrf.mxu2  ;;  %v1157_v26 = vpack.c.bf16 %v1059_v21, %v1059_v21  ;;  %v246_v13 = vld [vmem:[%s1504_s22 + $0x240] sm:$0xff] }
  0xac   : > { %1231 = vst.msk [vmem:[%s1653_s28 + $0xd0] sm:$0xf] %vm1178_vm1, %v1132_v19  ;;  %v1083_v24 = vpack.c.bf16 %v985_v20, %v985_v20  ;;  %v750_v25 = vadd.f32 %v1636_v2, %v749_v23  ;;  %v824_v31 = vpop.f32.mrf.mxu3  ;;  %v221_v20 = vld [vmem:[%s1504_s22 + $0x178] sm:$0xff]  ;;  %v271_v23 = vld [vmem:[%s1504_s22 + $0x308] sm:$0xff] }
  0xad   : > { %v1108_v27 = vpack.c.bf16 %v1010_v22, %v1010_v22  ;;  %v602_v29 = vpop.f32.mrf.mxu0  ;;  %v825_v36 = vadd.f32 %v1636_v2, %v824_v31  ;;  %1256 = vst.msk [vmem:[%s1653_s28 + $0x134] sm:$0xf] %vm1178_vm1, %v1157_v26 }
  0xae   : > { %1182 = vst.msk [vmem:[%s1653_s28 + $0xc] sm:$0xf] %vm1178_vm1, %v1083_v24  ;;  %v937_v32 = vmul.f32 0.2, %v750_v25  ;;  %v603_v33 = vadd.f32 %v1636_v2, %v602_v29  ;;  %v677_v34 = vpop.f32.mrf.mxu1 }
  0xaf   : > { %1207 = vst.msk [vmem:[%s1653_s28 + $0x70] sm:$0xf] %vm1178_vm1, %v1108_v27  ;;  %v678_v37 = vadd.f32 %v1636_v2, %v677_v34  ;;  %v962_v41 = vmul.f32 0.2, %v825_v36 }
  0xb0   : > { %v1035_v39 = vmax.f32 %v750_v25, %v937_v32  ;;  %1410 = vmatmul.msk.f32.gmra.mxu2 %vm278_vm0, %v244_v28  ;;  %v888_v40 = vmul.f32 0.2, %v603_v33  ;;  %1360 = vmatmul.msk.f32.gmra.mxu0 %vm278_vm0, %v194_v30 }
  0xb1   : > { %v913_v42 = vmul.f32 0.2, %v678_v37  ;;  %1385 = vmatmul.msk.f32.gmra.mxu1 %vm278_vm0, %v219_v35  ;;  %v1060_v45 = vmax.f32 %v825_v36, %v962_v41  ;;  %1435 = vmatmul.msk.f32.gmra.mxu3 %vm278_vm0, %v269_v38 }
  0xb2   : > { %v1133_v43 = vpack.c.bf16 %v1035_v39, %v1035_v39  ;;  %v986_v44 = vmax.f32 %v603_v33, %v888_v40  ;;  %v197_v39 = vld [vmem:[%s1504_s22 + $0xb8] sm:$0xff] }
  0xb3   : > { %v1011_v46 = vmax.f32 %v678_v37, %v913_v42  ;;  %v752_v47 = vpop.f32.mrf.mxu2  ;;  %v1158_v50 = vpack.c.bf16 %v1060_v45, %v1060_v45  ;;  %v247_v37 = vld [vmem:[%s1504_s22 + $0x248] sm:$0xff] }
  0xb4   : > { %1232 = vst.msk [vmem:[%s1653_s28 + $0xd4] sm:$0xf] %vm1178_vm1, %v1133_v43  ;;  %v1084_v48 = vpack.c.bf16 %v986_v44, %v986_v44  ;;  %v753_v49 = vadd.f32 %v1636_v2, %v752_v47  ;;  %v827_v55 = vpop.f32.mrf.mxu3  ;;  %v222_v44 = vld [vmem:[%s1504_s22 + $0x180] sm:$0xff] }
  0xb5   : > { %v1109_v51 = vpack.c.bf16 %v1011_v46, %v1011_v46  ;;  %v605_v53 = vpop.f32.mrf.mxu0  ;;  %v828_v60 = vadd.f32 %v1636_v2, %v827_v55  ;;  %1257 = vst.msk [vmem:[%s1653_s28 + $0x138] sm:$0xf] %vm1178_vm1, %v1158_v50 }
  0xb6   : > { %1183 = vst.msk [vmem:[%s1653_s28 + $0x10] sm:$0xf] %vm1178_vm1, %v1084_v48  ;;  %v938_v56 = vmul.f32 0.2, %v753_v49  ;;  %v606_v57 = vadd.f32 %v1636_v2, %v605_v53  ;;  %v680_v58 = vpop.f32.mrf.mxu1 }
  0xb7   : > { %1208 = vst.msk [vmem:[%s1653_s28 + $0x74] sm:$0xf] %vm1178_vm1, %v1109_v51  ;;  %v681_v61 = vadd.f32 %v1636_v2, %v680_v58  ;;  %v963_v1 = vmul.f32 0.2, %v828_v60 }
  0xb8   : > { %v1036_v63 = vmax.f32 %v753_v49, %v938_v56  ;;  %1411 = vmatmul.msk.f32.gmra.mxu2 %vm278_vm0, %v245_v52  ;;  %v889_v0 = vmul.f32 0.2, %v606_v57  ;;  %1361 = vmatmul.msk.f32.gmra.mxu0 %vm278_vm0, %v195_v54 }
  0xb9   : > { %v914_v3 = vmul.f32 0.2, %v681_v61  ;;  %1386 = vmatmul.msk.f32.gmra.mxu1 %vm278_vm0, %v220_v59  ;;  %v1061_v6 = vmax.f32 %v828_v60, %v963_v1  ;;  %1436 = vmatmul.msk.f32.gmra.mxu3 %vm278_vm0, %v270_v62  ;;  %v248_v60 = vld [vmem:[%s1504_s22 + $0x250] sm:$0xff]  ;;  %v198_v62 = vld [vmem:[%s1504_s22 + $0xc0] sm:$0xff] }
  0xba   : > { %v1134_v4 = vpack.c.bf16 %v1036_v63, %v1036_v63  ;;  %v987_v5 = vmax.f32 %v606_v57, %v889_v0 }
  0xbb   : > { %v1012_v7 = vmax.f32 %v681_v61, %v914_v3  ;;  %v755_v8 = vpop.f32.mrf.mxu2  ;;  %v1159_v11 = vpack.c.bf16 %v1061_v6, %v1061_v6 }
  0xbc   : > { %1233 = vst.msk [vmem:[%s1653_s28 + $0xd8] sm:$0xf] %vm1178_vm1, %v1134_v4  ;;  %v1085_v9 = vpack.c.bf16 %v987_v5, %v987_v5  ;;  %v756_v10 = vadd.f32 %v1636_v2, %v755_v8  ;;  %v830_v16 = vpop.f32.mrf.mxu3  ;;  %v223_v4 = vld [vmem:[%s1504_s22 + $0x188] sm:$0xff] }
  0xbd   : > { %v1110_v12 = vpack.c.bf16 %v1012_v7, %v1012_v7  ;;  %v608_v14 = vpop.f32.mrf.mxu0  ;;  %v831_v21 = vadd.f32 %v1636_v2, %v830_v16  ;;  %1258 = vst.msk [vmem:[%s1653_s28 + $0x13c] sm:$0xf] %vm1178_vm1, %v1159_v11 }
  0xbe   : > { %1184 = vst.msk [vmem:[%s1653_s28 + $0x14] sm:$0xf] %vm1178_vm1, %v1085_v9  ;;  %v939_v17 = vmul.f32 0.2, %v756_v10  ;;  %v609_v18 = vadd.f32 %v1636_v2, %v608_v14  ;;  %v683_v19 = vpop.f32.mrf.mxu1 }
  0xbf   : > { %1209 = vst.msk [vmem:[%s1653_s28 + $0x78] sm:$0xf] %vm1178_vm1, %v1110_v12  ;;  %v684_v22 = vadd.f32 %v1636_v2, %v683_v19  ;;  %v964_v26 = vmul.f32 0.2, %v831_v21 }
  0xc0   : > { %v1037_v24 = vmax.f32 %v756_v10, %v939_v17  ;;  %1412 = vmatmul.msk.f32.gmra.mxu2 %vm278_vm0, %v246_v13  ;;  %v890_v25 = vmul.f32 0.2, %v609_v18  ;;  %1362 = vmatmul.msk.f32.gmra.mxu0 %vm278_vm0, %v196_v15 }
  0xc1   : > { %v915_v27 = vmul.f32 0.2, %v684_v22  ;;  %1387 = vmatmul.msk.f32.gmra.mxu1 %vm278_vm0, %v221_v20  ;;  %v1062_v30 = vmax.f32 %v831_v21, %v964_v26  ;;  %1437 = vmatmul.msk.f32.gmra.mxu3 %vm278_vm0, %v271_v23 }
  0xc2   : > { %v1135_v28 = vpack.c.bf16 %v1037_v24, %v1037_v24  ;;  %v988_v29 = vmax.f32 %v609_v18, %v890_v25 }
  0xc3   : > { %v1013_v31 = vmax.f32 %v684_v22, %v915_v27  ;;  %v758_v32 = vpop.f32.mrf.mxu2  ;;  %v1160_v35 = vpack.c.bf16 %v1062_v30, %v1062_v30 }
  0xc4   : > { %1234 = vst.msk [vmem:[%s1653_s28 + $0xdc] sm:$0xf] %vm1178_vm1, %v1135_v28  ;;  %v1086_v33 = vpack.c.bf16 %v988_v29, %v988_v29  ;;  %v759_v34 = vadd.f32 %v1636_v2, %v758_v32  ;;  %v833_v40 = vpop.f32.mrf.mxu3 }
  0xc5   : > { %v1111_v36 = vpack.c.bf16 %v1013_v31, %v1013_v31  ;;  %v611_v38 = vpop.f32.mrf.mxu0  ;;  %v834_v45 = vadd.f32 %v1636_v2, %v833_v40  ;;  %1259 = vst.msk [vmem:[%s1653_s28 + $0x140] sm:$0xf] %vm1178_vm1, %v1160_v35 }
  0xc6   : > { %1185 = vst.msk [vmem:[%s1653_s28 + $0x18] sm:$0xf] %vm1178_vm1, %v1086_v33  ;;  %v940_v41 = vmul.f32 0.2, %v759_v34  ;;  %v612_v42 = vadd.f32 %v1636_v2, %v611_v38  ;;  %v686_v43 = vpop.f32.mrf.mxu1 }
  0xc7   : > { %1210 = vst.msk [vmem:[%s1653_s28 + $0x7c] sm:$0xf] %vm1178_vm1, %v1111_v36  ;;  %v687_v46 = vadd.f32 %v1636_v2, %v686_v43  ;;  %v965_v49 = vmul.f32 0.2, %v834_v45 }
  0xc8   : > { %v1038_v47 = vmax.f32 %v759_v34, %v940_v41  ;;  %1413 = vmatmul.msk.f32.gmra.mxu2 %vm278_vm0, %v247_v37  ;;  %v891_v48 = vmul.f32 0.2, %v612_v42  ;;  %1363 = vmatmul.msk.f32.gmra.mxu0 %vm278_vm0, %v197_v39 }
  0xc9   : > { %v916_v50 = vmul.f32 0.2, %v687_v46  ;;  %1388 = vmatmul.msk.f32.gmra.mxu1 %vm278_vm0, %v222_v44  ;;  %v1063_v53 = vmax.f32 %v834_v45, %v965_v49 }
  0xca   : > { %v1136_v51 = vpack.c.bf16 %v1038_v47, %v1038_v47  ;;  %v989_v52 = vmax.f32 %v612_v42, %v891_v48 }
  0xcb   : > { %v1014_v54 = vmax.f32 %v687_v46, %v916_v50  ;;  %v761_v55 = vpop.f32.mrf.mxu2  ;;  %v1161_v58 = vpack.c.bf16 %v1063_v53, %v1063_v53 }
  0xcc   : > { %1235 = vst.msk [vmem:[%s1653_s28 + $0xe0] sm:$0xf] %vm1178_vm1, %v1136_v51  ;;  %v1087_v56 = vpack.c.bf16 %v989_v52, %v989_v52  ;;  %v762_v57 = vadd.f32 %v1636_v2, %v761_v55  ;;  %v836_v63 = vpop.f32.mrf.mxu3 }
  0xcd   : > { %v1112_v59 = vpack.c.bf16 %v1014_v54, %v1014_v54  ;;  %v614_v61 = vpop.f32.mrf.mxu0  ;;  %v837_v5 = vadd.f32 %v1636_v2, %v836_v63  ;;  %1260 = vst.msk [vmem:[%s1653_s28 + $0x144] sm:$0xf] %vm1178_vm1, %v1161_v58 }
  0xce   : > { %1186 = vst.msk [vmem:[%s1653_s28 + $0x1c] sm:$0xf] %vm1178_vm1, %v1087_v56  ;;  %v941_v0 = vmul.f32 0.2, %v762_v57  ;;  %v615_v1 = vadd.f32 %v1636_v2, %v614_v61  ;;  %v689_v3 = vpop.f32.mrf.mxu1 }
  0xcf   : > { %1211 = vst.msk [vmem:[%s1653_s28 + $0x80] sm:$0xf] %vm1178_vm1, %v1112_v59  ;;  %v690_v6 = vadd.f32 %v1636_v2, %v689_v3  ;;  %v966_v9 = vmul.f32 0.2, %v837_v5 }
  0xd0   : > { %v1039_v7 = vmax.f32 %v762_v57, %v941_v0  ;;  %1414 = vmatmul.msk.f32.gmra.mxu2 %vm278_vm0, %v248_v60  ;;  %v892_v8 = vmul.f32 0.2, %v615_v1  ;;  %1364 = vmatmul.msk.f32.gmra.mxu0 %vm278_vm0, %v198_v62 }
  0xd1   : > { %v917_v10 = vmul.f32 0.2, %v690_v6  ;;  %1389 = vmatmul.msk.f32.gmra.mxu1 %vm278_vm0, %v223_v4  ;;  %v1064_v13 = vmax.f32 %v837_v5, %v966_v9 }
  0xd2   : > { %v1137_v11 = vpack.c.bf16 %v1039_v7, %v1039_v7  ;;  %v990_v12 = vmax.f32 %v615_v1, %v892_v8 }
  0xd3   : > { %v1015_v14 = vmax.f32 %v690_v6, %v917_v10  ;;  %v764_v15 = vpop.f32.mrf.mxu2  ;;  %v1162_v18 = vpack.c.bf16 %v1064_v13, %v1064_v13 }
  0xd4   : > { %1236 = vst.msk [vmem:[%s1653_s28 + $0xe4] sm:$0xf] %vm1178_vm1, %v1137_v11  ;;  %v1088_v16 = vpack.c.bf16 %v990_v12, %v990_v12  ;;  %v765_v17 = vadd.f32 %v1636_v2, %v764_v15  ;;  %v839_v21 = vpop.f32.mrf.mxu3 }
  0xd5   : > { %v1113_v19 = vpack.c.bf16 %v1015_v14, %v1015_v14  ;;  %v617_v20 = vpop.f32.mrf.mxu0  ;;  %v840_v25 = vadd.f32 %v1636_v2, %v839_v21  ;;  %1261 = vst.msk [vmem:[%s1653_s28 + $0x148] sm:$0xf] %vm1178_vm1, %v1162_v18 }
  0xd6   : > { %1187 = vst.msk [vmem:[%s1653_s28 + $0x20] sm:$0xf] %vm1178_vm1, %v1088_v16  ;;  %v942_v22 = vmul.f32 0.2, %v765_v17  ;;  %v618_v23 = vadd.f32 %v1636_v2, %v617_v20  ;;  %v692_v24 = vpop.f32.mrf.mxu1 }
  0xd7   : > { %1212 = vst.msk [vmem:[%s1653_s28 + $0x84] sm:$0xf] %vm1178_vm1, %v1113_v19  ;;  %v693_v26 = vadd.f32 %v1636_v2, %v692_v24  ;;  %v967_v29 = vmul.f32 0.2, %v840_v25 }
  0xd8   : > { %v1040_v27 = vmax.f32 %v765_v17, %v942_v22  ;;  %v893_v28 = vmul.f32 0.2, %v618_v23 }
  0xd9   : > { %v918_v30 = vmul.f32 0.2, %v693_v26  ;;  %v1065_v33 = vmax.f32 %v840_v25, %v967_v29 }
  0xda   : > { %v1138_v31 = vpack.c.bf16 %v1040_v27, %v1040_v27  ;;  %v991_v32 = vmax.f32 %v618_v23, %v893_v28 }
  0xdb   : > { %v1016_v34 = vmax.f32 %v693_v26, %v918_v30  ;;  %v767_v35 = vpop.f32.mrf.mxu2  ;;  %v1163_v38 = vpack.c.bf16 %v1065_v33, %v1065_v33 }
  0xdc   : > { %1237 = vst.msk [vmem:[%s1653_s28 + $0xe8] sm:$0xf] %vm1178_vm1, %v1138_v31  ;;  %v1089_v36 = vpack.c.bf16 %v991_v32, %v991_v32  ;;  %v768_v37 = vadd.f32 %v1636_v2, %v767_v35  ;;  %v842_v41 = vpop.f32.mrf.mxu3 }
  0xdd   : > { %v1114_v39 = vpack.c.bf16 %v1016_v34, %v1016_v34  ;;  %v620_v40 = vpop.f32.mrf.mxu0  ;;  %v843_v45 = vadd.f32 %v1636_v2, %v842_v41  ;;  %1262 = vst.msk [vmem:[%s1653_s28 + $0x14c] sm:$0xf] %vm1178_vm1, %v1163_v38 }
  0xde   : > { %1188 = vst.msk [vmem:[%s1653_s28 + $0x24] sm:$0xf] %vm1178_vm1, %v1089_v36  ;;  %v943_v42 = vmul.f32 0.2, %v768_v37  ;;  %v621_v43 = vadd.f32 %v1636_v2, %v620_v40  ;;  %v695_v44 = vpop.f32.mrf.mxu1 }
  0xdf   : > { %1213 = vst.msk [vmem:[%s1653_s28 + $0x88] sm:$0xf] %vm1178_vm1, %v1114_v39  ;;  %v696_v46 = vadd.f32 %v1636_v2, %v695_v44  ;;  %v968_v49 = vmul.f32 0.2, %v843_v45 }
  0xe0   : > { %v1041_v47 = vmax.f32 %v768_v37, %v943_v42  ;;  %v894_v48 = vmul.f32 0.2, %v621_v43 }
  0xe1   : > { %v919_v50 = vmul.f32 0.2, %v696_v46  ;;  %v1066_v53 = vmax.f32 %v843_v45, %v968_v49 }
  0xe2   : > { %v1139_v51 = vpack.c.bf16 %v1041_v47, %v1041_v47  ;;  %v992_v52 = vmax.f32 %v621_v43, %v894_v48 }
  0xe3   : > { %v1017_v54 = vmax.f32 %v696_v46, %v919_v50  ;;  %v770_v55 = vpop.f32.mrf.mxu2  ;;  %v1164_v58 = vpack.c.bf16 %v1066_v53, %v1066_v53 }
  0xe4   : > { %1238 = vst.msk [vmem:[%s1653_s28 + $0xec] sm:$0xf] %vm1178_vm1, %v1139_v51  ;;  %v1090_v56 = vpack.c.bf16 %v992_v52, %v992_v52  ;;  %v771_v57 = vadd.f32 %v1636_v2, %v770_v55  ;;  %v845_v61 = vpop.f32.mrf.mxu3 }
  0xe5   : > { %v1115_v59 = vpack.c.bf16 %v1017_v54, %v1017_v54  ;;  %v623_v60 = vpop.f32.mrf.mxu0  ;;  %v846_v1 = vadd.f32 %v1636_v2, %v845_v61  ;;  %1263 = vst.msk [vmem:[%s1653_s28 + $0x150] sm:$0xf] %vm1178_vm1, %v1164_v58 }
  0xe6   : > { %1189 = vst.msk [vmem:[%s1653_s28 + $0x28] sm:$0xf] %vm1178_vm1, %v1090_v56  ;;  %v944_v62 = vmul.f32 0.2, %v771_v57  ;;  %v624_v63 = vadd.f32 %v1636_v2, %v623_v60  ;;  %v698_v0 = vpop.f32.mrf.mxu1 }
  0xe7   : > { %1214 = vst.msk [vmem:[%s1653_s28 + $0x8c] sm:$0xf] %vm1178_vm1, %v1115_v59  ;;  %v699_v3 = vadd.f32 %v1636_v2, %v698_v0  ;;  %v969_v6 = vmul.f32 0.2, %v846_v1 }
  0xe8   : > { %v1042_v4 = vmax.f32 %v771_v57, %v944_v62  ;;  %v895_v5 = vmul.f32 0.2, %v624_v63 }
  0xe9   : > { %v920_v7 = vmul.f32 0.2, %v699_v3  ;;  %v1067_v10 = vmax.f32 %v846_v1, %v969_v6 }
  0xea   : > { %v1140_v8 = vpack.c.bf16 %v1042_v4, %v1042_v4  ;;  %v993_v9 = vmax.f32 %v624_v63, %v895_v5 }
  0xeb   : > { %v1018_v11 = vmax.f32 %v699_v3, %v920_v7  ;;  %v773_v12 = vpop.f32.mrf.mxu2  ;;  %v1165_v15 = vpack.c.bf16 %v1067_v10, %v1067_v10 }
  0xec   : > { %1239 = vst.msk [vmem:[%s1653_s28 + $0xf0] sm:$0xf] %vm1178_vm1, %v1140_v8  ;;  %v1091_v13 = vpack.c.bf16 %v993_v9, %v993_v9  ;;  %v774_v14 = vadd.f32 %v1636_v2, %v773_v12  ;;  %v848_v18 = vpop.f32.mrf.mxu3 }
  0xed   : > { %v1116_v16 = vpack.c.bf16 %v1018_v11, %v1018_v11  ;;  %v626_v17 = vpop.f32.mrf.mxu0  ;;  %v849_v22 = vadd.f32 %v1636_v2, %v848_v18  ;;  %1264 = vst.msk [vmem:[%s1653_s28 + $0x154] sm:$0xf] %vm1178_vm1, %v1165_v15 }
  0xee   : > { %1190 = vst.msk [vmem:[%s1653_s28 + $0x2c] sm:$0xf] %vm1178_vm1, %v1091_v13  ;;  %v945_v19 = vmul.f32 0.2, %v774_v14  ;;  %v627_v20 = vadd.f32 %v1636_v2, %v626_v17  ;;  %v701_v21 = vpop.f32.mrf.mxu1 }
  0xef   : > { %1215 = vst.msk [vmem:[%s1653_s28 + $0x90] sm:$0xf] %vm1178_vm1, %v1116_v16  ;;  %v702_v23 = vadd.f32 %v1636_v2, %v701_v21  ;;  %v970_v26 = vmul.f32 0.2, %v849_v22 }
  0xf0   : > { %v1043_v24 = vmax.f32 %v774_v14, %v945_v19  ;;  %v896_v25 = vmul.f32 0.2, %v627_v20 }
  0xf1   : > { %v921_v27 = vmul.f32 0.2, %v702_v23  ;;  %v1068_v30 = vmax.f32 %v849_v22, %v970_v26 }
  0xf2   : > { %v1141_v28 = vpack.c.bf16 %v1043_v24, %v1043_v24  ;;  %v994_v29 = vmax.f32 %v627_v20, %v896_v25 }
  0xf3   : > { %v1019_v31 = vmax.f32 %v702_v23, %v921_v27  ;;  %v776_v32 = vpop.f32.mrf.mxu2  ;;  %v1166_v35 = vpack.c.bf16 %v1068_v30, %v1068_v30 }
  0xf4   : > { %1240 = vst.msk [vmem:[%s1653_s28 + $0xf4] sm:$0xf] %vm1178_vm1, %v1141_v28  ;;  %v1092_v33 = vpack.c.bf16 %v994_v29, %v994_v29  ;;  %v777_v34 = vadd.f32 %v1636_v2, %v776_v32  ;;  %v851_v38 = vpop.f32.mrf.mxu3 }
  0xf5   : > { %v1117_v36 = vpack.c.bf16 %v1019_v31, %v1019_v31  ;;  %v629_v37 = vpop.f32.mrf.mxu0  ;;  %v852_v42 = vadd.f32 %v1636_v2, %v851_v38  ;;  %1265 = vst.msk [vmem:[%s1653_s28 + $0x158] sm:$0xf] %vm1178_vm1, %v1166_v35 }
  0xf6   : > { %1191 = vst.msk [vmem:[%s1653_s28 + $0x30] sm:$0xf] %vm1178_vm1, %v1092_v33  ;;  %v946_v39 = vmul.f32 0.2, %v777_v34  ;;  %v630_v40 = vadd.f32 %v1636_v2, %v629_v37  ;;  %v704_v41 = vpop.f32.mrf.mxu1 }
  0xf7   : > { %1216 = vst.msk [vmem:[%s1653_s28 + $0x94] sm:$0xf] %vm1178_vm1, %v1117_v36  ;;  %v705_v43 = vadd.f32 %v1636_v2, %v704_v41  ;;  %v971_v46 = vmul.f32 0.2, %v852_v42 }
  0xf8   : > { %v1044_v44 = vmax.f32 %v777_v34, %v946_v39  ;;  %v897_v45 = vmul.f32 0.2, %v630_v40 }
  0xf9   : > { %v922_v47 = vmul.f32 0.2, %v705_v43  ;;  %v1069_v50 = vmax.f32 %v852_v42, %v971_v46 }
  0xfa   : > { %v1142_v48 = vpack.c.bf16 %v1044_v44, %v1044_v44  ;;  %v995_v49 = vmax.f32 %v630_v40, %v897_v45 }
  0xfb   : > { %v1020_v51 = vmax.f32 %v705_v43, %v922_v47  ;;  %v779_v52 = vpop.f32.mrf.mxu2  ;;  %v1167_v55 = vpack.c.bf16 %v1069_v50, %v1069_v50 }
  0xfc   : > { %1241 = vst.msk [vmem:[%s1653_s28 + $0xf8] sm:$0xf] %vm1178_vm1, %v1142_v48  ;;  %v1093_v53 = vpack.c.bf16 %v995_v49, %v995_v49  ;;  %v780_v54 = vadd.f32 %v1636_v2, %v779_v52  ;;  %v854_v58 = vpop.f32.mrf.mxu3 }
  0xfd   : > { %v1118_v56 = vpack.c.bf16 %v1020_v51, %v1020_v51  ;;  %v632_v57 = vpop.f32.mrf.mxu0  ;;  %v855_v62 = vadd.f32 %v1636_v2, %v854_v58  ;;  %1266 = vst.msk [vmem:[%s1653_s28 + $0x15c] sm:$0xf] %vm1178_vm1, %v1167_v55 }
  0xfe   : > { %1192 = vst.msk [vmem:[%s1653_s28 + $0x34] sm:$0xf] %vm1178_vm1, %v1093_v53  ;;  %v947_v59 = vmul.f32 0.2, %v780_v54  ;;  %v633_v60 = vadd.f32 %v1636_v2, %v632_v57  ;;  %v707_v61 = vpop.f32.mrf.mxu1 }
  0xff   : > { %1217 = vst.msk [vmem:[%s1653_s28 + $0x98] sm:$0xf] %vm1178_vm1, %v1118_v56  ;;  %v708_v63 = vadd.f32 %v1636_v2, %v707_v61  ;;  %v972_v3 = vmul.f32 0.2, %v855_v62 }
 0x100   : > { %v1045_v0 = vmax.f32 %v780_v54, %v947_v59  ;;  %v898_v1 = vmul.f32 0.2, %v633_v60 }
 0x101   : > { %v923_v4 = vmul.f32 0.2, %v708_v63  ;;  %v1070_v7 = vmax.f32 %v855_v62, %v972_v3 }
 0x102   : > { %v1143_v5 = vpack.c.bf16 %v1045_v0, %v1045_v0  ;;  %v996_v6 = vmax.f32 %v633_v60, %v898_v1 }
 0x103   : > { %v1021_v8 = vmax.f32 %v708_v63, %v923_v4  ;;  %v782_v9 = vpop.f32.mrf.mxu2  ;;  %v1168_v12 = vpack.c.bf16 %v1070_v7, %v1070_v7 }
 0x104   : > { %1242 = vst.msk [vmem:[%s1653_s28 + $0xfc] sm:$0xf] %vm1178_vm1, %v1143_v5  ;;  %v1094_v10 = vpack.c.bf16 %v996_v6, %v996_v6  ;;  %v783_v11 = vadd.f32 %v1636_v2, %v782_v9  ;;  %v857_v15 = vpop.f32.mrf.mxu3 }
 0x105   : > { %v1119_v13 = vpack.c.bf16 %v1021_v8, %v1021_v8  ;;  %v635_v14 = vpop.f32.mrf.mxu0  ;;  %v858_v19 = vadd.f32 %v1636_v2, %v857_v15  ;;  %1267 = vst.msk [vmem:[%s1653_s28 + $0x160] sm:$0xf] %vm1178_vm1, %v1168_v12 }
 0x106   : > { %1193 = vst.msk [vmem:[%s1653_s28 + $0x38] sm:$0xf] %vm1178_vm1, %v1094_v10  ;;  %v948_v16 = vmul.f32 0.2, %v783_v11  ;;  %v636_v17 = vadd.f32 %v1636_v2, %v635_v14  ;;  %v710_v18 = vpop.f32.mrf.mxu1 }
 0x107   : > { %1218 = vst.msk [vmem:[%s1653_s28 + $0x9c] sm:$0xf] %vm1178_vm1, %v1119_v13  ;;  %v711_v20 = vadd.f32 %v1636_v2, %v710_v18  ;;  %v973_v23 = vmul.f32 0.2, %v858_v19 }
 0x108   : > { %v1046_v21 = vmax.f32 %v783_v11, %v948_v16  ;;  %v899_v22 = vmul.f32 0.2, %v636_v17 }
 0x109   : > { %v924_v24 = vmul.f32 0.2, %v711_v20  ;;  %v1071_v27 = vmax.f32 %v858_v19, %v973_v23 }
 0x10a   : > { %v1144_v25 = vpack.c.bf16 %v1046_v21, %v1046_v21  ;;  %v997_v26 = vmax.f32 %v636_v17, %v899_v22 }
 0x10b   : > { %v1022_v28 = vmax.f32 %v711_v20, %v924_v24  ;;  %v785_v29 = vpop.f32.mrf.mxu2  ;;  %v1169_v32 = vpack.c.bf16 %v1071_v27, %v1071_v27 }
 0x10c   : > { %1243 = vst.msk [vmem:[%s1653_s28 + $0x100] sm:$0xf] %vm1178_vm1, %v1144_v25  ;;  %v1095_v30 = vpack.c.bf16 %v997_v26, %v997_v26  ;;  %v786_v31 = vadd.f32 %v1636_v2, %v785_v29  ;;  %v860_v35 = vpop.f32.mrf.mxu3 }
 0x10d   : > { %v1120_v33 = vpack.c.bf16 %v1022_v28, %v1022_v28  ;;  %v638_v34 = vpop.f32.mrf.mxu0  ;;  %v861_v39 = vadd.f32 %v1636_v2, %v860_v35  ;;  %1268 = vst.msk [vmem:[%s1653_s28 + $0x164] sm:$0xf] %vm1178_vm1, %v1169_v32 }
 0x10e   : > { %1194 = vst.msk [vmem:[%s1653_s28 + $0x3c] sm:$0xf] %vm1178_vm1, %v1095_v30  ;;  %v949_v36 = vmul.f32 0.2, %v786_v31  ;;  %v639_v37 = vadd.f32 %v1636_v2, %v638_v34  ;;  %v713_v38 = vpop.f32.mrf.mxu1 }
 0x10f   : > { %1219 = vst.msk [vmem:[%s1653_s28 + $0xa0] sm:$0xf] %vm1178_vm1, %v1120_v33  ;;  %v714_v40 = vadd.f32 %v1636_v2, %v713_v38  ;;  %v974_v43 = vmul.f32 0.2, %v861_v39 }
 0x110   : > { %v1047_v41 = vmax.f32 %v786_v31, %v949_v36  ;;  %v900_v42 = vmul.f32 0.2, %v639_v37 }
 0x111   : > { %v925_v44 = vmul.f32 0.2, %v714_v40  ;;  %v1072_v47 = vmax.f32 %v861_v39, %v974_v43 }
 0x112   : > { %v1145_v45 = vpack.c.bf16 %v1047_v41, %v1047_v41  ;;  %v998_v46 = vmax.f32 %v639_v37, %v900_v42 }
 0x113   : > { %v1023_v48 = vmax.f32 %v714_v40, %v925_v44  ;;  %v788_v49 = vpop.f32.mrf.mxu2  ;;  %v1170_v52 = vpack.c.bf16 %v1072_v47, %v1072_v47 }
 0x114   : > { %1244 = vst.msk [vmem:[%s1653_s28 + $0x104] sm:$0xf] %vm1178_vm1, %v1145_v45  ;;  %v1096_v50 = vpack.c.bf16 %v998_v46, %v998_v46  ;;  %v789_v51 = vadd.f32 %v1636_v2, %v788_v49  ;;  %v863_v55 = vpop.f32.mrf.mxu3 }
 0x115   : > { %v1121_v53 = vpack.c.bf16 %v1023_v48, %v1023_v48  ;;  %v641_v54 = vpop.f32.mrf.mxu0  ;;  %v864_v59 = vadd.f32 %v1636_v2, %v863_v55  ;;  %1269 = vst.msk [vmem:[%s1653_s28 + $0x168] sm:$0xf] %vm1178_vm1, %v1170_v52 }
 0x116   : > { %1195 = vst.msk [vmem:[%s1653_s28 + $0x40] sm:$0xf] %vm1178_vm1, %v1096_v50  ;;  %v950_v56 = vmul.f32 0.2, %v789_v51  ;;  %v642_v57 = vadd.f32 %v1636_v2, %v641_v54  ;;  %v716_v58 = vpop.f32.mrf.mxu1 }
 0x117   : > { %1220 = vst.msk [vmem:[%s1653_s28 + $0xa4] sm:$0xf] %vm1178_vm1, %v1121_v53  ;;  %v717_v60 = vadd.f32 %v1636_v2, %v716_v58  ;;  %v975_v63 = vmul.f32 0.2, %v864_v59 }
 0x118   : > { %v1048_v61 = vmax.f32 %v789_v51, %v950_v56  ;;  %v901_v62 = vmul.f32 0.2, %v642_v57 }
 0x119   : > { %v926_v0 = vmul.f32 0.2, %v717_v60  ;;  %v1073_v4 = vmax.f32 %v864_v59, %v975_v63 }
 0x11a   : > { %v1146_v1 = vpack.c.bf16 %v1048_v61, %v1048_v61  ;;  %v999_v3 = vmax.f32 %v642_v57, %v901_v62 }
 0x11b   : > { %v1024_v5 = vmax.f32 %v717_v60, %v926_v0  ;;  %v791_v6 = vpop.f32.mrf.mxu2  ;;  %v1171_v9 = vpack.c.bf16 %v1073_v4, %v1073_v4 }
 0x11c   : > { %1245 = vst.msk [vmem:[%s1653_s28 + $0x108] sm:$0xf] %vm1178_vm1, %v1146_v1  ;;  %v1097_v7 = vpack.c.bf16 %v999_v3, %v999_v3  ;;  %v792_v8 = vadd.f32 %v1636_v2, %v791_v6  ;;  %v866_v12 = vpop.f32.mrf.mxu3 }
 0x11d   : > { %v1122_v10 = vpack.c.bf16 %v1024_v5, %v1024_v5  ;;  %v644_v11 = vpop.f32.mrf.mxu0  ;;  %v867_v16 = vadd.f32 %v1636_v2, %v866_v12  ;;  %1270 = vst.msk [vmem:[%s1653_s28 + $0x16c] sm:$0xf] %vm1178_vm1, %v1171_v9 }
 0x11e   : > { %1196 = vst.msk [vmem:[%s1653_s28 + $0x44] sm:$0xf] %vm1178_vm1, %v1097_v7  ;;  %v951_v13 = vmul.f32 0.2, %v792_v8  ;;  %v645_v14 = vadd.f32 %v1636_v2, %v644_v11  ;;  %v719_v15 = vpop.f32.mrf.mxu1 }
 0x11f   : > { %1221 = vst.msk [vmem:[%s1653_s28 + $0xa8] sm:$0xf] %vm1178_vm1, %v1122_v10  ;;  %v720_v17 = vadd.f32 %v1636_v2, %v719_v15  ;;  %v976_v20 = vmul.f32 0.2, %v867_v16  ;;  %v1932_v2 = vld [vmem:[%s2017_s2] ss:$0 sm:$0xff] }
 0x120   : > { %v1049_v18 = vmax.f32 %v792_v8, %v951_v13  ;;  %v902_v19 = vmul.f32 0.2, %v645_v14 }
 0x121   : > { %v927_v21 = vmul.f32 0.2, %v720_v17  ;;  %v1074_v24 = vmax.f32 %v867_v16, %v976_v20 }
 0x122   : > { %v1147_v22 = vpack.c.bf16 %v1049_v18, %v1049_v18  ;;  %v1000_v23 = vmax.f32 %v645_v14, %v902_v19 }
 0x123   : > { %v1025_v25 = vmax.f32 %v720_v17, %v927_v21  ;;  %v794_v26 = vpop.f32.mrf.mxu2  ;;  %v1172_v29 = vpack.c.bf16 %v1074_v24, %v1074_v24 }
 0x124   : > { %1246 = vst.msk [vmem:[%s1653_s28 + $0x10c] sm:$0xf] %vm1178_vm1, %v1147_v22  ;;  %v1098_v27 = vpack.c.bf16 %v1000_v23, %v1000_v23  ;;  %v795_v28 = vadd.f32 %v1932_v2, %v794_v26  ;;  %v869_v32 = vpop.f32.mrf.mxu3 }
 0x125   : > { %v1123_v30 = vpack.c.bf16 %v1025_v25, %v1025_v25  ;;  %v647_v31 = vpop.f32.mrf.mxu0  ;;  %v870_v36 = vadd.f32 %v1932_v2, %v869_v32  ;;  %1271 = vst.msk [vmem:[%s1653_s28 + $0x170] sm:$0xf] %vm1178_vm1, %v1172_v29 }
 0x126   : > { %1197 = vst.msk [vmem:[%s1653_s28 + $0x48] sm:$0xf] %vm1178_vm1, %v1098_v27  ;;  %v952_v33 = vmul.f32 0.2, %v795_v28  ;;  %v648_v34 = vadd.f32 %v1932_v2, %v647_v31  ;;  %v722_v35 = vpop.f32.mrf.mxu1 }
 0x127   : > { %1222 = vst.msk [vmem:[%s1653_s28 + $0xac] sm:$0xf] %vm1178_vm1, %v1123_v30  ;;  %v723_v37 = vadd.f32 %v1932_v2, %v722_v35  ;;  %v977_v40 = vmul.f32 0.2, %v870_v36 }
 0x128   : > { %v1050_v38 = vmax.f32 %v795_v28, %v952_v33  ;;  %v903_v39 = vmul.f32 0.2, %v648_v34 }
 0x129   : > { %v928_v41 = vmul.f32 0.2, %v723_v37  ;;  %v1075_v44 = vmax.f32 %v870_v36, %v977_v40 }
 0x12a   : > { %v1148_v42 = vpack.c.bf16 %v1050_v38, %v1050_v38  ;;  %v1001_v43 = vmax.f32 %v648_v34, %v903_v39 }
 0x12b   : > { %v1026_v45 = vmax.f32 %v723_v37, %v928_v41  ;;  %v797_v46 = vpop.f32.mrf.mxu2  ;;  %v1173_v49 = vpack.c.bf16 %v1075_v44, %v1075_v44 }
 0x12c   : > { %1247 = vst.msk [vmem:[%s1653_s28 + $0x110] sm:$0xf] %vm1178_vm1, %v1148_v42  ;;  %v1099_v47 = vpack.c.bf16 %v1001_v43, %v1001_v43  ;;  %v798_v48 = vadd.f32 %v1932_v2, %v797_v46  ;;  %v872_v52 = vpop.f32.mrf.mxu3 }
 0x12d   : > { %v1124_v50 = vpack.c.bf16 %v1026_v45, %v1026_v45  ;;  %v650_v51 = vpop.f32.mrf.mxu0  ;;  %v873_v56 = vadd.f32 %v1932_v2, %v872_v52  ;;  %1272 = vst.msk [vmem:[%s1653_s28 + $0x174] sm:$0xf] %vm1178_vm1, %v1173_v49 }
 0x12e   : > { %1198 = vst.msk [vmem:[%s1653_s28 + $0x4c] sm:$0xf] %vm1178_vm1, %v1099_v47  ;;  %v953_v53 = vmul.f32 0.2, %v798_v48  ;;  %v651_v54 = vadd.f32 %v1932_v2, %v650_v51  ;;  %v725_v55 = vpop.f32.mrf.mxu1 }
 0x12f   : > { %1223 = vst.msk [vmem:[%s1653_s28 + $0xb0] sm:$0xf] %vm1178_vm1, %v1124_v50  ;;  %v726_v57 = vadd.f32 %v1932_v2, %v725_v55  ;;  %v978_v60 = vmul.f32 0.2, %v873_v56 }
 0x130   : > { %v1051_v58 = vmax.f32 %v798_v48, %v953_v53  ;;  %v904_v59 = vmul.f32 0.2, %v651_v54 }
 0x131   : > { %v929_v61 = vmul.f32 0.2, %v726_v57  ;;  %v1076_v0 = vmax.f32 %v873_v56, %v978_v60 }
 0x132   : > { %v1149_v62 = vpack.c.bf16 %v1051_v58, %v1051_v58  ;;  %v1002_v63 = vmax.f32 %v651_v54, %v904_v59 }
 0x133   : > { %v1027_v1 = vmax.f32 %v726_v57, %v929_v61  ;;  %v800_v3 = vpop.f32.mrf.mxu2  ;;  %v1174_v6 = vpack.c.bf16 %v1076_v0, %v1076_v0 }
 0x134   : > { %1248 = vst.msk [vmem:[%s1653_s28 + $0x114] sm:$0xf] %vm1178_vm1, %v1149_v62  ;;  %v1100_v4 = vpack.c.bf16 %v1002_v63, %v1002_v63  ;;  %v801_v5 = vadd.f32 %v1932_v2, %v800_v3  ;;  %v875_v9 = vpop.f32.mrf.mxu3 }
 0x135   : > { %v1125_v7 = vpack.c.bf16 %v1027_v1, %v1027_v1  ;;  %v653_v8 = vpop.f32.mrf.mxu0  ;;  %v876_v13 = vadd.f32 %v1932_v2, %v875_v9  ;;  %1273 = vst.msk [vmem:[%s1653_s28 + $0x178] sm:$0xf] %vm1178_vm1, %v1174_v6 }
 0x136   : > { %1199 = vst.msk [vmem:[%s1653_s28 + $0x50] sm:$0xf] %vm1178_vm1, %v1100_v4  ;;  %v954_v10 = vmul.f32 0.2, %v801_v5  ;;  %v654_v11 = vadd.f32 %v1932_v2, %v653_v8  ;;  %v728_v12 = vpop.f32.mrf.mxu1 }
 0x137   : > { %1224 = vst.msk [vmem:[%s1653_s28 + $0xb4] sm:$0xf] %vm1178_vm1, %v1125_v7  ;;  %v729_v14 = vadd.f32 %v1932_v2, %v728_v12  ;;  %v979_v17 = vmul.f32 0.2, %v876_v13 }
 0x138   : > { %v1052_v15 = vmax.f32 %v801_v5, %v954_v10  ;;  %v905_v16 = vmul.f32 0.2, %v654_v11 }
 0x139   : > { %v930_v18 = vmul.f32 0.2, %v729_v14  ;;  %v1077_v21 = vmax.f32 %v876_v13, %v979_v17 }
 0x13a   : > { %v1150_v19 = vpack.c.bf16 %v1052_v15, %v1052_v15  ;;  %v1003_v20 = vmax.f32 %v654_v11, %v905_v16 }
 0x13b   : > { %v1028_v22 = vmax.f32 %v729_v14, %v930_v18  ;;  %v803_v23 = vpop.f32.mrf.mxu2  ;;  %v1175_v26 = vpack.c.bf16 %v1077_v21, %v1077_v21 }
 0x13c   : > { %1249 = vst.msk [vmem:[%s1653_s28 + $0x118] sm:$0xf] %vm1178_vm1, %v1150_v19  ;;  %v1101_v24 = vpack.c.bf16 %v1003_v20, %v1003_v20  ;;  %v804_v25 = vadd.f32 %v1932_v2, %v803_v23  ;;  %v878_v29 = vpop.f32.mrf.mxu3 }
 0x13d   : > { %v1126_v27 = vpack.c.bf16 %v1028_v22, %v1028_v22  ;;  %v656_v28 = vpop.f32.mrf.mxu0  ;;  %v879_v33 = vadd.f32 %v1932_v2, %v878_v29  ;;  %1274 = vst.msk [vmem:[%s1653_s28 + $0x17c] sm:$0xf] %vm1178_vm1, %v1175_v26 }
 0x13e   : > { %1200 = vst.msk [vmem:[%s1653_s28 + $0x54] sm:$0xf] %vm1178_vm1, %v1101_v24  ;;  %v955_v30 = vmul.f32 0.2, %v804_v25  ;;  %v657_v31 = vadd.f32 %v1932_v2, %v656_v28  ;;  %v731_v32 = vpop.f32.mrf.mxu1 }
 0x13f   : > { %1225 = vst.msk [vmem:[%s1653_s28 + $0xb8] sm:$0xf] %vm1178_vm1, %v1126_v27  ;;  %v732_v34 = vadd.f32 %v1932_v2, %v731_v32  ;;  %v980_v37 = vmul.f32 0.2, %v879_v33 }
 0x140   : > { %v1053_v35 = vmax.f32 %v804_v25, %v955_v30  ;;  %v906_v36 = vmul.f32 0.2, %v657_v31 }
 0x141   : > { %v931_v38 = vmul.f32 0.2, %v732_v34  ;;  %v1078_v41 = vmax.f32 %v879_v33, %v980_v37 }
 0x142   : > { %v1151_v39 = vpack.c.bf16 %v1053_v35, %v1053_v35  ;;  %v1004_v40 = vmax.f32 %v657_v31, %v906_v36 }
 0x143   : > { %v1029_v42 = vmax.f32 %v732_v34, %v931_v38  ;;  %v806_v43 = vpop.f32.mrf.mxu2  ;;  %v1176_v46 = vpack.c.bf16 %v1078_v41, %v1078_v41 }
 0x144   : > { %1250 = vst.msk [vmem:[%s1653_s28 + $0x11c] sm:$0xf] %vm1178_vm1, %v1151_v39  ;;  %v1102_v44 = vpack.c.bf16 %v1004_v40, %v1004_v40  ;;  %v807_v45 = vadd.f32 %v1932_v2, %v806_v43  ;;  %v881_v49 = vpop.f32.mrf.mxu3 }
 0x145   : > { %v1127_v47 = vpack.c.bf16 %v1029_v42, %v1029_v42  ;;  %v659_v48 = vpop.f32.mrf.mxu0  ;;  %v882_v53 = vadd.f32 %v1932_v2, %v881_v49  ;;  %1275 = vst.msk [vmem:[%s1653_s28 + $0x180] sm:$0xf] %vm1178_vm1, %v1176_v46 }
 0x146   : > { %1201 = vst.msk [vmem:[%s1653_s28 + $0x58] sm:$0xf] %vm1178_vm1, %v1102_v44  ;;  %v956_v50 = vmul.f32 0.2, %v807_v45  ;;  %v660_v51 = vadd.f32 %v1932_v2, %v659_v48  ;;  %v734_v52 = vpop.f32.mrf.mxu1 }
 0x147   : > { %1226 = vst.msk [vmem:[%s1653_s28 + $0xbc] sm:$0xf] %vm1178_vm1, %v1127_v47  ;;  %v735_v54 = vadd.f32 %v1932_v2, %v734_v52  ;;  %v981_v57 = vmul.f32 0.2, %v882_v53 }
 0x148   : > { %v1054_v55 = vmax.f32 %v807_v45, %v956_v50  ;;  %v907_v56 = vmul.f32 0.2, %v660_v51 }
 0x149   : > { %v932_v58 = vmul.f32 0.2, %v735_v54  ;;  %v1079_v61 = vmax.f32 %v882_v53, %v981_v57 }
 0x14a   : > { %v1152_v59 = vpack.c.bf16 %v1054_v55, %v1054_v55  ;;  %v1005_v60 = vmax.f32 %v660_v51, %v907_v56 }
 0x14b   : > { %v1030_v62 = vmax.f32 %v735_v54, %v932_v58  ;;  %v809_v63 = vpop.f32.mrf.mxu2  ;;  %v1177_v3 = vpack.c.bf16 %v1079_v61, %v1079_v61 }
 0x14c   : > { %1251 = vst.msk [vmem:[%s1653_s28 + $0x120] sm:$0xf] %vm1178_vm1, %v1152_v59  ;;  %v1103_v0 = vpack.c.bf16 %v1005_v60, %v1005_v60  ;;  %v810_v1 = vadd.f32 %v1932_v2, %v809_v63 }
 0x14d   : > { %v1128_v4 = vpack.c.bf16 %v1030_v62, %v1030_v62  ;;  %v662_v5 = vpop.f32.mrf.mxu0  ;;  %1276 = vst.msk [vmem:[%s1653_s28 + $0x184] sm:$0xf] %vm1178_vm1, %v1177_v3 }
 0x14e   : > { %1202 = vst.msk [vmem:[%s1653_s28 + $0x5c] sm:$0xf] %vm1178_vm1, %v1103_v0  ;;  %v957_v6 = vmul.f32 0.2, %v810_v1  ;;  %v663_v7 = vadd.f32 %v1932_v2, %v662_v5  ;;  %v737_v8 = vpop.f32.mrf.mxu1 }
 0x14f   : > { %1227 = vst.msk [vmem:[%s1653_s28 + $0xc0] sm:$0xf] %vm1178_vm1, %v1128_v4  ;;  %v738_v9 = vadd.f32 %v1932_v2, %v737_v8 }
 0x150   : > { %v1055_v10 = vmax.f32 %v810_v1, %v957_v6  ;;  %v908_v11 = vmul.f32 0.2, %v663_v7 }
 0x151   : > { %v933_v12 = vmul.f32 0.2, %v738_v9 }
 0x152   : > { %v1153_v13 = vpack.c.bf16 %v1055_v10, %v1055_v10  ;;  %v1006_v14 = vmax.f32 %v663_v7, %v908_v11 }
 0x153   : > { %v1031_v15 = vmax.f32 %v738_v9, %v933_v12  ;;  %v812_v16 = vpop.f32.mrf.mxu2 }
 0x154   : > { %1252 = vst.msk [vmem:[%s1653_s28 + $0x124] sm:$0xf] %vm1178_vm1, %v1153_v13  ;;  %v1104_v17 = vpack.c.bf16 %v1006_v14, %v1006_v14  ;;  %v813_v18 = vadd.f32 %v1932_v2, %v812_v16 }
 0x155   : > { %v1129_v19 = vpack.c.bf16 %v1031_v15, %v1031_v15 }
 0x156   : > { %1203 = vst.msk [vmem:[%s1653_s28 + $0x60] sm:$0xf] %vm1178_vm1, %v1104_v17  ;;  %v958_v20 = vmul.f32 0.2, %v813_v18 }
 0x157   : > { %1228 = vst.msk [vmem:[%s1653_s28 + $0xc4] sm:$0xf] %vm1178_vm1, %v1129_v19 }
 0x158   : > { %v1056_v21 = vmax.f32 %v813_v18, %v958_v20 }
 0x15a   : > { %v1154_v22 = vpack.c.bf16 %v1056_v21, %v1056_v21 }
 0x15c   : > { %1253 = vst.msk [vmem:[%s1653_s28 + $0x128] sm:$0xf] %vm1178_vm1, %v1154_v22 }
 0x15d PF: > { %s13_s12 = sadd.s32 1, %s1462_s12  }
 0x15e   : > { %p10_p4 = scmp.ge.s32.totalorder %s13_s12, 4  }
 0x160   :  { %12 = sbr.rel (!%p10_p4) target bundleno = 1 (0x1), region = 62 }

// kernel: discriminator_forward.4
= control target key start
LH: loop header
LB: loop body
LE: loop exit
PB: predicated region body
PF: predicated region fallthrough
CT: control target
= control target key end

     0   :  { %s7512_s1 = inlined_call_operand.vmem [shape: bf16[1024,128], index: 1, kind: input, shape index: {}]   ;;  %s7513_s0 = inlined_call_operand.vmem [shape: bf16[392,1024], index: 0, kind: input, shape index: {}]   ;;  %s7514_s2 = inlined_call_operand.vmem [shape: f32[1,128], index: 2, kind: input, shape index: {}]   ;;  %s7515_s3 = inlined_call_operand.vmem [shape: f32[1,128], index: 3, kind: input, shape index: {}]   ;;  %s7516_s4 = inlined_call_operand.vmem [shape: bf16[392,128], index: 4, kind: output, shape index: {}]  }
   0x1   :  { %v4837_v0 = vld [vmem:[%s7512_s1 + $0x38] sm:$0xff]  ;;  %v4836_v4 = vld [vmem:[%s7512_s1 + $0x30] sm:$0xff]  ;;  %v4835_v8 = vld [vmem:[%s7512_s1 + $0x28] sm:$0xff] }
   0x2   :  { %v4845_v1 = vld [vmem:[%s7512_s1 + $0x78] sm:$0xff]  ;;  %1713 = vmatpush.bf16.msra.mxu0 %v4837_v0  ;;  %v4844_v5 = vld [vmem:[%s7512_s1 + $0x70] sm:$0xff]  ;;  %v4843_v9 = vld [vmem:[%s7512_s1 + $0x68] sm:$0xff] }
   0x3   :  { %v4853_v2 = vld [vmem:[%s7512_s1 + $0xb8] sm:$0xff]  ;;  %1846 = vmatpush.bf16.msra.mxu1 %v4845_v1  ;;  %v4852_v6 = vld [vmem:[%s7512_s1 + $0xb0] sm:$0xff]  ;;  %v4851_v10 = vld [vmem:[%s7512_s1 + $0xa8] sm:$0xff] }
   0x4   :  { %v4861_v3 = vld [vmem:[%s7512_s1 + $0xf8] sm:$0xff]  ;;  %1979 = vmatpush.bf16.msra.mxu2 %v4853_v2  ;;  %v4860_v7 = vld [vmem:[%s7512_s1 + $0xf0] sm:$0xff]  ;;  %v4859_v11 = vld [vmem:[%s7512_s1 + $0xe8] sm:$0xff] }
   0x5   :  { %2112 = vmatpush.bf16.msra.mxu3 %v4861_v3  ;;  %v4834_v12 = vld [vmem:[%s7512_s1 + $0x20] sm:$0xff]  ;;  %v4833_v16 = vld [vmem:[%s7512_s1 + $0x18] sm:$0xff]  ;;  %v4832_v20 = vld [vmem:[%s7512_s1 + $0x10] sm:$0xff] }
   0x6   :  { %1714 = vmatpush.bf16.msra.mxu0 %v4836_v4  ;;  %v4842_v13 = vld [vmem:[%s7512_s1 + $0x60] sm:$0xff]  ;;  %v4841_v17 = vld [vmem:[%s7512_s1 + $0x58] sm:$0xff]  ;;  %v4840_v21 = vld [vmem:[%s7512_s1 + $0x50] sm:$0xff] }
   0x7   :  { %1847 = vmatpush.bf16.msra.mxu1 %v4844_v5  ;;  %v4850_v14 = vld [vmem:[%s7512_s1 + $0xa0] sm:$0xff]  ;;  %v4849_v18 = vld [vmem:[%s7512_s1 + $0x98] sm:$0xff]  ;;  %v4848_v22 = vld [vmem:[%s7512_s1 + $0x90] sm:$0xff] }
   0x8   :  { %1980 = vmatpush.bf16.msra.mxu2 %v4852_v6  ;;  %v4858_v15 = vld [vmem:[%s7512_s1 + $0xe0] sm:$0xff]  ;;  %v4857_v19 = vld [vmem:[%s7512_s1 + $0xd8] sm:$0xff]  ;;  %v4856_v23 = vld [vmem:[%s7512_s1 + $0xd0] sm:$0xff] }
   0x9   :  { %2113 = vmatpush.bf16.msra.mxu3 %v4860_v7  ;;  %v4831_v24 = vld [vmem:[%s7512_s1 + $0x8] sm:$0xff]  ;;  %v4830_v28 = vld [vmem:[%s7512_s1] sm:$0xff]  ;;  %v4885_v40 = vld [vmem:[%s7512_s1 + $0x1b8] sm:$0xff] }
   0xa   :  { %1715 = vmatpush.bf16.msra.mxu0 %v4835_v8  ;;  %v4839_v25 = vld [vmem:[%s7512_s1 + $0x48] sm:$0xff]  ;;  %v4838_v29 = vld [vmem:[%s7512_s1 + $0x40] sm:$0xff]  ;;  %v4869_v41 = vld [vmem:[%s7512_s1 + $0x138] sm:$0xff] }
   0xb   :  { %1848 = vmatpush.bf16.msra.mxu1 %v4843_v9  ;;  %v4847_v26 = vld [vmem:[%s7512_s1 + $0x88] sm:$0xff]  ;;  %v4846_v30 = vld [vmem:[%s7512_s1 + $0x80] sm:$0xff]  ;;  %v4893_v46 = vld [vmem:[%s7512_s1 + $0x1f8] sm:$0xff] }
   0xc   :  { %1981 = vmatpush.bf16.msra.mxu2 %v4851_v10  ;;  %v4855_v27 = vld [vmem:[%s7512_s1 + $0xc8] sm:$0xff]  ;;  %v4854_v31 = vld [vmem:[%s7512_s1 + $0xc0] sm:$0xff]  ;;  %v4877_v47 = vld [vmem:[%s7512_s1 + $0x178] sm:$0xff] }
   0xd   :  { %2114 = vmatpush.bf16.msra.mxu3 %v4859_v11  ;;  %v3616_v32 = vld [vmem:[%s7513_s0] sm:$0xf]  ;;  %v4638_v34 = vld [vmem:[%s7513_s0 + $0x4] sm:$0xf]  ;;  %v3624_v36 = vld [vmem:[%s7513_s0 + $0x8] sm:$0xf] }
   0xe   :  { %1716 = vmatpush.bf16.msra.mxu0 %v4834_v12  ;;  %v4642_v33 = vld [vmem:[%s7513_s0 + $0x1c] sm:$0xf0]  ;;  %v3618_v35 = vld [vmem:[%s7513_s0 + $0x20] sm:$0xf0]  ;;  %v4643_v37 = vld [vmem:[%s7513_s0 + $0x24] sm:$0xf0] }
   0xf   :  { %1849 = vmatpush.bf16.msra.mxu1 %v4842_v13  ;;  %v4639_v38 = vld [vmem:[%s7513_s0 + $0xc] sm:$0xf]  ;;  %v3617_v42 = vor.u32 %v4642_v33, %v3616_v32  ;;  %v3621_v43 = vor.u32 %v4638_v34, %v3618_v35  ;;  %v3625_v44 = vor.u32 %v4643_v37, %v3624_v36  ;;  %v3648_v48 = vld [vmem:[%s7513_s0 + $0x40] sm:$0xf]  ;;  %v4646_v50 = vld [vmem:[%s7513_s0 + $0x44] sm:$0xf] }
  0x10   :  { %1982 = vmatpush.bf16.msra.mxu2 %v4850_v14  ;;  %v3626_v39 = vld [vmem:[%s7513_s0 + $0x28] sm:$0xf0]  ;;  %v4650_v49 = vld [vmem:[%s7513_s0 + $0x5c] sm:$0xf0]  ;;  %v3650_v51 = vld [vmem:[%s7513_s0 + $0x60] sm:$0xf0] }
  0x11   :  { %2115 = vmatpush.bf16.msra.mxu3 %v4858_v15  ;;  %v3629_v45 = vor.u32 %v4639_v38, %v3626_v39  ;;  %v3656_v52 = vld [vmem:[%s7513_s0 + $0x48] sm:$0xf]  ;;  %v4647_v54 = vld [vmem:[%s7513_s0 + $0x4c] sm:$0xf]  ;;  %v3649_v56 = vor.u32 %v4650_v49, %v3648_v48  ;;  %v3653_v57 = vor.u32 %v4646_v50, %v3650_v51  ;;  %v4884_v60 = vld [vmem:[%s7512_s1 + $0x1b0] sm:$0xff] }
  0x12   :  { %1717 = vmatpush.bf16.msra.mxu0 %v4833_v16  ;;  %v4651_v53 = vld [vmem:[%s7513_s0 + $0x64] sm:$0xf0]  ;;  %v3658_v55 = vld [vmem:[%s7513_s0 + $0x68] sm:$0xf0]  ;;  %v4868_v61 = vld [vmem:[%s7512_s1 + $0x130] sm:$0xff] }
  0x13   :  { %1850 = vmatpush.bf16.msra.mxu1 %v4841_v17  ;;  %v3657_v58 = vor.u32 %v4651_v53, %v3656_v52  ;;  %v3661_v59 = vor.u32 %v4647_v54, %v3658_v55  ;;  %v4892_v62 = vld [vmem:[%s7512_s1 + $0x1f0] sm:$0xff]  ;;  %v3680_v0 = vld [vmem:[%s7513_s0 + $0x80] sm:$0xf]  ;;  %v4654_v2 = vld [vmem:[%s7513_s0 + $0x84] sm:$0xf] }
  0x14   :  { %1983 = vmatpush.bf16.msra.mxu2 %v4849_v18  ;;  %v4876_v63 = vld [vmem:[%s7512_s1 + $0x170] sm:$0xff]  ;;  %v4658_v1 = vld [vmem:[%s7513_s0 + $0x9c] sm:$0xf0]  ;;  %v3682_v3 = vld [vmem:[%s7513_s0 + $0xa0] sm:$0xf0] }
  0x15   :  { %2116 = vmatpush.bf16.msra.mxu3 %v4857_v19  ;;  %v3688_v4 = vld [vmem:[%s7513_s0 + $0x88] sm:$0xf]  ;;  %v4655_v6 = vld [vmem:[%s7513_s0 + $0x8c] sm:$0xf]  ;;  %v3681_v8 = vor.u32 %v4658_v1, %v3680_v0  ;;  %v3685_v9 = vor.u32 %v4654_v2, %v3682_v3  ;;  %v3712_v12 = vld [vmem:[%s7513_s0 + $0xc0] sm:$0xf] }
  0x16   :  { %1718 = vmatpush.bf16.msra.mxu0 %v4832_v20  ;;  %v4659_v5 = vld [vmem:[%s7513_s0 + $0xa4] sm:$0xf0]  ;;  %v3690_v7 = vld [vmem:[%s7513_s0 + $0xa8] sm:$0xf0]  ;;  %v4666_v13 = vld [vmem:[%s7513_s0 + $0xdc] sm:$0xf0] }
  0x17   :  { %1851 = vmatpush.bf16.msra.mxu1 %v4840_v21  ;;  %v3689_v10 = vor.u32 %v4659_v5, %v3688_v4  ;;  %v3693_v11 = vor.u32 %v4655_v6, %v3690_v7  ;;  %v4662_v14 = vld [vmem:[%s7513_s0 + $0xc4] sm:$0xf]  ;;  %v3720_v16 = vld [vmem:[%s7513_s0 + $0xc8] sm:$0xf]  ;;  %v4663_v18 = vld [vmem:[%s7513_s0 + $0xcc] sm:$0xf]  ;;  %v3713_v20 = vor.u32 %v4666_v13, %v3712_v12 }
  0x18   :  { %1984 = vmatpush.bf16.msra.mxu2 %v4848_v22  ;;  %v3714_v15 = vld [vmem:[%s7513_s0 + $0xe0] sm:$0xf0]  ;;  %v4667_v17 = vld [vmem:[%s7513_s0 + $0xe4] sm:$0xf0]  ;;  %v3722_v19 = vld [vmem:[%s7513_s0 + $0xe8] sm:$0xf0] }
  0x19   :  { %2117 = vmatpush.bf16.msra.mxu3 %v4856_v23  ;;  %v3717_v21 = vor.u32 %v4662_v14, %v3714_v15  ;;  %v3721_v22 = vor.u32 %v4667_v17, %v3720_v16  ;;  %v3725_v23 = vor.u32 %v4663_v18, %v3722_v19  ;;  %v4883_v36 = vld [vmem:[%s7512_s1 + $0x1a8] sm:$0xff]  ;;  %v3808_v52 = vld [vmem:[%s7513_s0 + $0x180] sm:$0xf]  ;;  %v4686_v54 = vld [vmem:[%s7513_s0 + $0x184] sm:$0xf] }
  0x1a   :  { %1719 = vmatpush.bf16.msra.mxu0 %v4831_v24  ;;  %v3744_v24 = vld [vmem:[%s7513_s0 + $0x100] sm:$0xf]  ;;  %v4867_v37 = vld [vmem:[%s7512_s1 + $0x128] sm:$0xff]  ;;  %v3810_v55 = vld [vmem:[%s7513_s0 + $0x1a0] sm:$0xf0] }
  0x1b   :  { %1852 = vmatpush.bf16.msra.mxu1 %v4839_v25  ;;  %v4674_v25 = vld [vmem:[%s7513_s0 + $0x11c] sm:$0xf0]  ;;  %v4891_v38 = vld [vmem:[%s7512_s1 + $0x1e8] sm:$0xff]  ;;  %v4694_v2 = vld [vmem:[%s7513_s0 + $0x1c4] sm:$0xf] }
  0x1c   :  { %1985 = vmatpush.bf16.msra.mxu2 %v4847_v26  ;;  %v4670_v26 = vld [vmem:[%s7513_s0 + $0x104] sm:$0xf]  ;;  %v3745_v32 = vor.u32 %v4674_v25, %v3744_v24  ;;  %v4875_v39 = vld [vmem:[%s7512_s1 + $0x168] sm:$0xff]  ;;  %v4690_v53 = vld [vmem:[%s7513_s0 + $0x19c] sm:$0xf0] }
  0x1d   :  { %2118 = vmatpush.bf16.msra.mxu3 %v4855_v27  ;;  %v3746_v27 = vld [vmem:[%s7513_s0 + $0x120] sm:$0xf0]  ;;  %v3840_v0 = vld [vmem:[%s7513_s0 + $0x1c0] sm:$0xf]  ;;  %v3848_v4 = vld [vmem:[%s7513_s0 + $0x1c8] sm:$0xf] }
  0x1e   :  { %1720 = vmatpush.bf16.msra.mxu0 %v4830_v28  ;;  %v3752_v28 = vld [vmem:[%s7513_s0 + $0x108] sm:$0xf]  ;;  %v3749_v33 = vor.u32 %v4670_v26, %v3746_v27  ;;  %v4698_v1 = vld [vmem:[%s7513_s0 + $0x1dc] sm:$0xf0]  ;;  %v3842_v3 = vld [vmem:[%s7513_s0 + $0x1e0] sm:$0xf0] }
  0x1f   :  { %1853 = vmatpush.bf16.msra.mxu1 %v4838_v29  ;;  %v4675_v29 = vld [vmem:[%s7513_s0 + $0x124] sm:$0xf0]  ;;  %v4695_v6 = vld [vmem:[%s7513_s0 + $0x1cc] sm:$0xf]  ;;  %v4882_v12 = vld [vmem:[%s7512_s1 + $0x1a0] sm:$0xff] }
  0x20   :  { %1986 = vmatpush.bf16.msra.mxu2 %v4846_v30  ;;  %v4671_v30 = vld [vmem:[%s7513_s0 + $0x10c] sm:$0xf]  ;;  %v3753_v34 = vor.u32 %v4675_v29, %v3752_v28  ;;  %v4699_v5 = vld [vmem:[%s7513_s0 + $0x1e4] sm:$0xf0]  ;;  %v4866_v13 = vld [vmem:[%s7512_s1 + $0x120] sm:$0xff] }
  0x21   :  { %2119 = vmatpush.bf16.msra.mxu3 %v4854_v31  ;;  %1721 = vmatmul.bf16.vlgmr.msra.gmra.mxu0 %v3617_v42  ;;  %v3754_v31 = vld [vmem:[%s7513_s0 + $0x128] sm:$0xf0]  ;;  %v4678_v42 = vld [vmem:[%s7513_s0 + $0x144] sm:$0xf]  ;;  %v3872_v15 = vld [vmem:[%s7513_s0 + $0x200] sm:$0xf] }
  0x22   :  { %2245 = vmatpush.bf16.msrb.mxu0 %v4869_v41  ;;  %1854 = vmatmul.bf16.vlgmr.msra.gmra.mxu1 %v3621_v43  ;;  %v3757_v35 = vor.u32 %v4671_v30, %v3754_v31  ;;  %v4682_v41 = vld [vmem:[%s7513_s0 + $0x15c] sm:$0xf0]  ;;  %v3778_v43 = vld [vmem:[%s7513_s0 + $0x160] sm:$0xf0]  ;;  %v3850_v7 = vld [vmem:[%s7513_s0 + $0x1e8] sm:$0xf0] }
  0x23   :  { %1987 = vmatmul.bf16.vlgmr.msra.gmra.mxu2 %v3625_v44  ;;  %2378 = vmatpush.bf16.msrb.mxu1 %v4877_v47  ;;  %v3784_v44 = vld [vmem:[%s7513_s0 + $0x148] sm:$0xf]  ;;  %v3786_v47 = vld [vmem:[%s7513_s0 + $0x168] sm:$0xf0]  ;;  %v3781_v49 = vor.u32 %v4678_v42, %v3778_v43  ;;  %v4890_v14 = vld [vmem:[%s7512_s1 + $0x1e0] sm:$0xff] }
  0x24   :  { %2511 = vmatpush.bf16.msrb.mxu2 %v4885_v40  ;;  %2120 = vmatmul.bf16.vlgmr.msra.gmra.mxu3 %v3629_v45  ;;  %v3776_v40 = vld [vmem:[%s7513_s0 + $0x140] sm:$0xf]  ;;  %v4683_v45 = vld [vmem:[%s7513_s0 + $0x164] sm:$0xf0]  ;;  %v4702_v18 = vld [vmem:[%s7513_s0 + $0x204] sm:$0xf] }
  0x25   :  { %2644 = vmatpush.bf16.msrb.mxu3 %v4893_v46  ;;  %v4679_v46 = vld [vmem:[%s7513_s0 + $0x14c] sm:$0xf]  ;;  %v3777_v48 = vor.u32 %v4682_v41, %v3776_v40  ;;  %v3785_v50 = vor.u32 %v4683_v45, %v3784_v44  ;;  %v4706_v16 = vld [vmem:[%s7513_s0 + $0x21c] sm:$0xf0]  ;;  %v3874_v19 = vld [vmem:[%s7513_s0 + $0x220] sm:$0xf0] }
  0x26   :  { %2246 = vmatpush.bf16.msrb.mxu0 %v4868_v61  ;;  %v3789_v51 = vor.u32 %v4679_v46, %v3786_v47  ;;  %v3813_v61 = vor.u32 %v4686_v54, %v3810_v55  ;;  %v4874_v17 = vld [vmem:[%s7512_s1 + $0x160] sm:$0xff]  ;;  %v3873_v24 = vor.u32 %v4706_v16, %v3872_v15  ;;  %v3877_v25 = vor.u32 %v4702_v18, %v3874_v19  ;;  %v3912_v42 = vld [vmem:[%s7513_s0 + $0x248] sm:$0xf]  ;;  %v4711_v44 = vld [vmem:[%s7513_s0 + $0x24c] sm:$0xf] }
  0x27   :  { %2379 = vmatpush.bf16.msrb.mxu1 %v4876_v63  ;;  %v4710_v40 = vld [vmem:[%s7513_s0 + $0x244] sm:$0xf]  ;;  %v4715_v43 = vld [vmem:[%s7513_s0 + $0x264] sm:$0xf0]  ;;  %v3914_v45 = vld [vmem:[%s7513_s0 + $0x268] sm:$0xf0] }
  0x28   :  { %2512 = vmatpush.bf16.msrb.mxu2 %v4884_v60  ;;  %v3809_v60 = vor.u32 %v4690_v53, %v3808_v52  ;;  %v3906_v41 = vld [vmem:[%s7513_s0 + $0x260] sm:$0xf0]  ;;  %v3913_v53 = vor.u32 %v4715_v43, %v3912_v42  ;;  %v3917_v54 = vor.u32 %v4711_v44, %v3914_v45 }
  0x29   :  { %2645 = vmatpush.bf16.msrb.mxu3 %v4892_v62 }
  0x2a   :  { %2247 = vmatpush.bf16.msrb.mxu0 %v4867_v37 }
  0x2b   :  { %2380 = vmatpush.bf16.msrb.mxu1 %v4875_v39  ;;  %v4714_v39 = vld [vmem:[%s7513_s0 + $0x25c] sm:$0xf0] }
  0x2c   :  { %2513 = vmatpush.bf16.msrb.mxu2 %v4883_v36 }
  0x2d   :  { %2646 = vmatpush.bf16.msrb.mxu3 %v4891_v38  ;;  %v3904_v38 = vld [vmem:[%s7513_s0 + $0x240] sm:$0xf] }
  0x2e   :  { %2248 = vmatpush.bf16.msrb.mxu0 %v4866_v13 }
  0x2f   :  { %2381 = vmatpush.bf16.msrb.mxu1 %v4874_v17 }
  0x30   :  { %2514 = vmatpush.bf16.msrb.mxu2 %v4882_v12 }
  0x31   :  { %1726 = vmatmul.bf16.gmra.mxu0 %v3649_v56  ;;  %v3816_v56 = vld [vmem:[%s7513_s0 + $0x188] sm:$0xf]  ;;  %2647 = vmatpush.bf16.msrb.mxu3 %v4890_v14 }
  0x32   :  { %1859 = vmatmul.bf16.gmra.mxu1 %v3653_v57  ;;  %v4691_v57 = vld [vmem:[%s7513_s0 + $0x1a4] sm:$0xf0] }
  0x33   :  { %1992 = vmatmul.bf16.gmra.mxu2 %v3657_v58  ;;  %v4687_v58 = vld [vmem:[%s7513_s0 + $0x18c] sm:$0xf]  ;;  %v3817_v62 = vor.u32 %v4691_v57, %v3816_v56 }
  0x34   :  { %2125 = vmatmul.bf16.gmra.mxu3 %v3661_v59  ;;  %v3818_v59 = vld [vmem:[%s7513_s0 + $0x1a8] sm:$0xf0] }
  0x35   :  { %v3821_v63 = vor.u32 %v4687_v58, %v3818_v59 }
  0x41   :  { %1731 = vmatmul.bf16.gmra.mxu0 %v3681_v8  ;;  %v3841_v8 = vor.u32 %v4698_v1, %v3840_v0  ;;  %v3936_v0 = vld [vmem:[%s7513_s0 + $0x280] sm:$0xf] }
  0x42   :  { %1864 = vmatmul.bf16.gmra.mxu1 %v3685_v9  ;;  %v3845_v9 = vor.u32 %v4694_v2, %v3842_v3  ;;  %v4722_v1 = vld [vmem:[%s7513_s0 + $0x29c] sm:$0xf0]  ;;  %v4718_v2 = vld [vmem:[%s7513_s0 + $0x284] sm:$0xf] }
  0x43   :  { %1997 = vmatmul.bf16.gmra.mxu2 %v3689_v10  ;;  %v3849_v10 = vor.u32 %v4699_v5, %v3848_v4  ;;  %v3938_v3 = vld [vmem:[%s7513_s0 + $0x2a0] sm:$0xf0]  ;;  %v3944_v4 = vld [vmem:[%s7513_s0 + $0x288] sm:$0xf] }
  0x44   :  { %2130 = vmatmul.bf16.gmra.mxu3 %v3693_v11  ;;  %v3853_v11 = vor.u32 %v4695_v6, %v3850_v7  ;;  %v4723_v5 = vld [vmem:[%s7513_s0 + $0x2a4] sm:$0xf0]  ;;  %v4719_v6 = vld [vmem:[%s7513_s0 + $0x28c] sm:$0xf] }
  0x45   :  { %v3946_v7 = vld [vmem:[%s7513_s0 + $0x2a8] sm:$0xf0]  ;;  %v3945_v15 = vor.u32 %v4723_v5, %v3944_v4 }
  0x46   :  { %v3949_v16 = vor.u32 %v4719_v6, %v3946_v7 }
  0x51   :  { %1736 = vmatmul.bf16.gmra.mxu0 %v3713_v20  ;;  %v3880_v20 = vld [vmem:[%s7513_s0 + $0x208] sm:$0xf] }
  0x52   :  { %1869 = vmatmul.bf16.gmra.mxu1 %v3717_v21  ;;  %v4707_v21 = vld [vmem:[%s7513_s0 + $0x224] sm:$0xf0] }
  0x53   :  { %2002 = vmatmul.bf16.gmra.mxu2 %v3721_v22  ;;  %v4703_v22 = vld [vmem:[%s7513_s0 + $0x20c] sm:$0xf]  ;;  %v3881_v28 = vor.u32 %v4707_v21, %v3880_v20 }
  0x54   :  { %2135 = vmatmul.bf16.gmra.mxu3 %v3725_v23  ;;  %v3882_v23 = vld [vmem:[%s7513_s0 + $0x228] sm:$0xf0] }
  0x55   :  { %v3885_v29 = vor.u32 %v4703_v22, %v3882_v23 }
  0x61   :  { %1741 = vmatmul.bf16.gmra.mxu0 %v3745_v32 }
  0x62   :  { %1874 = vmatmul.bf16.gmra.mxu1 %v3749_v33 }
  0x63   :  { %2007 = vmatmul.bf16.gmra.mxu2 %v3753_v34 }
  0x64   :  { %2140 = vmatmul.bf16.gmra.mxu3 %v3757_v35 }
  0x71   :  { %1746 = vmatmul.bf16.gmra.mxu0 %v3777_v48  ;;  %v3905_v48 = vor.u32 %v4714_v39, %v3904_v38 }
  0x72   :  { %1879 = vmatmul.bf16.gmra.mxu1 %v3781_v49  ;;  %v3909_v49 = vor.u32 %v4710_v40, %v3906_v41 }
  0x73   :  { %2012 = vmatmul.bf16.gmra.mxu2 %v3785_v50 }
  0x74   :  { %2145 = vmatmul.bf16.gmra.mxu3 %v3789_v51 }
  0x81   :  { %1751 = vmatmul.bf16.gmra.mxu0 %v3809_v60 }
  0x82   :  { %1884 = vmatmul.bf16.gmra.mxu1 %v3813_v61 }
  0x83   :  { %2017 = vmatmul.bf16.gmra.mxu2 %v3817_v62 }
  0x84   :  { %2150 = vmatmul.bf16.gmra.mxu3 %v3821_v63 }
  0x91   :  { %1756 = vmatmul.bf16.gmra.mxu0 %v3841_v8 }
  0x92   :  { %1889 = vmatmul.bf16.gmra.mxu1 %v3845_v9 }
  0x93   :  { %2022 = vmatmul.bf16.gmra.mxu2 %v3849_v10  ;;  %v3937_v10 = vor.u32 %v4722_v1, %v3936_v0  ;;  %v4739_v0 = vld [vmem:[%s7513_s0 + $0x324] sm:$0xf0]  ;;  %v4735_v1 = vld [vmem:[%s7513_s0 + $0x30c] sm:$0xf] }
  0x94   :  { %2155 = vmatmul.bf16.gmra.mxu3 %v3853_v11  ;;  %v3941_v11 = vor.u32 %v4718_v2, %v3938_v3  ;;  %v4010_v2 = vld [vmem:[%s7513_s0 + $0x328] sm:$0xf0] }
  0x9e   :  { %v1722_v26 = vpop.f32.mrf.mxu0 }
  0x9f   :  { %v1855_v27 = vpop.f32.mrf.mxu1 }
  0xa0   :  { %v1856_v30 = vadd.f32 %v1855_v27, %v1722_v26  ;;  %v4881_v26 = vld [vmem:[%s7512_s1 + $0x198] sm:$0xff] }
  0xa1   :  { %1761 = vmatmul.bf16.gmra.mxu0 %v3873_v24  ;;  %v4865_v27 = vld [vmem:[%s7512_s1 + $0x118] sm:$0xff]  ;;  %2515 = vmatpush.bf16.msrb.mxu2 %v4881_v26  ;;  %v4034_v26 = vld [vmem:[%s7513_s0 + $0x360] sm:$0xf0] }
  0xa2   :  { %1894 = vmatmul.bf16.gmra.mxu1 %v3877_v25  ;;  %2249 = vmatpush.bf16.msrb.mxu0 %v4865_v27  ;;  %v4040_v27 = vld [vmem:[%s7513_s0 + $0x348] sm:$0xf] }
  0xa3   :  { %2027 = vmatmul.bf16.gmra.mxu2 %v3881_v28  ;;  %v4889_v28 = vld [vmem:[%s7512_s1 + $0x1d8] sm:$0xff] }
  0xa4   :  { %2160 = vmatmul.bf16.gmra.mxu3 %v3885_v29  ;;  %v3968_v29 = vld [vmem:[%s7513_s0 + $0x2c0] sm:$0xf] }
  0xa5   :  { %2648 = vmatpush.bf16.msrb.mxu3 %v4889_v28  ;;  %v4747_v28 = vld [vmem:[%s7513_s0 + $0x364] sm:$0xf0] }
  0xa6   :  { %v1988_v31 = vpop.f32.mrf.mxu2  ;;  %v1724_v34 = vpop.f32.mrf.mxu0 }
  0xa7   :  { %v2121_v32 = vpop.f32.mrf.mxu3  ;;  %v1989_v33 = vadd.f32 %v1988_v31, %v1856_v30  ;;  %v1857_v35 = vpop.f32.mrf.mxu1  ;;  %v4730_v30 = vld [vmem:[%s7513_s0 + $0x2dc] sm:$0xf0]  ;;  %v4726_v31 = vld [vmem:[%s7513_s0 + $0x2c4] sm:$0xf] }
  0xa8   :  { %v1858_v36 = vadd.f32 %v1857_v35, %v1724_v34  ;;  %v4731_v34 = vld [vmem:[%s7513_s0 + $0x2e4] sm:$0xf0]  ;;  %v4727_v35 = vld [vmem:[%s7513_s0 + $0x2cc] sm:$0xf]  ;;  %v3969_v40 = vor.u32 %v4730_v30, %v3968_v29 }
  0xa9   :  { %v5430_v37 = vadd.f32 %v2121_v32, %v1989_v33  ;;  %v3970_v32 = vld [vmem:[%s7513_s0 + $0x2e0] sm:$0xf0]  ;;  %v3976_v33 = vld [vmem:[%s7513_s0 + $0x2c8] sm:$0xf]  ;;  %v4743_v29 = vld [vmem:[%s7513_s0 + $0x34c] sm:$0xf] }
  0xaa   :  { %v3973_v41 = vor.u32 %v4726_v31, %v3970_v32  ;;  %v3977_v45 = vor.u32 %v4731_v34, %v3976_v33  ;;  %v4042_v30 = vld [vmem:[%s7513_s0 + $0x368] sm:$0xf0] }
  0xae   :  { %v1990_v46 = vpop.f32.mrf.mxu2  ;;  %v1727_v51 = vpop.f32.mrf.mxu0 }
  0xaf   :  { %v2123_v47 = vpop.f32.mrf.mxu3  ;;  %v1991_v50 = vadd.f32 %v1990_v46, %v1858_v36  ;;  %v1860_v52 = vpop.f32.mrf.mxu1  ;;  %v3978_v36 = vld [vmem:[%s7513_s0 + $0x2e8] sm:$0xf0] }
  0xb0   :  { %v1861_v55 = vadd.f32 %v1860_v52, %v1727_v51  ;;  %v3981_v46 = vor.u32 %v4727_v35, %v3978_v36 }
  0xb1   :  { %v5456_v56 = vadd.f32 %v2123_v47, %v1991_v50  ;;  %1766 = vmatmul.bf16.gmra.mxu0 %v3905_v48 }
  0xb2   :  { %1899 = vmatmul.bf16.gmra.mxu1 %v3909_v49  ;;  %v4873_v49 = vld [vmem:[%s7512_s1 + $0x158] sm:$0xff] }
  0xb3   :  { %2032 = vmatmul.bf16.gmra.mxu2 %v3913_v53  ;;  %2382 = vmatpush.bf16.msrb.mxu1 %v4873_v49 }
  0xb4   :  { %2165 = vmatmul.bf16.gmra.mxu3 %v3917_v54 }
  0xb6   :  { %v1993_v57 = vpop.f32.mrf.mxu2  ;;  %v1729_v60 = vpop.f32.mrf.mxu0 }
  0xb7   :  { %v2126_v58 = vpop.f32.mrf.mxu3  ;;  %v1994_v59 = vadd.f32 %v1993_v57, %v1861_v55  ;;  %v1862_v61 = vpop.f32.mrf.mxu1 }
  0xb8   :  { %v1863_v62 = vadd.f32 %v1862_v61, %v1729_v60  ;;  %v4734_v60 = vld [vmem:[%s7513_s0 + $0x304] sm:$0xf] }
  0xb9   :  { %v5458_v63 = vadd.f32 %v2126_v58, %v1994_v59  ;;  %v4000_v58 = vld [vmem:[%s7513_s0 + $0x300] sm:$0xf]  ;;  %v4002_v61 = vld [vmem:[%s7513_s0 + $0x320] sm:$0xf0] }
  0xba   :  { %v4738_v59 = vld [vmem:[%s7513_s0 + $0x31c] sm:$0xf0]  ;;  %v4005_v6 = vor.u32 %v4734_v60, %v4002_v61  ;;  %v4751_v60 = vld [vmem:[%s7513_s0 + $0x38c] sm:$0xf] }
  0xbb   :  { %v4001_v5 = vor.u32 %v4738_v59, %v4000_v58  ;;  %v4072_v58 = vld [vmem:[%s7513_s0 + $0x388] sm:$0xf]  ;;  %v4074_v61 = vld [vmem:[%s7513_s0 + $0x3a8] sm:$0xf0] }
  0xbc   :  { %v4755_v59 = vld [vmem:[%s7513_s0 + $0x3a4] sm:$0xf0] }
  0xbe   :  { %v1995_v8 = vpop.f32.mrf.mxu2  ;;  %v1732_v13 = vpop.f32.mrf.mxu0 }
  0xbf   :  { %v2128_v9 = vpop.f32.mrf.mxu3  ;;  %v1996_v12 = vadd.f32 %v1995_v8, %v1863_v62  ;;  %v1865_v14 = vpop.f32.mrf.mxu1  ;;  %v4008_v62 = vld [vmem:[%s7513_s0 + $0x308] sm:$0xf] }
  0xc0   :  { %v1866_v17 = vadd.f32 %v1865_v14, %v1732_v13 }
  0xc1   :  { %v5484_v18 = vadd.f32 %v2128_v9, %v1996_v12  ;;  %1771 = vmatmul.bf16.gmra.mxu0 %v3937_v10  ;;  %v4009_v10 = vor.u32 %v4739_v0, %v4008_v62 }
  0xc2   :  { %1904 = vmatmul.bf16.gmra.mxu1 %v3941_v11  ;;  %v4013_v11 = vor.u32 %v4735_v1, %v4010_v2 }
  0xc3   :  { %2037 = vmatmul.bf16.gmra.mxu2 %v3945_v15 }
  0xc4   :  { %2170 = vmatmul.bf16.gmra.mxu3 %v3949_v16 }
  0xc6   :  { %v1998_v19 = vpop.f32.mrf.mxu2  ;;  %v1734_v22 = vpop.f32.mrf.mxu0 }
  0xc7   :  { %v2131_v20 = vpop.f32.mrf.mxu3  ;;  %v1999_v21 = vadd.f32 %v1998_v19, %v1866_v17  ;;  %v1867_v23 = vpop.f32.mrf.mxu1 }
  0xc8   :  { %v1868_v24 = vadd.f32 %v1867_v23, %v1734_v22  ;;  %v4032_v22 = vld [vmem:[%s7513_s0 + $0x340] sm:$0xf] }
  0xc9   :  { %v5486_v25 = vadd.f32 %v2131_v20, %v1999_v21  ;;  %v4746_v23 = vld [vmem:[%s7513_s0 + $0x35c] sm:$0xf0] }
  0xca   :  { %v4033_v33 = vor.u32 %v4746_v23, %v4032_v22  ;;  %v4096_v23 = vld [vmem:[%s7513_s0 + $0x3c0] sm:$0xf] }
  0xce   :  { %v2000_v38 = vpop.f32.mrf.mxu2  ;;  %v1737_v43 = vpop.f32.mrf.mxu0 }
  0xcf   :  { %v2133_v39 = vpop.f32.mrf.mxu3  ;;  %v2001_v42 = vadd.f32 %v2000_v38, %v1868_v24  ;;  %v1870_v44 = vpop.f32.mrf.mxu1  ;;  %v4742_v24 = vld [vmem:[%s7513_s0 + $0x344] sm:$0xf] }
  0xd0   :  { %v1871_v47 = vadd.f32 %v1870_v44, %v1737_v43  ;;  %v4037_v34 = vor.u32 %v4742_v24, %v4034_v26  ;;  %v4762_v24 = vld [vmem:[%s7513_s0 + $0x3dc] sm:$0xf0]  ;;  %v4758_v26 = vld [vmem:[%s7513_s0 + $0x3c4] sm:$0xf] }
  0xd1   :  { %v5521_v48 = vadd.f32 %v2133_v39, %v2001_v42  ;;  %1776 = vmatmul.bf16.gmra.mxu0 %v3969_v40  ;;  %v4041_v39 = vor.u32 %v4747_v28, %v4040_v27  ;;  %v4045_v40 = vor.u32 %v4743_v29, %v4042_v30  ;;  %v4098_v27 = vld [vmem:[%s7513_s0 + $0x3e0] sm:$0xf0]  ;;  %v4104_v28 = vld [vmem:[%s7513_s0 + $0x3c8] sm:$0xf]  ;;  %v4759_v30 = vld [vmem:[%s7513_s0 + $0x3cc] sm:$0xf] }
  0xd2   :  { %1909 = vmatmul.bf16.gmra.mxu1 %v3973_v41  ;;  %v4763_v29 = vld [vmem:[%s7513_s0 + $0x3e4] sm:$0xf0] }
  0xd3   :  { %2042 = vmatmul.bf16.gmra.mxu2 %v3977_v45 }
  0xd4   :  { %2175 = vmatmul.bf16.gmra.mxu3 %v3981_v46 }
  0xd6   :  { %v2003_v50 = vpop.f32.mrf.mxu2  ;;  %v1739_v53 = vpop.f32.mrf.mxu0 }
  0xd7   :  { %v2136_v51 = vpop.f32.mrf.mxu3  ;;  %v2004_v52 = vadd.f32 %v2003_v50, %v1871_v47  ;;  %v1872_v54 = vpop.f32.mrf.mxu1 }
  0xd8   :  { %v1873_v55 = vadd.f32 %v1872_v54, %v1739_v53  ;;  %v4754_v53 = vld [vmem:[%s7513_s0 + $0x39c] sm:$0xf0]  ;;  %v4750_v54 = vld [vmem:[%s7513_s0 + $0x384] sm:$0xf] }
  0xd9   :  { %v5526_v57 = vadd.f32 %v2136_v51, %v2004_v52  ;;  %v4880_v51 = vld [vmem:[%s7512_s1 + $0x190] sm:$0xff]  ;;  %v4064_v52 = vld [vmem:[%s7513_s0 + $0x380] sm:$0xf] }
  0xda   :  { %2516 = vmatpush.bf16.msrb.mxu2 %v4880_v51  ;;  %v4065_v1 = vor.u32 %v4754_v53, %v4064_v52 }
  0xde   :  { %v2005_v3 = vpop.f32.mrf.mxu2  ;;  %v1742_v8 = vpop.f32.mrf.mxu0 }
  0xdf   :  { %v2138_v4 = vpop.f32.mrf.mxu3  ;;  %v2006_v7 = vadd.f32 %v2005_v3, %v1873_v55  ;;  %v1875_v9 = vpop.f32.mrf.mxu1  ;;  %v4066_v55 = vld [vmem:[%s7513_s0 + $0x3a0] sm:$0xf0] }
  0xe0   :  { %v1876_v12 = vadd.f32 %v1875_v9, %v1742_v8  ;;  %v4069_v2 = vor.u32 %v4750_v54, %v4066_v55  ;;  %v4128_v54 = vld [vmem:[%s7513_s0 + $0x400] sm:$0xf] }
  0xe1   :  { %v5552_v13 = vadd.f32 %v2138_v4, %v2006_v7  ;;  %1781 = vmatmul.bf16.gmra.mxu0 %v4001_v5  ;;  %v4077_v7 = vor.u32 %v4751_v60, %v4074_v61  ;;  %v4770_v55 = vld [vmem:[%s7513_s0 + $0x41c] sm:$0xf0]  ;;  %v4136_v60 = vld [vmem:[%s7513_s0 + $0x408] sm:$0xf] }
  0xe2   :  { %1914 = vmatmul.bf16.gmra.mxu1 %v4005_v6  ;;  %v4073_v6 = vor.u32 %v4755_v59, %v4072_v58  ;;  %v4766_v58 = vld [vmem:[%s7513_s0 + $0x404] sm:$0xf]  ;;  %v4771_v61 = vld [vmem:[%s7513_s0 + $0x424] sm:$0xf0] }
  0xe3   :  { %2047 = vmatmul.bf16.gmra.mxu2 %v4009_v10  ;;  %v4864_v10 = vld [vmem:[%s7512_s1 + $0x110] sm:$0xff]  ;;  %v4130_v59 = vld [vmem:[%s7513_s0 + $0x420] sm:$0xf0] }
  0xe4   :  { %2180 = vmatmul.bf16.gmra.mxu3 %v4013_v11  ;;  %v4888_v11 = vld [vmem:[%s7512_s1 + $0x1d0] sm:$0xff]  ;;  %2250 = vmatpush.bf16.msrb.mxu0 %v4864_v10 }
  0xe5   :  { %2649 = vmatpush.bf16.msrb.mxu3 %v4888_v11 }
  0xe6   :  { %v2008_v14 = vpop.f32.mrf.mxu2  ;;  %v1744_v17 = vpop.f32.mrf.mxu0 }
  0xe7   :  { %v2141_v15 = vpop.f32.mrf.mxu3  ;;  %v2009_v16 = vadd.f32 %v2008_v14, %v1876_v12  ;;  %v1877_v19 = vpop.f32.mrf.mxu1  ;;  %v4872_v12 = vld [vmem:[%s7512_s1 + $0x150] sm:$0xff] }
  0xe8   :  { %v1878_v20 = vadd.f32 %v1877_v19, %v1744_v17  ;;  %2383 = vmatpush.bf16.msrb.mxu1 %v4872_v12 }
  0xe9   :  { %v5554_v21 = vadd.f32 %v2141_v15, %v2009_v16 }
  0xee   :  { %v2010_v31 = vpop.f32.mrf.mxu2  ;;  %v1747_v36 = vpop.f32.mrf.mxu0 }
  0xef   :  { %v2143_v32 = vpop.f32.mrf.mxu3  ;;  %v2011_v35 = vadd.f32 %v2010_v31, %v1878_v20  ;;  %v1880_v38 = vpop.f32.mrf.mxu1  ;;  %v4106_v31 = vld [vmem:[%s7513_s0 + $0x3e8] sm:$0xf0] }
  0xf0   :  { %v1881_v41 = vadd.f32 %v1880_v38, %v1747_v36 }
  0xf1   :  { %v5580_v42 = vadd.f32 %v2143_v32, %v2011_v35  ;;  %1786 = vmatmul.bf16.gmra.mxu0 %v4033_v33  ;;  %v4101_v35 = vor.u32 %v4758_v26, %v4098_v27  ;;  %v4778_v26 = vld [vmem:[%s7513_s0 + $0x45c] sm:$0xf0]  ;;  %v4774_v27 = vld [vmem:[%s7513_s0 + $0x444] sm:$0xf] }
  0xf2   :  { %1919 = vmatmul.bf16.gmra.mxu1 %v4037_v34  ;;  %v4097_v34 = vor.u32 %v4762_v24, %v4096_v23  ;;  %v4160_v24 = vld [vmem:[%s7513_s0 + $0x440] sm:$0xf] }
  0xf3   :  { %2052 = vmatmul.bf16.gmra.mxu2 %v4041_v39 }
  0xf4   :  { %2185 = vmatmul.bf16.gmra.mxu3 %v4045_v40  ;;  %v4105_v40 = vor.u32 %v4763_v29, %v4104_v28  ;;  %v4162_v28 = vld [vmem:[%s7513_s0 + $0x460] sm:$0xf0]  ;;  %v4168_v29 = vld [vmem:[%s7513_s0 + $0x448] sm:$0xf] }
  0xf6   :  { %v2013_v43 = vpop.f32.mrf.mxu2  ;;  %v1749_v46 = vpop.f32.mrf.mxu0 }
  0xf7   :  { %v2146_v44 = vpop.f32.mrf.mxu3  ;;  %v2014_v45 = vadd.f32 %v2013_v43, %v1881_v41  ;;  %v1882_v47 = vpop.f32.mrf.mxu1  ;;  %v4109_v41 = vor.u32 %v4759_v30, %v4106_v31  ;;  %v4779_v30 = vld [vmem:[%s7513_s0 + $0x464] sm:$0xf0]  ;;  %v4775_v31 = vld [vmem:[%s7513_s0 + $0x44c] sm:$0xf] }
  0xf8   :  { %v1883_v49 = vadd.f32 %v1882_v47, %v1749_v46 }
  0xf9   :  { %v5582_v50 = vadd.f32 %v2146_v44, %v2014_v45 }
  0xfe   :  { %v2015_v62 = vpop.f32.mrf.mxu2  ;;  %v1752_v4 = vpop.f32.mrf.mxu0 }
  0xff   :  { %v2148_v0 = vpop.f32.mrf.mxu3  ;;  %v2016_v3 = vadd.f32 %v2015_v62, %v1883_v49  ;;  %v1885_v5 = vpop.f32.mrf.mxu1  ;;  %v4767_v62 = vld [vmem:[%s7513_s0 + $0x40c] sm:$0xf] }
 0x100   :  { %v1886_v8 = vadd.f32 %v1885_v5, %v1752_v4  ;;  %v4133_v4 = vor.u32 %v4766_v58, %v4130_v59 }
 0x101   :  { %v5611_v9 = vadd.f32 %v2148_v0, %v2016_v3  ;;  %1791 = vmatmul.bf16.gmra.mxu0 %v4065_v1  ;;  %v4138_v0 = vld [vmem:[%s7513_s0 + $0x428] sm:$0xf0]  ;;  %v4129_v3 = vor.u32 %v4770_v55, %v4128_v54 }
 0x102   :  { %1924 = vmatmul.bf16.gmra.mxu1 %v4069_v2  ;;  %v4141_v10 = vor.u32 %v4767_v62, %v4138_v0  ;;  %v4192_v0 = vld [vmem:[%s7513_s0 + $0x480] sm:$0xf] }
 0x103   :  { %2057 = vmatmul.bf16.gmra.mxu2 %v4073_v6 }
 0x104   :  { %2190 = vmatmul.bf16.gmra.mxu3 %v4077_v7 }
 0x106   :  { %v2018_v14 = vpop.f32.mrf.mxu2  ;;  %v1754_v17 = vpop.f32.mrf.mxu0 }
 0x107   :  { %v2151_v15 = vpop.f32.mrf.mxu3  ;;  %v2019_v16 = vadd.f32 %v2018_v14, %v1886_v8  ;;  %v1887_v19 = vpop.f32.mrf.mxu1  ;;  %v4137_v8 = vor.u32 %v4771_v61, %v4136_v60 }
 0x108   :  { %v1888_v20 = vadd.f32 %v1887_v19, %v1754_v17 }
 0x109   :  { %v5622_v22 = vadd.f32 %v2151_v15, %v2019_v16 }
 0x10e   :  { %v2020_v32 = vpop.f32.mrf.mxu2  ;;  %v1757_v38 = vpop.f32.mrf.mxu0 }
 0x10f   :  { %v2153_v33 = vpop.f32.mrf.mxu3  ;;  %v2021_v36 = vadd.f32 %v2020_v32, %v1888_v20  ;;  %v1890_v39 = vpop.f32.mrf.mxu1  ;;  %v4170_v32 = vld [vmem:[%s7513_s0 + $0x468] sm:$0xf0] }
 0x110   :  { %v1891_v43 = vadd.f32 %v1890_v39, %v1757_v38 }
 0x111   :  { %v5648_v44 = vadd.f32 %v2153_v33, %v2021_v36  ;;  %1796 = vmatmul.bf16.gmra.mxu0 %v4097_v34  ;;  %v4165_v36 = vor.u32 %v4774_v27, %v4162_v28 }
 0x112   :  { %1929 = vmatmul.bf16.gmra.mxu1 %v4101_v35  ;;  %v4161_v35 = vor.u32 %v4778_v26, %v4160_v24 }
 0x113   :  { %2062 = vmatmul.bf16.gmra.mxu2 %v4105_v40 }
 0x114   :  { %2195 = vmatmul.bf16.gmra.mxu3 %v4109_v41  ;;  %v4169_v41 = vor.u32 %v4779_v30, %v4168_v29 }
 0x116   :  { %v2023_v45 = vpop.f32.mrf.mxu2  ;;  %v1759_v49 = vpop.f32.mrf.mxu0 }
 0x117   :  { %v2156_v46 = vpop.f32.mrf.mxu3  ;;  %v2024_v47 = vadd.f32 %v2023_v45, %v1891_v43  ;;  %v1892_v51 = vpop.f32.mrf.mxu1  ;;  %v4173_v43 = vor.u32 %v4775_v31, %v4170_v32 }
 0x118   :  { %v1893_v52 = vadd.f32 %v1892_v51, %v1759_v49  ;;  %v4863_v49 = vld [vmem:[%s7512_s1 + $0x108] sm:$0xff] }
 0x119   :  { %v5650_v53 = vadd.f32 %v2156_v46, %v2024_v47  ;;  %v4879_v47 = vld [vmem:[%s7512_s1 + $0x188] sm:$0xff]  ;;  %2251 = vmatpush.bf16.msrb.mxu0 %v4863_v49 }
 0x11a   :  { %v4887_v51 = vld [vmem:[%s7512_s1 + $0x1c8] sm:$0xff]  ;;  %2517 = vmatpush.bf16.msrb.mxu2 %v4879_v47 }
 0x11b   :  { %2650 = vmatpush.bf16.msrb.mxu3 %v4887_v51 }
 0x11e   :  { %v2025_v1 = vpop.f32.mrf.mxu2  ;;  %v1762_v6 = vpop.f32.mrf.mxu0 }
 0x11f   :  { %v2158_v2 = vpop.f32.mrf.mxu3  ;;  %v2026_v5 = vadd.f32 %v2025_v1, %v1893_v52  ;;  %v1895_v7 = vpop.f32.mrf.mxu1  ;;  %v4871_v52 = vld [vmem:[%s7512_s1 + $0x148] sm:$0xff]  ;;  %v4786_v1 = vld [vmem:[%s7513_s0 + $0x49c] sm:$0xf0] }
 0x120   :  { %v1896_v11 = vadd.f32 %v1895_v7, %v1762_v6  ;;  %2384 = vmatpush.bf16.msrb.mxu1 %v4871_v52  ;;  %v4783_v6 = vld [vmem:[%s7513_s0 + $0x48c] sm:$0xf] }
 0x121   :  { %v5676_v12 = vadd.f32 %v2158_v2, %v2026_v5  ;;  %1801 = vmatmul.bf16.gmra.mxu0 %v4129_v3  ;;  %v4782_v2 = vld [vmem:[%s7513_s0 + $0x484] sm:$0xf]  ;;  %v4787_v5 = vld [vmem:[%s7513_s0 + $0x4a4] sm:$0xf0]  ;;  %v4202_v7 = vld [vmem:[%s7513_s0 + $0x4a8] sm:$0xf0] }
 0x122   :  { %1934 = vmatmul.bf16.gmra.mxu1 %v4133_v4  ;;  %v4194_v3 = vld [vmem:[%s7513_s0 + $0x4a0] sm:$0xf0]  ;;  %v4200_v4 = vld [vmem:[%s7513_s0 + $0x488] sm:$0xf] }
 0x123   :  { %2067 = vmatmul.bf16.gmra.mxu2 %v4137_v8 }
 0x124   :  { %2200 = vmatmul.bf16.gmra.mxu3 %v4141_v10 }
 0x126   :  { %v2028_v14 = vpop.f32.mrf.mxu2  ;;  %v1764_v17 = vpop.f32.mrf.mxu0 }
 0x127   :  { %v2161_v15 = vpop.f32.mrf.mxu3  ;;  %v2029_v16 = vadd.f32 %v2028_v14, %v1896_v11  ;;  %v1897_v19 = vpop.f32.mrf.mxu1  ;;  %v4193_v11 = vor.u32 %v4786_v1, %v4192_v0  ;;  %v4197_v14 = vor.u32 %v4782_v2, %v4194_v3 }
 0x128   :  { %v1898_v20 = vadd.f32 %v1897_v19, %v1764_v17  ;;  %v4201_v19 = vor.u32 %v4787_v5, %v4200_v4 }
 0x129   :  { %v5678_v23 = vadd.f32 %v2161_v15, %v2029_v16 }
 0x12e   :  { %v2030_v33 = vpop.f32.mrf.mxu2  ;;  %v1767_v39 = vpop.f32.mrf.mxu0 }
 0x12f   :  { %v2163_v34 = vpop.f32.mrf.mxu3  ;;  %v2031_v38 = vadd.f32 %v2030_v33, %v1898_v20  ;;  %v1900_v40 = vpop.f32.mrf.mxu1  ;;  %v4205_v20 = vor.u32 %v4783_v6, %v4202_v7  ;;  %v4256_v7 = vld [vmem:[%s7513_s0 + $0x500] sm:$0xf] }
 0x130   :  { %v1901_v45 = vadd.f32 %v1900_v40, %v1767_v39  ;;  %v4232_v39 = vld [vmem:[%s7513_s0 + $0x4c8] sm:$0xf] }
 0x131   :  { %v5704_v46 = vadd.f32 %v2163_v34, %v2031_v38  ;;  %1806 = vmatmul.bf16.gmra.mxu0 %v4161_v35  ;;  %v4224_v34 = vld [vmem:[%s7513_s0 + $0x4c0] sm:$0xf]  ;;  %v4226_v38 = vld [vmem:[%s7513_s0 + $0x4e0] sm:$0xf0]  ;;  %v4795_v40 = vld [vmem:[%s7513_s0 + $0x4e4] sm:$0xf0] }
 0x132   :  { %1939 = vmatmul.bf16.gmra.mxu1 %v4165_v36  ;;  %v4794_v35 = vld [vmem:[%s7513_s0 + $0x4dc] sm:$0xf0]  ;;  %v4790_v36 = vld [vmem:[%s7513_s0 + $0x4c4] sm:$0xf] }
 0x133   :  { %2072 = vmatmul.bf16.gmra.mxu2 %v4169_v41  ;;  %v4791_v41 = vld [vmem:[%s7513_s0 + $0x4cc] sm:$0xf]  ;;  %v4225_v49 = vor.u32 %v4794_v35, %v4224_v34  ;;  %v4229_v51 = vor.u32 %v4790_v36, %v4226_v38  ;;  %v4878_v36 = vld [vmem:[%s7512_s1 + $0x180] sm:$0xff] }
 0x134   :  { %2205 = vmatmul.bf16.gmra.mxu3 %v4173_v43  ;;  %v4234_v43 = vld [vmem:[%s7513_s0 + $0x4e8] sm:$0xf0]  ;;  %v4862_v38 = vld [vmem:[%s7512_s1 + $0x100] sm:$0xff]  ;;  %2518 = vmatpush.bf16.msrb.mxu2 %v4878_v36 }
 0x135   :  { %2252 = vmatpush.bf16.msrb.mxu0 %v4862_v38  ;;  %v4322_v36 = vld [vmem:[%s7513_s0 + $0x5a0] sm:$0xf0]  ;;  %v4328_v38 = vld [vmem:[%s7513_s0 + $0x588] sm:$0xf] }
 0x136   :  { %v2033_v54 = vpop.f32.mrf.mxu2  ;;  %v1769_v59 = vpop.f32.mrf.mxu0 }
 0x137   :  { %v2166_v55 = vpop.f32.mrf.mxu3  ;;  %v2034_v58 = vadd.f32 %v2033_v54, %v1901_v45  ;;  %v1902_v60 = vpop.f32.mrf.mxu1 }
 0x138   :  { %v1903_v61 = vadd.f32 %v1902_v60, %v1769_v59  ;;  %v4237_v59 = vor.u32 %v4791_v41, %v4234_v43 }
 0x139   :  { %v5718_v62 = vadd.f32 %v2166_v55, %v2034_v58  ;;  %v4233_v58 = vor.u32 %v4795_v40, %v4232_v39  ;;  %v4886_v39 = vld [vmem:[%s7512_s1 + $0x1c0] sm:$0xff] }
 0x13a   :  { %v4870_v40 = vld [vmem:[%s7512_s1 + $0x140] sm:$0xff]  ;;  %2651 = vmatpush.bf16.msrb.mxu3 %v4886_v39  ;;  %v4819_v39 = vld [vmem:[%s7513_s0 + $0x5a4] sm:$0xf0] }
 0x13b   :  { %2385 = vmatpush.bf16.msrb.mxu1 %v4870_v40  ;;  %v4815_v40 = vld [vmem:[%s7513_s0 + $0x58c] sm:$0xf] }
 0x13e   :  { %v2035_v8 = vpop.f32.mrf.mxu2  ;;  %v1772_v16 = vpop.f32.mrf.mxu0 }
 0x13f   :  { %v2168_v10 = vpop.f32.mrf.mxu3  ;;  %v2036_v15 = vadd.f32 %v2035_v8, %v1903_v61  ;;  %v1905_v17 = vpop.f32.mrf.mxu1  ;;  %v4802_v8 = vld [vmem:[%s7513_s0 + $0x51c] sm:$0xf0] }
 0x140   :  { %v1906_v24 = vadd.f32 %v1905_v17, %v1772_v16  ;;  %v4799_v16 = vld [vmem:[%s7513_s0 + $0x50c] sm:$0xf] }
 0x141   :  { %v5744_v26 = vadd.f32 %v2168_v10, %v2036_v15  ;;  %1811 = vmatmul.bf16.gmra.mxu0 %v4193_v11  ;;  %v4798_v10 = vld [vmem:[%s7513_s0 + $0x504] sm:$0xf]  ;;  %v4803_v15 = vld [vmem:[%s7513_s0 + $0x524] sm:$0xf0]  ;;  %v4266_v17 = vld [vmem:[%s7513_s0 + $0x528] sm:$0xf0] }
 0x142   :  { %1944 = vmatmul.bf16.gmra.mxu1 %v4197_v14  ;;  %v4258_v11 = vld [vmem:[%s7513_s0 + $0x520] sm:$0xf0]  ;;  %v4264_v14 = vld [vmem:[%s7513_s0 + $0x508] sm:$0xf] }
 0x143   :  { %2077 = vmatmul.bf16.gmra.mxu2 %v4201_v19 }
 0x144   :  { %2210 = vmatmul.bf16.gmra.mxu3 %v4205_v20 }
 0x146   :  { %v2038_v27 = vpop.f32.mrf.mxu2  ;;  %v1774_v30 = vpop.f32.mrf.mxu0 }
 0x147   :  { %v2171_v28 = vpop.f32.mrf.mxu3  ;;  %v2039_v29 = vadd.f32 %v2038_v27, %v1906_v24  ;;  %v1907_v31 = vpop.f32.mrf.mxu1  ;;  %v4257_v24 = vor.u32 %v4802_v8, %v4256_v7  ;;  %v4261_v27 = vor.u32 %v4798_v10, %v4258_v11 }
 0x148   :  { %v1908_v32 = vadd.f32 %v1907_v31, %v1774_v30  ;;  %v4265_v31 = vor.u32 %v4803_v15, %v4264_v14 }
 0x149   :  { %v5746_v33 = vadd.f32 %v2171_v28, %v2039_v29 }
 0x14e   :  { %v2040_v45 = vpop.f32.mrf.mxu2  ;;  %v1777_v54 = vpop.f32.mrf.mxu0 }
 0x14f   :  { %v2173_v47 = vpop.f32.mrf.mxu3  ;;  %v2041_v52 = vadd.f32 %v2040_v45, %v1908_v32  ;;  %v1910_v55 = vpop.f32.mrf.mxu1  ;;  %v4269_v32 = vor.u32 %v4799_v16, %v4266_v17 }
 0x150   :  { %v1911_v60 = vadd.f32 %v1910_v55, %v1777_v54  ;;  %v4288_v54 = vld [vmem:[%s7513_s0 + $0x540] sm:$0xf] }
 0x151   :  { %v5772_v61 = vadd.f32 %v2173_v47, %v2041_v52  ;;  %1816 = vmatmul.bf16.gmra.mxu0 %v4225_v49  ;;  %v4810_v55 = vld [vmem:[%s7513_s0 + $0x55c] sm:$0xf0] }
 0x152   :  { %1949 = vmatmul.bf16.gmra.mxu1 %v4229_v51 }
 0x153   :  { %2082 = vmatmul.bf16.gmra.mxu2 %v4233_v58  ;;  %v4806_v58 = vld [vmem:[%s7513_s0 + $0x544] sm:$0xf] }
 0x154   :  { %2215 = vmatmul.bf16.gmra.mxu3 %v4237_v59  ;;  %v4290_v59 = vld [vmem:[%s7513_s0 + $0x560] sm:$0xf0] }
 0x155   :  { %v4293_v7 = vor.u32 %v4806_v58, %v4290_v59  ;;  %v4329_v58 = vor.u32 %v4819_v39, %v4328_v38 }
 0x156   :  { %v2043_v0 = vpop.f32.mrf.mxu2  ;;  %v1779_v3 = vpop.f32.mrf.mxu0 }
 0x157   :  { %v2176_v1 = vpop.f32.mrf.mxu3  ;;  %v2044_v2 = vadd.f32 %v2043_v0, %v1911_v60  ;;  %v1912_v4 = vpop.f32.mrf.mxu1  ;;  %v4296_v60 = vld [vmem:[%s7513_s0 + $0x548] sm:$0xf] }
 0x158   :  { %v1913_v5 = vadd.f32 %v1912_v4, %v1779_v3  ;;  %v4811_v0 = vld [vmem:[%s7513_s0 + $0x564] sm:$0xf0] }
 0x159   :  { %v5774_v6 = vadd.f32 %v2176_v1, %v2044_v2  ;;  %v4807_v1 = vld [vmem:[%s7513_s0 + $0x54c] sm:$0xf]  ;;  %v4297_v14 = vor.u32 %v4811_v0, %v4296_v60 }
 0x15a   :  { %v4298_v2 = vld [vmem:[%s7513_s0 + $0x568] sm:$0xf0] }
 0x15b   :  { %v4301_v15 = vor.u32 %v4807_v1, %v4298_v2 }
 0x15e   :  { %v2045_v19 = vpop.f32.mrf.mxu2  ;;  %v1782_v29 = vpop.f32.mrf.mxu0 }
 0x15f   :  { %v2178_v20 = vpop.f32.mrf.mxu3  ;;  %v2046_v28 = vadd.f32 %v2045_v19, %v1913_v5  ;;  %v1915_v30 = vpop.f32.mrf.mxu1  ;;  %v4289_v5 = vor.u32 %v4810_v55, %v4288_v54 }
 0x160   :  { %v1916_v34 = vadd.f32 %v1915_v30, %v1782_v29 }
 0x161   :  { %v5800_v35 = vadd.f32 %v2178_v20, %v2046_v28  ;;  %1821 = vmatmul.bf16.gmra.mxu0 %v4257_v24 }
 0x162   :  { %1954 = vmatmul.bf16.gmra.mxu1 %v4261_v27 }
 0x163   :  { %2087 = vmatmul.bf16.gmra.mxu2 %v4265_v31  ;;  %v4320_v31 = vld [vmem:[%s7513_s0 + $0x580] sm:$0xf] }
 0x164   :  { %2220 = vmatmul.bf16.gmra.mxu3 %v4269_v32  ;;  %v4818_v32 = vld [vmem:[%s7513_s0 + $0x59c] sm:$0xf0] }
 0x166   :  { %v2048_v41 = vpop.f32.mrf.mxu2  ;;  %v1784_v47 = vpop.f32.mrf.mxu0 }
 0x167   :  { %v2181_v43 = vpop.f32.mrf.mxu3  ;;  %v2049_v45 = vadd.f32 %v2048_v41, %v1916_v34  ;;  %v1917_v49 = vpop.f32.mrf.mxu1  ;;  %v4814_v34 = vld [vmem:[%s7513_s0 + $0x584] sm:$0xf]  ;;  %v4330_v41 = vld [vmem:[%s7513_s0 + $0x5a8] sm:$0xf0] }
 0x168   :  { %v1918_v51 = vadd.f32 %v1917_v49, %v1784_v47  ;;  %v4321_v47 = vor.u32 %v4818_v32, %v4320_v31  ;;  %v4325_v49 = vor.u32 %v4814_v34, %v4322_v36  ;;  %v4333_v59 = vor.u32 %v4815_v40, %v4330_v41 }
 0x169   :  { %v5814_v52 = vadd.f32 %v2181_v43, %v2049_v45 }
 0x16e   :  { %v2050_v3 = vpop.f32.mrf.mxu2  ;;  %v1787_v10 = vpop.f32.mrf.mxu0 }
 0x16f   :  { %v2183_v4 = vpop.f32.mrf.mxu3  ;;  %v2051_v8 = vadd.f32 %v2050_v3, %v1918_v51  ;;  %v1920_v11 = vpop.f32.mrf.mxu1 }
 0x170   :  { %v1921_v16 = vadd.f32 %v1920_v11, %v1787_v10  ;;  %v4352_v10 = vld [vmem:[%s7513_s0 + $0x5c0] sm:$0xf] }
 0x171   :  { %v5840_v17 = vadd.f32 %v2183_v4, %v2051_v8  ;;  %1826 = vmatmul.bf16.gmra.mxu0 %v4289_v5  ;;  %v4826_v11 = vld [vmem:[%s7513_s0 + $0x5dc] sm:$0xf0] }
 0x172   :  { %1959 = vmatmul.bf16.gmra.mxu1 %v4293_v7 }
 0x173   :  { %2092 = vmatmul.bf16.gmra.mxu2 %v4297_v14  ;;  %v4822_v14 = vld [vmem:[%s7513_s0 + $0x5c4] sm:$0xf] }
 0x174   :  { %2225 = vmatmul.bf16.gmra.mxu3 %v4301_v15  ;;  %v4354_v15 = vld [vmem:[%s7513_s0 + $0x5e0] sm:$0xf0] }
 0x175   :  { %v4357_v31 = vor.u32 %v4822_v14, %v4354_v15 }
 0x176   :  { %v2053_v19 = vpop.f32.mrf.mxu2  ;;  %v1789_v27 = vpop.f32.mrf.mxu0 }
 0x177   :  { %v2186_v20 = vpop.f32.mrf.mxu3  ;;  %v2054_v24 = vadd.f32 %v2053_v19, %v1921_v16  ;;  %v1922_v28 = vpop.f32.mrf.mxu1  ;;  %v4360_v16 = vld [vmem:[%s7513_s0 + $0x5c8] sm:$0xf] }
 0x178   :  { %v1923_v29 = vadd.f32 %v1922_v28, %v1789_v27  ;;  %v4827_v19 = vld [vmem:[%s7513_s0 + $0x5e4] sm:$0xf0] }
 0x179   :  { %v5842_v30 = vadd.f32 %v2186_v20, %v2054_v24  ;;  %v4823_v20 = vld [vmem:[%s7513_s0 + $0x5cc] sm:$0xf]  ;;  %v4361_v38 = vor.u32 %v4827_v19, %v4360_v16 }
 0x17a   :  { %v4362_v24 = vld [vmem:[%s7513_s0 + $0x5e8] sm:$0xf0] }
 0x17b   :  { %v4365_v39 = vor.u32 %v4823_v20, %v4362_v24 }
 0x17e   :  { %v2055_v43 = vpop.f32.mrf.mxu2  ;;  %v1792_v54 = vpop.f32.mrf.mxu0 }
 0x17f   :  { %v2188_v45 = vpop.f32.mrf.mxu3  ;;  %v2056_v51 = vadd.f32 %v2055_v43, %v1923_v29  ;;  %v1925_v55 = vpop.f32.mrf.mxu1  ;;  %v4353_v29 = vor.u32 %v4826_v11, %v4352_v10 }
 0x180   :  { %v1926_v60 = vadd.f32 %v1925_v55, %v1792_v54  ;;  %v209_v54 = vld [vmem:[%s7513_s0 + $0x600] sm:$0xff] }
 0x181   :  { %v5868_v0 = vadd.f32 %v2188_v45, %v2056_v51  ;;  %1831 = vmatmul.bf16.gmra.mxu0 %v4321_v47 }
 0x182   :  { %1964 = vmatmul.bf16.gmra.mxu1 %v4325_v49 }
 0x183   :  { %2097 = vmatmul.bf16.gmra.mxu2 %v4329_v58  ;;  %v210_v58 = vld [vmem:[%s7513_s0 + $0x608] sm:$0xff] }
 0x184   :  { %2230 = vmatmul.bf16.gmra.mxu3 %v4333_v59 }
 0x186   :  { %v2058_v1 = vpop.f32.mrf.mxu2  ;;  %v1794_v4 = vpop.f32.mrf.mxu0 }
 0x187   :  { %v2191_v2 = vpop.f32.mrf.mxu3  ;;  %v2059_v3 = vadd.f32 %v2058_v1, %v1926_v60  ;;  %v1927_v5 = vpop.f32.mrf.mxu1  ;;  %v921_v60 = vunpack.c.l.b16 %v209_v54  ;;  %v922_v1 = vunpack.c.h.b16 %v209_v54 }
 0x188   :  { %v1928_v7 = vadd.f32 %v1927_v5, %v1794_v4 }
 0x189   :  { %v5870_v8 = vadd.f32 %v2191_v2, %v2059_v3  ;;  %v923_v2 = vunpack.c.l.b16 %v210_v58  ;;  %v924_v3 = vunpack.c.h.b16 %v210_v58  ;;  %v1122_v10 = vpack.c.b16 %v922_v1, %v922_v1 }
 0x18b   :  { %v1123_v16 = vpack.c.b16 %v923_v2, %v923_v2  ;;  %v1124_v19 = vpack.c.b16 %v924_v3, %v924_v3 }
 0x18e   :  { %v2060_v27 = vpop.f32.mrf.mxu2  ;;  %v1797_v34 = vpop.f32.mrf.mxu0 }
 0x18f   :  { %v2193_v28 = vpop.f32.mrf.mxu3  ;;  %v2061_v32 = vadd.f32 %v2060_v27, %v1928_v7  ;;  %v1930_v36 = vpop.f32.mrf.mxu1  ;;  %v1121_v7 = vpack.c.b16 %v921_v60, %v921_v60 }
 0x190   :  { %v1931_v40 = vadd.f32 %v1930_v36, %v1797_v34 }
 0x191   :  { %v5896_v41 = vadd.f32 %v2193_v28, %v2061_v32  ;;  %1836 = vmatmul.bf16.gmra.mxu0 %v4353_v29 }
 0x192   :  { %1969 = vmatmul.bf16.gmra.mxu1 %v4357_v31 }
 0x193   :  { %2102 = vmatmul.bf16.gmra.mxu2 %v4361_v38  ;;  %v3632_v38 = vld [vmem:[%s7513_s0 + $0x10] sm:$0xf] }
 0x194   :  { %2235 = vmatmul.bf16.gmra.mxu3 %v4365_v39  ;;  %v4644_v39 = vld [vmem:[%s7513_s0 + $0x2c] sm:$0xf0] }
 0x195   :  { %v3633_v58 = vor.u32 %v4644_v39, %v3632_v38  ;;  %v4653_v38 = vld [vmem:[%s7513_s0 + $0x74] sm:$0xf0]  ;;  %v4649_v39 = vld [vmem:[%s7513_s0 + $0x5c] sm:$0xf] }
 0x196   :  { %v2063_v43 = vpop.f32.mrf.mxu2  ;;  %v1799_v49 = vpop.f32.mrf.mxu0 }
 0x197   :  { %v2196_v45 = vpop.f32.mrf.mxu3  ;;  %v2064_v47 = vadd.f32 %v2063_v43, %v1931_v40  ;;  %v1932_v51 = vpop.f32.mrf.mxu1  ;;  %v4640_v40 = vld [vmem:[%s7513_s0 + $0x14] sm:$0xf] }
 0x198   :  { %v1933_v55 = vadd.f32 %v1932_v51, %v1799_v49  ;;  %v3634_v43 = vld [vmem:[%s7513_s0 + $0x30] sm:$0xf0]  ;;  %v4641_v49 = vld [vmem:[%s7513_s0 + $0x1c] sm:$0xf] }
 0x199   :  { %v5904_v59 = vadd.f32 %v2196_v45, %v2064_v47  ;;  %v3640_v45 = vld [vmem:[%s7513_s0 + $0x18] sm:$0xf]  ;;  %v3642_v51 = vld [vmem:[%s7513_s0 + $0x38] sm:$0xf0]  ;;  %v3637_v60 = vor.u32 %v4640_v40, %v3634_v43 }
 0x19a   :  { %v4645_v47 = vld [vmem:[%s7513_s0 + $0x34] sm:$0xf0]  ;;  %v3674_v40 = vld [vmem:[%s7513_s0 + $0x78] sm:$0xf0] }
 0x19e   :  { %v2065_v4 = vpop.f32.mrf.mxu2  ;;  %v1802_v14 = vpop.f32.mrf.mxu0 }
 0x19f   :  { %v2198_v5 = vpop.f32.mrf.mxu3  ;;  %v2066_v11 = vadd.f32 %v2065_v4, %v1933_v55  ;;  %v1935_v15 = vpop.f32.mrf.mxu1  ;;  %v3641_v4 = vor.u32 %v4645_v47, %v3640_v45 }
 0x1a0   :  { %v1936_v20 = vadd.f32 %v1935_v15, %v1802_v14 }
 0x1a1   :  { %v5906_v24 = vadd.f32 %v2198_v5, %v2066_v11  ;;  %1841 = vmatmul.bf16.gmra.mxu0 %v1121_v7  ;;  %v3645_v5 = vor.u32 %v4641_v49, %v3642_v51 }
 0x1a2   :  { %1974 = vmatmul.bf16.gmra.mxu1 %v1122_v10 }
 0x1a3   :  { %2107 = vmatmul.bf16.gmra.mxu2 %v1123_v16 }
 0x1a4   :  { %2240 = vmatmul.bf16.gmra.mxu3 %v1124_v19 }
 0x1a6   :  { %v2068_v27 = vpop.f32.mrf.mxu2  ;;  %v1804_v31 = vpop.f32.mrf.mxu0 }
 0x1a7   :  { %v2201_v28 = vpop.f32.mrf.mxu3  ;;  %v2069_v29 = vadd.f32 %v2068_v27, %v1936_v20  ;;  %v1937_v32 = vpop.f32.mrf.mxu1 }
 0x1a8   :  { %v1938_v34 = vadd.f32 %v1937_v32, %v1804_v31  ;;  %v4648_v31 = vld [vmem:[%s7513_s0 + $0x54] sm:$0xf] }
 0x1a9   :  { %v5908_v36 = vadd.f32 %v2201_v28, %v2069_v29  ;;  %v3664_v28 = vld [vmem:[%s7513_s0 + $0x50] sm:$0xf]  ;;  %v3666_v32 = vld [vmem:[%s7513_s0 + $0x70] sm:$0xf0] }
 0x1aa   :  { %v4652_v29 = vld [vmem:[%s7513_s0 + $0x6c] sm:$0xf0]  ;;  %v3669_v49 = vor.u32 %v4648_v31, %v3666_v32  ;;  %v4661_v31 = vld [vmem:[%s7513_s0 + $0xb4] sm:$0xf0]  ;;  %v4657_v32 = vld [vmem:[%s7513_s0 + $0x9c] sm:$0xf] }
 0x1ab   :  { %v3665_v47 = vor.u32 %v4652_v29, %v3664_v28  ;;  %v3698_v28 = vld [vmem:[%s7513_s0 + $0xb0] sm:$0xf0]  ;;  %v3704_v29 = vld [vmem:[%s7513_s0 + $0x98] sm:$0xf] }
 0x1ae   :  { %v2070_v54 = vpop.f32.mrf.mxu2  ;;  %v1807_v2 = vpop.f32.mrf.mxu0 }
 0x1af   :  { %v2203_v55 = vpop.f32.mrf.mxu3  ;;  %v2071_v1 = vadd.f32 %v2070_v54, %v1938_v34  ;;  %v1940_v3 = vpop.f32.mrf.mxu1  ;;  %v3672_v34 = vld [vmem:[%s7513_s0 + $0x58] sm:$0xf] }
 0x1b0   :  { %v1941_v7 = vadd.f32 %v1940_v3, %v1807_v2 }
 0x1b1   :  { %v5934_v10 = vadd.f32 %v2203_v55, %v2071_v1  ;;  %2253 = vmatmul.bf16.vlgmr.msrb.gmra.mxu0 %v3633_v58  ;;  %v3673_v58 = vor.u32 %v4653_v38, %v3672_v34  ;;  %v3706_v34 = vld [vmem:[%s7513_s0 + $0xb8] sm:$0xf0] }
 0x1b2   :  { %2386 = vmatmul.bf16.vlgmr.msrb.gmra.mxu1 %v3637_v60  ;;  %v3677_v60 = vor.u32 %v4649_v39, %v3674_v40 }
 0x1b3   :  { %2519 = vmatmul.bf16.vlgmr.msrb.gmra.mxu2 %v3641_v4 }
 0x1b4   :  { %2652 = vmatmul.bf16.vlgmr.msrb.gmra.mxu3 %v3645_v5 }
 0x1b6   :  { %v2073_v11 = vpop.f32.mrf.mxu2  ;;  %v1809_v16 = vpop.f32.mrf.mxu0 }
 0x1b7   :  { %v2206_v14 = vpop.f32.mrf.mxu3  ;;  %v2074_v15 = vadd.f32 %v2073_v11, %v1941_v7  ;;  %v1942_v19 = vpop.f32.mrf.mxu1 }
 0x1b8   :  { %v1943_v20 = vadd.f32 %v1942_v19, %v1809_v16  ;;  %v3696_v16 = vld [vmem:[%s7513_s0 + $0x90] sm:$0xf] }
 0x1b9   :  { %v5936_v27 = vadd.f32 %v2206_v14, %v2074_v15  ;;  %v4660_v19 = vld [vmem:[%s7513_s0 + $0xac] sm:$0xf0] }
 0x1ba   :  { %v3697_v40 = vor.u32 %v4660_v19, %v3696_v16  ;;  %v4668_v16 = vld [vmem:[%s7513_s0 + $0xec] sm:$0xf0]  ;;  %v4664_v19 = vld [vmem:[%s7513_s0 + $0xd4] sm:$0xf] }
 0x1be   :  { %v2075_v43 = vpop.f32.mrf.mxu2  ;;  %v1812_v54 = vpop.f32.mrf.mxu0 }
 0x1bf   :  { %v2208_v45 = vpop.f32.mrf.mxu3  ;;  %v2076_v51 = vadd.f32 %v2075_v43, %v1943_v20  ;;  %v1945_v55 = vpop.f32.mrf.mxu1  ;;  %v4656_v20 = vld [vmem:[%s7513_s0 + $0x94] sm:$0xf] }
 0x1c0   :  { %v1946_v1 = vadd.f32 %v1945_v55, %v1812_v54  ;;  %v3701_v43 = vor.u32 %v4656_v20, %v3698_v28  ;;  %v3709_v54 = vor.u32 %v4657_v32, %v3706_v34  ;;  %v3730_v20 = vld [vmem:[%s7513_s0 + $0xf0] sm:$0xf0]  ;;  %v3736_v28 = vld [vmem:[%s7513_s0 + $0xd8] sm:$0xf]  ;;  %v3738_v32 = vld [vmem:[%s7513_s0 + $0xf8] sm:$0xf0] }
 0x1c1   :  { %v5962_v2 = vadd.f32 %v2208_v45, %v2076_v51  ;;  %2258 = vmatmul.bf16.gmra.mxu0 %v3665_v47  ;;  %v3705_v51 = vor.u32 %v4661_v31, %v3704_v29  ;;  %v4669_v29 = vld [vmem:[%s7513_s0 + $0xf4] sm:$0xf0]  ;;  %v4665_v31 = vld [vmem:[%s7513_s0 + $0xdc] sm:$0xf] }
 0x1c2   :  { %2391 = vmatmul.bf16.gmra.mxu1 %v3669_v49 }
 0x1c3   :  { %2524 = vmatmul.bf16.gmra.mxu2 %v3673_v58 }
 0x1c4   :  { %2657 = vmatmul.bf16.gmra.mxu3 %v3677_v60 }
 0x1c6   :  { %v2078_v3 = vpop.f32.mrf.mxu2  ;;  %v1814_v7 = vpop.f32.mrf.mxu0 }
 0x1c7   :  { %v2211_v4 = vpop.f32.mrf.mxu3  ;;  %v2079_v5 = vadd.f32 %v2078_v3, %v1946_v1  ;;  %v1947_v11 = vpop.f32.mrf.mxu1 }
 0x1c8   :  { %v1948_v14 = vadd.f32 %v1947_v11, %v1814_v7 }
 0x1c9   :  { %v5964_v15 = vadd.f32 %v2211_v4, %v2079_v5 }
 0x1ce   :  { %v2080_v38 = vpop.f32.mrf.mxu2  ;;  %v1817_v47 = vpop.f32.mrf.mxu0 }
 0x1cf   :  { %v2213_v39 = vpop.f32.mrf.mxu3  ;;  %v2081_v45 = vadd.f32 %v2080_v38, %v1948_v14  ;;  %v1950_v49 = vpop.f32.mrf.mxu1  ;;  %v3728_v14 = vld [vmem:[%s7513_s0 + $0xd0] sm:$0xf] }
 0x1d0   :  { %v1951_v55 = vadd.f32 %v1950_v49, %v1817_v47  ;;  %v3737_v49 = vor.u32 %v4669_v29, %v3736_v28  ;;  %v3768_v28 = vld [vmem:[%s7513_s0 + $0x118] sm:$0xf] }
 0x1d1   :  { %v5990_v58 = vadd.f32 %v2213_v39, %v2081_v45  ;;  %2263 = vmatmul.bf16.gmra.mxu0 %v3697_v40  ;;  %v3729_v39 = vor.u32 %v4668_v16, %v3728_v14  ;;  %v3733_v40 = vor.u32 %v4664_v19, %v3730_v20  ;;  %v4676_v16 = vld [vmem:[%s7513_s0 + $0x12c] sm:$0xf0]  ;;  %v4672_v19 = vld [vmem:[%s7513_s0 + $0x114] sm:$0xf]  ;;  %v4677_v29 = vld [vmem:[%s7513_s0 + $0x134] sm:$0xf0] }
 0x1d2   :  { %2396 = vmatmul.bf16.gmra.mxu1 %v3701_v43  ;;  %v3762_v20 = vld [vmem:[%s7513_s0 + $0x130] sm:$0xf0] }
 0x1d3   :  { %2529 = vmatmul.bf16.gmra.mxu2 %v3705_v51  ;;  %v3741_v51 = vor.u32 %v4665_v31, %v3738_v32  ;;  %v4673_v31 = vld [vmem:[%s7513_s0 + $0x11c] sm:$0xf] }
 0x1d4   :  { %2662 = vmatmul.bf16.gmra.mxu3 %v3709_v54  ;;  %v3770_v32 = vld [vmem:[%s7513_s0 + $0x138] sm:$0xf0] }
 0x1d6   :  { %v2083_v60 = vpop.f32.mrf.mxu2  ;;  %v1819_v4 = vpop.f32.mrf.mxu0 }
 0x1d7   :  { %v2216_v1 = vpop.f32.mrf.mxu3  ;;  %v2084_v3 = vadd.f32 %v2083_v60, %v1951_v55  ;;  %v1952_v5 = vpop.f32.mrf.mxu1 }
 0x1d8   :  { %v1953_v7 = vadd.f32 %v1952_v5, %v1819_v4 }
 0x1d9   :  { %v5992_v11 = vadd.f32 %v2216_v1, %v2084_v3 }
 0x1db   :  { %7552 = vst [vmem:[#allocation3_spill] sm:$0xff] %v5992_v11 }
 0x1de   :  { %v2085_v34 = vpop.f32.mrf.mxu2  ;;  %v1822_v45 = vpop.f32.mrf.mxu0 }
 0x1df   :  { %v2218_v38 = vpop.f32.mrf.mxu3  ;;  %v2086_v43 = vadd.f32 %v2085_v34, %v1953_v7  ;;  %v1955_v47 = vpop.f32.mrf.mxu1  ;;  %v3760_v7 = vld [vmem:[%s7513_s0 + $0x110] sm:$0xf] }
 0x1e0   :  { %v1956_v54 = vadd.f32 %v1955_v47, %v1822_v45 }
 0x1e1   :  { %v6018_v55 = vadd.f32 %v2218_v38, %v2086_v43  ;;  %2268 = vmatmul.bf16.gmra.mxu0 %v3729_v39  ;;  %v3761_v39 = vor.u32 %v4676_v16, %v3760_v7  ;;  %v4684_v16 = vld [vmem:[%s7513_s0 + $0x16c] sm:$0xf0] }
 0x1e2   :  { %2401 = vmatmul.bf16.gmra.mxu1 %v3733_v40  ;;  %v3765_v40 = vor.u32 %v4672_v19, %v3762_v20  ;;  %v4680_v19 = vld [vmem:[%s7513_s0 + $0x154] sm:$0xf] }
 0x1e3   :  { %7553 = vst [vmem:[#allocation4_spill] sm:$0xff] %v6018_v55  ;;  %2534 = vmatmul.bf16.gmra.mxu2 %v3737_v49  ;;  %v3769_v49 = vor.u32 %v4677_v29, %v3768_v28  ;;  %v3794_v20 = vld [vmem:[%s7513_s0 + $0x170] sm:$0xf0]  ;;  %v4685_v28 = vld [vmem:[%s7513_s0 + $0x174] sm:$0xf0] }
 0x1e4   :  { %2667 = vmatmul.bf16.gmra.mxu3 %v3741_v51  ;;  %v3773_v51 = vor.u32 %v4673_v31, %v3770_v32  ;;  %v4681_v29 = vld [vmem:[%s7513_s0 + $0x15c] sm:$0xf] }
 0x1e5   :  { %v3802_v31 = vld [vmem:[%s7513_s0 + $0x178] sm:$0xf0] }
 0x1e6   :  { %v2088_v60 = vpop.f32.mrf.mxu2  ;;  %v1824_v4 = vpop.f32.mrf.mxu0 }
 0x1e7   :  { %v2221_v1 = vpop.f32.mrf.mxu3  ;;  %v2089_v3 = vadd.f32 %v2088_v60, %v1956_v54  ;;  %v1957_v5 = vpop.f32.mrf.mxu1 }
 0x1e8   :  { %v1958_v11 = vadd.f32 %v1957_v5, %v1824_v4 }
 0x1e9   :  { %v6020_v14 = vadd.f32 %v2221_v1, %v2089_v3 }
 0x1eb   :  { %7554 = vst [vmem:[#allocation5_spill] sm:$0xff] %v6020_v14 }
 0x1ee   :  { %v2090_v34 = vpop.f32.mrf.mxu2  ;;  %v1827_v45 = vpop.f32.mrf.mxu0 }
 0x1ef   :  { %v2223_v38 = vpop.f32.mrf.mxu3  ;;  %v2091_v43 = vadd.f32 %v2090_v34, %v1958_v11  ;;  %v1960_v47 = vpop.f32.mrf.mxu1  ;;  %v3792_v11 = vld [vmem:[%s7513_s0 + $0x150] sm:$0xf] }
 0x1f0   :  { %v1961_v54 = vadd.f32 %v1960_v47, %v1827_v45 }
 0x1f1   :  { %v6046_v60 = vadd.f32 %v2223_v38, %v2091_v43  ;;  %2273 = vmatmul.bf16.gmra.mxu0 %v3761_v39  ;;  %v3793_v38 = vor.u32 %v4684_v16, %v3792_v11  ;;  %v3797_v39 = vor.u32 %v4680_v19, %v3794_v20  ;;  %v4692_v16 = vld [vmem:[%s7513_s0 + $0x1ac] sm:$0xf0]  ;;  %v4688_v19 = vld [vmem:[%s7513_s0 + $0x194] sm:$0xf] }
 0x1f2   :  { %2406 = vmatmul.bf16.gmra.mxu1 %v3765_v40  ;;  %v3826_v20 = vld [vmem:[%s7513_s0 + $0x1b0] sm:$0xf0] }
 0x1f3   :  { %7555 = vst [vmem:[#allocation6_spill] sm:$0xff] %v6046_v60  ;;  %2539 = vmatmul.bf16.gmra.mxu2 %v3769_v49  ;;  %v3805_v49 = vor.u32 %v4681_v29, %v3802_v31  ;;  %v3834_v29 = vld [vmem:[%s7513_s0 + $0x1b8] sm:$0xf0] }
 0x1f4   :  { %2672 = vmatmul.bf16.gmra.mxu3 %v3773_v51 }
 0x1f6   :  { %v2093_v1 = vpop.f32.mrf.mxu2  ;;  %v1829_v5 = vpop.f32.mrf.mxu0 }
 0x1f7   :  { %v2226_v3 = vpop.f32.mrf.mxu3  ;;  %v2094_v4 = vadd.f32 %v2093_v1, %v1961_v54  ;;  %v1962_v14 = vpop.f32.mrf.mxu1 }
 0x1f8   :  { %v1963_v55 = vadd.f32 %v1962_v14, %v1829_v5  ;;  %v3800_v14 = vld [vmem:[%s7513_s0 + $0x158] sm:$0xf] }
 0x1f9   :  { %v6048_v7 = vadd.f32 %v2226_v3, %v2094_v4  ;;  %v3801_v47 = vor.u32 %v4685_v28, %v3800_v14  ;;  %v4693_v14 = vld [vmem:[%s7513_s0 + $0x1b4] sm:$0xf0]  ;;  %v4689_v28 = vld [vmem:[%s7513_s0 + $0x19c] sm:$0xf] }
 0x1fb   :  { %7556 = vst [vmem:[#allocation7_spill] sm:$0xff] %v6048_v7 }
 0x1fe   :  { %v2095_v32 = vpop.f32.mrf.mxu2  ;;  %v1832_v43 = vpop.f32.mrf.mxu0 }
 0x1ff   :  { %v2228_v34 = vpop.f32.mrf.mxu3  ;;  %v2096_v40 = vadd.f32 %v2095_v32, %v1963_v55  ;;  %v1965_v45 = vpop.f32.mrf.mxu1  ;;  %v3824_v55 = vld [vmem:[%s7513_s0 + $0x190] sm:$0xf] }
 0x200   :  { %v1966_v51 = vadd.f32 %v1965_v45, %v1832_v43 }
 0x201   :  { %v6074_v54 = vadd.f32 %v2228_v34, %v2096_v40  ;;  %2278 = vmatmul.bf16.gmra.mxu0 %v3793_v38  ;;  %v3825_v34 = vor.u32 %v4692_v16, %v3824_v55  ;;  %v3829_v38 = vor.u32 %v4688_v19, %v3826_v20  ;;  %v4700_v16 = vld [vmem:[%s7513_s0 + $0x1ec] sm:$0xf0]  ;;  %v4696_v19 = vld [vmem:[%s7513_s0 + $0x1d4] sm:$0xf] }
 0x202   :  { %2411 = vmatmul.bf16.gmra.mxu1 %v3797_v39  ;;  %v3858_v20 = vld [vmem:[%s7513_s0 + $0x1f0] sm:$0xf0] }
 0x203   :  { %7557 = vst [vmem:[#allocation8_spill] sm:$0xff] %v6074_v54  ;;  %2544 = vmatmul.bf16.gmra.mxu2 %v3801_v47  ;;  %v3837_v47 = vor.u32 %v4689_v28, %v3834_v29  ;;  %v3866_v28 = vld [vmem:[%s7513_s0 + $0x1f8] sm:$0xf0] }
 0x204   :  { %2677 = vmatmul.bf16.gmra.mxu3 %v3805_v49 }
 0x206   :  { %v2098_v1 = vpop.f32.mrf.mxu2  ;;  %v1834_v5 = vpop.f32.mrf.mxu0 }
 0x207   :  { %v2231_v3 = vpop.f32.mrf.mxu3  ;;  %v2099_v4 = vadd.f32 %v2098_v1, %v1966_v51  ;;  %v1967_v7 = vpop.f32.mrf.mxu1 }
 0x208   :  { %v1968_v60 = vadd.f32 %v1967_v7, %v1834_v5  ;;  %v3832_v7 = vld [vmem:[%s7513_s0 + $0x198] sm:$0xf] }
 0x209   :  { %v6076_v11 = vadd.f32 %v2231_v3, %v2099_v4  ;;  %v3833_v45 = vor.u32 %v4693_v14, %v3832_v7  ;;  %v4701_v7 = vld [vmem:[%s7513_s0 + $0x1f4] sm:$0xf0]  ;;  %v4697_v14 = vld [vmem:[%s7513_s0 + $0x1dc] sm:$0xf] }
 0x20b   :  { %7558 = vst [vmem:[#allocation9_spill] sm:$0xff] %v6076_v11 }
 0x20e   :  { %v2100_v31 = vpop.f32.mrf.mxu2  ;;  %v1837_v40 = vpop.f32.mrf.mxu0 }
 0x20f   :  { %v2233_v32 = vpop.f32.mrf.mxu3  ;;  %v2101_v39 = vadd.f32 %v2100_v31, %v1968_v60  ;;  %v1970_v43 = vpop.f32.mrf.mxu1  ;;  %v3856_v60 = vld [vmem:[%s7513_s0 + $0x1d0] sm:$0xf] }
 0x210   :  { %v1971_v49 = vadd.f32 %v1970_v43, %v1837_v40 }
 0x211   :  { %v6102_v51 = vadd.f32 %v2233_v32, %v2101_v39  ;;  %2283 = vmatmul.bf16.gmra.mxu0 %v3825_v34  ;;  %v3857_v32 = vor.u32 %v4700_v16, %v3856_v60  ;;  %v3861_v34 = vor.u32 %v4696_v19, %v3858_v20  ;;  %v4708_v60 = vld [vmem:[%s7513_s0 + $0x22c] sm:$0xf0]  ;;  %v4704_v16 = vld [vmem:[%s7513_s0 + $0x214] sm:$0xf]  ;;  %v4709_v20 = vld [vmem:[%s7513_s0 + $0x234] sm:$0xf0] }
 0x212   :  { %2416 = vmatmul.bf16.gmra.mxu1 %v3829_v38  ;;  %v3890_v19 = vld [vmem:[%s7513_s0 + $0x230] sm:$0xf0] }
 0x213   :  { %7559 = vst [vmem:[#allocation10_spill] sm:$0xff] %v6102_v51  ;;  %2549 = vmatmul.bf16.gmra.mxu2 %v3833_v45  ;;  %v3869_v45 = vor.u32 %v4697_v14, %v3866_v28 }
 0x214   :  { %2682 = vmatmul.bf16.gmra.mxu3 %v3837_v47 }
 0x216   :  { %v2103_v1 = vpop.f32.mrf.mxu2  ;;  %v1839_v5 = vpop.f32.mrf.mxu0 }
 0x217   :  { %v2236_v3 = vpop.f32.mrf.mxu3  ;;  %v2104_v4 = vadd.f32 %v2103_v1, %v1971_v49  ;;  %v1972_v11 = vpop.f32.mrf.mxu1 }
 0x218   :  { %v1973_v54 = vadd.f32 %v1972_v11, %v1839_v5  ;;  %v3864_v11 = vld [vmem:[%s7513_s0 + $0x1d8] sm:$0xf] }
 0x219   :  { %v6104_v55 = vadd.f32 %v2236_v3, %v2104_v4  ;;  %v3865_v43 = vor.u32 %v4701_v7, %v3864_v11  ;;  %v4705_v11 = vld [vmem:[%s7513_s0 + $0x21c] sm:$0xf] }
 0x21a   :  { %v3898_v7 = vld [vmem:[%s7513_s0 + $0x238] sm:$0xf0] }
 0x21b   :  { %7560 = vst [vmem:[#allocation11_spill] sm:$0xff] %v6104_v55 }
 0x21e   :  { %v2105_v29 = vpop.f32.mrf.mxu2  ;;  %v1842_v39 = vpop.f32.mrf.mxu0 }
 0x21f   :  { %v2238_v31 = vpop.f32.mrf.mxu3  ;;  %v2106_v38 = vadd.f32 %v2105_v29, %v1973_v54  ;;  %v1975_v40 = vpop.f32.mrf.mxu1  ;;  %v3888_v54 = vld [vmem:[%s7513_s0 + $0x210] sm:$0xf] }
 0x220   :  { %v1976_v47 = vadd.f32 %v1975_v40, %v1842_v39  ;;  %v3889_v29 = vor.u32 %v4708_v60, %v3888_v54  ;;  %v3901_v39 = vor.u32 %v4705_v11, %v3898_v7  ;;  %v4713_v11 = vld [vmem:[%s7513_s0 + $0x25c] sm:$0xf] }
 0x221   :  { %v6130_v49 = vadd.f32 %v2238_v31, %v2106_v38  ;;  %2288 = vmatmul.bf16.gmra.mxu0 %v3857_v32  ;;  %v3893_v31 = vor.u32 %v4704_v16, %v3890_v19  ;;  %v3920_v16 = vld [vmem:[%s7513_s0 + $0x250] sm:$0xf]  ;;  %v4712_v19 = vld [vmem:[%s7513_s0 + $0x254] sm:$0xf]  ;;  %v3930_v7 = vld [vmem:[%s7513_s0 + $0x278] sm:$0xf0] }
 0x222   :  { %2421 = vmatmul.bf16.gmra.mxu1 %v3861_v34 }
 0x223   :  { %2554 = vmatmul.bf16.gmra.mxu2 %v3865_v43 }
 0x224   :  { %2687 = vmatmul.bf16.gmra.mxu3 %v3869_v45 }
 0x226   :  { %v2108_v1 = vpop.f32.mrf.mxu2  ;;  %v1844_v5 = vpop.f32.mrf.mxu0 }
 0x227   :  { %v2241_v3 = vpop.f32.mrf.mxu3  ;;  %v2109_v4 = vadd.f32 %v2108_v1, %v1976_v47  ;;  %v1977_v55 = vpop.f32.mrf.mxu1 }
 0x228   :  { %v3896_v55 = vld [vmem:[%s7513_s0 + $0x218] sm:$0xf] }
 0x229   :  { %v6132_v51 = vadd.f32 %v2241_v3, %v2109_v4  ;;  %v3897_v38 = vor.u32 %v4709_v20, %v3896_v55  ;;  %v3922_v55 = vld [vmem:[%s7513_s0 + $0x270] sm:$0xf0]  ;;  %v4717_v20 = vld [vmem:[%s7513_s0 + $0x274] sm:$0xf0] }
 0x22e   :  { %v2110_v14 = vpop.f32.mrf.mxu2  ;;  %v2254_v32 = vpop.f32.mrf.mxu0 }
 0x22f   :  { %v2243_v28 = vpop.f32.mrf.mxu3  ;;  %v2387_v34 = vpop.f32.mrf.mxu1  ;;  %v2255_v40 = vadd.f32 %v2254_v32, %v5430_v37  ;;  %v4716_v37 = vld [vmem:[%s7513_s0 + $0x26c] sm:$0xf0] }
 0x231   :  { %v2388_v43 = vadd.f32 %v2387_v34, %v2255_v40  ;;  %2293 = vmatmul.bf16.gmra.mxu0 %v3889_v29  ;;  %v3921_v29 = vor.u32 %v4716_v37, %v3920_v16  ;;  %v3933_v40 = vor.u32 %v4713_v11, %v3930_v7  ;;  %v4725_v11 = vld [vmem:[%s7513_s0 + $0x2b4] sm:$0xf0]  ;;  %v4721_v7 = vld [vmem:[%s7513_s0 + $0x29c] sm:$0xf] }
 0x232   :  { %2426 = vmatmul.bf16.gmra.mxu1 %v3893_v31  ;;  %v3925_v31 = vor.u32 %v4712_v19, %v3922_v55  ;;  %v4724_v55 = vld [vmem:[%s7513_s0 + $0x2ac] sm:$0xf0] }
 0x233   :  { %2559 = vmatmul.bf16.gmra.mxu2 %v3897_v38 }
 0x234   :  { %2692 = vmatmul.bf16.gmra.mxu3 %v3901_v39 }
 0x236   :  { %v2520_v45 = vpop.f32.mrf.mxu2  ;;  %v2256_v3 = vpop.f32.mrf.mxu0 }
 0x237   :  { %v2653_v47 = vpop.f32.mrf.mxu3  ;;  %v2521_v1 = vadd.f32 %v2520_v45, %v2388_v43  ;;  %v2389_v4 = vpop.f32.mrf.mxu1  ;;  %v2257_v5 = vadd.f32 %v2256_v3, %v5456_v56  ;;  %v3928_v56 = vld [vmem:[%s7513_s0 + $0x258] sm:$0xf] }
 0x238   :  { %v3929_v39 = vor.u32 %v4717_v20, %v3928_v56  ;;  %v4720_v56 = vld [vmem:[%s7513_s0 + $0x294] sm:$0xf] }
 0x239   :  { %v6160_v54 = vadd.f32 %v2653_v47, %v2521_v1  ;;  %v2390_v60 = vadd.f32 %v2389_v4, %v2257_v5  ;;  %v3954_v20 = vld [vmem:[%s7513_s0 + $0x2b0] sm:$0xf0] }
 0x23e   :  { %v2522_v14 = vpop.f32.mrf.mxu2  ;;  %v2259_v34 = vpop.f32.mrf.mxu0 }
 0x23f   :  { %v2655_v28 = vpop.f32.mrf.mxu3  ;;  %v2523_v32 = vadd.f32 %v2522_v14, %v2390_v60  ;;  %v2392_v38 = vpop.f32.mrf.mxu1  ;;  %v2260_v43 = vadd.f32 %v2259_v34, %v5458_v63  ;;  %v3952_v63 = vld [vmem:[%s7513_s0 + $0x290] sm:$0xf]  ;;  %v3962_v14 = vld [vmem:[%s7513_s0 + $0x2b8] sm:$0xf0] }
 0x241   :  { %v6187_v45 = vadd.f32 %v2655_v28, %v2523_v32  ;;  %v2393_v47 = vadd.f32 %v2392_v38, %v2260_v43  ;;  %2298 = vmatmul.bf16.gmra.mxu0 %v3921_v29  ;;  %v3957_v32 = vor.u32 %v4720_v56, %v3954_v20  ;;  %v3965_v43 = vor.u32 %v4721_v7, %v3962_v14  ;;  %v4732_v20 = vld [vmem:[%s7513_s0 + $0x2ec] sm:$0xf0]  ;;  %v4733_v7 = vld [vmem:[%s7513_s0 + $0x2f4] sm:$0xf0]  ;;  %v4729_v14 = vld [vmem:[%s7513_s0 + $0x2dc] sm:$0xf] }
 0x242   :  { %2431 = vmatmul.bf16.gmra.mxu1 %v3925_v31  ;;  %v3953_v31 = vor.u32 %v4724_v55, %v3952_v63 }
 0x243   :  { %2564 = vmatmul.bf16.gmra.mxu2 %v3929_v39 }
 0x244   :  { %2697 = vmatmul.bf16.gmra.mxu3 %v3933_v40 }
 0x246   :  { %v2525_v1 = vpop.f32.mrf.mxu2  ;;  %v2261_v5 = vpop.f32.mrf.mxu0 }
 0x247   :  { %v2658_v3 = vpop.f32.mrf.mxu3  ;;  %v2526_v4 = vadd.f32 %v2525_v1, %v2393_v47  ;;  %v2394_v16 = vpop.f32.mrf.mxu1  ;;  %v2262_v60 = vadd.f32 %v2261_v5, %v5484_v18  ;;  %v3960_v18 = vld [vmem:[%s7513_s0 + $0x298] sm:$0xf] }
 0x248   :  { %v3961_v40 = vor.u32 %v4725_v11, %v3960_v18  ;;  %v4728_v18 = vld [vmem:[%s7513_s0 + $0x2d4] sm:$0xf] }
 0x249   :  { %v6190_v37 = vadd.f32 %v2658_v3, %v2526_v4  ;;  %v2395_v19 = vadd.f32 %v2394_v16, %v2262_v60  ;;  %v3986_v11 = vld [vmem:[%s7513_s0 + $0x2f0] sm:$0xf0] }
 0x24e   :  { %v2527_v28 = vpop.f32.mrf.mxu2  ;;  %v2264_v38 = vpop.f32.mrf.mxu0 }
 0x24f   :  { %v2660_v29 = vpop.f32.mrf.mxu3  ;;  %v2528_v34 = vadd.f32 %v2527_v28, %v2395_v19  ;;  %v2397_v39 = vpop.f32.mrf.mxu1  ;;  %v2265_v47 = vadd.f32 %v2264_v38, %v5486_v25  ;;  %v3984_v25 = vld [vmem:[%s7513_s0 + $0x2d0] sm:$0xf]  ;;  %v3994_v28 = vld [vmem:[%s7513_s0 + $0x2f8] sm:$0xf0] }
 0x251   :  { %v6217_v1 = vadd.f32 %v2660_v29, %v2528_v34  ;;  %v2398_v3 = vadd.f32 %v2397_v39, %v2265_v47  ;;  %2303 = vmatmul.bf16.gmra.mxu0 %v3953_v31  ;;  %v3989_v34 = vor.u32 %v4728_v18, %v3986_v11  ;;  %v3997_v47 = vor.u32 %v4729_v14, %v3994_v28  ;;  %v4740_v11 = vld [vmem:[%s7513_s0 + $0x32c] sm:$0xf0]  ;;  %v4741_v14 = vld [vmem:[%s7513_s0 + $0x334] sm:$0xf0]  ;;  %v4737_v28 = vld [vmem:[%s7513_s0 + $0x31c] sm:$0xf] }
 0x252   :  { %2436 = vmatmul.bf16.gmra.mxu1 %v3957_v32  ;;  %v3985_v32 = vor.u32 %v4732_v20, %v3984_v25 }
 0x253   :  { %2569 = vmatmul.bf16.gmra.mxu2 %v3961_v40 }
 0x254   :  { %2702 = vmatmul.bf16.gmra.mxu3 %v3965_v43 }
 0x256   :  { %v2530_v4 = vpop.f32.mrf.mxu2  ;;  %v2266_v60 = vpop.f32.mrf.mxu0 }
 0x257   :  { %v2663_v5 = vpop.f32.mrf.mxu3  ;;  %v2531_v16 = vadd.f32 %v2530_v4, %v2398_v3  ;;  %v2399_v63 = vpop.f32.mrf.mxu1  ;;  %v2267_v19 = vadd.f32 %v2266_v60, %v5521_v48  ;;  %v3992_v48 = vld [vmem:[%s7513_s0 + $0x2d8] sm:$0xf] }
 0x258   :  { %v3993_v43 = vor.u32 %v4733_v7, %v3992_v48  ;;  %v4736_v48 = vld [vmem:[%s7513_s0 + $0x314] sm:$0xf] }
 0x259   :  { %v6220_v55 = vadd.f32 %v2663_v5, %v2531_v16  ;;  %v2400_v56 = vadd.f32 %v2399_v63, %v2267_v19  ;;  %v4018_v7 = vld [vmem:[%s7513_s0 + $0x330] sm:$0xf0] }
 0x25e   :  { %v2532_v29 = vpop.f32.mrf.mxu2  ;;  %v2269_v39 = vpop.f32.mrf.mxu0 }
 0x25f   :  { %v2665_v31 = vpop.f32.mrf.mxu3  ;;  %v2533_v38 = vadd.f32 %v2532_v29, %v2400_v56  ;;  %v2402_v40 = vpop.f32.mrf.mxu1  ;;  %v2270_v3 = vadd.f32 %v2269_v39, %v5526_v57  ;;  %v4016_v57 = vld [vmem:[%s7513_s0 + $0x310] sm:$0xf]  ;;  %v4026_v29 = vld [vmem:[%s7513_s0 + $0x338] sm:$0xf0] }
 0x261   :  { %v6247_v4 = vadd.f32 %v2665_v31, %v2533_v38  ;;  %v2403_v5 = vadd.f32 %v2402_v40, %v2270_v3  ;;  %2308 = vmatmul.bf16.gmra.mxu0 %v3985_v32  ;;  %v4021_v38 = vor.u32 %v4736_v48, %v4018_v7  ;;  %v4029_v3 = vor.u32 %v4737_v28, %v4026_v29  ;;  %v4748_v7 = vld [vmem:[%s7513_s0 + $0x36c] sm:$0xf0]  ;;  %v4749_v28 = vld [vmem:[%s7513_s0 + $0x374] sm:$0xf0]  ;;  %v4745_v29 = vld [vmem:[%s7513_s0 + $0x35c] sm:$0xf] }
 0x262   :  { %2441 = vmatmul.bf16.gmra.mxu1 %v3989_v34  ;;  %v4017_v34 = vor.u32 %v4740_v11, %v4016_v57 }
 0x263   :  { %2574 = vmatmul.bf16.gmra.mxu2 %v3993_v43 }
 0x264   :  { %2707 = vmatmul.bf16.gmra.mxu3 %v3997_v47 }
 0x266   :  { %v2535_v16 = vpop.f32.mrf.mxu2  ;;  %v2271_v19 = vpop.f32.mrf.mxu0 }
 0x267   :  { %v2668_v60 = vpop.f32.mrf.mxu3  ;;  %v2536_v63 = vadd.f32 %v2535_v16, %v2403_v5  ;;  %v2404_v25 = vpop.f32.mrf.mxu1  ;;  %v2272_v56 = vadd.f32 %v2271_v19, %v5552_v13  ;;  %v4024_v13 = vld [vmem:[%s7513_s0 + $0x318] sm:$0xf] }
 0x268   :  { %v4025_v47 = vor.u32 %v4741_v14, %v4024_v13  ;;  %v4744_v13 = vld [vmem:[%s7513_s0 + $0x354] sm:$0xf] }
 0x269   :  { %v6250_v20 = vadd.f32 %v2668_v60, %v2536_v63  ;;  %v2405_v18 = vadd.f32 %v2404_v25, %v2272_v56  ;;  %v4050_v14 = vld [vmem:[%s7513_s0 + $0x370] sm:$0xf0] }
 0x26e   :  { %v2537_v31 = vpop.f32.mrf.mxu2  ;;  %v2274_v40 = vpop.f32.mrf.mxu0 }
 0x26f   :  { %v2670_v32 = vpop.f32.mrf.mxu3  ;;  %v2538_v39 = vadd.f32 %v2537_v31, %v2405_v18  ;;  %v2407_v43 = vpop.f32.mrf.mxu1  ;;  %v2275_v5 = vadd.f32 %v2274_v40, %v5554_v21  ;;  %v4048_v21 = vld [vmem:[%s7513_s0 + $0x350] sm:$0xf]  ;;  %v4058_v31 = vld [vmem:[%s7513_s0 + $0x378] sm:$0xf0] }
 0x271   :  { %v6277_v16 = vadd.f32 %v2670_v32, %v2538_v39  ;;  %v2408_v60 = vadd.f32 %v2407_v43, %v2275_v5  ;;  %2313 = vmatmul.bf16.gmra.mxu0 %v4017_v34  ;;  %v4053_v39 = vor.u32 %v4744_v13, %v4050_v14  ;;  %v4061_v5 = vor.u32 %v4745_v29, %v4058_v31  ;;  %v4756_v14 = vld [vmem:[%s7513_s0 + $0x3ac] sm:$0xf0]  ;;  %v4757_v29 = vld [vmem:[%s7513_s0 + $0x3b4] sm:$0xf0]  ;;  %v4753_v31 = vld [vmem:[%s7513_s0 + $0x39c] sm:$0xf] }
 0x272   :  { %2446 = vmatmul.bf16.gmra.mxu1 %v4021_v38  ;;  %v4049_v38 = vor.u32 %v4748_v7, %v4048_v21 }
 0x273   :  { %2579 = vmatmul.bf16.gmra.mxu2 %v4025_v47 }
 0x274   :  { %2712 = vmatmul.bf16.gmra.mxu3 %v4029_v3 }
 0x276   :  { %v2540_v63 = vpop.f32.mrf.mxu2  ;;  %v2276_v56 = vpop.f32.mrf.mxu0 }
 0x277   :  { %v2673_v19 = vpop.f32.mrf.mxu3  ;;  %v2541_v25 = vadd.f32 %v2540_v63, %v2408_v60  ;;  %v2409_v57 = vpop.f32.mrf.mxu1  ;;  %v2277_v18 = vadd.f32 %v2276_v56, %v5580_v42  ;;  %v4056_v42 = vld [vmem:[%s7513_s0 + $0x358] sm:$0xf] }
 0x278   :  { %v4057_v3 = vor.u32 %v4749_v28, %v4056_v42  ;;  %v4752_v42 = vld [vmem:[%s7513_s0 + $0x394] sm:$0xf] }
 0x279   :  { %v6280_v11 = vadd.f32 %v2673_v19, %v2541_v25  ;;  %v2410_v48 = vadd.f32 %v2409_v57, %v2277_v18  ;;  %v4082_v28 = vld [vmem:[%s7513_s0 + $0x3b0] sm:$0xf0] }
 0x27e   :  { %v2542_v32 = vpop.f32.mrf.mxu2  ;;  %v2279_v43 = vpop.f32.mrf.mxu0 }
 0x27f   :  { %v2675_v34 = vpop.f32.mrf.mxu3  ;;  %v2543_v40 = vadd.f32 %v2542_v32, %v2410_v48  ;;  %v2412_v47 = vpop.f32.mrf.mxu1  ;;  %v2280_v60 = vadd.f32 %v2279_v43, %v5582_v50  ;;  %v4080_v50 = vld [vmem:[%s7513_s0 + $0x390] sm:$0xf]  ;;  %v4090_v32 = vld [vmem:[%s7513_s0 + $0x3b8] sm:$0xf0] }
 0x281   :  { %v6307_v63 = vadd.f32 %v2675_v34, %v2543_v40  ;;  %v2413_v19 = vadd.f32 %v2412_v47, %v2280_v60  ;;  %2318 = vmatmul.bf16.gmra.mxu0 %v4049_v38  ;;  %v4085_v40 = vor.u32 %v4752_v42, %v4082_v28  ;;  %v4093_v60 = vor.u32 %v4753_v31, %v4090_v32  ;;  %v4764_v28 = vld [vmem:[%s7513_s0 + $0x3ec] sm:$0xf0]  ;;  %v4765_v31 = vld [vmem:[%s7513_s0 + $0x3f4] sm:$0xf0]  ;;  %v4761_v32 = vld [vmem:[%s7513_s0 + $0x3dc] sm:$0xf] }
 0x282   :  { %2451 = vmatmul.bf16.gmra.mxu1 %v4053_v39  ;;  %v4081_v39 = vor.u32 %v4756_v14, %v4080_v50 }
 0x283   :  { %2584 = vmatmul.bf16.gmra.mxu2 %v4057_v3 }
 0x284   :  { %2717 = vmatmul.bf16.gmra.mxu3 %v4061_v5 }
 0x286   :  { %v2545_v25 = vpop.f32.mrf.mxu2  ;;  %v2281_v18 = vpop.f32.mrf.mxu0 }
 0x287   :  { %v2678_v56 = vpop.f32.mrf.mxu3  ;;  %v2546_v57 = vadd.f32 %v2545_v25, %v2413_v19  ;;  %v2414_v21 = vpop.f32.mrf.mxu1  ;;  %v2282_v48 = vadd.f32 %v2281_v18, %v5611_v9  ;;  %v4088_v9 = vld [vmem:[%s7513_s0 + $0x398] sm:$0xf] }
 0x288   :  { %v4089_v5 = vor.u32 %v4757_v29, %v4088_v9  ;;  %v4760_v9 = vld [vmem:[%s7513_s0 + $0x3d4] sm:$0xf] }
 0x289   :  { %v6310_v7 = vadd.f32 %v2678_v56, %v2546_v57  ;;  %v2415_v13 = vadd.f32 %v2414_v21, %v2282_v48  ;;  %v4114_v29 = vld [vmem:[%s7513_s0 + $0x3f0] sm:$0xf0] }
 0x28e   :  { %v2547_v34 = vpop.f32.mrf.mxu2  ;;  %v2284_v47 = vpop.f32.mrf.mxu0 }
 0x28f   :  { %v2680_v38 = vpop.f32.mrf.mxu3  ;;  %v2548_v43 = vadd.f32 %v2547_v34, %v2415_v13  ;;  %v2417_v3 = vpop.f32.mrf.mxu1  ;;  %v2285_v19 = vadd.f32 %v2284_v47, %v5622_v22  ;;  %v4112_v22 = vld [vmem:[%s7513_s0 + $0x3d0] sm:$0xf]  ;;  %v4122_v34 = vld [vmem:[%s7513_s0 + $0x3f8] sm:$0xf0] }
 0x291   :  { %v6337_v25 = vadd.f32 %v2680_v38, %v2548_v43  ;;  %v2418_v56 = vadd.f32 %v2417_v3, %v2285_v19  ;;  %2323 = vmatmul.bf16.gmra.mxu0 %v4081_v39  ;;  %v4117_v43 = vor.u32 %v4760_v9, %v4114_v29  ;;  %v4125_v19 = vor.u32 %v4761_v32, %v4122_v34  ;;  %v4772_v29 = vld [vmem:[%s7513_s0 + $0x42c] sm:$0xf0]  ;;  %v4773_v32 = vld [vmem:[%s7513_s0 + $0x434] sm:$0xf0]  ;;  %v4769_v34 = vld [vmem:[%s7513_s0 + $0x41c] sm:$0xf] }
 0x292   :  { %2456 = vmatmul.bf16.gmra.mxu1 %v4085_v40  ;;  %v4113_v40 = vor.u32 %v4764_v28, %v4112_v22 }
 0x293   :  { %2589 = vmatmul.bf16.gmra.mxu2 %v4089_v5 }
 0x294   :  { %2722 = vmatmul.bf16.gmra.mxu3 %v4093_v60 }
 0x296   :  { %v2550_v57 = vpop.f32.mrf.mxu2  ;;  %v2286_v48 = vpop.f32.mrf.mxu0 }
 0x297   :  { %v2683_v18 = vpop.f32.mrf.mxu3  ;;  %v2551_v21 = vadd.f32 %v2550_v57, %v2418_v56  ;;  %v2419_v50 = vpop.f32.mrf.mxu1  ;;  %v2287_v13 = vadd.f32 %v2286_v48, %v5648_v44  ;;  %v4120_v44 = vld [vmem:[%s7513_s0 + $0x3d8] sm:$0xf] }
 0x298   :  { %v4121_v60 = vor.u32 %v4765_v31, %v4120_v44  ;;  %v4768_v44 = vld [vmem:[%s7513_s0 + $0x414] sm:$0xf] }
 0x299   :  { %v6340_v14 = vadd.f32 %v2683_v18, %v2551_v21  ;;  %v2420_v42 = vadd.f32 %v2419_v50, %v2287_v13  ;;  %v4146_v31 = vld [vmem:[%s7513_s0 + $0x430] sm:$0xf0] }
 0x29e   :  { %v2552_v38 = vpop.f32.mrf.mxu2  ;;  %v2289_v3 = vpop.f32.mrf.mxu0 }
 0x29f   :  { %v2685_v39 = vpop.f32.mrf.mxu3  ;;  %v2553_v47 = vadd.f32 %v2552_v38, %v2420_v42  ;;  %v2422_v5 = vpop.f32.mrf.mxu1  ;;  %v2290_v56 = vadd.f32 %v2289_v3, %v5650_v53  ;;  %v4144_v53 = vld [vmem:[%s7513_s0 + $0x410] sm:$0xf]  ;;  %v4154_v38 = vld [vmem:[%s7513_s0 + $0x438] sm:$0xf0] }
 0x2a1   :  { %v6367_v57 = vadd.f32 %v2685_v39, %v2553_v47  ;;  %v2423_v18 = vadd.f32 %v2422_v5, %v2290_v56  ;;  %2328 = vmatmul.bf16.gmra.mxu0 %v4113_v40  ;;  %v4149_v47 = vor.u32 %v4768_v44, %v4146_v31  ;;  %v4157_v56 = vor.u32 %v4769_v34, %v4154_v38  ;;  %v4780_v31 = vld [vmem:[%s7513_s0 + $0x46c] sm:$0xf0]  ;;  %v4781_v34 = vld [vmem:[%s7513_s0 + $0x474] sm:$0xf0]  ;;  %v4777_v38 = vld [vmem:[%s7513_s0 + $0x45c] sm:$0xf] }
 0x2a2   :  { %2461 = vmatmul.bf16.gmra.mxu1 %v4117_v43  ;;  %v4145_v43 = vor.u32 %v4772_v29, %v4144_v53 }
 0x2a3   :  { %2594 = vmatmul.bf16.gmra.mxu2 %v4121_v60 }
 0x2a4   :  { %2727 = vmatmul.bf16.gmra.mxu3 %v4125_v19 }
 0x2a6   :  { %v2555_v21 = vpop.f32.mrf.mxu2  ;;  %v2291_v13 = vpop.f32.mrf.mxu0 }
 0x2a7   :  { %v2688_v48 = vpop.f32.mrf.mxu3  ;;  %v2556_v50 = vadd.f32 %v2555_v21, %v2423_v18  ;;  %v2424_v22 = vpop.f32.mrf.mxu1  ;;  %v2292_v42 = vadd.f32 %v2291_v13, %v5676_v12  ;;  %v4152_v12 = vld [vmem:[%s7513_s0 + $0x418] sm:$0xf] }
 0x2a8   :  { %v4153_v19 = vor.u32 %v4773_v32, %v4152_v12  ;;  %v4776_v12 = vld [vmem:[%s7513_s0 + $0x454] sm:$0xf] }
 0x2a9   :  { %v6370_v28 = vadd.f32 %v2688_v48, %v2556_v50  ;;  %v2425_v9 = vadd.f32 %v2424_v22, %v2292_v42  ;;  %v4178_v32 = vld [vmem:[%s7513_s0 + $0x470] sm:$0xf0] }
 0x2ae   :  { %v2557_v39 = vpop.f32.mrf.mxu2  ;;  %v2294_v5 = vpop.f32.mrf.mxu0 }
 0x2af   :  { %v2690_v40 = vpop.f32.mrf.mxu3  ;;  %v2558_v3 = vadd.f32 %v2557_v39, %v2425_v9  ;;  %v2427_v60 = vpop.f32.mrf.mxu1  ;;  %v2295_v18 = vadd.f32 %v2294_v5, %v5678_v23  ;;  %v4176_v23 = vld [vmem:[%s7513_s0 + $0x450] sm:$0xf]  ;;  %v4186_v39 = vld [vmem:[%s7513_s0 + $0x478] sm:$0xf0] }
 0x2b1   :  { %v6397_v21 = vadd.f32 %v2690_v40, %v2558_v3  ;;  %v2428_v48 = vadd.f32 %v2427_v60, %v2295_v18  ;;  %2333 = vmatmul.bf16.gmra.mxu0 %v4145_v43  ;;  %v4181_v3 = vor.u32 %v4776_v12, %v4178_v32  ;;  %v4189_v18 = vor.u32 %v4777_v38, %v4186_v39  ;;  %v4788_v32 = vld [vmem:[%s7513_s0 + $0x4ac] sm:$0xf0]  ;;  %v4789_v38 = vld [vmem:[%s7513_s0 + $0x4b4] sm:$0xf0]  ;;  %v4785_v39 = vld [vmem:[%s7513_s0 + $0x49c] sm:$0xf] }
 0x2b2   :  { %2466 = vmatmul.bf16.gmra.mxu1 %v4149_v47  ;;  %v4177_v47 = vor.u32 %v4780_v31, %v4176_v23 }
 0x2b3   :  { %2599 = vmatmul.bf16.gmra.mxu2 %v4153_v19 }
 0x2b4   :  { %2732 = vmatmul.bf16.gmra.mxu3 %v4157_v56 }
 0x2b6   :  { %v2560_v50 = vpop.f32.mrf.mxu2  ;;  %v2296_v42 = vpop.f32.mrf.mxu0 }
 0x2b7   :  { %v2693_v13 = vpop.f32.mrf.mxu3  ;;  %v2561_v22 = vadd.f32 %v2560_v50, %v2428_v48  ;;  %v2429_v53 = vpop.f32.mrf.mxu1  ;;  %v2297_v9 = vadd.f32 %v2296_v42, %v5704_v46  ;;  %v4184_v46 = vld [vmem:[%s7513_s0 + $0x458] sm:$0xf] }
 0x2b8   :  { %v4185_v56 = vor.u32 %v4781_v34, %v4184_v46  ;;  %v4784_v46 = vld [vmem:[%s7513_s0 + $0x494] sm:$0xf] }
 0x2b9   :  { %v6400_v29 = vadd.f32 %v2693_v13, %v2561_v22  ;;  %v2430_v44 = vadd.f32 %v2429_v53, %v2297_v9  ;;  %v4210_v34 = vld [vmem:[%s7513_s0 + $0x4b0] sm:$0xf0] }
 0x2be   :  { %v2562_v40 = vpop.f32.mrf.mxu2  ;;  %v2299_v60 = vpop.f32.mrf.mxu0 }
 0x2bf   :  { %v2695_v43 = vpop.f32.mrf.mxu3  ;;  %v2563_v5 = vadd.f32 %v2562_v40, %v2430_v44  ;;  %v2432_v19 = vpop.f32.mrf.mxu1  ;;  %v2300_v48 = vadd.f32 %v2299_v60, %v5718_v62  ;;  %v4208_v62 = vld [vmem:[%s7513_s0 + $0x490] sm:$0xf]  ;;  %v4218_v40 = vld [vmem:[%s7513_s0 + $0x4b8] sm:$0xf0] }
 0x2c1   :  { %v6427_v50 = vadd.f32 %v2695_v43, %v2563_v5  ;;  %v2433_v13 = vadd.f32 %v2432_v19, %v2300_v48  ;;  %2338 = vmatmul.bf16.gmra.mxu0 %v4177_v47  ;;  %v4213_v5 = vor.u32 %v4784_v46, %v4210_v34  ;;  %v4221_v48 = vor.u32 %v4785_v39, %v4218_v40  ;;  %v4796_v34 = vld [vmem:[%s7513_s0 + $0x4ec] sm:$0xf0]  ;;  %v4797_v39 = vld [vmem:[%s7513_s0 + $0x4f4] sm:$0xf0]  ;;  %v4793_v40 = vld [vmem:[%s7513_s0 + $0x4dc] sm:$0xf] }
 0x2c2   :  { %2471 = vmatmul.bf16.gmra.mxu1 %v4181_v3  ;;  %v4209_v3 = vor.u32 %v4788_v32, %v4208_v62 }
 0x2c3   :  { %2604 = vmatmul.bf16.gmra.mxu2 %v4185_v56 }
 0x2c4   :  { %2737 = vmatmul.bf16.gmra.mxu3 %v4189_v18 }
 0x2c6   :  { %v2565_v22 = vpop.f32.mrf.mxu2  ;;  %v2301_v9 = vpop.f32.mrf.mxu0 }
 0x2c7   :  { %v2698_v42 = vpop.f32.mrf.mxu3  ;;  %v2566_v53 = vadd.f32 %v2565_v22, %v2433_v13  ;;  %v2434_v23 = vpop.f32.mrf.mxu1  ;;  %v2302_v44 = vadd.f32 %v2301_v9, %v5744_v26  ;;  %v4216_v26 = vld [vmem:[%s7513_s0 + $0x498] sm:$0xf] }
 0x2c8   :  { %v4217_v18 = vor.u32 %v4789_v38, %v4216_v26  ;;  %v4792_v26 = vld [vmem:[%s7513_s0 + $0x4d4] sm:$0xf] }
 0x2c9   :  { %v6430_v31 = vadd.f32 %v2698_v42, %v2566_v53  ;;  %v2435_v12 = vadd.f32 %v2434_v23, %v2302_v44  ;;  %v4242_v38 = vld [vmem:[%s7513_s0 + $0x4f0] sm:$0xf0] }
 0x2ce   :  { %v2567_v43 = vpop.f32.mrf.mxu2  ;;  %v2304_v19 = vpop.f32.mrf.mxu0 }
 0x2cf   :  { %v2700_v47 = vpop.f32.mrf.mxu3  ;;  %v2568_v60 = vadd.f32 %v2567_v43, %v2435_v12  ;;  %v2437_v56 = vpop.f32.mrf.mxu1  ;;  %v2305_v13 = vadd.f32 %v2304_v19, %v5746_v33  ;;  %v4240_v33 = vld [vmem:[%s7513_s0 + $0x4d0] sm:$0xf]  ;;  %v4250_v43 = vld [vmem:[%s7513_s0 + $0x4f8] sm:$0xf0] }
 0x2d1   :  { %v6457_v22 = vadd.f32 %v2700_v47, %v2568_v60  ;;  %v2438_v42 = vadd.f32 %v2437_v56, %v2305_v13  ;;  %2343 = vmatmul.bf16.gmra.mxu0 %v4209_v3  ;;  %v4245_v60 = vor.u32 %v4792_v26, %v4242_v38  ;;  %v4253_v13 = vor.u32 %v4793_v40, %v4250_v43  ;;  %v4804_v38 = vld [vmem:[%s7513_s0 + $0x52c] sm:$0xf0]  ;;  %v4805_v40 = vld [vmem:[%s7513_s0 + $0x534] sm:$0xf0]  ;;  %v4801_v43 = vld [vmem:[%s7513_s0 + $0x51c] sm:$0xf] }
 0x2d2   :  { %2476 = vmatmul.bf16.gmra.mxu1 %v4213_v5  ;;  %v4241_v5 = vor.u32 %v4796_v34, %v4240_v33 }
 0x2d3   :  { %2609 = vmatmul.bf16.gmra.mxu2 %v4217_v18 }
 0x2d4   :  { %2742 = vmatmul.bf16.gmra.mxu3 %v4221_v48 }
 0x2d6   :  { %v2570_v53 = vpop.f32.mrf.mxu2  ;;  %v2306_v44 = vpop.f32.mrf.mxu0 }
 0x2d7   :  { %v2703_v9 = vpop.f32.mrf.mxu3  ;;  %v2571_v23 = vadd.f32 %v2570_v53, %v2438_v42  ;;  %v2439_v62 = vpop.f32.mrf.mxu1  ;;  %v2307_v12 = vadd.f32 %v2306_v44, %v5772_v61  ;;  %v4248_v61 = vld [vmem:[%s7513_s0 + $0x4d8] sm:$0xf] }
 0x2d8   :  { %v4249_v48 = vor.u32 %v4797_v39, %v4248_v61  ;;  %v4800_v61 = vld [vmem:[%s7513_s0 + $0x514] sm:$0xf] }
 0x2d9   :  { %v6460_v32 = vadd.f32 %v2703_v9, %v2571_v23  ;;  %v2440_v46 = vadd.f32 %v2439_v62, %v2307_v12  ;;  %v4274_v39 = vld [vmem:[%s7513_s0 + $0x530] sm:$0xf0] }
 0x2de   :  { %v2572_v47 = vpop.f32.mrf.mxu2  ;;  %v2309_v56 = vpop.f32.mrf.mxu0 }
 0x2df   :  { %v2705_v3 = vpop.f32.mrf.mxu3  ;;  %v2573_v19 = vadd.f32 %v2572_v47, %v2440_v46  ;;  %v2442_v18 = vpop.f32.mrf.mxu1  ;;  %v2310_v42 = vadd.f32 %v2309_v56, %v5774_v6  ;;  %v4272_v6 = vld [vmem:[%s7513_s0 + $0x510] sm:$0xf]  ;;  %v4282_v47 = vld [vmem:[%s7513_s0 + $0x538] sm:$0xf0] }
 0x2e1   :  { %v6487_v53 = vadd.f32 %v2705_v3, %v2573_v19  ;;  %v2443_v9 = vadd.f32 %v2442_v18, %v2310_v42  ;;  %2348 = vmatmul.bf16.gmra.mxu0 %v4241_v5  ;;  %v4277_v19 = vor.u32 %v4800_v61, %v4274_v39  ;;  %v4285_v42 = vor.u32 %v4801_v43, %v4282_v47  ;;  %v4812_v39 = vld [vmem:[%s7513_s0 + $0x56c] sm:$0xf0]  ;;  %v4813_v43 = vld [vmem:[%s7513_s0 + $0x574] sm:$0xf0]  ;;  %v4809_v47 = vld [vmem:[%s7513_s0 + $0x55c] sm:$0xf] }
 0x2e2   :  { %2481 = vmatmul.bf16.gmra.mxu1 %v4245_v60  ;;  %v4273_v60 = vor.u32 %v4804_v38, %v4272_v6 }
 0x2e3   :  { %2614 = vmatmul.bf16.gmra.mxu2 %v4249_v48 }
 0x2e4   :  { %2747 = vmatmul.bf16.gmra.mxu3 %v4253_v13 }
 0x2e6   :  { %v2575_v23 = vpop.f32.mrf.mxu2  ;;  %v2311_v12 = vpop.f32.mrf.mxu0 }
 0x2e7   :  { %v2708_v44 = vpop.f32.mrf.mxu3  ;;  %v2576_v62 = vadd.f32 %v2575_v23, %v2443_v9  ;;  %v2444_v33 = vpop.f32.mrf.mxu1  ;;  %v2312_v46 = vadd.f32 %v2311_v12, %v5800_v35  ;;  %v4280_v35 = vld [vmem:[%s7513_s0 + $0x518] sm:$0xf] }
 0x2e8   :  { %v4281_v13 = vor.u32 %v4805_v40, %v4280_v35  ;;  %v4808_v35 = vld [vmem:[%s7513_s0 + $0x554] sm:$0xf] }
 0x2e9   :  { %v6490_v34 = vadd.f32 %v2708_v44, %v2576_v62  ;;  %v2445_v26 = vadd.f32 %v2444_v33, %v2312_v46  ;;  %v4306_v40 = vld [vmem:[%s7513_s0 + $0x570] sm:$0xf0] }
 0x2ee   :  { %v2577_v3 = vpop.f32.mrf.mxu2  ;;  %v2314_v18 = vpop.f32.mrf.mxu0 }
 0x2ef   :  { %v2710_v5 = vpop.f32.mrf.mxu3  ;;  %v2578_v56 = vadd.f32 %v2577_v3, %v2445_v26  ;;  %v2447_v48 = vpop.f32.mrf.mxu1  ;;  %v2315_v9 = vadd.f32 %v2314_v18, %v5814_v52  ;;  %v4304_v52 = vld [vmem:[%s7513_s0 + $0x550] sm:$0xf]  ;;  %v4314_v3 = vld [vmem:[%s7513_s0 + $0x578] sm:$0xf0] }
 0x2f1   :  { %v6517_v23 = vadd.f32 %v2710_v5, %v2578_v56  ;;  %v2448_v44 = vadd.f32 %v2447_v48, %v2315_v9  ;;  %2353 = vmatmul.bf16.gmra.mxu0 %v4273_v60  ;;  %v4309_v56 = vor.u32 %v4808_v35, %v4306_v40  ;;  %v4317_v9 = vor.u32 %v4809_v47, %v4314_v3  ;;  %v4820_v40 = vld [vmem:[%s7513_s0 + $0x5ac] sm:$0xf0]  ;;  %v4821_v47 = vld [vmem:[%s7513_s0 + $0x5b4] sm:$0xf0]  ;;  %v4817_v3 = vld [vmem:[%s7513_s0 + $0x59c] sm:$0xf] }
 0x2f2   :  { %2486 = vmatmul.bf16.gmra.mxu1 %v4277_v19  ;;  %v4305_v19 = vor.u32 %v4812_v39, %v4304_v52 }
 0x2f3   :  { %2619 = vmatmul.bf16.gmra.mxu2 %v4281_v13 }
 0x2f4   :  { %2752 = vmatmul.bf16.gmra.mxu3 %v4285_v42 }
 0x2f6   :  { %v2580_v62 = vpop.f32.mrf.mxu2  ;;  %v2316_v46 = vpop.f32.mrf.mxu0 }
 0x2f7   :  { %v2713_v12 = vpop.f32.mrf.mxu3  ;;  %v2581_v33 = vadd.f32 %v2580_v62, %v2448_v44  ;;  %v2449_v6 = vpop.f32.mrf.mxu1  ;;  %v2317_v26 = vadd.f32 %v2316_v46, %v5840_v17  ;;  %v4312_v17 = vld [vmem:[%s7513_s0 + $0x558] sm:$0xf] }
 0x2f8   :  { %v4313_v42 = vor.u32 %v4813_v43, %v4312_v17  ;;  %v4816_v17 = vld [vmem:[%s7513_s0 + $0x594] sm:$0xf] }
 0x2f9   :  { %v6520_v38 = vadd.f32 %v2713_v12, %v2581_v33  ;;  %v2450_v61 = vadd.f32 %v2449_v6, %v2317_v26  ;;  %v4338_v43 = vld [vmem:[%s7513_s0 + $0x5b0] sm:$0xf0] }
 0x2fe   :  { %v2582_v5 = vpop.f32.mrf.mxu2  ;;  %v2319_v48 = vpop.f32.mrf.mxu0 }
 0x2ff   :  { %v2715_v60 = vpop.f32.mrf.mxu3  ;;  %v2583_v18 = vadd.f32 %v2582_v5, %v2450_v61  ;;  %v2452_v13 = vpop.f32.mrf.mxu1  ;;  %v2320_v44 = vadd.f32 %v2319_v48, %v5842_v30  ;;  %v4336_v30 = vld [vmem:[%s7513_s0 + $0x590] sm:$0xf]  ;;  %v4346_v5 = vld [vmem:[%s7513_s0 + $0x5b8] sm:$0xf0] }
 0x301   :  { %v6547_v62 = vadd.f32 %v2715_v60, %v2583_v18  ;;  %v2453_v12 = vadd.f32 %v2452_v13, %v2320_v44  ;;  %2358 = vmatmul.bf16.gmra.mxu0 %v4305_v19  ;;  %v4341_v18 = vor.u32 %v4816_v17, %v4338_v43  ;;  %v4349_v44 = vor.u32 %v4817_v3, %v4346_v5  ;;  %v4828_v43 = vld [vmem:[%s7513_s0 + $0x5ec] sm:$0xf0]  ;;  %v4829_v3 = vld [vmem:[%s7513_s0 + $0x5f4] sm:$0xf0]  ;;  %v4825_v5 = vld [vmem:[%s7513_s0 + $0x5dc] sm:$0xf] }
 0x302   :  { %2491 = vmatmul.bf16.gmra.mxu1 %v4309_v56  ;;  %v4337_v56 = vor.u32 %v4820_v40, %v4336_v30 }
 0x303   :  { %2624 = vmatmul.bf16.gmra.mxu2 %v4313_v42 }
 0x304   :  { %2757 = vmatmul.bf16.gmra.mxu3 %v4317_v9 }
 0x306   :  { %v2585_v33 = vpop.f32.mrf.mxu2  ;;  %v2321_v26 = vpop.f32.mrf.mxu0 }
 0x307   :  { %v2718_v46 = vpop.f32.mrf.mxu3  ;;  %v2586_v6 = vadd.f32 %v2585_v33, %v2453_v12  ;;  %v2454_v52 = vpop.f32.mrf.mxu1  ;;  %v2322_v61 = vadd.f32 %v2321_v26, %v5868_v0  ;;  %v4344_v0 = vld [vmem:[%s7513_s0 + $0x598] sm:$0xf] }
 0x308   :  { %v4345_v9 = vor.u32 %v4821_v47, %v4344_v0  ;;  %v4824_v0 = vld [vmem:[%s7513_s0 + $0x5d4] sm:$0xf] }
 0x309   :  { %v6550_v39 = vadd.f32 %v2718_v46, %v2586_v6  ;;  %v2455_v35 = vadd.f32 %v2454_v52, %v2322_v61  ;;  %v4370_v47 = vld [vmem:[%s7513_s0 + $0x5f0] sm:$0xf0] }
 0x30e   :  { %v2587_v60 = vpop.f32.mrf.mxu2  ;;  %v2324_v13 = vpop.f32.mrf.mxu0 }
 0x30f   :  { %v2720_v19 = vpop.f32.mrf.mxu3  ;;  %v2588_v48 = vadd.f32 %v2587_v60, %v2455_v35  ;;  %v2457_v42 = vpop.f32.mrf.mxu1  ;;  %v2325_v12 = vadd.f32 %v2324_v13, %v5870_v8  ;;  %v4368_v8 = vld [vmem:[%s7513_s0 + $0x5d0] sm:$0xf]  ;;  %v4378_v60 = vld [vmem:[%s7513_s0 + $0x5f8] sm:$0xf0] }
 0x311   :  { %v6577_v33 = vadd.f32 %v2720_v19, %v2588_v48  ;;  %v2458_v46 = vadd.f32 %v2457_v42, %v2325_v12  ;;  %2363 = vmatmul.bf16.gmra.mxu0 %v4337_v56  ;;  %v4373_v48 = vor.u32 %v4824_v0, %v4370_v47  ;;  %v4381_v12 = vor.u32 %v4825_v5, %v4378_v60 }
 0x312   :  { %2496 = vmatmul.bf16.gmra.mxu1 %v4341_v18  ;;  %v4369_v18 = vor.u32 %v4828_v43, %v4368_v8 }
 0x313   :  { %2629 = vmatmul.bf16.gmra.mxu2 %v4345_v9 }
 0x314   :  { %2762 = vmatmul.bf16.gmra.mxu3 %v4349_v44 }
 0x316   :  { %v2590_v6 = vpop.f32.mrf.mxu2  ;;  %v2326_v61 = vpop.f32.mrf.mxu0 }
 0x317   :  { %v2723_v26 = vpop.f32.mrf.mxu3  ;;  %v2591_v52 = vadd.f32 %v2590_v6, %v2458_v46  ;;  %v2459_v30 = vpop.f32.mrf.mxu1  ;;  %v2327_v35 = vadd.f32 %v2326_v61, %v5896_v41  ;;  %v4376_v41 = vld [vmem:[%s7513_s0 + $0x5d8] sm:$0xf] }
 0x318   :  { %v4377_v44 = vor.u32 %v4829_v3, %v4376_v41 }
 0x319   :  { %v6580_v40 = vadd.f32 %v2723_v26, %v2591_v52  ;;  %v2460_v17 = vadd.f32 %v2459_v30, %v2327_v35 }
 0x31e   :  { %v2592_v19 = vpop.f32.mrf.mxu2  ;;  %v2329_v42 = vpop.f32.mrf.mxu0 }
 0x31f   :  { %v2725_v56 = vpop.f32.mrf.mxu3  ;;  %v2593_v13 = vadd.f32 %v2592_v19, %v2460_v17  ;;  %v2462_v9 = vpop.f32.mrf.mxu1  ;;  %v2330_v46 = vadd.f32 %v2329_v42, %v5904_v59  ;;  %v211_v17 = vld [vmem:[%s7513_s0 + $0x610] sm:$0xff]  ;;  %v212_v59 = vld [vmem:[%s7513_s0 + $0x618] sm:$0xff] }
 0x320   :  { %v925_v41 = vunpack.c.l.b16 %v211_v17  ;;  %v926_v3 = vunpack.c.h.b16 %v211_v17  ;;  %v927_v5 = vunpack.c.l.b16 %v212_v59  ;;  %v928_v60 = vunpack.c.h.b16 %v212_v59 }
 0x321   :  { %v6607_v6 = vadd.f32 %v2725_v56, %v2593_v13  ;;  %v2463_v26 = vadd.f32 %v2462_v9, %v2330_v46  ;;  %2368 = vmatmul.bf16.gmra.mxu0 %v4369_v18 }
 0x322   :  { %2501 = vmatmul.bf16.gmra.mxu1 %v4373_v48  ;;  %v1125_v18 = vpack.c.b16 %v925_v41, %v925_v41  ;;  %v1126_v48 = vpack.c.b16 %v926_v3, %v926_v3 }
 0x323   :  { %2634 = vmatmul.bf16.gmra.mxu2 %v4377_v44  ;;  %v1127_v44 = vpack.c.b16 %v927_v5, %v927_v5 }
 0x324   :  { %2767 = vmatmul.bf16.gmra.mxu3 %v4381_v12 }
 0x326   :  { %v2595_v52 = vpop.f32.mrf.mxu2  ;;  %v2331_v35 = vpop.f32.mrf.mxu0 }
 0x327   :  { %v2728_v61 = vpop.f32.mrf.mxu3  ;;  %v2596_v30 = vadd.f32 %v2595_v52, %v2463_v26  ;;  %v2464_v8 = vpop.f32.mrf.mxu1  ;;  %v2332_v43 = vadd.f32 %v2331_v35, %v5906_v24  ;;  %v1128_v24 = vpack.c.b16 %v928_v60, %v928_v60 }
 0x329   :  { %v6616_v0 = vadd.f32 %v2728_v61, %v2596_v30  ;;  %v2465_v47 = vadd.f32 %v2464_v8, %v2332_v43 }
 0x32e   :  { %v2597_v19 = vpop.f32.mrf.mxu2  ;;  %v2334_v42 = vpop.f32.mrf.mxu0 }
 0x32f   :  { %v2730_v56 = vpop.f32.mrf.mxu3  ;;  %v2598_v13 = vadd.f32 %v2597_v19, %v2465_v47  ;;  %v2467_v9 = vpop.f32.mrf.mxu1  ;;  %v2335_v12 = vadd.f32 %v2334_v42, %v5908_v36 }
 0x331   :  { %v6619_v46 = vadd.f32 %v2730_v56, %v2598_v13  ;;  %v2468_v26 = vadd.f32 %v2467_v9, %v2335_v12  ;;  %2373 = vmatmul.bf16.gmra.mxu0 %v1125_v18  ;;  %v3033_v12 = vadd.f32 %v6187_v45, %v6160_v54 }
 0x332   :  { %2506 = vmatmul.bf16.gmra.mxu1 %v1126_v48 }
 0x333   :  { %2639 = vmatmul.bf16.gmra.mxu2 %v1127_v44 }
 0x334   :  { %2772 = vmatmul.bf16.gmra.mxu3 %v1128_v24 }
 0x336   :  { %v2600_v52 = vpop.f32.mrf.mxu2  ;;  %v2336_v35 = vpop.f32.mrf.mxu0 }
 0x337   :  { %v2733_v61 = vpop.f32.mrf.mxu3  ;;  %v2601_v30 = vadd.f32 %v2600_v52, %v2468_v26  ;;  %v2469_v8 = vpop.f32.mrf.mxu1  ;;  %v2337_v17 = vadd.f32 %v2336_v35, %v5934_v10  ;;  %v3034_v26 = vadd.f32 %v3033_v12, %v6190_v37 }
 0x339   :  { %v6622_v43 = vadd.f32 %v2733_v61, %v2601_v30  ;;  %v2470_v59 = vadd.f32 %v2469_v8, %v2337_v17  ;;  %v3035_v61 = vadd.f32 %v3034_v26, %v6217_v1 }
 0x33e   :  { %v2602_v47 = vpop.f32.mrf.mxu2  ;;  %v2339_v3 = vpop.f32.mrf.mxu0 }
 0x33f   :  { %v2735_v41 = vpop.f32.mrf.mxu3  ;;  %v2603_v36 = vadd.f32 %v2602_v47, %v2470_v59  ;;  %v2472_v5 = vpop.f32.mrf.mxu1  ;;  %v2340_v60 = vadd.f32 %v2339_v3, %v5936_v27  ;;  %v3036_v59 = vadd.f32 %v3035_v61, %v6220_v55 }
 0x341   :  { %v6625_v19 = vadd.f32 %v2735_v41, %v2603_v36  ;;  %v2473_v56 = vadd.f32 %v2472_v5, %v2340_v60  ;;  %v3037_v41 = vadd.f32 %v3036_v59, %v6247_v4 }
 0x343   :  { %v3038_v36 = vadd.f32 %v3037_v41, %v6250_v20 }
 0x345   :  { %v3039_v60 = vadd.f32 %v3038_v36, %v6277_v16 }
 0x346   :  { %v2605_v18 = vpop.f32.mrf.mxu2  ;;  %v2341_v42 = vpop.f32.mrf.mxu0 }
 0x347   :  { %v2738_v48 = vpop.f32.mrf.mxu3  ;;  %v2606_v13 = vadd.f32 %v2605_v18, %v2473_v56  ;;  %v2474_v9 = vpop.f32.mrf.mxu1  ;;  %v2342_v10 = vadd.f32 %v2341_v42, %v5962_v2 }
 0x349   :  { %v6628_v44 = vadd.f32 %v2738_v48, %v2606_v13  ;;  %v2475_v24 = vadd.f32 %v2474_v9, %v2342_v10 }
 0x34e   :  { %v2607_v52 = vpop.f32.mrf.mxu2  ;;  %v2344_v35 = vpop.f32.mrf.mxu0 }
 0x34f   :  { %v2740_v27 = vpop.f32.mrf.mxu3  ;;  %v2608_v30 = vadd.f32 %v2607_v52, %v2475_v24  ;;  %v2477_v8 = vpop.f32.mrf.mxu1  ;;  %v2345_v17 = vadd.f32 %v2344_v35, %v5964_v15  ;;  %v3040_v15 = vadd.f32 %v3039_v60, %v6280_v11  ;;  %v7562_v35 = vld [vmem:[#allocation3_spill] sm:$0xff] }
 0x351   :  { %v6636_v2 = vadd.f32 %v2740_v27, %v2608_v30  ;;  %v2478_v47 = vadd.f32 %v2477_v8, %v2345_v17  ;;  %v3041_v10 = vadd.f32 %v3040_v15, %v6307_v63 }
 0x353   :  { %7561 = vst [vmem:[#allocation12_spill] sm:$0xff] %v6636_v2  ;;  %v3042_v24 = vadd.f32 %v3041_v10, %v6310_v7 }
 0x355   :  { %v3043_v52 = vadd.f32 %v3042_v24, %v6337_v25 }
 0x356   :  { %v2610_v3 = vpop.f32.mrf.mxu2  ;;  %v2346_v18 = vpop.f32.mrf.mxu0 }
 0x357   :  { %v2743_v5 = vpop.f32.mrf.mxu3  ;;  %v2611_v56 = vadd.f32 %v2610_v3, %v2478_v47  ;;  %v2479_v48 = vpop.f32.mrf.mxu1  ;;  %v2347_v13 = vadd.f32 %v2346_v18, %v5990_v58  ;;  %v3044_v58 = vadd.f32 %v3043_v52, %v6340_v14 }
 0x359   :  { %v6643_v42 = vadd.f32 %v2743_v5, %v2611_v56  ;;  %v2480_v9 = vadd.f32 %v2479_v48, %v2347_v13  ;;  %v3045_v47 = vadd.f32 %v3044_v58, %v6367_v57  ;;  %v7564_v48 = vld [vmem:[#allocation4_spill] sm:$0xff] }
 0x35b   :  { %v3046_v41 = vadd.f32 %v3045_v47, %v6370_v28 }
 0x35d   :  { %v3047_v5 = vadd.f32 %v3046_v41, %v6397_v21 }
 0x35e   :  { %v2612_v12 = vpop.f32.mrf.mxu2  ;;  %v2349_v61 = vpop.f32.mrf.mxu0 }
 0x35f   :  { %v2745_v26 = vpop.f32.mrf.mxu3  ;;  %v2613_v27 = vadd.f32 %v2612_v12, %v2480_v9  ;;  %v2482_v30 = vpop.f32.mrf.mxu1  ;;  %v2350_v8 = vadd.f32 %v2349_v61, %v7562_v35  ;;  %v3048_v15 = vadd.f32 %v3047_v5, %v6400_v29 }
 0x361   :  { %v6650_v17 = vadd.f32 %v2745_v26, %v2613_v27  ;;  %v2483_v59 = vadd.f32 %v2482_v30, %v2350_v8  ;;  %v3049_v24 = vadd.f32 %v3048_v15, %v6427_v50  ;;  %v7566_v8 = vld [vmem:[#allocation5_spill] sm:$0xff]  ;;  %v7568_v15 = vld [vmem:[#allocation6_spill] sm:$0xff] }
 0x363   :  { %7563 = vst [vmem:[#allocation3_spill] sm:$0xff] %v6650_v17  ;;  %v3050_v12 = vadd.f32 %v3049_v24, %v6430_v31 }
 0x365   :  { %v3051_v27 = vadd.f32 %v3050_v12, %v6457_v22 }
 0x366   :  { %v2615_v36 = vpop.f32.mrf.mxu2  ;;  %v2351_v56 = vpop.f32.mrf.mxu0 }
 0x367   :  { %v2748_v3 = vpop.f32.mrf.mxu3  ;;  %v2616_v60 = vadd.f32 %v2615_v36, %v2483_v59  ;;  %v2484_v18 = vpop.f32.mrf.mxu1  ;;  %v2352_v13 = vadd.f32 %v2351_v56, %v7564_v48  ;;  %v3052_v59 = vadd.f32 %v3051_v27, %v6460_v32 }
 0x369   :  { %v6657_v9 = vadd.f32 %v2748_v3, %v2616_v60  ;;  %v2485_v10 = vadd.f32 %v2484_v18, %v2352_v13  ;;  %v3053_v36 = vadd.f32 %v3052_v59, %v6487_v53 }
 0x36b   :  { %7565 = vst [vmem:[#allocation4_spill] sm:$0xff] %v6657_v9  ;;  %v3054_v3 = vadd.f32 %v3053_v36, %v6490_v34 }
 0x36d   :  { %v3055_v56 = vadd.f32 %v3054_v3, %v6517_v23 }
 0x36e   :  { %v2617_v26 = vpop.f32.mrf.mxu2  ;;  %v2354_v30 = vpop.f32.mrf.mxu0 }
 0x36f   :  { %v2750_v52 = vpop.f32.mrf.mxu3  ;;  %v2618_v61 = vadd.f32 %v2617_v26, %v2485_v10  ;;  %v2487_v35 = vpop.f32.mrf.mxu1  ;;  %v2355_v58 = vadd.f32 %v2354_v30, %v7566_v8  ;;  %v3056_v24 = vadd.f32 %v3055_v56, %v6520_v38 }
 0x371   :  { %v6664_v47 = vadd.f32 %v2750_v52, %v2618_v61  ;;  %v2488_v41 = vadd.f32 %v2487_v35, %v2355_v58  ;;  %v3057_v52 = vadd.f32 %v3056_v24, %v6547_v62 }
 0x373   :  { %7567 = vst [vmem:[#allocation5_spill] sm:$0xff] %v6664_v47  ;;  %v3058_v27 = vadd.f32 %v3057_v52, %v6550_v39  ;;  %v7572_v52 = vld [vmem:[#allocation8_spill] sm:$0xff] }
 0x375   :  { %v3059_v35 = vadd.f32 %v3058_v27, %v6577_v33 }
 0x376   :  { %v2620_v5 = vpop.f32.mrf.mxu2  ;;  %v2356_v48 = vpop.f32.mrf.mxu0 }
 0x377   :  { %v2753_v60 = vpop.f32.mrf.mxu3  ;;  %v2621_v18 = vadd.f32 %v2620_v5, %v2488_v41  ;;  %v2489_v13 = vpop.f32.mrf.mxu1  ;;  %v2357_v10 = vadd.f32 %v2356_v48, %v7568_v15  ;;  %v7570_v41 = vld [vmem:[#allocation7_spill] sm:$0xff]  ;;  %v3060_v3 = vadd.f32 %v3059_v35, %v6580_v40 }
 0x379   :  { %v6671_v12 = vadd.f32 %v2753_v60, %v2621_v18  ;;  %v2490_v26 = vadd.f32 %v2489_v13, %v2357_v10  ;;  %v3061_v56 = vadd.f32 %v3060_v3, %v6607_v6 }
 0x37b   :  { %7569 = vst [vmem:[#allocation6_spill] sm:$0xff] %v6671_v12  ;;  %v3062_v18 = vadd.f32 %v3061_v56, %v6616_v0 }
 0x37d   :  { %v3063_v15 = vadd.f32 %v3062_v18, %v6619_v46  ;;  %v7574_v18 = vld [vmem:[#allocation9_spill] sm:$0xff] }
 0x37e   :  { %v2622_v61 = vpop.f32.mrf.mxu2  ;;  %v2359_v58 = vpop.f32.mrf.mxu0 }
 0x37f   :  { %v2755_v30 = vpop.f32.mrf.mxu3  ;;  %v2623_v8 = vadd.f32 %v2622_v61, %v2490_v26  ;;  %v2492_v59 = vpop.f32.mrf.mxu1  ;;  %v2360_v36 = vadd.f32 %v2359_v58, %v7570_v41  ;;  %v3064_v61 = vadd.f32 %v3063_v15, %v6622_v43 }
 0x381   :  { %v6678_v5 = vadd.f32 %v2755_v30, %v2623_v8  ;;  %v2493_v60 = vadd.f32 %v2492_v59, %v2360_v36  ;;  %v3065_v35 = vadd.f32 %v3064_v61, %v6625_v19 }
 0x383   :  { %7571 = vst [vmem:[#allocation7_spill] sm:$0xff] %v6678_v5  ;;  %v3066_v8 = vadd.f32 %v3065_v35, %v6628_v44 }
 0x385   :  { %v3067_v36 = vadd.f32 %v3066_v8, %v6636_v2 }
 0x386   :  { %v2625_v48 = vpop.f32.mrf.mxu2  ;;  %v2361_v24 = vpop.f32.mrf.mxu0 }
 0x387   :  { %v2758_v13 = vpop.f32.mrf.mxu3  ;;  %v2626_v10 = vadd.f32 %v2625_v48, %v2493_v60  ;;  %v2494_v26 = vpop.f32.mrf.mxu1  ;;  %v2362_v27 = vadd.f32 %v2361_v24, %v7572_v52  ;;  %v3068_v24 = vadd.f32 %v3067_v36, %v6643_v42 }
 0x389   :  { %v6685_v58 = vadd.f32 %v2758_v13, %v2626_v10  ;;  %v2495_v30 = vadd.f32 %v2494_v26, %v2362_v27  ;;  %v3069_v15 = vadd.f32 %v3068_v24, %v6650_v17 }
 0x38b   :  { %7573 = vst [vmem:[#allocation8_spill] sm:$0xff] %v6685_v58  ;;  %v3070_v10 = vadd.f32 %v3069_v15, %v6657_v9 }
 0x38d   :  { %v3071_v61 = vadd.f32 %v3070_v10, %v6664_v47 }
 0x38e   :  { %v2627_v59 = vpop.f32.mrf.mxu2  ;;  %v2364_v56 = vpop.f32.mrf.mxu0 }
 0x38f   :  { %v2760_v41 = vpop.f32.mrf.mxu3  ;;  %v2628_v3 = vadd.f32 %v2627_v59, %v2495_v30  ;;  %v2497_v60 = vpop.f32.mrf.mxu1  ;;  %v2365_v48 = vadd.f32 %v2364_v56, %v7574_v18  ;;  %v7576_v59 = vld [vmem:[#allocation10_spill] sm:$0xff]  ;;  %v3072_v56 = vadd.f32 %v3071_v61, %v6671_v12 }
 0x391   :  { %v6692_v52 = vadd.f32 %v2760_v41, %v2628_v3  ;;  %v2498_v13 = vadd.f32 %v2497_v60, %v2365_v48  ;;  %v3073_v41 = vadd.f32 %v3072_v56, %v6678_v5 }
 0x393   :  { %7575 = vst [vmem:[#allocation9_spill] sm:$0xff] %v6692_v52  ;;  %v3074_v3 = vadd.f32 %v3073_v41, %v6685_v58 }
 0x395   :  { %v3075_v24 = vadd.f32 %v3074_v3, %v6692_v52 }
 0x396   :  { %v2630_v26 = vpop.f32.mrf.mxu2  ;;  %v2366_v8 = vpop.f32.mrf.mxu0 }
 0x397   :  { %v2763_v27 = vpop.f32.mrf.mxu3  ;;  %v2631_v35 = vadd.f32 %v2630_v26, %v2498_v13  ;;  %v2499_v30 = vpop.f32.mrf.mxu1  ;;  %v2367_v2 = vadd.f32 %v2366_v8, %v7576_v59  ;;  %v7577_v13 = vld [vmem:[#allocation11_spill] sm:$0xff] }
 0x399   :  { %v2764_v18 = vadd.f32 %v2763_v27, %v2631_v35  ;;  %v2500_v36 = vadd.f32 %v2499_v30, %v2367_v2 }
 0x39b   :  { %v3076_v47 = vadd.f32 %v3075_v24, %v2764_v18 }
 0x39e   :  { %v2632_v60 = vpop.f32.mrf.mxu2  ;;  %v2369_v9 = vpop.f32.mrf.mxu0 }
 0x39f   :  { %v2765_v48 = vpop.f32.mrf.mxu3  ;;  %v2633_v15 = vadd.f32 %v2632_v60, %v2500_v36  ;;  %v2502_v10 = vpop.f32.mrf.mxu1  ;;  %v2370_v26 = vadd.f32 %v2369_v9, %v7577_v13  ;;  %v5044_v13 = vmov 392.0  }
 0x3a0   :  { %5040 = vrcp.f32 %v5044_v13 }
 0x3a1   :  { %v2766_v17 = vadd.f32 %v2765_v48, %v2633_v15  ;;  %v2503_v8 = vadd.f32 %v2502_v10, %v2370_v26 }
 0x3a3   :  { %v3077_v59 = vadd.f32 %v3076_v47, %v2766_v17 }
 0x3a6   :  { %v2635_v61 = vpop.f32.mrf.mxu2  ;;  %v2371_v35 = vpop.f32.mrf.mxu0 }
 0x3a7   :  { %v2768_v27 = vpop.f32.mrf.mxu3  ;;  %v2636_v2 = vadd.f32 %v2635_v61, %v2503_v8  ;;  %v2504_v30 = vpop.f32.mrf.mxu1  ;;  %v2372_v56 = vadd.f32 %v2371_v35, %v6130_v49 }
 0x3a9   :  { %v2769_v41 = vadd.f32 %v2768_v27, %v2636_v2  ;;  %v2505_v58 = vadd.f32 %v2504_v30, %v2372_v56 }
 0x3ab   :  { %v3078_v5 = vadd.f32 %v3077_v59, %v2769_v41  ;;  %v5041_v59 = vpop.eup %5040 }
 0x3ac   :  { %v3088_v56 = vmul.f32 392.0, %v5041_v59  ;;  %vm3092_vm0 = vweird.f32 %v5041_v59 }
 0x3ae   :  { %v2637_v3 = vpop.f32.mrf.mxu2  ;;  %v2374_v52 = vpop.f32.mrf.mxu0 }
 0x3af   :  { %v2770_v36 = vpop.f32.mrf.mxu3  ;;  %v2638_v60 = vadd.f32 %v2637_v3, %v2505_v58  ;;  %v2507_v12 = vpop.f32.mrf.mxu1  ;;  %v2375_v9 = vadd.f32 %v2374_v52, %v6132_v51  ;;  %v3089_v51 = vsub.f32 1.0, %v3088_v56 }
 0x3b1   :  { %v2771_v48 = vadd.f32 %v2770_v36, %v2638_v60  ;;  %v2508_v24 = vadd.f32 %v2507_v12, %v2375_v9  ;;  %v3090_v12 = vmul.f32 %v5041_v59, %v3089_v51 }
 0x3b3   :  { %v3079_v47 = vadd.f32 %v3078_v5, %v2771_v48  ;;  %v3091_v36 = vadd.f32 %v5041_v59, %v3090_v12 }
 0x3b5   :  { %v6705_v9 = vsel %vm3092_vm0, %v5041_v59, %v3091_v36 }
 0x3b6   :  { %v2640_v15 = vpop.f32.mrf.mxu2  ;;  %v2376_v8 = vpop.f32.mrf.mxu0 }
 0x3b7   :  { %v2773_v10 = vpop.f32.mrf.mxu3  ;;  %v2641_v26 = vadd.f32 %v2640_v15, %v2508_v24  ;;  %v2509_v49 = vpop.f32.mrf.mxu1 }
 0x3b9   :  { %v2774_v61 = vadd.f32 %v2773_v10, %v2641_v26 }
 0x3bb   :  { %v3080_v27 = vadd.f32 %v3079_v47, %v2774_v61 }
 0x3bd   :  { %v3081_v2 = vrot.slane %v3080_v27, 4 }
 0x3be   :  { %v2642_v35 = vpop.f32.mrf.mxu2 }
 0x3bf   :  { %v2775_v58 = vpop.f32.mrf.mxu3  ;;  %v3082_v30 = vadd.f32 %v3081_v2, %v3080_v27 }
 0x3c1   :  { %v3083_v3 = vrot.slane %v3082_v30, 2 }
 0x3c3   :  { %v3084_v52 = vadd.f32 %v3083_v3, %v3082_v30 }
 0x3c5   :  { %v3085_v5 = vrot.slane %v3084_v52, 1 }
 0x3c7   :  { %v3086_v60 = vadd.f32 %v3085_v5, %v3084_v52 }
 0x3c9   :  { %v6708_v24 = vmul.f32 %v6705_v9, %v3086_v60 }
 0x3cb   :  { %v6711_v47 = vsub.f32 %v2764_v18, %v6708_v24  ;;  %v6714_v15 = vsub.f32 %v2766_v17, %v6708_v24  ;;  %v6717_v10 = vsub.f32 %v2769_v41, %v6708_v24  ;;  %v6720_v13 = vsub.f32 %v2771_v48, %v6708_v24 }
 0x3cc   :  { %v6723_v26 = vsub.f32 %v2774_v61, %v6708_v24  ;;  %v6727_v8 = vsub.f32 %v6160_v54, %v6708_v24  ;;  %v6731_v18 = vsub.f32 %v6187_v45, %v6708_v24  ;;  %v6735_v17 = vsub.f32 %v6190_v37, %v6708_v24 }
 0x3cd   :  { %7578 = vst [vmem:[#allocation10_spill] sm:$0xff] %v6711_v47  ;;  %v6743_v49 = vsub.f32 %v6217_v1, %v6708_v24  ;;  %v6747_v54 = vsub.f32 %v6220_v55, %v6708_v24  ;;  %v6753_v37 = vsub.f32 %v6247_v4, %v6708_v24  ;;  %v6759_v1 = vsub.f32 %v6250_v20, %v6708_v24 }
 0x3ce   :  { %7579 = vst [vmem:[#allocation11_spill] sm:$0xff] %v6714_v15  ;;  %v3144_v41 = vmul.f32 %v6727_v8, %v6727_v8  ;;  %v3145_v48 = vmul.f32 %v6731_v18, %v6731_v18  ;;  %v3146_v45 = vmul.f32 %v6735_v17, %v6735_v17  ;;  %v6765_v35 = vsub.f32 %v6277_v16, %v6708_v24 }
 0x3cf   :  { %7580 = vst [vmem:[#allocation13_spill] sm:$0xff] %v6717_v10  ;;  %v3147_v27 = vmul.f32 %v6743_v49, %v6743_v49  ;;  %v3148_v55 = vmul.f32 %v6747_v54, %v6747_v54  ;;  %v3149_v4 = vmul.f32 %v6753_v37, %v6753_v37  ;;  %v6771_v30 = vsub.f32 %v6280_v11, %v6708_v24 }
 0x3d0   :  { %v3193_v61 = vadd.f32 %v3145_v48, %v3144_v41  ;;  %v3150_v20 = vmul.f32 %v6759_v1, %v6759_v1  ;;  %v6777_v3 = vsub.f32 %v6307_v63, %v6708_v24  ;;  %v3151_v16 = vmul.f32 %v6765_v35, %v6765_v35 }
 0x3d1   :  { %v6783_v52 = vsub.f32 %v6310_v7, %v6708_v24  ;;  %v3152_v11 = vmul.f32 %v6771_v30, %v6771_v30  ;;  %v6789_v5 = vsub.f32 %v6337_v25, %v6708_v24  ;;  %v6795_v60 = vsub.f32 %v6340_v14, %v6708_v24 }
 0x3d2   :  { %v3194_v59 = vadd.f32 %v3193_v61, %v3146_v45  ;;  %v3153_v63 = vmul.f32 %v6777_v3, %v6777_v3  ;;  %v6801_v48 = vsub.f32 %v6367_v57, %v6708_v24  ;;  %v6807_v61 = vsub.f32 %v6370_v28, %v6708_v24 }
 0x3d3   :  { %v3154_v7 = vmul.f32 %v6783_v52, %v6783_v52  ;;  %v3155_v25 = vmul.f32 %v6789_v5, %v6789_v5  ;;  %v3156_v14 = vmul.f32 %v6795_v60, %v6795_v60 }
 0x3d4   :  { %v3195_v2 = vadd.f32 %v3194_v59, %v3147_v27  ;;  %v6813_v59 = vsub.f32 %v6397_v21, %v6708_v24  ;;  %v3157_v57 = vmul.f32 %v6801_v48, %v6801_v48  ;;  %v3158_v28 = vmul.f32 %v6807_v61, %v6807_v61 }
 0x3d6   :  { %v3196_v58 = vadd.f32 %v3195_v2, %v3148_v55  ;;  %v6819_v2 = vsub.f32 %v6400_v29, %v6708_v24  ;;  %v3159_v21 = vmul.f32 %v6813_v59, %v6813_v59 }
 0x3d8   :  { %v3197_v56 = vadd.f32 %v3196_v58, %v3149_v4  ;;  %v6825_v58 = vsub.f32 %v6427_v50, %v6708_v24  ;;  %v3160_v29 = vmul.f32 %v6819_v2, %v6819_v2 }
 0x3da   :  { %v3198_v51 = vadd.f32 %v3197_v56, %v3150_v20  ;;  %v6831_v56 = vsub.f32 %v6430_v31, %v6708_v24  ;;  %v3161_v50 = vmul.f32 %v6825_v58, %v6825_v58 }
 0x3dc   :  { %v3199_v12 = vadd.f32 %v3198_v51, %v3151_v16  ;;  %v6837_v51 = vsub.f32 %v6457_v22, %v6708_v24  ;;  %v3162_v31 = vmul.f32 %v6831_v56, %v6831_v56 }
 0x3de   :  { %v3200_v36 = vadd.f32 %v3199_v12, %v3152_v11  ;;  %v6843_v12 = vsub.f32 %v6460_v32, %v6708_v24  ;;  %v3163_v22 = vmul.f32 %v6837_v51, %v6837_v51 }
 0x3e0   :  { %v3201_v41 = vadd.f32 %v3200_v36, %v3153_v63  ;;  %v6849_v36 = vsub.f32 %v6487_v53, %v6708_v24  ;;  %v3164_v32 = vmul.f32 %v6843_v12, %v6843_v12 }
 0x3e2   :  { %v3202_v45 = vadd.f32 %v3201_v41, %v3154_v7  ;;  %v6855_v41 = vsub.f32 %v6490_v34, %v6708_v24  ;;  %v3165_v53 = vmul.f32 %v6849_v36, %v6849_v36 }
 0x3e4   :  { %v3203_v27 = vadd.f32 %v3202_v45, %v3155_v25  ;;  %v6861_v45 = vsub.f32 %v6517_v23, %v6708_v24  ;;  %v3166_v34 = vmul.f32 %v6855_v41, %v6855_v41 }
 0x3e6   :  { %v3204_v55 = vadd.f32 %v3203_v27, %v3156_v14  ;;  %v6867_v27 = vsub.f32 %v6520_v38, %v6708_v24  ;;  %v3167_v23 = vmul.f32 %v6861_v45, %v6861_v45 }
 0x3e8   :  { %v3205_v4 = vadd.f32 %v3204_v55, %v3157_v57  ;;  %v6873_v55 = vsub.f32 %v6547_v62, %v6708_v24  ;;  %v3168_v38 = vmul.f32 %v6867_v27, %v6867_v27 }
 0x3ea   :  { %v3206_v20 = vadd.f32 %v3205_v4, %v3158_v28  ;;  %v6879_v4 = vsub.f32 %v6550_v39, %v6708_v24  ;;  %v3169_v62 = vmul.f32 %v6873_v55, %v6873_v55 }
 0x3ec   :  { %v3207_v16 = vadd.f32 %v3206_v20, %v3159_v21  ;;  %v6885_v20 = vsub.f32 %v6577_v33, %v6708_v24  ;;  %v3170_v39 = vmul.f32 %v6879_v4, %v6879_v4 }
 0x3ee   :  { %v3208_v11 = vadd.f32 %v3207_v16, %v3160_v29  ;;  %v6891_v16 = vsub.f32 %v6580_v40, %v6708_v24  ;;  %v3171_v33 = vmul.f32 %v6885_v20, %v6885_v20 }
 0x3f0   :  { %v3209_v63 = vadd.f32 %v3208_v11, %v3161_v50  ;;  %v6897_v11 = vsub.f32 %v6607_v6, %v6708_v24  ;;  %v3172_v40 = vmul.f32 %v6891_v16, %v6891_v16 }
 0x3f2   :  { %v3210_v7 = vadd.f32 %v3209_v63, %v3162_v31  ;;  %v6903_v63 = vsub.f32 %v6616_v0, %v6708_v24  ;;  %v3173_v6 = vmul.f32 %v6897_v11, %v6897_v11 }
 0x3f4   :  { %v3211_v25 = vadd.f32 %v3210_v7, %v3163_v22  ;;  %v6909_v7 = vsub.f32 %v6619_v46, %v6708_v24  ;;  %v3174_v0 = vmul.f32 %v6903_v63, %v6903_v63 }
 0x3f6   :  { %v3212_v14 = vadd.f32 %v3211_v25, %v3164_v32  ;;  %v6915_v25 = vsub.f32 %v6622_v43, %v6708_v24  ;;  %v3175_v46 = vmul.f32 %v6909_v7, %v6909_v7 }
 0x3f8   :  { %v3213_v57 = vadd.f32 %v3212_v14, %v3165_v53  ;;  %v6921_v14 = vsub.f32 %v6625_v19, %v6708_v24  ;;  %v3176_v43 = vmul.f32 %v6915_v25, %v6915_v25 }
 0x3fa   :  { %v3214_v28 = vadd.f32 %v3213_v57, %v3166_v34  ;;  %v6927_v57 = vsub.f32 %v6628_v44, %v6708_v24  ;;  %v3177_v19 = vmul.f32 %v6921_v14, %v6921_v14 }
 0x3fc   :  { %v3215_v21 = vadd.f32 %v3214_v28, %v3167_v23  ;;  %v7581_v28 = vld [vmem:[#allocation12_spill] sm:$0xff]  ;;  %v3178_v44 = vmul.f32 %v6927_v57, %v6927_v57 }
 0x3fe   :  { %v3216_v29 = vadd.f32 %v3215_v21, %v3168_v38  ;;  %v6933_v38 = vsub.f32 %v7581_v28, %v6708_v24 }
 0x400   :  { %v3217_v50 = vadd.f32 %v3216_v29, %v3169_v62  ;;  %v6939_v62 = vsub.f32 %v6643_v42, %v6708_v24 }
 0x402   :  { %v3218_v31 = vadd.f32 %v3217_v50, %v3170_v39  ;;  %v7582_v39 = vld [vmem:[#allocation3_spill] sm:$0xff]  ;;  %v3180_v42 = vmul.f32 %v6939_v62, %v6939_v62 }
 0x403   :  { %v6945_v50 = vsub.f32 %v7582_v39, %v6708_v24  ;;  %v7587_v39 = vld [vmem:[#allocation8_spill] sm:$0xff] }
 0x404   :  { %v3219_v22 = vadd.f32 %v3218_v31, %v3171_v33  ;;  %v3179_v33 = vmul.f32 %v6933_v38, %v6933_v38 }
 0x406   :  { %v3220_v32 = vadd.f32 %v3219_v22, %v3172_v40  ;;  %v7583_v40 = vld [vmem:[#allocation4_spill] sm:$0xff] }
 0x407   :  { %v6951_v22 = vsub.f32 %v7583_v40, %v6708_v24 }
 0x408   :  { %v3221_v53 = vadd.f32 %v3220_v32, %v3173_v6  ;;  %v7584_v32 = vld [vmem:[#allocation5_spill] sm:$0xff] }
 0x40a   :  { %v3222_v34 = vadd.f32 %v3221_v53, %v3174_v0  ;;  %v6957_v0 = vsub.f32 %v7584_v32, %v6708_v24  ;;  %v3181_v53 = vmul.f32 %v6945_v50, %v6945_v50 }
 0x40c   :  { %v3223_v23 = vadd.f32 %v3222_v34, %v3175_v46  ;;  %v7585_v34 = vld [vmem:[#allocation6_spill] sm:$0xff] }
 0x40e   :  { %v3224_v21 = vadd.f32 %v3223_v23, %v3176_v43  ;;  %v6963_v43 = vsub.f32 %v7585_v34, %v6708_v24  ;;  %v3182_v23 = vmul.f32 %v6951_v22, %v6951_v22 }
 0x410   :  { %v3225_v29 = vadd.f32 %v3224_v21, %v3177_v19  ;;  %v7586_v19 = vld [vmem:[#allocation7_spill] sm:$0xff] }
 0x411   :  { %v6969_v21 = vsub.f32 %v7586_v19, %v6708_v24  ;;  %v3188_v19 = vmul.f32 %v6711_v47, %v6711_v47 }
 0x412   :  { %v3226_v31 = vadd.f32 %v3225_v29, %v3178_v44  ;;  %v3183_v44 = vmul.f32 %v6957_v0, %v6957_v0 }
 0x413   :  { %v3185_v32 = vmul.f32 %v6969_v21, %v6969_v21 }
 0x414   :  { %v3227_v6 = vadd.f32 %v3226_v31, %v3179_v33  ;;  %v6975_v33 = vsub.f32 %v7587_v39, %v6708_v24  ;;  %v3184_v31 = vmul.f32 %v6963_v43, %v6963_v43  ;;  %v3190_v39 = vmul.f32 %v6717_v10, %v6717_v10 }
 0x416   :  { %v3228_v46 = vadd.f32 %v3227_v6, %v3180_v42  ;;  %7588 = vst [vmem:[#allocation12_spill] sm:$0xff] %v6975_v33  ;;  %v7589_v42 = vld [vmem:[#allocation9_spill] sm:$0xff] }
 0x417   :  { %v6981_v6 = vsub.f32 %v7589_v42, %v6708_v24  ;;  %v3189_v24 = vmul.f32 %v6714_v15, %v6714_v15 }
 0x418   :  { %v3229_v28 = vadd.f32 %v3228_v46, %v3181_v53  ;;  %v3186_v46 = vmul.f32 %v6975_v33, %v6975_v33 }
 0x419   :  { %7590 = vst [vmem:[#allocation3_spill] sm:$0xff] %v6981_v6 }
 0x41a   :  { %v3230_v29 = vadd.f32 %v3229_v28, %v3182_v23  ;;  %v3187_v23 = vmul.f32 %v6981_v6, %v6981_v6 }
 0x41c   :  { %v3231_v40 = vadd.f32 %v3230_v29, %v3183_v44 }
 0x41e   :  { %v3232_v53 = vadd.f32 %v3231_v40, %v3184_v31  ;;  %v3191_v40 = vmul.f32 %v6720_v13, %v6720_v13 }
 0x420   :  { %v3233_v34 = vadd.f32 %v3232_v53, %v3185_v32  ;;  %v3192_v32 = vmul.f32 %v6723_v26, %v6723_v26 }
 0x422   :  { %v3234_v28 = vadd.f32 %v3233_v34, %v3186_v46 }
 0x424   :  { %v3235_v44 = vadd.f32 %v3234_v28, %v3187_v23 }
 0x426   :  { %v3236_v29 = vadd.f32 %v3235_v44, %v3188_v19 }
 0x428   :  { %v3237_v31 = vadd.f32 %v3236_v29, %v3189_v24 }
 0x42a   :  { %v3238_v42 = vadd.f32 %v3237_v31, %v3190_v39 }
 0x42c   :  { %v3239_v53 = vadd.f32 %v3238_v42, %v3191_v40 }
 0x42e   :  { %v3240_v46 = vadd.f32 %v3239_v53, %v3192_v32 }
 0x430   :  { %v3241_v34 = vrot.slane %v3240_v46, 4 }
 0x432   :  { %v3242_v47 = vadd.f32 %v3241_v34, %v3240_v46  ;;  %v7591_v34 = vld [vmem:[#allocation12_spill] sm:$0xff] }
 0x434   :  { %v3243_v23 = vrot.slane %v3242_v47, 2 }
 0x436   :  { %v3244_v28 = vadd.f32 %v3243_v23, %v3242_v47 }
 0x438   :  { %v3245_v6 = vrot.slane %v3244_v28, 1 }
 0x43a   :  { %v3246_v15 = vadd.f32 %v3245_v6, %v3244_v28  ;;  %v7592_v28 = vld [vmem:[#allocation3_spill] sm:$0xff] }
 0x43c   :  { %v3247_v19 = vmul.f32 %v3246_v15, %v6705_v9 }
 0x43e   :  { %v3248_v44 = vadd.f32 1e-05, %v3247_v19  ;;  %v7593_v19 = vld [vmem:[#allocation10_spill] sm:$0xff] }
 0x440   :  { %5042 = vrsqrt.f32 %v3248_v44  ;;  %vm3255_vm2 = vweird.f32 %v3248_v44 }
 0x446   :  { %v5043_v24 = vpop.eup %5042 }
 0x447   :  { %v3250_v29 = vmul.f32 %v5043_v24, %v3248_v44  ;;  %vm3256_vm1 = vweird.f32 %v5043_v24  ;;  %v7594_v44 = vld [vmem:[#allocation11_spill] sm:$0xff] }
 0x448   :  { %vm3257_vm3 = vmor %vm3255_vm2, %vm3256_vm1 }
 0x449   :  { %v3251_v10 = vmul.f32 %v5043_v24, %v3250_v29 }
 0x44b   :  { %v3252_v33 = vmul.f32 0.5, %v3251_v10 }
 0x44d   :  { %v3253_v39 = vsub.f32 1.5, %v3252_v33 }
 0x44f   :  { %v3254_v31 = vmul.f32 %v5043_v24, %v3253_v39 }
 0x451   :  { %v3258_v40 = vsel %vm3257_vm3, %v5043_v24, %v3254_v31  ;;  %v7595_v24 = vld [vmem:[#allocation13_spill] sm:$0xff] }
 0x452   :  { %v3259_v42 = vmul.f32 %v3258_v40, %v6727_v8  ;;  %v3260_v47 = vmul.f32 %v3258_v40, %v6731_v18  ;;  %v7003_v6 = vmul.f32 %v3258_v40, %v6720_v13  ;;  %v3261_v9 = vmul.f32 %v3258_v40, %v6735_v17 }
 0x453   :  { %v3262_v15 = vmul.f32 %v3258_v40, %v6743_v49  ;;  %v3263_v32 = vmul.f32 %v3258_v40, %v6747_v54  ;;  %v7009_v10 = vmul.f32 %v3258_v40, %v6723_v26  ;;  %v3264_v33 = vmul.f32 %v3258_v40, %v6753_v37 }
 0x454   :  { %v3265_v53 = vmul.f32 %v3258_v40, %v6759_v1  ;;  %v3266_v8 = vmul.f32 %v3258_v40, %v6765_v35  ;;  %v3267_v18 = vmul.f32 %v3258_v40, %v6771_v30  ;;  %v3268_v13 = vmul.f32 %v3258_v40, %v6777_v3 }
 0x455   :  { %v3269_v46 = vmul.f32 %v3258_v40, %v6783_v52  ;;  %v3270_v17 = vmul.f32 %v3258_v40, %v6789_v5  ;;  %v3271_v49 = vmul.f32 %v3258_v40, %v6795_v60  ;;  %v3272_v54 = vmul.f32 %v3258_v40, %v6801_v48 }
 0x456   :  { %v3273_v26 = vmul.f32 %v3258_v40, %v6807_v61  ;;  %v3274_v37 = vmul.f32 %v3258_v40, %v6813_v59  ;;  %v3275_v1 = vmul.f32 %v3258_v40, %v6819_v2  ;;  %v3276_v35 = vmul.f32 %v3258_v40, %v6825_v58 }
 0x457   :  { %v3277_v30 = vmul.f32 %v3258_v40, %v6831_v56  ;;  %v3278_v3 = vmul.f32 %v3258_v40, %v6837_v51  ;;  %v3279_v52 = vmul.f32 %v3258_v40, %v6843_v12  ;;  %v3280_v5 = vmul.f32 %v3258_v40, %v6849_v36 }
 0x458   :  { %v3281_v60 = vmul.f32 %v3258_v40, %v6855_v41  ;;  %v3282_v48 = vmul.f32 %v3258_v40, %v6861_v45  ;;  %v3283_v61 = vmul.f32 %v3258_v40, %v6867_v27  ;;  %v3284_v59 = vmul.f32 %v3258_v40, %v6873_v55  ;;  %v7042_v45 = vld [vmem:[%s7514_s2] ss:$0 sm:$0xff] }
 0x459   :  { %v3285_v2 = vmul.f32 %v3258_v40, %v6879_v4  ;;  %v3286_v58 = vmul.f32 %v3258_v40, %v6885_v20  ;;  %v3287_v56 = vmul.f32 %v3258_v40, %v6891_v16  ;;  %v3288_v51 = vmul.f32 %v3258_v40, %v6897_v11 }
 0x45a   :  { %v3289_v12 = vmul.f32 %v3258_v40, %v6903_v63  ;;  %v3290_v36 = vmul.f32 %v3258_v40, %v6909_v7  ;;  %v3291_v41 = vmul.f32 %v3258_v40, %v6915_v25  ;;  %v3292_v27 = vmul.f32 %v3258_v40, %v6921_v14 }
 0x45b   :  { %v3293_v55 = vmul.f32 %v3258_v40, %v6927_v57  ;;  %v3294_v4 = vmul.f32 %v3258_v40, %v6933_v38  ;;  %v3295_v20 = vmul.f32 %v3258_v40, %v6939_v62  ;;  %v3296_v16 = vmul.f32 %v3258_v40, %v6945_v50 }
 0x45c   :  { %v3297_v11 = vmul.f32 %v3258_v40, %v6951_v22  ;;  %v3298_v63 = vmul.f32 %v3258_v40, %v6957_v0  ;;  %v3299_v7 = vmul.f32 %v3258_v40, %v6963_v43  ;;  %v3300_v25 = vmul.f32 %v3258_v40, %v6969_v21 }
 0x45d   :  { %v3301_v23 = vmul.f32 %v3258_v40, %v7591_v34  ;;  %v3302_v14 = vmul.f32 %v3258_v40, %v7592_v28  ;;  %v3303_v57 = vmul.f32 %v3258_v40, %v7593_v19  ;;  %v3304_v38 = vmul.f32 %v3258_v40, %v7594_v44 }
 0x45e   :  { %v3305_v62 = vmul.f32 %v3258_v40, %v7595_v24  ;;  %v3312_v50 = vmul.f32 %v7042_v45, %v3259_v42  ;;  %v3313_v22 = vmul.f32 %v7042_v45, %v3260_v47  ;;  %v3314_v0 = vmul.f32 %v7042_v45, %v3261_v9 }
 0x45f   :  { %v3315_v43 = vmul.f32 %v7042_v45, %v3262_v15  ;;  %v3316_v21 = vmul.f32 %v7042_v45, %v3263_v32  ;;  %v3317_v29 = vmul.f32 %v7042_v45, %v3264_v33  ;;  %v3318_v39 = vmul.f32 %v7042_v45, %v3265_v53 }
 0x460   :  { %v3319_v31 = vmul.f32 %v7042_v45, %v3266_v8  ;;  %v3320_v34 = vmul.f32 %v7042_v45, %v3267_v18  ;;  %v3321_v40 = vmul.f32 %v7042_v45, %v3268_v13  ;;  %v3322_v42 = vmul.f32 %v7042_v45, %v3269_v46 }
 0x461   :  { %v3323_v47 = vmul.f32 %v7042_v45, %v3270_v17  ;;  %v3324_v9 = vmul.f32 %v7042_v45, %v3271_v49  ;;  %v3325_v15 = vmul.f32 %v7042_v45, %v3272_v54  ;;  %v3326_v32 = vmul.f32 %v7042_v45, %v3273_v26 }
 0x462   :  { %v3327_v33 = vmul.f32 %v7042_v45, %v3274_v37  ;;  %v3328_v53 = vmul.f32 %v7042_v45, %v3275_v1  ;;  %v3329_v8 = vmul.f32 %v7042_v45, %v3276_v35  ;;  %v3330_v18 = vmul.f32 %v7042_v45, %v3277_v30 }
 0x463   :  { %v3331_v13 = vmul.f32 %v7042_v45, %v3278_v3  ;;  %v3332_v46 = vmul.f32 %v7042_v45, %v3279_v52  ;;  %v3333_v17 = vmul.f32 %v7042_v45, %v3280_v5  ;;  %v3334_v49 = vmul.f32 %v7042_v45, %v3281_v60 }
 0x464   :  { %v3335_v54 = vmul.f32 %v7042_v45, %v3282_v48  ;;  %v3336_v26 = vmul.f32 %v7042_v45, %v3283_v61  ;;  %v3337_v37 = vmul.f32 %v7042_v45, %v3284_v59  ;;  %v3338_v1 = vmul.f32 %v7042_v45, %v3285_v2  ;;  %v7095_v61 = vld [vmem:[%s7515_s3] ss:$0 sm:$0xff] }
 0x465   :  { %v3339_v35 = vmul.f32 %v7042_v45, %v3286_v58  ;;  %v3340_v30 = vmul.f32 %v7042_v45, %v3287_v56  ;;  %v3341_v3 = vmul.f32 %v7042_v45, %v3288_v51  ;;  %v3342_v52 = vmul.f32 %v7042_v45, %v3289_v12 }
 0x466   :  { %v3343_v5 = vmul.f32 %v7042_v45, %v3290_v36  ;;  %v3344_v60 = vmul.f32 %v7042_v45, %v3291_v41  ;;  %v3345_v48 = vmul.f32 %v7042_v45, %v3292_v27  ;;  %v3346_v59 = vmul.f32 %v7042_v45, %v3293_v55 }
 0x467   :  { %v3347_v2 = vmul.f32 %v7042_v45, %v3294_v4  ;;  %v3348_v58 = vmul.f32 %v7042_v45, %v3295_v20  ;;  %v3349_v56 = vmul.f32 %v7042_v45, %v3296_v16  ;;  %v3350_v51 = vmul.f32 %v7042_v45, %v3297_v11 }
 0x468   :  { %v3351_v12 = vmul.f32 %v7042_v45, %v3298_v63  ;;  %v3352_v36 = vmul.f32 %v7042_v45, %v3299_v7  ;;  %v3353_v41 = vmul.f32 %v7042_v45, %v3300_v25  ;;  %v3354_v27 = vmul.f32 %v7042_v45, %v3301_v23 }
 0x469   :  { %v3355_v28 = vmul.f32 %v7042_v45, %v3302_v14  ;;  %v3356_v55 = vmul.f32 %v7042_v45, %v3303_v57  ;;  %v3357_v4 = vmul.f32 %v7042_v45, %v3304_v38  ;;  %v3358_v20 = vmul.f32 %v7042_v45, %v3305_v62 }
 0x46a   :  { %v3359_v16 = vmul.f32 %v7042_v45, %v7003_v6  ;;  %v3360_v11 = vmul.f32 %v7042_v45, %v7009_v10  ;;  %v7115_v63 = vadd.f32 %v7095_v61, %v3312_v50  ;;  %v7118_v7 = vadd.f32 %v7095_v61, %v3313_v22 }
 0x46b   :  { %v7121_v25 = vadd.f32 %v7095_v61, %v3314_v0  ;;  %v7124_v23 = vadd.f32 %v7095_v61, %v3315_v43  ;;  %v7127_v14 = vadd.f32 %v7095_v61, %v3316_v21  ;;  %v7130_v6 = vadd.f32 %v7095_v61, %v3317_v29 }
 0x46c   :  { %v7133_v10 = vadd.f32 %v7095_v61, %v3318_v39  ;;  %v7136_v45 = vadd.f32 %v7095_v61, %v3319_v31  ;;  %v7139_v19 = vadd.f32 %v7095_v61, %v3320_v34  ;;  %v7142_v57 = vadd.f32 %v7095_v61, %v3321_v40 }
 0x46d   :  { %v7145_v44 = vadd.f32 %v7095_v61, %v3322_v42  ;;  %v7148_v38 = vadd.f32 %v7095_v61, %v3323_v47  ;;  %v7151_v24 = vadd.f32 %v7095_v61, %v3324_v9  ;;  %v7154_v62 = vadd.f32 %v7095_v61, %v3325_v15 }
 0x46e   :  { %v7157_v50 = vadd.f32 %v7095_v61, %v3326_v32  ;;  %v7160_v22 = vadd.f32 %v7095_v61, %v3327_v33  ;;  %v7163_v0 = vadd.f32 %v7095_v61, %v3328_v53  ;;  %v7166_v43 = vadd.f32 %v7095_v61, %v3329_v8 }
 0x46f   :  { %v7169_v21 = vadd.f32 %v7095_v61, %v3330_v18  ;;  %v7172_v29 = vadd.f32 %v7095_v61, %v3331_v13  ;;  %v7175_v39 = vadd.f32 %v7095_v61, %v3332_v46  ;;  %v7178_v31 = vadd.f32 %v7095_v61, %v3333_v17 }
 0x470   :  { %v7181_v34 = vadd.f32 %v7095_v61, %v3334_v49  ;;  %v7184_v40 = vadd.f32 %v7095_v61, %v3335_v54  ;;  %v7187_v42 = vadd.f32 %v7095_v61, %v3336_v26  ;;  %v7190_v47 = vadd.f32 %v7095_v61, %v3337_v37 }
 0x471   :  { %7596 = vst [vmem:[#allocation4_spill] sm:$0xff] %v7172_v29  ;;  %v7193_v9 = vadd.f32 %v7095_v61, %v3338_v1  ;;  %v7196_v15 = vadd.f32 %v7095_v61, %v3339_v35  ;;  %v7199_v32 = vadd.f32 %v7095_v61, %v3340_v30  ;;  %v7202_v33 = vadd.f32 %v7095_v61, %v3341_v3 }
 0x472   :  { %7597 = vst [vmem:[#allocation5_spill] sm:$0xff] %v7178_v31  ;;  %v7205_v53 = vadd.f32 %v7095_v61, %v3342_v52  ;;  %v7208_v8 = vadd.f32 %v7095_v61, %v3343_v5  ;;  %v7211_v18 = vadd.f32 %v7095_v61, %v3344_v60  ;;  %v7214_v13 = vadd.f32 %v7095_v61, %v3345_v48 }
 0x473   :  { %7598 = vst [vmem:[#allocation6_spill] sm:$0xff] %v7181_v34  ;;  %v7217_v46 = vadd.f32 %v7095_v61, %v3346_v59  ;;  %v7220_v17 = vadd.f32 %v7095_v61, %v3347_v2  ;;  %v7223_v49 = vadd.f32 %v7095_v61, %v3348_v58  ;;  %v7226_v54 = vadd.f32 %v7095_v61, %v3349_v56 }
 0x474   :  { %7599 = vst [vmem:[#allocation7_spill] sm:$0xff] %v7187_v42  ;;  %v7229_v26 = vadd.f32 %v7095_v61, %v3350_v51  ;;  %v7232_v37 = vadd.f32 %v7095_v61, %v3351_v12  ;;  %v7235_v1 = vadd.f32 %v7095_v61, %v3352_v36  ;;  %v7238_v35 = vadd.f32 %v7095_v61, %v3353_v41 }
 0x475   :  { %7600 = vst [vmem:[#allocation8_spill] sm:$0xff] %v7190_v47  ;;  %v7241_v30 = vadd.f32 %v7095_v61, %v3354_v27  ;;  %v7244_v3 = vadd.f32 %v7095_v61, %v3355_v28  ;;  %v3414_v52 = vmul.f32 0.2, %v7115_v63  ;;  %v7248_v5 = vadd.f32 %v7095_v61, %v3356_v55 }
 0x476   :  { %7601 = vst [vmem:[#allocation9_spill] sm:$0xff] %v7196_v15  ;;  %v7251_v60 = vadd.f32 %v7095_v61, %v3357_v4  ;;  %v7254_v48 = vadd.f32 %v7095_v61, %v3358_v20  ;;  %v3415_v59 = vmul.f32 0.2, %v7118_v7  ;;  %v7258_v2 = vadd.f32 %v7095_v61, %v3359_v16 }
 0x477   :  { %7602 = vst [vmem:[#allocation12_spill] sm:$0xff] %v7199_v32  ;;  %v3416_v58 = vmul.f32 0.2, %v7121_v25  ;;  %v3417_v56 = vmul.f32 0.2, %v7124_v23  ;;  %v7264_v12 = vadd.f32 %v7095_v61, %v3360_v11  ;;  %v3463_v20 = vmax.f32 %v7115_v63, %v3414_v52 }
 0x478   :  { %7603 = vst [vmem:[#allocation3_spill] sm:$0xff] %v7205_v53  ;;  %v3418_v51 = vmul.f32 0.2, %v7127_v14  ;;  %v3419_v36 = vmul.f32 0.2, %v7130_v6  ;;  %v3464_v11 = vmax.f32 %v7118_v7, %v3415_v59 }
 0x479   :  { %7604 = vst [vmem:[#allocation10_spill] sm:$0xff] %v7208_v8  ;;  %v3420_v41 = vmul.f32 0.2, %v7133_v10  ;;  %v3421_v27 = vmul.f32 0.2, %v7136_v45  ;;  %v3465_v63 = vmax.f32 %v7121_v25, %v3416_v58  ;;  %v3466_v7 = vmax.f32 %v7124_v23, %v3417_v56 }
 0x47a   :  { %7605 = vst [vmem:[#allocation11_spill] sm:$0xff] %v7214_v13  ;;  %v3422_v28 = vmul.f32 0.2, %v7139_v19  ;;  %v3423_v55 = vmul.f32 0.2, %v7142_v57  ;;  %v3467_v25 = vmax.f32 %v7127_v14, %v3418_v51  ;;  %v3468_v23 = vmax.f32 %v7130_v6, %v3419_v36 }
 0x47b   :  { %7606 = vst [vmem:[#allocation13_spill] sm:$0xff] %v7217_v46  ;;  %v3424_v4 = vmul.f32 0.2, %v7145_v44  ;;  %v3425_v16 = vmul.f32 0.2, %v7148_v38  ;;  %v3469_v14 = vmax.f32 %v7133_v10, %v3420_v41  ;;  %v3470_v6 = vmax.f32 %v7136_v45, %v3421_v27 }
 0x47c   :  { %7607 = vst [vmem:[#allocation14_spill] sm:$0xff] %v7220_v17  ;;  %v3427_v61 = vmul.f32 0.2, %v7154_v62  ;;  %v7290_v52 = vmul.f32 0.2, %v7166_v43  ;;  %v3471_v10 = vmax.f32 %v7139_v19, %v3422_v28  ;;  %v3472_v45 = vmax.f32 %v7142_v57, %v3423_v55 }
 0x47d   :  { %7608 = vst [vmem:[#allocation15_spill] sm:$0xff] %v7223_v49  ;;  %v7300_v59 = vmul.f32 0.2, %v7175_v39  ;;  %v7310_v58 = vmul.f32 0.2, %v7184_v40 }
 0x47e   :  { %7609 = vst [vmem:[#allocation16_spill] sm:$0xff] %v7229_v26  ;;  %v7313_v26 = vmul.f32 0.2, %v7187_v42  ;;  %v7320_v56 = vmul.f32 0.2, %v7193_v9  ;;  %v3476_v19 = vmax.f32 %v7154_v62, %v3427_v61  ;;  %v7628_v61 = vld [vmem:[#allocation9_spill] sm:$0xff] }
 0x47f   :  { %7610 = vst [vmem:[#allocation17_spill] sm:$0xff] %v7232_v37  ;;  %v7306_v37 = vmul.f32 0.2, %v7181_v34  ;;  %v7326_v34 = vmul.f32 0.2, %v7199_v32 }
 0x480   :  { %7611 = vst [vmem:[#allocation18_spill] sm:$0xff] %v7235_v1  ;;  %v7303_v1 = vmul.f32 0.2, %v7178_v31  ;;  %v7323_v31 = vmul.f32 0.2, %v7196_v15 }
 0x481   :  { %7612 = vst [vmem:[#allocation19_spill] sm:$0xff] %v7238_v35  ;;  %v7296_v35 = vmul.f32 0.2, %v7172_v29  ;;  %v7316_v29 = vmul.f32 0.2, %v7190_v47 }
 0x482   :  { %7613 = vst [vmem:[#allocation20_spill] sm:$0xff] %v7241_v30  ;;  %v7293_v30 = vmul.f32 0.2, %v7169_v21  ;;  %v7330_v51 = vmul.f32 0.2, %v7202_v33 }
 0x483   :  { %7614 = vst [vmem:[#allocation21_spill] sm:$0xff] %v7244_v3  ;;  %v7286_v3 = vmul.f32 0.2, %v7163_v0  ;;  %v7333_v42 = vmul.f32 0.2, %v7205_v53 }
 0x484   :  { %7615 = vst [vmem:[#allocation22_spill] sm:$0xff] %v7248_v5  ;;  %v7283_v5 = vmul.f32 0.2, %v7160_v22  ;;  %v7336_v47 = vmul.f32 0.2, %v7208_v8 }
 0x485   :  { %7616 = vst [vmem:[#allocation23_spill] sm:$0xff] %v7251_v60  ;;  %v7275_v60 = vmul.f32 0.2, %v7151_v24  ;;  %v7340_v36 = vmul.f32 0.2, %v7211_v18  ;;  %v3479_v55 = vmax.f32 %v7163_v0, %v7286_v3  ;;  %v7620_v0 = vld [vmem:[#allocation4_spill] sm:$0xff] }
 0x486   :  { %7617 = vst [vmem:[#allocation24_spill] sm:$0xff] %v7264_v12  ;;  %v7280_v12 = vmul.f32 0.2, %v7157_v50  ;;  %v7343_v15 = vmul.f32 0.2, %v7214_v13  ;;  %v3473_v13 = vmax.f32 %v7145_v44, %v3424_v4  ;;  %v3478_v57 = vmax.f32 %v7160_v22, %v7283_v5  ;;  %v7622_v5 = vld [vmem:[#allocation5_spill] sm:$0xff] }
 0x487   :  { %v7346_v32 = vmul.f32 0.2, %v7217_v46  ;;  %v7350_v41 = vmul.f32 0.2, %v7220_v17  ;;  %v3460_v53 = vmul.f32 0.2, %v7254_v48  ;;  %v3475_v46 = vmax.f32 %v7151_v24, %v7275_v60 }
 0x488   :  { %7618 = vst [vmem:[#allocation25_spill] sm:$0xff] %v7343_v15  ;;  %v3461_v8 = vmul.f32 0.2, %v7258_v2  ;;  %v7356_v27 = vmul.f32 0.2, %v7223_v49  ;;  %v3474_v15 = vmax.f32 %v7148_v38, %v3425_v16  ;;  %v3477_v28 = vmax.f32 %v7157_v50, %v7280_v12  ;;  %v7626_v4 = vld [vmem:[#allocation8_spill] sm:$0xff] }
 0x489   :  { %7619 = vst [vmem:[#allocation26_spill] sm:$0xff] %v7350_v41  ;;  %v4897_v17 = vpack.c.bf16 %v3464_v11, %v3463_v20  ;;  %v4902_v41 = vpack.c.bf16 %v3466_v7, %v3465_v63  ;;  %v4907_v49 = vpack.c.bf16 %v3468_v23, %v3467_v25  ;;  %v4912_v44 = vpack.c.bf16 %v3470_v6, %v3469_v14  ;;  %v7627_v20 = vld [vmem:[#allocation18_spill] sm:$0xff]  ;;  %v7631_v25 = vld [vmem:[#allocation20_spill] sm:$0xff] }
 0x48a   :  { %v3480_v38 = vmax.f32 %v7166_v43, %v7290_v52  ;;  %v3509_v24 = vmax.f32 %v7254_v48, %v3460_v53  ;;  %v3510_v62 = vmax.f32 %v7258_v2, %v3461_v8  ;;  %v4917_v50 = vpack.c.bf16 %v3472_v45, %v3471_v10  ;;  %v7621_v53 = vld [vmem:[#allocation16_spill] sm:$0xff]  ;;  %v7624_v2 = vld [vmem:[#allocation6_spill] sm:$0xff]  ;;  %v7634_v6 = vld [vmem:[#allocation21_spill] sm:$0xff] }
 0x48b   :  { %4898 = vst [vmem:[%s7516_s4] sm:$0xff] %v4897_v17   ;;  %v7377_v60 = vmul.f32 0.2, %v7226_v54  ;;  %v3481_v22 = vmax.f32 %v7169_v21, %v7293_v30  ;;  %v3482_v3 = vmax.f32 %v7620_v0, %v7296_v35  ;;  %v4922_v43 = vpack.c.bf16 %v3474_v15, %v3473_v13  ;;  %v7623_v35 = vld [vmem:[#allocation17_spill] sm:$0xff]  ;;  %v7625_v13 = vld [vmem:[#allocation7_spill] sm:$0xff]  ;;  %v7630_v52 = vld [vmem:[#allocation12_spill] sm:$0xff] }
 0x48c   :  { %5014 = vst [vmem:[%s7516_s4 + $0x8] sm:$0xff] %v4902_v41   ;;  %v7387_v8 = vmul.f32 0.2, %v7621_v53  ;;  %v3483_v17 = vmax.f32 %v7175_v39, %v7300_v59  ;;  %v3484_v48 = vmax.f32 %v7622_v5, %v7303_v1  ;;  %v4927_v21 = vpack.c.bf16 %v3476_v19, %v3475_v46  ;;  %v7636_v41 = vld [vmem:[#allocation11_spill] sm:$0xff]  ;;  %v7637_v19 = vld [vmem:[#allocation22_spill] sm:$0xff] }
 0x48d   :  { %5015 = vst [vmem:[%s7516_s4 + $0x10] sm:$0xff] %v4907_v49   ;;  %v3453_v30 = vmul.f32 0.2, %v7623_v35  ;;  %v3485_v12 = vmax.f32 %v7624_v2, %v7306_v37  ;;  %v3486_v15 = vmax.f32 %v7184_v40, %v7310_v58  ;;  %v4932_v39 = vpack.c.bf16 %v3478_v57, %v3477_v28  ;;  %v7632_v58 = vld [vmem:[#allocation3_spill] sm:$0xff]  ;;  %v7638_v28 = vld [vmem:[#allocation13_spill] sm:$0xff] }
 0x48e   :  { %5016 = vst [vmem:[%s7516_s4 + $0x18] sm:$0xff] %v4912_v44   ;;  %v3487_v1 = vmax.f32 %v7625_v13, %v7313_v26  ;;  %v3488_v49 = vmax.f32 %v7626_v4, %v7316_v29  ;;  %v4937_v46 = vpack.c.bf16 %v3480_v38, %v3479_v55  ;;  %v5012_v37 = vpack.c.bf16 %v3510_v62, %v3509_v24  ;;  %v7629_v29 = vld [vmem:[#allocation19_spill] sm:$0xff]  ;;  %v7640_v44 = vld [vmem:[#allocation14_spill] sm:$0xff] }
 0x48f   :  { %5017 = vst [vmem:[%s7516_s4 + $0x20] sm:$0xff] %v4917_v50   ;;  %v3454_v16 = vmul.f32 0.2, %v7627_v20  ;;  %v3489_v40 = vmax.f32 %v7193_v9, %v7320_v56  ;;  %v3490_v11 = vmax.f32 %v7628_v61, %v7323_v31  ;;  %v4942_v26 = vpack.c.bf16 %v3482_v3, %v3481_v22  ;;  %v7633_v56 = vld [vmem:[#allocation10_spill] sm:$0xff]  ;;  %v7635_v10 = vld [vmem:[#allocation25_spill] sm:$0xff]  ;;  %v7642_v62 = vld [vmem:[#allocation15_spill] sm:$0xff] }
 0x490   :  { %5018 = vst [vmem:[%s7516_s4 + $0x28] sm:$0xff] %v4922_v43   ;;  %v3455_v63 = vmul.f32 0.2, %v7629_v29  ;;  %v3491_v7 = vmax.f32 %v7630_v52, %v7326_v34  ;;  %v3492_v59 = vmax.f32 %v7202_v33, %v7330_v51  ;;  %v4947_v9 = vpack.c.bf16 %v3484_v48, %v3483_v17  ;;  %v7639_v55 = vld [vmem:[#allocation26_spill] sm:$0xff]  ;;  %v7643_v17 = vld [vmem:[#allocation24_spill] sm:$0xff] }
 0x491   :  { %5019 = vst [vmem:[%s7516_s4 + $0x30] sm:$0xff] %v4927_v21   ;;  %v3456_v31 = vmul.f32 0.2, %v7631_v25  ;;  %v3493_v23 = vmax.f32 %v7632_v58, %v7333_v42  ;;  %v3494_v14 = vmax.f32 %v7633_v56, %v7336_v47  ;;  %v4952_v34 = vpack.c.bf16 %v3486_v15, %v3485_v12 }
 0x492   :  { %5020 = vst [vmem:[%s7516_s4 + $0x38] sm:$0xff] %v4932_v39   ;;  %v3457_v33 = vmul.f32 0.2, %v7634_v6  ;;  %v3495_v51 = vmax.f32 %v7211_v18, %v7340_v36  ;;  %v3496_v45 = vmax.f32 %v7636_v41, %v7635_v10  ;;  %v4957_v42 = vpack.c.bf16 %v3488_v49, %v3487_v1  ;;  %v7641_v36 = vld [vmem:[#allocation23_spill] sm:$0xff] }
 0x493   :  { %5021 = vst [vmem:[%s7516_s4 + $0x40] sm:$0xff] %v4937_v46   ;;  %v3458_v47 = vmul.f32 0.2, %v7637_v19  ;;  %v3497_v57 = vmax.f32 %v7638_v28, %v7346_v32  ;;  %v3498_v38 = vmax.f32 %v7640_v44, %v7639_v55  ;;  %v4962_v18 = vpack.c.bf16 %v3490_v11, %v3489_v40 }
 0x494   :  { %5022 = vst [vmem:[%s7516_s4 + $0x48] sm:$0xff] %v4942_v26   ;;  %v3459_v24 = vmul.f32 0.2, %v7641_v36  ;;  %v3499_v50 = vmax.f32 %v7642_v62, %v7356_v27  ;;  %v3500_v22 = vmax.f32 %v7226_v54, %v7377_v60  ;;  %v4967_v32 = vpack.c.bf16 %v3492_v59, %v3491_v7 }
 0x495   :  { %5023 = vst [vmem:[%s7516_s4 + $0x50] sm:$0xff] %v4947_v9   ;;  %v3501_v0 = vmax.f32 %v7621_v53, %v7387_v8  ;;  %v3502_v3 = vmax.f32 %v7623_v35, %v3453_v30  ;;  %v4972_v43 = vpack.c.bf16 %v3494_v14, %v3493_v23  ;;  %v3462_v27 = vmul.f32 0.2, %v7643_v17 }
 0x496   :  { %5024 = vst [vmem:[%s7516_s4 + $0x58] sm:$0xff] %v4952_v34   ;;  %v3503_v5 = vmax.f32 %v7627_v20, %v3454_v16  ;;  %v3504_v54 = vmax.f32 %v7629_v29, %v3455_v63  ;;  %v4977_v60 = vpack.c.bf16 %v3496_v45, %v3495_v51  ;;  %v3505_v53 = vmax.f32 %v7631_v25, %v3456_v31 }
 0x497   :  { %5025 = vst [vmem:[%s7516_s4 + $0x60] sm:$0xff] %v4957_v42   ;;  %v3506_v8 = vmax.f32 %v7634_v6, %v3457_v33  ;;  %v4982_v48 = vpack.c.bf16 %v3498_v38, %v3497_v57  ;;  %v3507_v21 = vmax.f32 %v7637_v19, %v3458_v47  ;;  %v3508_v35 = vmax.f32 %v7641_v36, %v3459_v24 }
 0x498   :  { %5026 = vst [vmem:[%s7516_s4 + $0x68] sm:$0xff] %v4962_v18   ;;  %v4987_v30 = vpack.c.bf16 %v3500_v22, %v3499_v50  ;;  %v4992_v2 = vpack.c.bf16 %v3502_v3, %v3501_v0  ;;  %v3511_v12 = vmax.f32 %v7643_v17, %v3462_v27  ;;  %v4997_v15 = vpack.c.bf16 %v3504_v54, %v3503_v5 }
 0x499   :  { %5027 = vst [vmem:[%s7516_s4 + $0x70] sm:$0xff] %v4967_v32   ;;  %v5002_v39 = vpack.c.bf16 %v3506_v8, %v3505_v53  ;;  %v5007_v13 = vpack.c.bf16 %v3508_v35, %v3507_v21 }
 0x49a   :  { %5028 = vst [vmem:[%s7516_s4 + $0x78] sm:$0xff] %v4972_v43   ;;  %v3560_v1 = vpack.c.bf16 %v3511_v12, %v3511_v12 }
 0x49b   :  { %5029 = vst [vmem:[%s7516_s4 + $0x80] sm:$0xff] %v4977_v60  }
 0x49c   :  { %5030 = vst [vmem:[%s7516_s4 + $0x88] sm:$0xff] %v4982_v48  }
 0x49d   :  { %5031 = vst [vmem:[%s7516_s4 + $0x90] sm:$0xff] %v4987_v30  }
 0x49e   :  { %5032 = vst [vmem:[%s7516_s4 + $0x98] sm:$0xff] %v4992_v2  }
 0x49f   :  { %5033 = vst [vmem:[%s7516_s4 + $0xa0] sm:$0xff] %v4997_v15  }
 0x4a0   :  { %5034 = vst [vmem:[%s7516_s4 + $0xa8] sm:$0xff] %v5002_v39  }
 0x4a1   :  { %5035 = vst [vmem:[%s7516_s4 + $0xb0] sm:$0xff] %v5007_v13  }
 0x4a2   :  { %5036 = vst [vmem:[%s7516_s4 + $0xb8] sm:$0xff] %v5012_v37  }
 0x4a3   :  { %3609 = vst [vmem:[%s7516_s4 + $0xc0] sm:$0xf] %v3560_v1 }

// kernel: discriminator_forward.5
= control target key start
LH: loop header
LB: loop body
LE: loop exit
PB: predicated region body
PF: predicated region fallthrough
CT: control target
= control target key end

     0   :  { %s12945_s18 = smov 0   ;;  %s12947_s19 = smov 0   ;;  %s15129_s0 = inlined_call_operand.vmem [shape: bf16[8,6272], index: 0, kind: input, shape index: {}]   ;;  %s15130_s1 = inlined_call_operand.vmem [shape: bf16[6272,1024], index: 1, kind: input, shape index: {}]   ;;  %s15131_s2 = inlined_call_operand.vmem [shape: f32[1,1024], index: 2, kind: input, shape index: {}]   ;;  %s15132_s3 = inlined_call_operand.vmem [shape: f32[1,1024], index: 3, kind: input, shape index: {}]   ;;  %s15133_s4 = inlined_call_operand.vmem [shape: f32[1,1024], index: 4, kind: input, shape index: {}]   ;;  %s15134_s5 = inlined_call_operand.vmem [shape: f32[2,8,1], index: 5, kind: output, shape index: {}]  }
   0x1   :  { %s12949_s20 = smov 0   ;;  %s12951_s21 = smov 0  }
   0x2   :  { %s12953_s22 = smov 0   ;;  %s12955_s23 = smov 0  }
   0x3   :  { %s12957_s24 = smov 0  }
   0x4 LB: > { %s24_s25 = sadd.s32 1, %s12904_s22  ;;  %s27_s26 = sadd.s32 1, %s12908_s23  ;;  %s12912_s24 = sphi %s12957_s24, %s15_s24   ;;  %s12908_s23 = sphi %s12955_s23, %s15140_s23   ;;  %s12904_s22 = sphi %s12953_s22, %s15139_s22   ;;  %s12900_s21 = sphi %s12951_s21, %s15138_s21   ;;  %s12896_s20 = sphi %s12949_s20, %s15137_s20   ;;  %s12892_s19 = sphi %s12947_s19, %s15136_s19   ;;  %s12888_s18 = sphi %s12945_s18, %s15135_s18  }
   0x5   : > { %p25_p0 = scmp.ge.s32.totalorder %s24_s25, 4  ;;  %p66_p1 = scmp.ne.s32.totalorder %s12892_s19, %s12888_s18 }
   0x6   : > { %p67_p2 = scmp.eq.s32.totalorder %s12912_s24, 0  ;;  %s10811_s27 = sshll.u32 %s12908_s23, 2 }
   0x7   : > { %s15142_s25 = smov (%p25_p0, %s24_s25), 0  ;;  %s15144_s26 = smov (!%p25_p0, %s27_s26), %s12908_s23 }
   0x8   : > { %p29_p3 = scmp.ge.s32.totalorder %s15144_s26, 2  ;;  %p68_p4 = por %p67_p2, %p66_p1 }
   0x9   : > { %s53_s28 = sadd.s32 %s12904_s22, %s10811_s27  ;;  %s59_s7 = sadd.s32 1, %s12892_s19 }
   0xa   : > { %s15146_s26 = smov (%p29_p3, %s15144_s26), 0  ;;  %p10820_p6 = scmp.ge.s32.totalorder %s12912_s24, 8 }
   0xb   : > { %s10812_s29 = sshll.u32 %s15146_s26, 2 }
   0xc   : > { %s55_s30 = sadd.s32 %s10812_s29, %s15142_s25  ;;  %211 = sbr.rel (%p10820_p6) target bundleno = 805 (0x325), region = 20 }
   0xd   : > { %s56_s6 = ssub.s32 %s53_s28, %s55_s30 }
   0xe   : > { %p57_p5 = scmp.eq.s32.totalorder %s56_s6, 0 }
  0x10   : > { %s12996_s8 = scalar_select %p57_p5, %s12892_s19, %s59_s7  }
  0x11   : > { %214 = sbr.rel (!%p68_p4) target bundleno = 805 (0x325), region = 24  ;;  %s216_s9 = sand.u32 (%p68_p4), 1, %s12892_s19  }
  0x12   : > { %s10822_s10 = sshll.u32 (%p68_p4), %s53_s28, 2  ;;  %s12792_s11 = smul.u32 (%p68_p4), 3136, %s216_s9 }
  0x13   : > { %s13003_s14 = scalar_lea.vmem (%p68_p4), %s15130_s1, %s10822_s10 }
  0x14   : > { %v239_v0 = vld [vmem:[%s13003_s14] sm:$0xf] (%p68_p4)  ;;  %s13008_s15 = scalar_lea.vmem (%p68_p4), [#allocation2], %s12792_s11 }
  0x15   : > { %v241_v1 = vld [vmem:[%s13003_s14 + $0x20] sm:$0xf] (%p68_p4)  ;;  %240 = vst [vmem:[%s13008_s15] sm:$0xf] (%p68_p4), %v239_v0 }
  0x16   : > { %v243_v2 = vld [vmem:[%s13003_s14 + $0x40] sm:$0xf]  ;;  %242 = vst [vmem:[%s13008_s15 + $0x4] sm:$0xf] %v241_v1 }
  0x17   : > { %v245_v3 = vld [vmem:[%s13003_s14 + $0x60] sm:$0xf]  ;;  %244 = vst [vmem:[%s13008_s15 + $0x8] sm:$0xf] %v243_v2 }
  0x18   : > { %v247_v4 = vld [vmem:[%s13003_s14 + $0x80] sm:$0xf]  ;;  %246 = vst [vmem:[%s13008_s15 + $0xc] sm:$0xf] %v245_v3 }
  0x19   : > { %v249_v5 = vld [vmem:[%s13003_s14 + $0xa0] sm:$0xf]  ;;  %248 = vst [vmem:[%s13008_s15 + $0x10] sm:$0xf] %v247_v4 }
  0x1a   : > { %v251_v6 = vld [vmem:[%s13003_s14 + $0xc0] sm:$0xf]  ;;  %250 = vst [vmem:[%s13008_s15 + $0x14] sm:$0xf] %v249_v5 }
  0x1b   : > { %v253_v7 = vld [vmem:[%s13003_s14 + $0xe0] sm:$0xf]  ;;  %252 = vst [vmem:[%s13008_s15 + $0x18] sm:$0xf] %v251_v6 }
  0x1c   : > { %v255_v8 = vld [vmem:[%s13003_s14 + $0x100] sm:$0xf]  ;;  %254 = vst [vmem:[%s13008_s15 + $0x1c] sm:$0xf] %v253_v7 }
  0x1d   : > { %v257_v9 = vld [vmem:[%s13003_s14 + $0x120] sm:$0xf]  ;;  %256 = vst [vmem:[%s13008_s15 + $0x20] sm:$0xf] %v255_v8 }
  0x1e   : > { %v259_v10 = vld [vmem:[%s13003_s14 + $0x140] sm:$0xf]  ;;  %258 = vst [vmem:[%s13008_s15 + $0x24] sm:$0xf] %v257_v9 }
  0x1f   : > { %v261_v11 = vld [vmem:[%s13003_s14 + $0x160] sm:$0xf]  ;;  %260 = vst [vmem:[%s13008_s15 + $0x28] sm:$0xf] %v259_v10 }
  0x20   : > { %v263_v12 = vld [vmem:[%s13003_s14 + $0x180] sm:$0xf]  ;;  %262 = vst [vmem:[%s13008_s15 + $0x2c] sm:$0xf] %v261_v11 }
  0x21   : > { %v265_v13 = vld [vmem:[%s13003_s14 + $0x1a0] sm:$0xf]  ;;  %264 = vst [vmem:[%s13008_s15 + $0x30] sm:$0xf] %v263_v12 }
  0x22   : > { %v267_v14 = vld [vmem:[%s13003_s14 + $0x1c0] sm:$0xf]  ;;  %266 = vst [vmem:[%s13008_s15 + $0x34] sm:$0xf] %v265_v13 }
  0x23   : > { %v269_v15 = vld [vmem:[%s13003_s14 + $0x1e0] sm:$0xf]  ;;  %268 = vst [vmem:[%s13008_s15 + $0x38] sm:$0xf] %v267_v14 }
  0x24   : > { %v271_v16 = vld [vmem:[%s13003_s14 + $0x200] sm:$0xf]  ;;  %270 = vst [vmem:[%s13008_s15 + $0x3c] sm:$0xf] %v269_v15 }
  0x25   : > { %v273_v17 = vld [vmem:[%s13003_s14 + $0x220] sm:$0xf]  ;;  %272 = vst [vmem:[%s13008_s15 + $0x40] sm:$0xf] %v271_v16 }
  0x26   : > { %v275_v18 = vld [vmem:[%s13003_s14 + $0x240] sm:$0xf]  ;;  %274 = vst [vmem:[%s13008_s15 + $0x44] sm:$0xf] %v273_v17 }
  0x27   : > { %v277_v19 = vld [vmem:[%s13003_s14 + $0x260] sm:$0xf]  ;;  %276 = vst [vmem:[%s13008_s15 + $0x48] sm:$0xf] %v275_v18 }
  0x28   : > { %v279_v20 = vld [vmem:[%s13003_s14 + $0x280] sm:$0xf]  ;;  %278 = vst [vmem:[%s13008_s15 + $0x4c] sm:$0xf] %v277_v19 }
  0x29   : > { %v281_v21 = vld [vmem:[%s13003_s14 + $0x2a0] sm:$0xf]  ;;  %280 = vst [vmem:[%s13008_s15 + $0x50] sm:$0xf] %v279_v20 }
  0x2a   : > { %v283_v22 = vld [vmem:[%s13003_s14 + $0x2c0] sm:$0xf]  ;;  %282 = vst [vmem:[%s13008_s15 + $0x54] sm:$0xf] %v281_v21 }
  0x2b   : > { %v285_v23 = vld [vmem:[%s13003_s14 + $0x2e0] sm:$0xf]  ;;  %284 = vst [vmem:[%s13008_s15 + $0x58] sm:$0xf] %v283_v22 }
  0x2c   : > { %v287_v24 = vld [vmem:[%s13003_s14 + $0x300] sm:$0xf]  ;;  %286 = vst [vmem:[%s13008_s15 + $0x5c] sm:$0xf] %v285_v23 }
  0x2d   : > { %v289_v25 = vld [vmem:[%s13003_s14 + $0x320] sm:$0xf]  ;;  %288 = vst [vmem:[%s13008_s15 + $0x60] sm:$0xf] %v287_v24 }
  0x2e   : > { %v291_v26 = vld [vmem:[%s13003_s14 + $0x340] sm:$0xf]  ;;  %290 = vst [vmem:[%s13008_s15 + $0x64] sm:$0xf] %v289_v25 }
  0x2f   : > { %v293_v27 = vld [vmem:[%s13003_s14 + $0x360] sm:$0xf]  ;;  %292 = vst [vmem:[%s13008_s15 + $0x68] sm:$0xf] %v291_v26 }
  0x30   : > { %v295_v28 = vld [vmem:[%s13003_s14 + $0x380] sm:$0xf]  ;;  %294 = vst [vmem:[%s13008_s15 + $0x6c] sm:$0xf] %v293_v27 }
  0x31   : > { %v297_v29 = vld [vmem:[%s13003_s14 + $0x3a0] sm:$0xf]  ;;  %296 = vst [vmem:[%s13008_s15 + $0x70] sm:$0xf] %v295_v28 }
  0x32   : > { %v299_v30 = vld [vmem:[%s13003_s14 + $0x3c0] sm:$0xf]  ;;  %298 = vst [vmem:[%s13008_s15 + $0x74] sm:$0xf] %v297_v29 }
  0x33   : > { %v301_v31 = vld [vmem:[%s13003_s14 + $0x3e0] sm:$0xf]  ;;  %300 = vst [vmem:[%s13008_s15 + $0x78] sm:$0xf] %v299_v30 }
  0x34   : > { %v303_v32 = vld [vmem:[%s13003_s14 + $0x400] sm:$0xf]  ;;  %302 = vst [vmem:[%s13008_s15 + $0x7c] sm:$0xf] %v301_v31 }
  0x35   : > { %v305_v33 = vld [vmem:[%s13003_s14 + $0x420] sm:$0xf]  ;;  %304 = vst [vmem:[%s13008_s15 + $0x80] sm:$0xf] %v303_v32 }
  0x36   : > { %v307_v34 = vld [vmem:[%s13003_s14 + $0x440] sm:$0xf]  ;;  %306 = vst [vmem:[%s13008_s15 + $0x84] sm:$0xf] %v305_v33 }
  0x37   : > { %v309_v35 = vld [vmem:[%s13003_s14 + $0x460] sm:$0xf]  ;;  %308 = vst [vmem:[%s13008_s15 + $0x88] sm:$0xf] %v307_v34 }
  0x38   : > { %v311_v36 = vld [vmem:[%s13003_s14 + $0x480] sm:$0xf]  ;;  %310 = vst [vmem:[%s13008_s15 + $0x8c] sm:$0xf] %v309_v35 }
  0x39   : > { %v313_v37 = vld [vmem:[%s13003_s14 + $0x4a0] sm:$0xf]  ;;  %312 = vst [vmem:[%s13008_s15 + $0x90] sm:$0xf] %v311_v36 }
  0x3a   : > { %v315_v38 = vld [vmem:[%s13003_s14 + $0x4c0] sm:$0xf]  ;;  %314 = vst [vmem:[%s13008_s15 + $0x94] sm:$0xf] %v313_v37 }
  0x3b   : > { %v317_v39 = vld [vmem:[%s13003_s14 + $0x4e0] sm:$0xf]  ;;  %316 = vst [vmem:[%s13008_s15 + $0x98] sm:$0xf] %v315_v38 }
  0x3c   : > { %v319_v40 = vld [vmem:[%s13003_s14 + $0x500] sm:$0xf]  ;;  %318 = vst [vmem:[%s13008_s15 + $0x9c] sm:$0xf] %v317_v39 }
  0x3d   : > { %v321_v41 = vld [vmem:[%s13003_s14 + $0x520] sm:$0xf]  ;;  %320 = vst [vmem:[%s13008_s15 + $0xa0] sm:$0xf] %v319_v40 }
  0x3e   : > { %v323_v42 = vld [vmem:[%s13003_s14 + $0x540] sm:$0xf]  ;;  %322 = vst [vmem:[%s13008_s15 + $0xa4] sm:$0xf] %v321_v41 }
  0x3f   : > { %v325_v43 = vld [vmem:[%s13003_s14 + $0x560] sm:$0xf]  ;;  %324 = vst [vmem:[%s13008_s15 + $0xa8] sm:$0xf] %v323_v42 }
  0x40   : > { %v327_v44 = vld [vmem:[%s13003_s14 + $0x580] sm:$0xf]  ;;  %326 = vst [vmem:[%s13008_s15 + $0xac] sm:$0xf] %v325_v43 }
  0x41   : > { %v329_v45 = vld [vmem:[%s13003_s14 + $0x5a0] sm:$0xf]  ;;  %328 = vst [vmem:[%s13008_s15 + $0xb0] sm:$0xf] %v327_v44 }
  0x42   : > { %v331_v46 = vld [vmem:[%s13003_s14 + $0x5c0] sm:$0xf]  ;;  %330 = vst [vmem:[%s13008_s15 + $0xb4] sm:$0xf] %v329_v45 }
  0x43   : > { %v333_v47 = vld [vmem:[%s13003_s14 + $0x5e0] sm:$0xf]  ;;  %332 = vst [vmem:[%s13008_s15 + $0xb8] sm:$0xf] %v331_v46 }
  0x44   : > { %v335_v48 = vld [vmem:[%s13003_s14 + $0x600] sm:$0xf]  ;;  %334 = vst [vmem:[%s13008_s15 + $0xbc] sm:$0xf] %v333_v47 }
  0x45   : > { %v337_v49 = vld [vmem:[%s13003_s14 + $0x620] sm:$0xf]  ;;  %336 = vst [vmem:[%s13008_s15 + $0xc0] sm:$0xf] %v335_v48 }
  0x46   : > { %v339_v50 = vld [vmem:[%s13003_s14 + $0x640] sm:$0xf]  ;;  %338 = vst [vmem:[%s13008_s15 + $0xc4] sm:$0xf] %v337_v49 }
  0x47   : > { %v341_v51 = vld [vmem:[%s13003_s14 + $0x660] sm:$0xf]  ;;  %340 = vst [vmem:[%s13008_s15 + $0xc8] sm:$0xf] %v339_v50 }
  0x48   : > { %v343_v52 = vld [vmem:[%s13003_s14 + $0x680] sm:$0xf]  ;;  %342 = vst [vmem:[%s13008_s15 + $0xcc] sm:$0xf] %v341_v51 }
  0x49   : > { %v345_v53 = vld [vmem:[%s13003_s14 + $0x6a0] sm:$0xf]  ;;  %344 = vst [vmem:[%s13008_s15 + $0xd0] sm:$0xf] %v343_v52 }
  0x4a   : > { %v347_v54 = vld [vmem:[%s13003_s14 + $0x6c0] sm:$0xf]  ;;  %346 = vst [vmem:[%s13008_s15 + $0xd4] sm:$0xf] %v345_v53 }
  0x4b   : > { %v349_v55 = vld [vmem:[%s13003_s14 + $0x6e0] sm:$0xf]  ;;  %348 = vst [vmem:[%s13008_s15 + $0xd8] sm:$0xf] %v347_v54 }
  0x4c   : > { %v351_v56 = vld [vmem:[%s13003_s14 + $0x700] sm:$0xf]  ;;  %350 = vst [vmem:[%s13008_s15 + $0xdc] sm:$0xf] %v349_v55 }
  0x4d   : > { %v353_v57 = vld [vmem:[%s13003_s14 + $0x720] sm:$0xf]  ;;  %352 = vst [vmem:[%s13008_s15 + $0xe0] sm:$0xf] %v351_v56 }
  0x4e   : > { %v355_v58 = vld [vmem:[%s13003_s14 + $0x740] sm:$0xf]  ;;  %354 = vst [vmem:[%s13008_s15 + $0xe4] sm:$0xf] %v353_v57 }
  0x4f   : > { %v357_v59 = vld [vmem:[%s13003_s14 + $0x760] sm:$0xf]  ;;  %356 = vst [vmem:[%s13008_s15 + $0xe8] sm:$0xf] %v355_v58 }
  0x50   : > { %v359_v60 = vld [vmem:[%s13003_s14 + $0x780] sm:$0xf]  ;;  %358 = vst [vmem:[%s13008_s15 + $0xec] sm:$0xf] %v357_v59 }
  0x51   : > { %v361_v61 = vld [vmem:[%s13003_s14 + $0x7a0] sm:$0xf]  ;;  %360 = vst [vmem:[%s13008_s15 + $0xf0] sm:$0xf] %v359_v60 }
  0x52   : > { %v363_v62 = vld [vmem:[%s13003_s14 + $0x7c0] sm:$0xf]  ;;  %362 = vst [vmem:[%s13008_s15 + $0xf4] sm:$0xf] %v361_v61 }
  0x53   : > { %v365_v63 = vld [vmem:[%s13003_s14 + $0x7e0] sm:$0xf]  ;;  %364 = vst [vmem:[%s13008_s15 + $0xf8] sm:$0xf] %v363_v62 }
  0x54   : > { %v367_v0 = vld [vmem:[%s13003_s14 + $0x800] sm:$0xf]  ;;  %366 = vst [vmem:[%s13008_s15 + $0xfc] sm:$0xf] %v365_v63 }
  0x55   : > { %v369_v1 = vld [vmem:[%s13003_s14 + $0x820] sm:$0xf]  ;;  %368 = vst [vmem:[%s13008_s15 + $0x100] sm:$0xf] %v367_v0 }
  0x56   : > { %v371_v2 = vld [vmem:[%s13003_s14 + $0x840] sm:$0xf]  ;;  %370 = vst [vmem:[%s13008_s15 + $0x104] sm:$0xf] %v369_v1 }
  0x57   : > { %v373_v3 = vld [vmem:[%s13003_s14 + $0x860] sm:$0xf]  ;;  %372 = vst [vmem:[%s13008_s15 + $0x108] sm:$0xf] %v371_v2 }
  0x58   : > { %v375_v4 = vld [vmem:[%s13003_s14 + $0x880] sm:$0xf]  ;;  %374 = vst [vmem:[%s13008_s15 + $0x10c] sm:$0xf] %v373_v3 }
  0x59   : > { %v377_v5 = vld [vmem:[%s13003_s14 + $0x8a0] sm:$0xf]  ;;  %376 = vst [vmem:[%s13008_s15 + $0x110] sm:$0xf] %v375_v4 }
  0x5a   : > { %v379_v6 = vld [vmem:[%s13003_s14 + $0x8c0] sm:$0xf]  ;;  %378 = vst [vmem:[%s13008_s15 + $0x114] sm:$0xf] %v377_v5 }
  0x5b   : > { %v381_v7 = vld [vmem:[%s13003_s14 + $0x8e0] sm:$0xf]  ;;  %380 = vst [vmem:[%s13008_s15 + $0x118] sm:$0xf] %v379_v6 }
  0x5c   : > { %v383_v8 = vld [vmem:[%s13003_s14 + $0x900] sm:$0xf]  ;;  %382 = vst [vmem:[%s13008_s15 + $0x11c] sm:$0xf] %v381_v7 }
  0x5d   : > { %v385_v9 = vld [vmem:[%s13003_s14 + $0x920] sm:$0xf]  ;;  %384 = vst [vmem:[%s13008_s15 + $0x120] sm:$0xf] %v383_v8 }
  0x5e   : > { %v387_v10 = vld [vmem:[%s13003_s14 + $0x940] sm:$0xf]  ;;  %386 = vst [vmem:[%s13008_s15 + $0x124] sm:$0xf] %v385_v9 }
  0x5f   : > { %v389_v11 = vld [vmem:[%s13003_s14 + $0x960] sm:$0xf]  ;;  %388 = vst [vmem:[%s13008_s15 + $0x128] sm:$0xf] %v387_v10 }
  0x60   : > { %v391_v12 = vld [vmem:[%s13003_s14 + $0x980] sm:$0xf]  ;;  %390 = vst [vmem:[%s13008_s15 + $0x12c] sm:$0xf] %v389_v11 }
  0x61   : > { %v393_v13 = vld [vmem:[%s13003_s14 + $0x9a0] sm:$0xf]  ;;  %392 = vst [vmem:[%s13008_s15 + $0x130] sm:$0xf] %v391_v12 }
  0x62   : > { %v395_v14 = vld [vmem:[%s13003_s14 + $0x9c0] sm:$0xf]  ;;  %394 = vst [vmem:[%s13008_s15 + $0x134] sm:$0xf] %v393_v13 }
  0x63   : > { %v397_v15 = vld [vmem:[%s13003_s14 + $0x9e0] sm:$0xf]  ;;  %396 = vst [vmem:[%s13008_s15 + $0x138] sm:$0xf] %v395_v14 }
  0x64   : > { %v399_v16 = vld [vmem:[%s13003_s14 + $0xa00] sm:$0xf]  ;;  %398 = vst [vmem:[%s13008_s15 + $0x13c] sm:$0xf] %v397_v15 }
  0x65   : > { %v401_v17 = vld [vmem:[%s13003_s14 + $0xa20] sm:$0xf]  ;;  %400 = vst [vmem:[%s13008_s15 + $0x140] sm:$0xf] %v399_v16 }
  0x66   : > { %v403_v18 = vld [vmem:[%s13003_s14 + $0xa40] sm:$0xf]  ;;  %402 = vst [vmem:[%s13008_s15 + $0x144] sm:$0xf] %v401_v17 }
  0x67   : > { %v405_v19 = vld [vmem:[%s13003_s14 + $0xa60] sm:$0xf]  ;;  %404 = vst [vmem:[%s13008_s15 + $0x148] sm:$0xf] %v403_v18 }
  0x68   : > { %v407_v20 = vld [vmem:[%s13003_s14 + $0xa80] sm:$0xf]  ;;  %406 = vst [vmem:[%s13008_s15 + $0x14c] sm:$0xf] %v405_v19 }
  0x69   : > { %v409_v21 = vld [vmem:[%s13003_s14 + $0xaa0] sm:$0xf]  ;;  %408 = vst [vmem:[%s13008_s15 + $0x150] sm:$0xf] %v407_v20 }
  0x6a   : > { %v411_v22 = vld [vmem:[%s13003_s14 + $0xac0] sm:$0xf]  ;;  %410 = vst [vmem:[%s13008_s15 + $0x154] sm:$0xf] %v409_v21 }
  0x6b   : > { %v413_v23 = vld [vmem:[%s13003_s14 + $0xae0] sm:$0xf]  ;;  %412 = vst [vmem:[%s13008_s15 + $0x158] sm:$0xf] %v411_v22 }
  0x6c   : > { %v415_v24 = vld [vmem:[%s13003_s14 + $0xb00] sm:$0xf]  ;;  %414 = vst [vmem:[%s13008_s15 + $0x15c] sm:$0xf] %v413_v23 }
  0x6d   : > { %v417_v25 = vld [vmem:[%s13003_s14 + $0xb20] sm:$0xf]  ;;  %416 = vst [vmem:[%s13008_s15 + $0x160] sm:$0xf] %v415_v24 }
  0x6e   : > { %v419_v26 = vld [vmem:[%s13003_s14 + $0xb40] sm:$0xf]  ;;  %418 = vst [vmem:[%s13008_s15 + $0x164] sm:$0xf] %v417_v25 }
  0x6f   : > { %v421_v27 = vld [vmem:[%s13003_s14 + $0xb60] sm:$0xf]  ;;  %420 = vst [vmem:[%s13008_s15 + $0x168] sm:$0xf] %v419_v26 }
  0x70   : > { %v423_v28 = vld [vmem:[%s13003_s14 + $0xb80] sm:$0xf]  ;;  %422 = vst [vmem:[%s13008_s15 + $0x16c] sm:$0xf] %v421_v27 }
  0x71   : > { %v425_v29 = vld [vmem:[%s13003_s14 + $0xba0] sm:$0xf]  ;;  %424 = vst [vmem:[%s13008_s15 + $0x170] sm:$0xf] %v423_v28 }
  0x72   : > { %v427_v30 = vld [vmem:[%s13003_s14 + $0xbc0] sm:$0xf]  ;;  %426 = vst [vmem:[%s13008_s15 + $0x174] sm:$0xf] %v425_v29 }
  0x73   : > { %v429_v31 = vld [vmem:[%s13003_s14 + $0xbe0] sm:$0xf]  ;;  %428 = vst [vmem:[%s13008_s15 + $0x178] sm:$0xf] %v427_v30 }
  0x74   : > { %v431_v32 = vld [vmem:[%s13003_s14 + $0xc00] sm:$0xf]  ;;  %430 = vst [vmem:[%s13008_s15 + $0x17c] sm:$0xf] %v429_v31 }
  0x75   : > { %v433_v33 = vld [vmem:[%s13003_s14 + $0xc20] sm:$0xf]  ;;  %432 = vst [vmem:[%s13008_s15 + $0x180] sm:$0xf] %v431_v32 }
  0x76   : > { %v435_v34 = vld [vmem:[%s13003_s14 + $0xc40] sm:$0xf]  ;;  %434 = vst [vmem:[%s13008_s15 + $0x184] sm:$0xf] %v433_v33 }
  0x77   : > { %v437_v35 = vld [vmem:[%s13003_s14 + $0xc60] sm:$0xf]  ;;  %436 = vst [vmem:[%s13008_s15 + $0x188] sm:$0xf] %v435_v34 }
  0x78   : > { %v439_v36 = vld [vmem:[%s13003_s14 + $0xc80] sm:$0xf]  ;;  %438 = vst [vmem:[%s13008_s15 + $0x18c] sm:$0xf] %v437_v35 }
  0x79   : > { %v441_v37 = vld [vmem:[%s13003_s14 + $0xca0] sm:$0xf]  ;;  %440 = vst [vmem:[%s13008_s15 + $0x190] sm:$0xf] %v439_v36 }
  0x7a   : > { %v443_v38 = vld [vmem:[%s13003_s14 + $0xcc0] sm:$0xf]  ;;  %442 = vst [vmem:[%s13008_s15 + $0x194] sm:$0xf] %v441_v37 }
  0x7b   : > { %v445_v39 = vld [vmem:[%s13003_s14 + $0xce0] sm:$0xf]  ;;  %444 = vst [vmem:[%s13008_s15 + $0x198] sm:$0xf] %v443_v38 }
  0x7c   : > { %v447_v40 = vld [vmem:[%s13003_s14 + $0xd00] sm:$0xf]  ;;  %446 = vst [vmem:[%s13008_s15 + $0x19c] sm:$0xf] %v445_v39 }
  0x7d   : > { %v449_v41 = vld [vmem:[%s13003_s14 + $0xd20] sm:$0xf]  ;;  %448 = vst [vmem:[%s13008_s15 + $0x1a0] sm:$0xf] %v447_v40 }
  0x7e   : > { %v451_v42 = vld [vmem:[%s13003_s14 + $0xd40] sm:$0xf]  ;;  %450 = vst [vmem:[%s13008_s15 + $0x1a4] sm:$0xf] %v449_v41 }
  0x7f   : > { %v453_v43 = vld [vmem:[%s13003_s14 + $0xd60] sm:$0xf]  ;;  %452 = vst [vmem:[%s13008_s15 + $0x1a8] sm:$0xf] %v451_v42 }
  0x80   : > { %v455_v44 = vld [vmem:[%s13003_s14 + $0xd80] sm:$0xf]  ;;  %454 = vst [vmem:[%s13008_s15 + $0x1ac] sm:$0xf] %v453_v43 }
  0x81   : > { %v457_v45 = vld [vmem:[%s13003_s14 + $0xda0] sm:$0xf]  ;;  %456 = vst [vmem:[%s13008_s15 + $0x1b0] sm:$0xf] %v455_v44 }
  0x82   : > { %v459_v46 = vld [vmem:[%s13003_s14 + $0xdc0] sm:$0xf]  ;;  %458 = vst [vmem:[%s13008_s15 + $0x1b4] sm:$0xf] %v457_v45 }
  0x83   : > { %v461_v47 = vld [vmem:[%s13003_s14 + $0xde0] sm:$0xf]  ;;  %460 = vst [vmem:[%s13008_s15 + $0x1b8] sm:$0xf] %v459_v46 }
  0x84   : > { %v463_v48 = vld [vmem:[%s13003_s14 + $0xe00] sm:$0xf]  ;;  %462 = vst [vmem:[%s13008_s15 + $0x1bc] sm:$0xf] %v461_v47 }
  0x85   : > { %v465_v49 = vld [vmem:[%s13003_s14 + $0xe20] sm:$0xf]  ;;  %464 = vst [vmem:[%s13008_s15 + $0x1c0] sm:$0xf] %v463_v48 }
  0x86   : > { %v467_v50 = vld [vmem:[%s13003_s14 + $0xe40] sm:$0xf]  ;;  %466 = vst [vmem:[%s13008_s15 + $0x1c4] sm:$0xf] %v465_v49 }
  0x87   : > { %v469_v51 = vld [vmem:[%s13003_s14 + $0xe60] sm:$0xf]  ;;  %468 = vst [vmem:[%s13008_s15 + $0x1c8] sm:$0xf] %v467_v50 }
  0x88   : > { %v471_v52 = vld [vmem:[%s13003_s14 + $0xe80] sm:$0xf]  ;;  %470 = vst [vmem:[%s13008_s15 + $0x1cc] sm:$0xf] %v469_v51 }
  0x89   : > { %v473_v53 = vld [vmem:[%s13003_s14 + $0xea0] sm:$0xf]  ;;  %472 = vst [vmem:[%s13008_s15 + $0x1d0] sm:$0xf] %v471_v52 }
  0x8a   : > { %v475_v54 = vld [vmem:[%s13003_s14 + $0xec0] sm:$0xf]  ;;  %474 = vst [vmem:[%s13008_s15 + $0x1d4] sm:$0xf] %v473_v53 }
  0x8b   : > { %v477_v55 = vld [vmem:[%s13003_s14 + $0xee0] sm:$0xf]  ;;  %476 = vst [vmem:[%s13008_s15 + $0x1d8] sm:$0xf] %v475_v54 }
  0x8c   : > { %v479_v56 = vld [vmem:[%s13003_s14 + $0xf00] sm:$0xf]  ;;  %478 = vst [vmem:[%s13008_s15 + $0x1dc] sm:$0xf] %v477_v55 }
  0x8d   : > { %v481_v57 = vld [vmem:[%s13003_s14 + $0xf20] sm:$0xf]  ;;  %480 = vst [vmem:[%s13008_s15 + $0x1e0] sm:$0xf] %v479_v56 }
  0x8e   : > { %v483_v58 = vld [vmem:[%s13003_s14 + $0xf40] sm:$0xf]  ;;  %482 = vst [vmem:[%s13008_s15 + $0x1e4] sm:$0xf] %v481_v57 }
  0x8f   : > { %v485_v59 = vld [vmem:[%s13003_s14 + $0xf60] sm:$0xf]  ;;  %484 = vst [vmem:[%s13008_s15 + $0x1e8] sm:$0xf] %v483_v58 }
  0x90   : > { %v487_v60 = vld [vmem:[%s13003_s14 + $0xf80] sm:$0xf]  ;;  %486 = vst [vmem:[%s13008_s15 + $0x1ec] sm:$0xf] %v485_v59 }
  0x91   : > { %v489_v61 = vld [vmem:[%s13003_s14 + $0xfa0] sm:$0xf]  ;;  %488 = vst [vmem:[%s13008_s15 + $0x1f0] sm:$0xf] %v487_v60 }
  0x92   : > { %v491_v62 = vld [vmem:[%s13003_s14 + $0xfc0] sm:$0xf]  ;;  %490 = vst [vmem:[%s13008_s15 + $0x1f4] sm:$0xf] %v489_v61 }
  0x93   : > { %v493_v63 = vld [vmem:[%s13003_s14 + $0xfe0] sm:$0xf]  ;;  %492 = vst [vmem:[%s13008_s15 + $0x1f8] sm:$0xf] %v491_v62 }
  0x94   : > { %v495_v0 = vld [vmem:[%s13003_s14 + $0x1000] sm:$0xf]  ;;  %494 = vst [vmem:[%s13008_s15 + $0x1fc] sm:$0xf] %v493_v63 }
  0x95   : > { %v497_v1 = vld [vmem:[%s13003_s14 + $0x1020] sm:$0xf]  ;;  %496 = vst [vmem:[%s13008_s15 + $0x200] sm:$0xf] %v495_v0 }
  0x96   : > { %v499_v2 = vld [vmem:[%s13003_s14 + $0x1040] sm:$0xf]  ;;  %498 = vst [vmem:[%s13008_s15 + $0x204] sm:$0xf] %v497_v1 }
  0x97   : > { %v501_v3 = vld [vmem:[%s13003_s14 + $0x1060] sm:$0xf]  ;;  %500 = vst [vmem:[%s13008_s15 + $0x208] sm:$0xf] %v499_v2 }
  0x98   : > { %v503_v4 = vld [vmem:[%s13003_s14 + $0x1080] sm:$0xf]  ;;  %502 = vst [vmem:[%s13008_s15 + $0x20c] sm:$0xf] %v501_v3 }
  0x99   : > { %v505_v5 = vld [vmem:[%s13003_s14 + $0x10a0] sm:$0xf]  ;;  %504 = vst [vmem:[%s13008_s15 + $0x210] sm:$0xf] %v503_v4 }
  0x9a   : > { %v507_v6 = vld [vmem:[%s13003_s14 + $0x10c0] sm:$0xf]  ;;  %506 = vst [vmem:[%s13008_s15 + $0x214] sm:$0xf] %v505_v5 }
  0x9b   : > { %v509_v7 = vld [vmem:[%s13003_s14 + $0x10e0] sm:$0xf]  ;;  %508 = vst [vmem:[%s13008_s15 + $0x218] sm:$0xf] %v507_v6 }
  0x9c   : > { %v511_v8 = vld [vmem:[%s13003_s14 + $0x1100] sm:$0xf]  ;;  %510 = vst [vmem:[%s13008_s15 + $0x21c] sm:$0xf] %v509_v7 }
  0x9d   : > { %v513_v9 = vld [vmem:[%s13003_s14 + $0x1120] sm:$0xf]  ;;  %512 = vst [vmem:[%s13008_s15 + $0x220] sm:$0xf] %v511_v8 }
  0x9e   : > { %v515_v10 = vld [vmem:[%s13003_s14 + $0x1140] sm:$0xf]  ;;  %514 = vst [vmem:[%s13008_s15 + $0x224] sm:$0xf] %v513_v9 }
  0x9f   : > { %v517_v11 = vld [vmem:[%s13003_s14 + $0x1160] sm:$0xf]  ;;  %516 = vst [vmem:[%s13008_s15 + $0x228] sm:$0xf] %v515_v10 }
  0xa0   : > { %v519_v12 = vld [vmem:[%s13003_s14 + $0x1180] sm:$0xf]  ;;  %518 = vst [vmem:[%s13008_s15 + $0x22c] sm:$0xf] %v517_v11 }
  0xa1   : > { %v521_v13 = vld [vmem:[%s13003_s14 + $0x11a0] sm:$0xf]  ;;  %520 = vst [vmem:[%s13008_s15 + $0x230] sm:$0xf] %v519_v12 }
  0xa2   : > { %v523_v14 = vld [vmem:[%s13003_s14 + $0x11c0] sm:$0xf]  ;;  %522 = vst [vmem:[%s13008_s15 + $0x234] sm:$0xf] %v521_v13 }
  0xa3   : > { %v525_v15 = vld [vmem:[%s13003_s14 + $0x11e0] sm:$0xf]  ;;  %524 = vst [vmem:[%s13008_s15 + $0x238] sm:$0xf] %v523_v14 }
  0xa4   : > { %v527_v16 = vld [vmem:[%s13003_s14 + $0x1200] sm:$0xf]  ;;  %526 = vst [vmem:[%s13008_s15 + $0x23c] sm:$0xf] %v525_v15 }
  0xa5   : > { %v529_v17 = vld [vmem:[%s13003_s14 + $0x1220] sm:$0xf]  ;;  %528 = vst [vmem:[%s13008_s15 + $0x240] sm:$0xf] %v527_v16 }
  0xa6   : > { %v531_v18 = vld [vmem:[%s13003_s14 + $0x1240] sm:$0xf]  ;;  %530 = vst [vmem:[%s13008_s15 + $0x244] sm:$0xf] %v529_v17 }
  0xa7   : > { %v533_v19 = vld [vmem:[%s13003_s14 + $0x1260] sm:$0xf]  ;;  %532 = vst [vmem:[%s13008_s15 + $0x248] sm:$0xf] %v531_v18 }
  0xa8   : > { %v535_v20 = vld [vmem:[%s13003_s14 + $0x1280] sm:$0xf]  ;;  %534 = vst [vmem:[%s13008_s15 + $0x24c] sm:$0xf] %v533_v19 }
  0xa9   : > { %v537_v21 = vld [vmem:[%s13003_s14 + $0x12a0] sm:$0xf]  ;;  %536 = vst [vmem:[%s13008_s15 + $0x250] sm:$0xf] %v535_v20 }
  0xaa   : > { %v539_v22 = vld [vmem:[%s13003_s14 + $0x12c0] sm:$0xf]  ;;  %538 = vst [vmem:[%s13008_s15 + $0x254] sm:$0xf] %v537_v21 }
  0xab   : > { %v541_v23 = vld [vmem:[%s13003_s14 + $0x12e0] sm:$0xf]  ;;  %540 = vst [vmem:[%s13008_s15 + $0x258] sm:$0xf] %v539_v22 }
  0xac   : > { %v543_v24 = vld [vmem:[%s13003_s14 + $0x1300] sm:$0xf]  ;;  %542 = vst [vmem:[%s13008_s15 + $0x25c] sm:$0xf] %v541_v23 }
  0xad   : > { %v545_v25 = vld [vmem:[%s13003_s14 + $0x1320] sm:$0xf]  ;;  %544 = vst [vmem:[%s13008_s15 + $0x260] sm:$0xf] %v543_v24 }
  0xae   : > { %v547_v26 = vld [vmem:[%s13003_s14 + $0x1340] sm:$0xf]  ;;  %546 = vst [vmem:[%s13008_s15 + $0x264] sm:$0xf] %v545_v25 }
  0xaf   : > { %v549_v27 = vld [vmem:[%s13003_s14 + $0x1360] sm:$0xf]  ;;  %548 = vst [vmem:[%s13008_s15 + $0x268] sm:$0xf] %v547_v26 }
  0xb0   : > { %v551_v28 = vld [vmem:[%s13003_s14 + $0x1380] sm:$0xf]  ;;  %550 = vst [vmem:[%s13008_s15 + $0x26c] sm:$0xf] %v549_v27 }
  0xb1   : > { %v553_v29 = vld [vmem:[%s13003_s14 + $0x13a0] sm:$0xf]  ;;  %552 = vst [vmem:[%s13008_s15 + $0x270] sm:$0xf] %v551_v28 }
  0xb2   : > { %v555_v30 = vld [vmem:[%s13003_s14 + $0x13c0] sm:$0xf]  ;;  %554 = vst [vmem:[%s13008_s15 + $0x274] sm:$0xf] %v553_v29 }
  0xb3   : > { %v557_v31 = vld [vmem:[%s13003_s14 + $0x13e0] sm:$0xf]  ;;  %556 = vst [vmem:[%s13008_s15 + $0x278] sm:$0xf] %v555_v30 }
  0xb4   : > { %v559_v32 = vld [vmem:[%s13003_s14 + $0x1400] sm:$0xf]  ;;  %558 = vst [vmem:[%s13008_s15 + $0x27c] sm:$0xf] %v557_v31 }
  0xb5   : > { %v561_v33 = vld [vmem:[%s13003_s14 + $0x1420] sm:$0xf]  ;;  %560 = vst [vmem:[%s13008_s15 + $0x280] sm:$0xf] %v559_v32 }
  0xb6   : > { %v563_v34 = vld [vmem:[%s13003_s14 + $0x1440] sm:$0xf]  ;;  %562 = vst [vmem:[%s13008_s15 + $0x284] sm:$0xf] %v561_v33 }
  0xb7   : > { %v565_v35 = vld [vmem:[%s13003_s14 + $0x1460] sm:$0xf]  ;;  %564 = vst [vmem:[%s13008_s15 + $0x288] sm:$0xf] %v563_v34 }
  0xb8   : > { %v567_v36 = vld [vmem:[%s13003_s14 + $0x1480] sm:$0xf]  ;;  %566 = vst [vmem:[%s13008_s15 + $0x28c] sm:$0xf] %v565_v35 }
  0xb9   : > { %v569_v37 = vld [vmem:[%s13003_s14 + $0x14a0] sm:$0xf]  ;;  %568 = vst [vmem:[%s13008_s15 + $0x290] sm:$0xf] %v567_v36 }
  0xba   : > { %v571_v38 = vld [vmem:[%s13003_s14 + $0x14c0] sm:$0xf]  ;;  %570 = vst [vmem:[%s13008_s15 + $0x294] sm:$0xf] %v569_v37 }
  0xbb   : > { %v573_v39 = vld [vmem:[%s13003_s14 + $0x14e0] sm:$0xf]  ;;  %572 = vst [vmem:[%s13008_s15 + $0x298] sm:$0xf] %v571_v38 }
  0xbc   : > { %v575_v40 = vld [vmem:[%s13003_s14 + $0x1500] sm:$0xf]  ;;  %574 = vst [vmem:[%s13008_s15 + $0x29c] sm:$0xf] %v573_v39 }
  0xbd   : > { %v577_v41 = vld [vmem:[%s13003_s14 + $0x1520] sm:$0xf]  ;;  %576 = vst [vmem:[%s13008_s15 + $0x2a0] sm:$0xf] %v575_v40 }
  0xbe   : > { %v579_v42 = vld [vmem:[%s13003_s14 + $0x1540] sm:$0xf]  ;;  %578 = vst [vmem:[%s13008_s15 + $0x2a4] sm:$0xf] %v577_v41 }
  0xbf   : > { %v581_v43 = vld [vmem:[%s13003_s14 + $0x1560] sm:$0xf]  ;;  %580 = vst [vmem:[%s13008_s15 + $0x2a8] sm:$0xf] %v579_v42 }
  0xc0   : > { %v583_v44 = vld [vmem:[%s13003_s14 + $0x1580] sm:$0xf]  ;;  %582 = vst [vmem:[%s13008_s15 + $0x2ac] sm:$0xf] %v581_v43 }
  0xc1   : > { %v585_v45 = vld [vmem:[%s13003_s14 + $0x15a0] sm:$0xf]  ;;  %584 = vst [vmem:[%s13008_s15 + $0x2b0] sm:$0xf] %v583_v44 }
  0xc2   : > { %v587_v46 = vld [vmem:[%s13003_s14 + $0x15c0] sm:$0xf]  ;;  %586 = vst [vmem:[%s13008_s15 + $0x2b4] sm:$0xf] %v585_v45 }
  0xc3   : > { %v589_v47 = vld [vmem:[%s13003_s14 + $0x15e0] sm:$0xf]  ;;  %588 = vst [vmem:[%s13008_s15 + $0x2b8] sm:$0xf] %v587_v46 }
  0xc4   : > { %v591_v48 = vld [vmem:[%s13003_s14 + $0x1600] sm:$0xf]  ;;  %590 = vst [vmem:[%s13008_s15 + $0x2bc] sm:$0xf] %v589_v47 }
  0xc5   : > { %v593_v49 = vld [vmem:[%s13003_s14 + $0x1620] sm:$0xf]  ;;  %592 = vst [vmem:[%s13008_s15 + $0x2c0] sm:$0xf] %v591_v48 }
  0xc6   : > { %v595_v50 = vld [vmem:[%s13003_s14 + $0x1640] sm:$0xf]  ;;  %594 = vst [vmem:[%s13008_s15 + $0x2c4] sm:$0xf] %v593_v49 }
  0xc7   : > { %v597_v51 = vld [vmem:[%s13003_s14 + $0x1660] sm:$0xf]  ;;  %596 = vst [vmem:[%s13008_s15 + $0x2c8] sm:$0xf] %v595_v50 }
  0xc8   : > { %v599_v52 = vld [vmem:[%s13003_s14 + $0x1680] sm:$0xf]  ;;  %598 = vst [vmem:[%s13008_s15 + $0x2cc] sm:$0xf] %v597_v51 }
  0xc9   : > { %v601_v53 = vld [vmem:[%s13003_s14 + $0x16a0] sm:$0xf]  ;;  %600 = vst [vmem:[%s13008_s15 + $0x2d0] sm:$0xf] %v599_v52 }
  0xca   : > { %v603_v54 = vld [vmem:[%s13003_s14 + $0x16c0] sm:$0xf]  ;;  %602 = vst [vmem:[%s13008_s15 + $0x2d4] sm:$0xf] %v601_v53 }
  0xcb   : > { %v605_v55 = vld [vmem:[%s13003_s14 + $0x16e0] sm:$0xf]  ;;  %604 = vst [vmem:[%s13008_s15 + $0x2d8] sm:$0xf] %v603_v54 }
  0xcc   : > { %v607_v56 = vld [vmem:[%s13003_s14 + $0x1700] sm:$0xf]  ;;  %606 = vst [vmem:[%s13008_s15 + $0x2dc] sm:$0xf] %v605_v55 }
  0xcd   : > { %v609_v57 = vld [vmem:[%s13003_s14 + $0x1720] sm:$0xf]  ;;  %608 = vst [vmem:[%s13008_s15 + $0x2e0] sm:$0xf] %v607_v56 }
  0xce   : > { %v611_v58 = vld [vmem:[%s13003_s14 + $0x1740] sm:$0xf]  ;;  %610 = vst [vmem:[%s13008_s15 + $0x2e4] sm:$0xf] %v609_v57 }
  0xcf   : > { %v613_v59 = vld [vmem:[%s13003_s14 + $0x1760] sm:$0xf]  ;;  %612 = vst [vmem:[%s13008_s15 + $0x2e8] sm:$0xf] %v611_v58 }
  0xd0   : > { %v615_v60 = vld [vmem:[%s13003_s14 + $0x1780] sm:$0xf]  ;;  %614 = vst [vmem:[%s13008_s15 + $0x2ec] sm:$0xf] %v613_v59 }
  0xd1   : > { %v617_v61 = vld [vmem:[%s13003_s14 + $0x17a0] sm:$0xf]  ;;  %616 = vst [vmem:[%s13008_s15 + $0x2f0] sm:$0xf] %v615_v60 }
  0xd2   : > { %v619_v62 = vld [vmem:[%s13003_s14 + $0x17c0] sm:$0xf]  ;;  %618 = vst [vmem:[%s13008_s15 + $0x2f4] sm:$0xf] %v617_v61 }
  0xd3   : > { %v621_v63 = vld [vmem:[%s13003_s14 + $0x17e0] sm:$0xf]  ;;  %620 = vst [vmem:[%s13008_s15 + $0x2f8] sm:$0xf] %v619_v62 }
  0xd4   : > { %v623_v0 = vld [vmem:[%s13003_s14 + $0x1800] sm:$0xf]  ;;  %622 = vst [vmem:[%s13008_s15 + $0x2fc] sm:$0xf] %v621_v63 }
  0xd5   : > { %v625_v1 = vld [vmem:[%s13003_s14 + $0x1820] sm:$0xf]  ;;  %624 = vst [vmem:[%s13008_s15 + $0x300] sm:$0xf] %v623_v0 }
  0xd6   : > { %v627_v2 = vld [vmem:[%s13003_s14 + $0x1840] sm:$0xf]  ;;  %626 = vst [vmem:[%s13008_s15 + $0x304] sm:$0xf] %v625_v1 }
  0xd7   : > { %v629_v3 = vld [vmem:[%s13003_s14 + $0x1860] sm:$0xf]  ;;  %628 = vst [vmem:[%s13008_s15 + $0x308] sm:$0xf] %v627_v2 }
  0xd8   : > { %v631_v4 = vld [vmem:[%s13003_s14 + $0x1880] sm:$0xf]  ;;  %630 = vst [vmem:[%s13008_s15 + $0x30c] sm:$0xf] %v629_v3 }
  0xd9   : > { %v633_v5 = vld [vmem:[%s13003_s14 + $0x18a0] sm:$0xf]  ;;  %632 = vst [vmem:[%s13008_s15 + $0x310] sm:$0xf] %v631_v4 }
  0xda   : > { %v635_v6 = vld [vmem:[%s13003_s14 + $0x18c0] sm:$0xf]  ;;  %634 = vst [vmem:[%s13008_s15 + $0x314] sm:$0xf] %v633_v5 }
  0xdb   : > { %v637_v7 = vld [vmem:[%s13003_s14 + $0x18e0] sm:$0xf]  ;;  %636 = vst [vmem:[%s13008_s15 + $0x318] sm:$0xf] %v635_v6 }
  0xdc   : > { %v639_v8 = vld [vmem:[%s13003_s14 + $0x1900] sm:$0xf]  ;;  %638 = vst [vmem:[%s13008_s15 + $0x31c] sm:$0xf] %v637_v7 }
  0xdd   : > { %v641_v9 = vld [vmem:[%s13003_s14 + $0x1920] sm:$0xf]  ;;  %640 = vst [vmem:[%s13008_s15 + $0x320] sm:$0xf] %v639_v8 }
  0xde   : > { %v643_v10 = vld [vmem:[%s13003_s14 + $0x1940] sm:$0xf]  ;;  %642 = vst [vmem:[%s13008_s15 + $0x324] sm:$0xf] %v641_v9 }
  0xdf   : > { %v645_v11 = vld [vmem:[%s13003_s14 + $0x1960] sm:$0xf]  ;;  %644 = vst [vmem:[%s13008_s15 + $0x328] sm:$0xf] %v643_v10 }
  0xe0   : > { %v647_v12 = vld [vmem:[%s13003_s14 + $0x1980] sm:$0xf]  ;;  %646 = vst [vmem:[%s13008_s15 + $0x32c] sm:$0xf] %v645_v11 }
  0xe1   : > { %v649_v13 = vld [vmem:[%s13003_s14 + $0x19a0] sm:$0xf]  ;;  %648 = vst [vmem:[%s13008_s15 + $0x330] sm:$0xf] %v647_v12 }
  0xe2   : > { %v651_v14 = vld [vmem:[%s13003_s14 + $0x19c0] sm:$0xf]  ;;  %650 = vst [vmem:[%s13008_s15 + $0x334] sm:$0xf] %v649_v13 }
  0xe3   : > { %v653_v15 = vld [vmem:[%s13003_s14 + $0x19e0] sm:$0xf]  ;;  %652 = vst [vmem:[%s13008_s15 + $0x338] sm:$0xf] %v651_v14 }
  0xe4   : > { %v655_v16 = vld [vmem:[%s13003_s14 + $0x1a00] sm:$0xf]  ;;  %654 = vst [vmem:[%s13008_s15 + $0x33c] sm:$0xf] %v653_v15 }
  0xe5   : > { %v657_v17 = vld [vmem:[%s13003_s14 + $0x1a20] sm:$0xf]  ;;  %656 = vst [vmem:[%s13008_s15 + $0x340] sm:$0xf] %v655_v16 }
  0xe6   : > { %v659_v18 = vld [vmem:[%s13003_s14 + $0x1a40] sm:$0xf]  ;;  %658 = vst [vmem:[%s13008_s15 + $0x344] sm:$0xf] %v657_v17 }
  0xe7   : > { %v661_v19 = vld [vmem:[%s13003_s14 + $0x1a60] sm:$0xf]  ;;  %660 = vst [vmem:[%s13008_s15 + $0x348] sm:$0xf] %v659_v18 }
  0xe8   : > { %v663_v20 = vld [vmem:[%s13003_s14 + $0x1a80] sm:$0xf]  ;;  %662 = vst [vmem:[%s13008_s15 + $0x34c] sm:$0xf] %v661_v19 }
  0xe9   : > { %v665_v21 = vld [vmem:[%s13003_s14 + $0x1aa0] sm:$0xf]  ;;  %664 = vst [vmem:[%s13008_s15 + $0x350] sm:$0xf] %v663_v20 }
  0xea   : > { %v667_v22 = vld [vmem:[%s13003_s14 + $0x1ac0] sm:$0xf]  ;;  %666 = vst [vmem:[%s13008_s15 + $0x354] sm:$0xf] %v665_v21 }
  0xeb   : > { %v669_v23 = vld [vmem:[%s13003_s14 + $0x1ae0] sm:$0xf]  ;;  %668 = vst [vmem:[%s13008_s15 + $0x358] sm:$0xf] %v667_v22 }
  0xec   : > { %v671_v24 = vld [vmem:[%s13003_s14 + $0x1b00] sm:$0xf]  ;;  %670 = vst [vmem:[%s13008_s15 + $0x35c] sm:$0xf] %v669_v23 }
  0xed   : > { %v673_v25 = vld [vmem:[%s13003_s14 + $0x1b20] sm:$0xf]  ;;  %672 = vst [vmem:[%s13008_s15 + $0x360] sm:$0xf] %v671_v24 }
  0xee   : > { %v675_v26 = vld [vmem:[%s13003_s14 + $0x1b40] sm:$0xf]  ;;  %674 = vst [vmem:[%s13008_s15 + $0x364] sm:$0xf] %v673_v25 }
  0xef   : > { %v677_v27 = vld [vmem:[%s13003_s14 + $0x1b60] sm:$0xf]  ;;  %676 = vst [vmem:[%s13008_s15 + $0x368] sm:$0xf] %v675_v26 }
  0xf0   : > { %v679_v28 = vld [vmem:[%s13003_s14 + $0x1b80] sm:$0xf]  ;;  %678 = vst [vmem:[%s13008_s15 + $0x36c] sm:$0xf] %v677_v27 }
  0xf1   : > { %v681_v29 = vld [vmem:[%s13003_s14 + $0x1ba0] sm:$0xf]  ;;  %680 = vst [vmem:[%s13008_s15 + $0x370] sm:$0xf] %v679_v28 }
  0xf2   : > { %v683_v30 = vld [vmem:[%s13003_s14 + $0x1bc0] sm:$0xf]  ;;  %682 = vst [vmem:[%s13008_s15 + $0x374] sm:$0xf] %v681_v29 }
  0xf3   : > { %v685_v31 = vld [vmem:[%s13003_s14 + $0x1be0] sm:$0xf]  ;;  %684 = vst [vmem:[%s13008_s15 + $0x378] sm:$0xf] %v683_v30 }
  0xf4   : > { %v687_v32 = vld [vmem:[%s13003_s14 + $0x1c00] sm:$0xf]  ;;  %686 = vst [vmem:[%s13008_s15 + $0x37c] sm:$0xf] %v685_v31 }
  0xf5   : > { %v689_v33 = vld [vmem:[%s13003_s14 + $0x1c20] sm:$0xf]  ;;  %688 = vst [vmem:[%s13008_s15 + $0x380] sm:$0xf] %v687_v32 }
  0xf6   : > { %v691_v34 = vld [vmem:[%s13003_s14 + $0x1c40] sm:$0xf]  ;;  %690 = vst [vmem:[%s13008_s15 + $0x384] sm:$0xf] %v689_v33 }
  0xf7   : > { %v693_v35 = vld [vmem:[%s13003_s14 + $0x1c60] sm:$0xf]  ;;  %692 = vst [vmem:[%s13008_s15 + $0x388] sm:$0xf] %v691_v34 }
  0xf8   : > { %v695_v36 = vld [vmem:[%s13003_s14 + $0x1c80] sm:$0xf]  ;;  %694 = vst [vmem:[%s13008_s15 + $0x38c] sm:$0xf] %v693_v35 }
  0xf9   : > { %v697_v37 = vld [vmem:[%s13003_s14 + $0x1ca0] sm:$0xf]  ;;  %696 = vst [vmem:[%s13008_s15 + $0x390] sm:$0xf] %v695_v36 }
  0xfa   : > { %v699_v38 = vld [vmem:[%s13003_s14 + $0x1cc0] sm:$0xf]  ;;  %698 = vst [vmem:[%s13008_s15 + $0x394] sm:$0xf] %v697_v37 }
  0xfb   : > { %v701_v39 = vld [vmem:[%s13003_s14 + $0x1ce0] sm:$0xf]  ;;  %700 = vst [vmem:[%s13008_s15 + $0x398] sm:$0xf] %v699_v38 }
  0xfc   : > { %v703_v40 = vld [vmem:[%s13003_s14 + $0x1d00] sm:$0xf]  ;;  %702 = vst [vmem:[%s13008_s15 + $0x39c] sm:$0xf] %v701_v39 }
  0xfd   : > { %v705_v41 = vld [vmem:[%s13003_s14 + $0x1d20] sm:$0xf]  ;;  %704 = vst [vmem:[%s13008_s15 + $0x3a0] sm:$0xf] %v703_v40 }
  0xfe   : > { %v707_v42 = vld [vmem:[%s13003_s14 + $0x1d40] sm:$0xf]  ;;  %706 = vst [vmem:[%s13008_s15 + $0x3a4] sm:$0xf] %v705_v41 }
  0xff   : > { %v709_v43 = vld [vmem:[%s13003_s14 + $0x1d60] sm:$0xf]  ;;  %708 = vst [vmem:[%s13008_s15 + $0x3a8] sm:$0xf] %v707_v42 }
 0x100   : > { %v711_v44 = vld [vmem:[%s13003_s14 + $0x1d80] sm:$0xf]  ;;  %710 = vst [vmem:[%s13008_s15 + $0x3ac] sm:$0xf] %v709_v43 }
 0x101   : > { %v713_v45 = vld [vmem:[%s13003_s14 + $0x1da0] sm:$0xf]  ;;  %712 = vst [vmem:[%s13008_s15 + $0x3b0] sm:$0xf] %v711_v44 }
 0x102   : > { %v715_v46 = vld [vmem:[%s13003_s14 + $0x1dc0] sm:$0xf]  ;;  %714 = vst [vmem:[%s13008_s15 + $0x3b4] sm:$0xf] %v713_v45 }
 0x103   : > { %v717_v47 = vld [vmem:[%s13003_s14 + $0x1de0] sm:$0xf]  ;;  %716 = vst [vmem:[%s13008_s15 + $0x3b8] sm:$0xf] %v715_v46 }
 0x104   : > { %v719_v48 = vld [vmem:[%s13003_s14 + $0x1e00] sm:$0xf]  ;;  %718 = vst [vmem:[%s13008_s15 + $0x3bc] sm:$0xf] %v717_v47 }
 0x105   : > { %v721_v49 = vld [vmem:[%s13003_s14 + $0x1e20] sm:$0xf]  ;;  %720 = vst [vmem:[%s13008_s15 + $0x3c0] sm:$0xf] %v719_v48 }
 0x106   : > { %v723_v50 = vld [vmem:[%s13003_s14 + $0x1e40] sm:$0xf]  ;;  %722 = vst [vmem:[%s13008_s15 + $0x3c4] sm:$0xf] %v721_v49 }
 0x107   : > { %v725_v51 = vld [vmem:[%s13003_s14 + $0x1e60] sm:$0xf]  ;;  %724 = vst [vmem:[%s13008_s15 + $0x3c8] sm:$0xf] %v723_v50 }
 0x108   : > { %v727_v52 = vld [vmem:[%s13003_s14 + $0x1e80] sm:$0xf]  ;;  %726 = vst [vmem:[%s13008_s15 + $0x3cc] sm:$0xf] %v725_v51 }
 0x109   : > { %v729_v53 = vld [vmem:[%s13003_s14 + $0x1ea0] sm:$0xf]  ;;  %728 = vst [vmem:[%s13008_s15 + $0x3d0] sm:$0xf] %v727_v52 }
 0x10a   : > { %v731_v54 = vld [vmem:[%s13003_s14 + $0x1ec0] sm:$0xf]  ;;  %730 = vst [vmem:[%s13008_s15 + $0x3d4] sm:$0xf] %v729_v53 }
 0x10b   : > { %v733_v55 = vld [vmem:[%s13003_s14 + $0x1ee0] sm:$0xf]  ;;  %732 = vst [vmem:[%s13008_s15 + $0x3d8] sm:$0xf] %v731_v54 }
 0x10c   : > { %v735_v56 = vld [vmem:[%s13003_s14 + $0x1f00] sm:$0xf]  ;;  %734 = vst [vmem:[%s13008_s15 + $0x3dc] sm:$0xf] %v733_v55 }
 0x10d   : > { %v737_v57 = vld [vmem:[%s13003_s14 + $0x1f20] sm:$0xf]  ;;  %736 = vst [vmem:[%s13008_s15 + $0x3e0] sm:$0xf] %v735_v56 }
 0x10e   : > { %v739_v58 = vld [vmem:[%s13003_s14 + $0x1f40] sm:$0xf]  ;;  %738 = vst [vmem:[%s13008_s15 + $0x3e4] sm:$0xf] %v737_v57 }
 0x10f   : > { %v741_v59 = vld [vmem:[%s13003_s14 + $0x1f60] sm:$0xf]  ;;  %740 = vst [vmem:[%s13008_s15 + $0x3e8] sm:$0xf] %v739_v58 }
 0x110   : > { %v743_v60 = vld [vmem:[%s13003_s14 + $0x1f80] sm:$0xf]  ;;  %742 = vst [vmem:[%s13008_s15 + $0x3ec] sm:$0xf] %v741_v59 }
 0x111   : > { %v745_v61 = vld [vmem:[%s13003_s14 + $0x1fa0] sm:$0xf]  ;;  %744 = vst [vmem:[%s13008_s15 + $0x3f0] sm:$0xf] %v743_v60 }
 0x112   : > { %v747_v62 = vld [vmem:[%s13003_s14 + $0x1fc0] sm:$0xf]  ;;  %746 = vst [vmem:[%s13008_s15 + $0x3f4] sm:$0xf] %v745_v61 }
 0x113   : > { %v749_v63 = vld [vmem:[%s13003_s14 + $0x1fe0] sm:$0xf]  ;;  %748 = vst [vmem:[%s13008_s15 + $0x3f8] sm:$0xf] %v747_v62 }
 0x114   : > { %v751_v0 = vld [vmem:[%s13003_s14 + $0x2000] sm:$0xf]  ;;  %750 = vst [vmem:[%s13008_s15 + $0x3fc] sm:$0xf] %v749_v63 }
 0x115   : > { %v753_v1 = vld [vmem:[%s13003_s14 + $0x2020] sm:$0xf]  ;;  %752 = vst [vmem:[%s13008_s15 + $0x400] sm:$0xf] %v751_v0 }
 0x116   : > { %v755_v2 = vld [vmem:[%s13003_s14 + $0x2040] sm:$0xf]  ;;  %754 = vst [vmem:[%s13008_s15 + $0x404] sm:$0xf] %v753_v1 }
 0x117   : > { %v757_v3 = vld [vmem:[%s13003_s14 + $0x2060] sm:$0xf]  ;;  %756 = vst [vmem:[%s13008_s15 + $0x408] sm:$0xf] %v755_v2 }
 0x118   : > { %v759_v4 = vld [vmem:[%s13003_s14 + $0x2080] sm:$0xf]  ;;  %758 = vst [vmem:[%s13008_s15 + $0x40c] sm:$0xf] %v757_v3 }
 0x119   : > { %v761_v5 = vld [vmem:[%s13003_s14 + $0x20a0] sm:$0xf]  ;;  %760 = vst [vmem:[%s13008_s15 + $0x410] sm:$0xf] %v759_v4 }
 0x11a   : > { %v763_v6 = vld [vmem:[%s13003_s14 + $0x20c0] sm:$0xf]  ;;  %762 = vst [vmem:[%s13008_s15 + $0x414] sm:$0xf] %v761_v5 }
 0x11b   : > { %v765_v7 = vld [vmem:[%s13003_s14 + $0x20e0] sm:$0xf]  ;;  %764 = vst [vmem:[%s13008_s15 + $0x418] sm:$0xf] %v763_v6 }
 0x11c   : > { %v767_v8 = vld [vmem:[%s13003_s14 + $0x2100] sm:$0xf]  ;;  %766 = vst [vmem:[%s13008_s15 + $0x41c] sm:$0xf] %v765_v7 }
 0x11d   : > { %v769_v9 = vld [vmem:[%s13003_s14 + $0x2120] sm:$0xf]  ;;  %768 = vst [vmem:[%s13008_s15 + $0x420] sm:$0xf] %v767_v8 }
 0x11e   : > { %v771_v10 = vld [vmem:[%s13003_s14 + $0x2140] sm:$0xf]  ;;  %770 = vst [vmem:[%s13008_s15 + $0x424] sm:$0xf] %v769_v9 }
 0x11f   : > { %v773_v11 = vld [vmem:[%s13003_s14 + $0x2160] sm:$0xf]  ;;  %772 = vst [vmem:[%s13008_s15 + $0x428] sm:$0xf] %v771_v10 }
 0x120   : > { %v775_v12 = vld [vmem:[%s13003_s14 + $0x2180] sm:$0xf]  ;;  %774 = vst [vmem:[%s13008_s15 + $0x42c] sm:$0xf] %v773_v11 }
 0x121   : > { %v777_v13 = vld [vmem:[%s13003_s14 + $0x21a0] sm:$0xf]  ;;  %776 = vst [vmem:[%s13008_s15 + $0x430] sm:$0xf] %v775_v12 }
 0x122   : > { %v779_v14 = vld [vmem:[%s13003_s14 + $0x21c0] sm:$0xf]  ;;  %778 = vst [vmem:[%s13008_s15 + $0x434] sm:$0xf] %v777_v13 }
 0x123   : > { %v781_v15 = vld [vmem:[%s13003_s14 + $0x21e0] sm:$0xf]  ;;  %780 = vst [vmem:[%s13008_s15 + $0x438] sm:$0xf] %v779_v14 }
 0x124   : > { %v783_v16 = vld [vmem:[%s13003_s14 + $0x2200] sm:$0xf]  ;;  %782 = vst [vmem:[%s13008_s15 + $0x43c] sm:$0xf] %v781_v15 }
 0x125   : > { %v785_v17 = vld [vmem:[%s13003_s14 + $0x2220] sm:$0xf]  ;;  %784 = vst [vmem:[%s13008_s15 + $0x440] sm:$0xf] %v783_v16 }
 0x126   : > { %v787_v18 = vld [vmem:[%s13003_s14 + $0x2240] sm:$0xf]  ;;  %786 = vst [vmem:[%s13008_s15 + $0x444] sm:$0xf] %v785_v17 }
 0x127   : > { %v789_v19 = vld [vmem:[%s13003_s14 + $0x2260] sm:$0xf]  ;;  %788 = vst [vmem:[%s13008_s15 + $0x448] sm:$0xf] %v787_v18 }
 0x128   : > { %v791_v20 = vld [vmem:[%s13003_s14 + $0x2280] sm:$0xf]  ;;  %790 = vst [vmem:[%s13008_s15 + $0x44c] sm:$0xf] %v789_v19 }
 0x129   : > { %v793_v21 = vld [vmem:[%s13003_s14 + $0x22a0] sm:$0xf]  ;;  %792 = vst [vmem:[%s13008_s15 + $0x450] sm:$0xf] %v791_v20 }
 0x12a   : > { %v795_v22 = vld [vmem:[%s13003_s14 + $0x22c0] sm:$0xf]  ;;  %794 = vst [vmem:[%s13008_s15 + $0x454] sm:$0xf] %v793_v21 }
 0x12b   : > { %v797_v23 = vld [vmem:[%s13003_s14 + $0x22e0] sm:$0xf]  ;;  %796 = vst [vmem:[%s13008_s15 + $0x458] sm:$0xf] %v795_v22 }
 0x12c   : > { %v799_v24 = vld [vmem:[%s13003_s14 + $0x2300] sm:$0xf]  ;;  %798 = vst [vmem:[%s13008_s15 + $0x45c] sm:$0xf] %v797_v23 }
 0x12d   : > { %v801_v25 = vld [vmem:[%s13003_s14 + $0x2320] sm:$0xf]  ;;  %800 = vst [vmem:[%s13008_s15 + $0x460] sm:$0xf] %v799_v24 }
 0x12e   : > { %v803_v26 = vld [vmem:[%s13003_s14 + $0x2340] sm:$0xf]  ;;  %802 = vst [vmem:[%s13008_s15 + $0x464] sm:$0xf] %v801_v25 }
 0x12f   : > { %v805_v27 = vld [vmem:[%s13003_s14 + $0x2360] sm:$0xf]  ;;  %804 = vst [vmem:[%s13008_s15 + $0x468] sm:$0xf] %v803_v26 }
 0x130   : > { %v807_v28 = vld [vmem:[%s13003_s14 + $0x2380] sm:$0xf]  ;;  %806 = vst [vmem:[%s13008_s15 + $0x46c] sm:$0xf] %v805_v27 }
 0x131   : > { %v809_v29 = vld [vmem:[%s13003_s14 + $0x23a0] sm:$0xf]  ;;  %808 = vst [vmem:[%s13008_s15 + $0x470] sm:$0xf] %v807_v28 }
 0x132   : > { %v811_v30 = vld [vmem:[%s13003_s14 + $0x23c0] sm:$0xf]  ;;  %810 = vst [vmem:[%s13008_s15 + $0x474] sm:$0xf] %v809_v29 }
 0x133   : > { %v813_v31 = vld [vmem:[%s13003_s14 + $0x23e0] sm:$0xf]  ;;  %812 = vst [vmem:[%s13008_s15 + $0x478] sm:$0xf] %v811_v30 }
 0x134   : > { %v815_v32 = vld [vmem:[%s13003_s14 + $0x2400] sm:$0xf]  ;;  %814 = vst [vmem:[%s13008_s15 + $0x47c] sm:$0xf] %v813_v31 }
 0x135   : > { %v817_v33 = vld [vmem:[%s13003_s14 + $0x2420] sm:$0xf]  ;;  %816 = vst [vmem:[%s13008_s15 + $0x480] sm:$0xf] %v815_v32 }
 0x136   : > { %v819_v34 = vld [vmem:[%s13003_s14 + $0x2440] sm:$0xf]  ;;  %818 = vst [vmem:[%s13008_s15 + $0x484] sm:$0xf] %v817_v33 }
 0x137   : > { %v821_v35 = vld [vmem:[%s13003_s14 + $0x2460] sm:$0xf]  ;;  %820 = vst [vmem:[%s13008_s15 + $0x488] sm:$0xf] %v819_v34 }
 0x138   : > { %v823_v36 = vld [vmem:[%s13003_s14 + $0x2480] sm:$0xf]  ;;  %822 = vst [vmem:[%s13008_s15 + $0x48c] sm:$0xf] %v821_v35 }
 0x139   : > { %v825_v37 = vld [vmem:[%s13003_s14 + $0x24a0] sm:$0xf]  ;;  %824 = vst [vmem:[%s13008_s15 + $0x490] sm:$0xf] %v823_v36 }
 0x13a   : > { %v827_v38 = vld [vmem:[%s13003_s14 + $0x24c0] sm:$0xf]  ;;  %826 = vst [vmem:[%s13008_s15 + $0x494] sm:$0xf] %v825_v37 }
 0x13b   : > { %v829_v39 = vld [vmem:[%s13003_s14 + $0x24e0] sm:$0xf]  ;;  %828 = vst [vmem:[%s13008_s15 + $0x498] sm:$0xf] %v827_v38 }
 0x13c   : > { %v831_v40 = vld [vmem:[%s13003_s14 + $0x2500] sm:$0xf]  ;;  %830 = vst [vmem:[%s13008_s15 + $0x49c] sm:$0xf] %v829_v39 }
 0x13d   : > { %v833_v41 = vld [vmem:[%s13003_s14 + $0x2520] sm:$0xf]  ;;  %832 = vst [vmem:[%s13008_s15 + $0x4a0] sm:$0xf] %v831_v40 }
 0x13e   : > { %v835_v42 = vld [vmem:[%s13003_s14 + $0x2540] sm:$0xf]  ;;  %834 = vst [vmem:[%s13008_s15 + $0x4a4] sm:$0xf] %v833_v41 }
 0x13f   : > { %v837_v43 = vld [vmem:[%s13003_s14 + $0x2560] sm:$0xf]  ;;  %836 = vst [vmem:[%s13008_s15 + $0x4a8] sm:$0xf] %v835_v42 }
 0x140   : > { %v839_v44 = vld [vmem:[%s13003_s14 + $0x2580] sm:$0xf]  ;;  %838 = vst [vmem:[%s13008_s15 + $0x4ac] sm:$0xf] %v837_v43 }
 0x141   : > { %v841_v45 = vld [vmem:[%s13003_s14 + $0x25a0] sm:$0xf]  ;;  %840 = vst [vmem:[%s13008_s15 + $0x4b0] sm:$0xf] %v839_v44 }
 0x142   : > { %v843_v46 = vld [vmem:[%s13003_s14 + $0x25c0] sm:$0xf]  ;;  %842 = vst [vmem:[%s13008_s15 + $0x4b4] sm:$0xf] %v841_v45 }
 0x143   : > { %v845_v47 = vld [vmem:[%s13003_s14 + $0x25e0] sm:$0xf]  ;;  %844 = vst [vmem:[%s13008_s15 + $0x4b8] sm:$0xf] %v843_v46 }
 0x144   : > { %v847_v48 = vld [vmem:[%s13003_s14 + $0x2600] sm:$0xf]  ;;  %846 = vst [vmem:[%s13008_s15 + $0x4bc] sm:$0xf] %v845_v47 }
 0x145   : > { %v849_v49 = vld [vmem:[%s13003_s14 + $0x2620] sm:$0xf]  ;;  %848 = vst [vmem:[%s13008_s15 + $0x4c0] sm:$0xf] %v847_v48 }
 0x146   : > { %v851_v50 = vld [vmem:[%s13003_s14 + $0x2640] sm:$0xf]  ;;  %850 = vst [vmem:[%s13008_s15 + $0x4c4] sm:$0xf] %v849_v49 }
 0x147   : > { %v853_v51 = vld [vmem:[%s13003_s14 + $0x2660] sm:$0xf]  ;;  %852 = vst [vmem:[%s13008_s15 + $0x4c8] sm:$0xf] %v851_v50 }
 0x148   : > { %v855_v52 = vld [vmem:[%s13003_s14 + $0x2680] sm:$0xf]  ;;  %854 = vst [vmem:[%s13008_s15 + $0x4cc] sm:$0xf] %v853_v51 }
 0x149   : > { %v857_v53 = vld [vmem:[%s13003_s14 + $0x26a0] sm:$0xf]  ;;  %856 = vst [vmem:[%s13008_s15 + $0x4d0] sm:$0xf] %v855_v52 }
 0x14a   : > { %v859_v54 = vld [vmem:[%s13003_s14 + $0x26c0] sm:$0xf]  ;;  %858 = vst [vmem:[%s13008_s15 + $0x4d4] sm:$0xf] %v857_v53 }
 0x14b   : > { %v861_v55 = vld [vmem:[%s13003_s14 + $0x26e0] sm:$0xf]  ;;  %860 = vst [vmem:[%s13008_s15 + $0x4d8] sm:$0xf] %v859_v54 }
 0x14c   : > { %v863_v56 = vld [vmem:[%s13003_s14 + $0x2700] sm:$0xf]  ;;  %862 = vst [vmem:[%s13008_s15 + $0x4dc] sm:$0xf] %v861_v55 }
 0x14d   : > { %v865_v57 = vld [vmem:[%s13003_s14 + $0x2720] sm:$0xf]  ;;  %864 = vst [vmem:[%s13008_s15 + $0x4e0] sm:$0xf] %v863_v56 }
 0x14e   : > { %v867_v58 = vld [vmem:[%s13003_s14 + $0x2740] sm:$0xf]  ;;  %866 = vst [vmem:[%s13008_s15 + $0x4e4] sm:$0xf] %v865_v57 }
 0x14f   : > { %v869_v59 = vld [vmem:[%s13003_s14 + $0x2760] sm:$0xf]  ;;  %868 = vst [vmem:[%s13008_s15 + $0x4e8] sm:$0xf] %v867_v58 }
 0x150   : > { %v871_v60 = vld [vmem:[%s13003_s14 + $0x2780] sm:$0xf]  ;;  %870 = vst [vmem:[%s13008_s15 + $0x4ec] sm:$0xf] %v869_v59 }
 0x151   : > { %v873_v61 = vld [vmem:[%s13003_s14 + $0x27a0] sm:$0xf]  ;;  %872 = vst [vmem:[%s13008_s15 + $0x4f0] sm:$0xf] %v871_v60 }
 0x152   : > { %v875_v62 = vld [vmem:[%s13003_s14 + $0x27c0] sm:$0xf]  ;;  %874 = vst [vmem:[%s13008_s15 + $0x4f4] sm:$0xf] %v873_v61 }
 0x153   : > { %v877_v63 = vld [vmem:[%s13003_s14 + $0x27e0] sm:$0xf]  ;;  %876 = vst [vmem:[%s13008_s15 + $0x4f8] sm:$0xf] %v875_v62 }
 0x154   : > { %v879_v0 = vld [vmem:[%s13003_s14 + $0x2800] sm:$0xf]  ;;  %878 = vst [vmem:[%s13008_s15 + $0x4fc] sm:$0xf] %v877_v63 }
 0x155   : > { %v881_v1 = vld [vmem:[%s13003_s14 + $0x2820] sm:$0xf]  ;;  %880 = vst [vmem:[%s13008_s15 + $0x500] sm:$0xf] %v879_v0 }
 0x156   : > { %v883_v2 = vld [vmem:[%s13003_s14 + $0x2840] sm:$0xf]  ;;  %882 = vst [vmem:[%s13008_s15 + $0x504] sm:$0xf] %v881_v1 }
 0x157   : > { %v885_v3 = vld [vmem:[%s13003_s14 + $0x2860] sm:$0xf]  ;;  %884 = vst [vmem:[%s13008_s15 + $0x508] sm:$0xf] %v883_v2 }
 0x158   : > { %v887_v4 = vld [vmem:[%s13003_s14 + $0x2880] sm:$0xf]  ;;  %886 = vst [vmem:[%s13008_s15 + $0x50c] sm:$0xf] %v885_v3 }
 0x159   : > { %v889_v5 = vld [vmem:[%s13003_s14 + $0x28a0] sm:$0xf]  ;;  %888 = vst [vmem:[%s13008_s15 + $0x510] sm:$0xf] %v887_v4 }
 0x15a   : > { %v891_v6 = vld [vmem:[%s13003_s14 + $0x28c0] sm:$0xf]  ;;  %890 = vst [vmem:[%s13008_s15 + $0x514] sm:$0xf] %v889_v5 }
 0x15b   : > { %v893_v7 = vld [vmem:[%s13003_s14 + $0x28e0] sm:$0xf]  ;;  %892 = vst [vmem:[%s13008_s15 + $0x518] sm:$0xf] %v891_v6 }
 0x15c   : > { %v895_v8 = vld [vmem:[%s13003_s14 + $0x2900] sm:$0xf]  ;;  %894 = vst [vmem:[%s13008_s15 + $0x51c] sm:$0xf] %v893_v7 }
 0x15d   : > { %v897_v9 = vld [vmem:[%s13003_s14 + $0x2920] sm:$0xf]  ;;  %896 = vst [vmem:[%s13008_s15 + $0x520] sm:$0xf] %v895_v8 }
 0x15e   : > { %v899_v10 = vld [vmem:[%s13003_s14 + $0x2940] sm:$0xf]  ;;  %898 = vst [vmem:[%s13008_s15 + $0x524] sm:$0xf] %v897_v9 }
 0x15f   : > { %v901_v11 = vld [vmem:[%s13003_s14 + $0x2960] sm:$0xf]  ;;  %900 = vst [vmem:[%s13008_s15 + $0x528] sm:$0xf] %v899_v10 }
 0x160   : > { %v903_v12 = vld [vmem:[%s13003_s14 + $0x2980] sm:$0xf]  ;;  %902 = vst [vmem:[%s13008_s15 + $0x52c] sm:$0xf] %v901_v11 }
 0x161   : > { %v905_v13 = vld [vmem:[%s13003_s14 + $0x29a0] sm:$0xf]  ;;  %904 = vst [vmem:[%s13008_s15 + $0x530] sm:$0xf] %v903_v12 }
 0x162   : > { %v907_v14 = vld [vmem:[%s13003_s14 + $0x29c0] sm:$0xf]  ;;  %906 = vst [vmem:[%s13008_s15 + $0x534] sm:$0xf] %v905_v13 }
 0x163   : > { %v909_v15 = vld [vmem:[%s13003_s14 + $0x29e0] sm:$0xf]  ;;  %908 = vst [vmem:[%s13008_s15 + $0x538] sm:$0xf] %v907_v14 }
 0x164   : > { %v911_v16 = vld [vmem:[%s13003_s14 + $0x2a00] sm:$0xf]  ;;  %910 = vst [vmem:[%s13008_s15 + $0x53c] sm:$0xf] %v909_v15 }
 0x165   : > { %v913_v17 = vld [vmem:[%s13003_s14 + $0x2a20] sm:$0xf]  ;;  %912 = vst [vmem:[%s13008_s15 + $0x540] sm:$0xf] %v911_v16 }
 0x166   : > { %v915_v18 = vld [vmem:[%s13003_s14 + $0x2a40] sm:$0xf]  ;;  %914 = vst [vmem:[%s13008_s15 + $0x544] sm:$0xf] %v913_v17 }
 0x167   : > { %v917_v19 = vld [vmem:[%s13003_s14 + $0x2a60] sm:$0xf]  ;;  %916 = vst [vmem:[%s13008_s15 + $0x548] sm:$0xf] %v915_v18 }
 0x168   : > { %v919_v20 = vld [vmem:[%s13003_s14 + $0x2a80] sm:$0xf]  ;;  %918 = vst [vmem:[%s13008_s15 + $0x54c] sm:$0xf] %v917_v19 }
 0x169   : > { %v921_v21 = vld [vmem:[%s13003_s14 + $0x2aa0] sm:$0xf]  ;;  %920 = vst [vmem:[%s13008_s15 + $0x550] sm:$0xf] %v919_v20 }
 0x16a   : > { %v923_v22 = vld [vmem:[%s13003_s14 + $0x2ac0] sm:$0xf]  ;;  %922 = vst [vmem:[%s13008_s15 + $0x554] sm:$0xf] %v921_v21 }
 0x16b   : > { %v925_v23 = vld [vmem:[%s13003_s14 + $0x2ae0] sm:$0xf]  ;;  %924 = vst [vmem:[%s13008_s15 + $0x558] sm:$0xf] %v923_v22 }
 0x16c   : > { %v927_v24 = vld [vmem:[%s13003_s14 + $0x2b00] sm:$0xf]  ;;  %926 = vst [vmem:[%s13008_s15 + $0x55c] sm:$0xf] %v925_v23 }
 0x16d   : > { %v929_v25 = vld [vmem:[%s13003_s14 + $0x2b20] sm:$0xf]  ;;  %928 = vst [vmem:[%s13008_s15 + $0x560] sm:$0xf] %v927_v24 }
 0x16e   : > { %v931_v26 = vld [vmem:[%s13003_s14 + $0x2b40] sm:$0xf]  ;;  %930 = vst [vmem:[%s13008_s15 + $0x564] sm:$0xf] %v929_v25 }
 0x16f   : > { %v933_v27 = vld [vmem:[%s13003_s14 + $0x2b60] sm:$0xf]  ;;  %932 = vst [vmem:[%s13008_s15 + $0x568] sm:$0xf] %v931_v26 }
 0x170   : > { %v935_v28 = vld [vmem:[%s13003_s14 + $0x2b80] sm:$0xf]  ;;  %934 = vst [vmem:[%s13008_s15 + $0x56c] sm:$0xf] %v933_v27 }
 0x171   : > { %v937_v29 = vld [vmem:[%s13003_s14 + $0x2ba0] sm:$0xf]  ;;  %936 = vst [vmem:[%s13008_s15 + $0x570] sm:$0xf] %v935_v28 }
 0x172   : > { %v939_v30 = vld [vmem:[%s13003_s14 + $0x2bc0] sm:$0xf]  ;;  %938 = vst [vmem:[%s13008_s15 + $0x574] sm:$0xf] %v937_v29 }
 0x173   : > { %v941_v31 = vld [vmem:[%s13003_s14 + $0x2be0] sm:$0xf]  ;;  %940 = vst [vmem:[%s13008_s15 + $0x578] sm:$0xf] %v939_v30 }
 0x174   : > { %v943_v32 = vld [vmem:[%s13003_s14 + $0x2c00] sm:$0xf]  ;;  %942 = vst [vmem:[%s13008_s15 + $0x57c] sm:$0xf] %v941_v31 }
 0x175   : > { %v945_v33 = vld [vmem:[%s13003_s14 + $0x2c20] sm:$0xf]  ;;  %944 = vst [vmem:[%s13008_s15 + $0x580] sm:$0xf] %v943_v32 }
 0x176   : > { %v947_v34 = vld [vmem:[%s13003_s14 + $0x2c40] sm:$0xf]  ;;  %946 = vst [vmem:[%s13008_s15 + $0x584] sm:$0xf] %v945_v33 }
 0x177   : > { %v949_v35 = vld [vmem:[%s13003_s14 + $0x2c60] sm:$0xf]  ;;  %948 = vst [vmem:[%s13008_s15 + $0x588] sm:$0xf] %v947_v34 }
 0x178   : > { %v951_v36 = vld [vmem:[%s13003_s14 + $0x2c80] sm:$0xf]  ;;  %950 = vst [vmem:[%s13008_s15 + $0x58c] sm:$0xf] %v949_v35 }
 0x179   : > { %v953_v37 = vld [vmem:[%s13003_s14 + $0x2ca0] sm:$0xf]  ;;  %952 = vst [vmem:[%s13008_s15 + $0x590] sm:$0xf] %v951_v36 }
 0x17a   : > { %v955_v38 = vld [vmem:[%s13003_s14 + $0x2cc0] sm:$0xf]  ;;  %954 = vst [vmem:[%s13008_s15 + $0x594] sm:$0xf] %v953_v37 }
 0x17b   : > { %v957_v39 = vld [vmem:[%s13003_s14 + $0x2ce0] sm:$0xf]  ;;  %956 = vst [vmem:[%s13008_s15 + $0x598] sm:$0xf] %v955_v38 }
 0x17c   : > { %v959_v40 = vld [vmem:[%s13003_s14 + $0x2d00] sm:$0xf]  ;;  %958 = vst [vmem:[%s13008_s15 + $0x59c] sm:$0xf] %v957_v39 }
 0x17d   : > { %v961_v41 = vld [vmem:[%s13003_s14 + $0x2d20] sm:$0xf]  ;;  %960 = vst [vmem:[%s13008_s15 + $0x5a0] sm:$0xf] %v959_v40 }
 0x17e   : > { %v963_v42 = vld [vmem:[%s13003_s14 + $0x2d40] sm:$0xf]  ;;  %962 = vst [vmem:[%s13008_s15 + $0x5a4] sm:$0xf] %v961_v41 }
 0x17f   : > { %v965_v43 = vld [vmem:[%s13003_s14 + $0x2d60] sm:$0xf]  ;;  %964 = vst [vmem:[%s13008_s15 + $0x5a8] sm:$0xf] %v963_v42 }
 0x180   : > { %v967_v44 = vld [vmem:[%s13003_s14 + $0x2d80] sm:$0xf]  ;;  %966 = vst [vmem:[%s13008_s15 + $0x5ac] sm:$0xf] %v965_v43 }
 0x181   : > { %v969_v45 = vld [vmem:[%s13003_s14 + $0x2da0] sm:$0xf]  ;;  %968 = vst [vmem:[%s13008_s15 + $0x5b0] sm:$0xf] %v967_v44 }
 0x182   : > { %v971_v46 = vld [vmem:[%s13003_s14 + $0x2dc0] sm:$0xf]  ;;  %970 = vst [vmem:[%s13008_s15 + $0x5b4] sm:$0xf] %v969_v45 }
 0x183   : > { %v973_v47 = vld [vmem:[%s13003_s14 + $0x2de0] sm:$0xf]  ;;  %972 = vst [vmem:[%s13008_s15 + $0x5b8] sm:$0xf] %v971_v46 }
 0x184   : > { %v975_v48 = vld [vmem:[%s13003_s14 + $0x2e00] sm:$0xf]  ;;  %974 = vst [vmem:[%s13008_s15 + $0x5bc] sm:$0xf] %v973_v47 }
 0x185   : > { %v977_v49 = vld [vmem:[%s13003_s14 + $0x2e20] sm:$0xf]  ;;  %976 = vst [vmem:[%s13008_s15 + $0x5c0] sm:$0xf] %v975_v48 }
 0x186   : > { %v979_v50 = vld [vmem:[%s13003_s14 + $0x2e40] sm:$0xf]  ;;  %978 = vst [vmem:[%s13008_s15 + $0x5c4] sm:$0xf] %v977_v49 }
 0x187   : > { %v981_v51 = vld [vmem:[%s13003_s14 + $0x2e60] sm:$0xf]  ;;  %980 = vst [vmem:[%s13008_s15 + $0x5c8] sm:$0xf] %v979_v50 }
 0x188   : > { %v983_v52 = vld [vmem:[%s13003_s14 + $0x2e80] sm:$0xf]  ;;  %982 = vst [vmem:[%s13008_s15 + $0x5cc] sm:$0xf] %v981_v51 }
 0x189   : > { %v985_v53 = vld [vmem:[%s13003_s14 + $0x2ea0] sm:$0xf]  ;;  %984 = vst [vmem:[%s13008_s15 + $0x5d0] sm:$0xf] %v983_v52 }
 0x18a   : > { %v987_v54 = vld [vmem:[%s13003_s14 + $0x2ec0] sm:$0xf]  ;;  %986 = vst [vmem:[%s13008_s15 + $0x5d4] sm:$0xf] %v985_v53 }
 0x18b   : > { %v989_v55 = vld [vmem:[%s13003_s14 + $0x2ee0] sm:$0xf]  ;;  %988 = vst [vmem:[%s13008_s15 + $0x5d8] sm:$0xf] %v987_v54 }
 0x18c   : > { %v991_v56 = vld [vmem:[%s13003_s14 + $0x2f00] sm:$0xf]  ;;  %990 = vst [vmem:[%s13008_s15 + $0x5dc] sm:$0xf] %v989_v55 }
 0x18d   : > { %v993_v57 = vld [vmem:[%s13003_s14 + $0x2f20] sm:$0xf]  ;;  %992 = vst [vmem:[%s13008_s15 + $0x5e0] sm:$0xf] %v991_v56 }
 0x18e   : > { %v995_v58 = vld [vmem:[%s13003_s14 + $0x2f40] sm:$0xf]  ;;  %994 = vst [vmem:[%s13008_s15 + $0x5e4] sm:$0xf] %v993_v57 }
 0x18f   : > { %v997_v59 = vld [vmem:[%s13003_s14 + $0x2f60] sm:$0xf]  ;;  %996 = vst [vmem:[%s13008_s15 + $0x5e8] sm:$0xf] %v995_v58 }
 0x190   : > { %v999_v60 = vld [vmem:[%s13003_s14 + $0x2f80] sm:$0xf]  ;;  %998 = vst [vmem:[%s13008_s15 + $0x5ec] sm:$0xf] %v997_v59 }
 0x191   : > { %v1001_v61 = vld [vmem:[%s13003_s14 + $0x2fa0] sm:$0xf]  ;;  %1000 = vst [vmem:[%s13008_s15 + $0x5f0] sm:$0xf] %v999_v60 }
 0x192   : > { %v1003_v62 = vld [vmem:[%s13003_s14 + $0x2fc0] sm:$0xf]  ;;  %1002 = vst [vmem:[%s13008_s15 + $0x5f4] sm:$0xf] %v1001_v61 }
 0x193   : > { %v1005_v63 = vld [vmem:[%s13003_s14 + $0x2fe0] sm:$0xf]  ;;  %1004 = vst [vmem:[%s13008_s15 + $0x5f8] sm:$0xf] %v1003_v62 }
 0x194   : > { %v1007_v0 = vld [vmem:[%s13003_s14 + $0x3000] sm:$0xf]  ;;  %1006 = vst [vmem:[%s13008_s15 + $0x5fc] sm:$0xf] %v1005_v63 }
 0x195   : > { %v1009_v1 = vld [vmem:[%s13003_s14 + $0x3020] sm:$0xf]  ;;  %1008 = vst [vmem:[%s13008_s15 + $0x600] sm:$0xf] %v1007_v0 }
 0x196   : > { %v1011_v2 = vld [vmem:[%s13003_s14 + $0x3040] sm:$0xf]  ;;  %1010 = vst [vmem:[%s13008_s15 + $0x604] sm:$0xf] %v1009_v1 }
 0x197   : > { %v1013_v3 = vld [vmem:[%s13003_s14 + $0x3060] sm:$0xf]  ;;  %1012 = vst [vmem:[%s13008_s15 + $0x608] sm:$0xf] %v1011_v2 }
 0x198   : > { %v1015_v4 = vld [vmem:[%s13003_s14 + $0x3080] sm:$0xf]  ;;  %1014 = vst [vmem:[%s13008_s15 + $0x60c] sm:$0xf] %v1013_v3 }
 0x199   : > { %v1017_v5 = vld [vmem:[%s13003_s14 + $0x30a0] sm:$0xf]  ;;  %1016 = vst [vmem:[%s13008_s15 + $0x610] sm:$0xf] %v1015_v4 }
 0x19a   : > { %v1019_v6 = vld [vmem:[%s13003_s14 + $0x30c0] sm:$0xf]  ;;  %1018 = vst [vmem:[%s13008_s15 + $0x614] sm:$0xf] %v1017_v5 }
 0x19b   : > { %v1021_v7 = vld [vmem:[%s13003_s14 + $0x30e0] sm:$0xf]  ;;  %1020 = vst [vmem:[%s13008_s15 + $0x618] sm:$0xf] %v1019_v6 }
 0x19c   : > { %v1023_v8 = vld [vmem:[%s13003_s14 + $0x3100] sm:$0xf]  ;;  %1022 = vst [vmem:[%s13008_s15 + $0x61c] sm:$0xf] %v1021_v7 }
 0x19d   : > { %v1025_v9 = vld [vmem:[%s13003_s14 + $0x3120] sm:$0xf]  ;;  %1024 = vst [vmem:[%s13008_s15 + $0x620] sm:$0xf] %v1023_v8 }
 0x19e   : > { %v1027_v10 = vld [vmem:[%s13003_s14 + $0x3140] sm:$0xf]  ;;  %1026 = vst [vmem:[%s13008_s15 + $0x624] sm:$0xf] %v1025_v9 }
 0x19f   : > { %v1029_v11 = vld [vmem:[%s13003_s14 + $0x3160] sm:$0xf]  ;;  %1028 = vst [vmem:[%s13008_s15 + $0x628] sm:$0xf] %v1027_v10 }
 0x1a0   : > { %v1031_v12 = vld [vmem:[%s13003_s14 + $0x3180] sm:$0xf]  ;;  %1030 = vst [vmem:[%s13008_s15 + $0x62c] sm:$0xf] %v1029_v11 }
 0x1a1   : > { %v1033_v13 = vld [vmem:[%s13003_s14 + $0x31a0] sm:$0xf]  ;;  %1032 = vst [vmem:[%s13008_s15 + $0x630] sm:$0xf] %v1031_v12 }
 0x1a2   : > { %v1035_v14 = vld [vmem:[%s13003_s14 + $0x31c0] sm:$0xf]  ;;  %1034 = vst [vmem:[%s13008_s15 + $0x634] sm:$0xf] %v1033_v13 }
 0x1a3   : > { %v1037_v15 = vld [vmem:[%s13003_s14 + $0x31e0] sm:$0xf]  ;;  %1036 = vst [vmem:[%s13008_s15 + $0x638] sm:$0xf] %v1035_v14 }
 0x1a4   : > { %v1039_v16 = vld [vmem:[%s13003_s14 + $0x3200] sm:$0xf]  ;;  %1038 = vst [vmem:[%s13008_s15 + $0x63c] sm:$0xf] %v1037_v15 }
 0x1a5   : > { %v1041_v17 = vld [vmem:[%s13003_s14 + $0x3220] sm:$0xf]  ;;  %1040 = vst [vmem:[%s13008_s15 + $0x640] sm:$0xf] %v1039_v16 }
 0x1a6   : > { %v1043_v18 = vld [vmem:[%s13003_s14 + $0x3240] sm:$0xf]  ;;  %1042 = vst [vmem:[%s13008_s15 + $0x644] sm:$0xf] %v1041_v17 }
 0x1a7   : > { %v1045_v19 = vld [vmem:[%s13003_s14 + $0x3260] sm:$0xf]  ;;  %1044 = vst [vmem:[%s13008_s15 + $0x648] sm:$0xf] %v1043_v18 }
 0x1a8   : > { %v1047_v20 = vld [vmem:[%s13003_s14 + $0x3280] sm:$0xf]  ;;  %1046 = vst [vmem:[%s13008_s15 + $0x64c] sm:$0xf] %v1045_v19 }
 0x1a9   : > { %v1049_v21 = vld [vmem:[%s13003_s14 + $0x32a0] sm:$0xf]  ;;  %1048 = vst [vmem:[%s13008_s15 + $0x650] sm:$0xf] %v1047_v20 }
 0x1aa   : > { %v1051_v22 = vld [vmem:[%s13003_s14 + $0x32c0] sm:$0xf]  ;;  %1050 = vst [vmem:[%s13008_s15 + $0x654] sm:$0xf] %v1049_v21 }
 0x1ab   : > { %v1053_v23 = vld [vmem:[%s13003_s14 + $0x32e0] sm:$0xf]  ;;  %1052 = vst [vmem:[%s13008_s15 + $0x658] sm:$0xf] %v1051_v22 }
 0x1ac   : > { %v1055_v24 = vld [vmem:[%s13003_s14 + $0x3300] sm:$0xf]  ;;  %1054 = vst [vmem:[%s13008_s15 + $0x65c] sm:$0xf] %v1053_v23 }
 0x1ad   : > { %v1057_v25 = vld [vmem:[%s13003_s14 + $0x3320] sm:$0xf]  ;;  %1056 = vst [vmem:[%s13008_s15 + $0x660] sm:$0xf] %v1055_v24 }
 0x1ae   : > { %v1059_v26 = vld [vmem:[%s13003_s14 + $0x3340] sm:$0xf]  ;;  %1058 = vst [vmem:[%s13008_s15 + $0x664] sm:$0xf] %v1057_v25 }
 0x1af   : > { %v1061_v27 = vld [vmem:[%s13003_s14 + $0x3360] sm:$0xf]  ;;  %1060 = vst [vmem:[%s13008_s15 + $0x668] sm:$0xf] %v1059_v26 }
 0x1b0   : > { %v1063_v28 = vld [vmem:[%s13003_s14 + $0x3380] sm:$0xf]  ;;  %1062 = vst [vmem:[%s13008_s15 + $0x66c] sm:$0xf] %v1061_v27 }
 0x1b1   : > { %v1065_v29 = vld [vmem:[%s13003_s14 + $0x33a0] sm:$0xf]  ;;  %1064 = vst [vmem:[%s13008_s15 + $0x670] sm:$0xf] %v1063_v28 }
 0x1b2   : > { %v1067_v30 = vld [vmem:[%s13003_s14 + $0x33c0] sm:$0xf]  ;;  %1066 = vst [vmem:[%s13008_s15 + $0x674] sm:$0xf] %v1065_v29 }
 0x1b3   : > { %v1069_v31 = vld [vmem:[%s13003_s14 + $0x33e0] sm:$0xf]  ;;  %1068 = vst [vmem:[%s13008_s15 + $0x678] sm:$0xf] %v1067_v30 }
 0x1b4   : > { %v1071_v32 = vld [vmem:[%s13003_s14 + $0x3400] sm:$0xf]  ;;  %1070 = vst [vmem:[%s13008_s15 + $0x67c] sm:$0xf] %v1069_v31 }
 0x1b5   : > { %v1073_v33 = vld [vmem:[%s13003_s14 + $0x3420] sm:$0xf]  ;;  %1072 = vst [vmem:[%s13008_s15 + $0x680] sm:$0xf] %v1071_v32 }
 0x1b6   : > { %v1075_v34 = vld [vmem:[%s13003_s14 + $0x3440] sm:$0xf]  ;;  %1074 = vst [vmem:[%s13008_s15 + $0x684] sm:$0xf] %v1073_v33 }
 0x1b7   : > { %v1077_v35 = vld [vmem:[%s13003_s14 + $0x3460] sm:$0xf]  ;;  %1076 = vst [vmem:[%s13008_s15 + $0x688] sm:$0xf] %v1075_v34 }
 0x1b8   : > { %v1079_v36 = vld [vmem:[%s13003_s14 + $0x3480] sm:$0xf]  ;;  %1078 = vst [vmem:[%s13008_s15 + $0x68c] sm:$0xf] %v1077_v35 }
 0x1b9   : > { %v1081_v37 = vld [vmem:[%s13003_s14 + $0x34a0] sm:$0xf]  ;;  %1080 = vst [vmem:[%s13008_s15 + $0x690] sm:$0xf] %v1079_v36 }
 0x1ba   : > { %v1083_v38 = vld [vmem:[%s13003_s14 + $0x34c0] sm:$0xf]  ;;  %1082 = vst [vmem:[%s13008_s15 + $0x694] sm:$0xf] %v1081_v37 }
 0x1bb   : > { %v1085_v39 = vld [vmem:[%s13003_s14 + $0x34e0] sm:$0xf]  ;;  %1084 = vst [vmem:[%s13008_s15 + $0x698] sm:$0xf] %v1083_v38 }
 0x1bc   : > { %v1087_v40 = vld [vmem:[%s13003_s14 + $0x3500] sm:$0xf]  ;;  %1086 = vst [vmem:[%s13008_s15 + $0x69c] sm:$0xf] %v1085_v39 }
 0x1bd   : > { %v1089_v41 = vld [vmem:[%s13003_s14 + $0x3520] sm:$0xf]  ;;  %1088 = vst [vmem:[%s13008_s15 + $0x6a0] sm:$0xf] %v1087_v40 }
 0x1be   : > { %v1091_v42 = vld [vmem:[%s13003_s14 + $0x3540] sm:$0xf]  ;;  %1090 = vst [vmem:[%s13008_s15 + $0x6a4] sm:$0xf] %v1089_v41 }
 0x1bf   : > { %v1093_v43 = vld [vmem:[%s13003_s14 + $0x3560] sm:$0xf]  ;;  %1092 = vst [vmem:[%s13008_s15 + $0x6a8] sm:$0xf] %v1091_v42 }
 0x1c0   : > { %v1095_v44 = vld [vmem:[%s13003_s14 + $0x3580] sm:$0xf]  ;;  %1094 = vst [vmem:[%s13008_s15 + $0x6ac] sm:$0xf] %v1093_v43 }
 0x1c1   : > { %v1097_v45 = vld [vmem:[%s13003_s14 + $0x35a0] sm:$0xf]  ;;  %1096 = vst [vmem:[%s13008_s15 + $0x6b0] sm:$0xf] %v1095_v44 }
 0x1c2   : > { %v1099_v46 = vld [vmem:[%s13003_s14 + $0x35c0] sm:$0xf]  ;;  %1098 = vst [vmem:[%s13008_s15 + $0x6b4] sm:$0xf] %v1097_v45 }
 0x1c3   : > { %v1101_v47 = vld [vmem:[%s13003_s14 + $0x35e0] sm:$0xf]  ;;  %1100 = vst [vmem:[%s13008_s15 + $0x6b8] sm:$0xf] %v1099_v46 }
 0x1c4   : > { %v1103_v48 = vld [vmem:[%s13003_s14 + $0x3600] sm:$0xf]  ;;  %1102 = vst [vmem:[%s13008_s15 + $0x6bc] sm:$0xf] %v1101_v47 }
 0x1c5   : > { %v1105_v49 = vld [vmem:[%s13003_s14 + $0x3620] sm:$0xf]  ;;  %1104 = vst [vmem:[%s13008_s15 + $0x6c0] sm:$0xf] %v1103_v48 }
 0x1c6   : > { %v1107_v50 = vld [vmem:[%s13003_s14 + $0x3640] sm:$0xf]  ;;  %1106 = vst [vmem:[%s13008_s15 + $0x6c4] sm:$0xf] %v1105_v49 }
 0x1c7   : > { %v1109_v51 = vld [vmem:[%s13003_s14 + $0x3660] sm:$0xf]  ;;  %1108 = vst [vmem:[%s13008_s15 + $0x6c8] sm:$0xf] %v1107_v50 }
 0x1c8   : > { %v1111_v52 = vld [vmem:[%s13003_s14 + $0x3680] sm:$0xf]  ;;  %1110 = vst [vmem:[%s13008_s15 + $0x6cc] sm:$0xf] %v1109_v51 }
 0x1c9   : > { %v1113_v53 = vld [vmem:[%s13003_s14 + $0x36a0] sm:$0xf]  ;;  %1112 = vst [vmem:[%s13008_s15 + $0x6d0] sm:$0xf] %v1111_v52 }
 0x1ca   : > { %v1115_v54 = vld [vmem:[%s13003_s14 + $0x36c0] sm:$0xf]  ;;  %1114 = vst [vmem:[%s13008_s15 + $0x6d4] sm:$0xf] %v1113_v53 }
 0x1cb   : > { %v1117_v55 = vld [vmem:[%s13003_s14 + $0x36e0] sm:$0xf]  ;;  %1116 = vst [vmem:[%s13008_s15 + $0x6d8] sm:$0xf] %v1115_v54 }
 0x1cc   : > { %v1119_v56 = vld [vmem:[%s13003_s14 + $0x3700] sm:$0xf]  ;;  %1118 = vst [vmem:[%s13008_s15 + $0x6dc] sm:$0xf] %v1117_v55 }
 0x1cd   : > { %v1121_v57 = vld [vmem:[%s13003_s14 + $0x3720] sm:$0xf]  ;;  %1120 = vst [vmem:[%s13008_s15 + $0x6e0] sm:$0xf] %v1119_v56 }
 0x1ce   : > { %v1123_v58 = vld [vmem:[%s13003_s14 + $0x3740] sm:$0xf]  ;;  %1122 = vst [vmem:[%s13008_s15 + $0x6e4] sm:$0xf] %v1121_v57 }
 0x1cf   : > { %v1125_v59 = vld [vmem:[%s13003_s14 + $0x3760] sm:$0xf]  ;;  %1124 = vst [vmem:[%s13008_s15 + $0x6e8] sm:$0xf] %v1123_v58 }
 0x1d0   : > { %v1127_v60 = vld [vmem:[%s13003_s14 + $0x3780] sm:$0xf]  ;;  %1126 = vst [vmem:[%s13008_s15 + $0x6ec] sm:$0xf] %v1125_v59 }
 0x1d1   : > { %v1129_v61 = vld [vmem:[%s13003_s14 + $0x37a0] sm:$0xf]  ;;  %1128 = vst [vmem:[%s13008_s15 + $0x6f0] sm:$0xf] %v1127_v60 }
 0x1d2   : > { %v1131_v62 = vld [vmem:[%s13003_s14 + $0x37c0] sm:$0xf]  ;;  %1130 = vst [vmem:[%s13008_s15 + $0x6f4] sm:$0xf] %v1129_v61 }
 0x1d3   : > { %v1133_v63 = vld [vmem:[%s13003_s14 + $0x37e0] sm:$0xf]  ;;  %1132 = vst [vmem:[%s13008_s15 + $0x6f8] sm:$0xf] %v1131_v62 }
 0x1d4   : > { %v1135_v0 = vld [vmem:[%s13003_s14 + $0x3800] sm:$0xf]  ;;  %1134 = vst [vmem:[%s13008_s15 + $0x6fc] sm:$0xf] %v1133_v63 }
 0x1d5   : > { %v1137_v1 = vld [vmem:[%s13003_s14 + $0x3820] sm:$0xf]  ;;  %1136 = vst [vmem:[%s13008_s15 + $0x700] sm:$0xf] %v1135_v0 }
 0x1d6   : > { %v1139_v2 = vld [vmem:[%s13003_s14 + $0x3840] sm:$0xf]  ;;  %1138 = vst [vmem:[%s13008_s15 + $0x704] sm:$0xf] %v1137_v1 }
 0x1d7   : > { %v1141_v3 = vld [vmem:[%s13003_s14 + $0x3860] sm:$0xf]  ;;  %1140 = vst [vmem:[%s13008_s15 + $0x708] sm:$0xf] %v1139_v2 }
 0x1d8   : > { %v1143_v4 = vld [vmem:[%s13003_s14 + $0x3880] sm:$0xf]  ;;  %1142 = vst [vmem:[%s13008_s15 + $0x70c] sm:$0xf] %v1141_v3 }
 0x1d9   : > { %v1145_v5 = vld [vmem:[%s13003_s14 + $0x38a0] sm:$0xf]  ;;  %1144 = vst [vmem:[%s13008_s15 + $0x710] sm:$0xf] %v1143_v4 }
 0x1da   : > { %v1147_v6 = vld [vmem:[%s13003_s14 + $0x38c0] sm:$0xf]  ;;  %1146 = vst [vmem:[%s13008_s15 + $0x714] sm:$0xf] %v1145_v5 }
 0x1db   : > { %v1149_v7 = vld [vmem:[%s13003_s14 + $0x38e0] sm:$0xf]  ;;  %1148 = vst [vmem:[%s13008_s15 + $0x718] sm:$0xf] %v1147_v6 }
 0x1dc   : > { %v1151_v8 = vld [vmem:[%s13003_s14 + $0x3900] sm:$0xf]  ;;  %1150 = vst [vmem:[%s13008_s15 + $0x71c] sm:$0xf] %v1149_v7 }
 0x1dd   : > { %v1153_v9 = vld [vmem:[%s13003_s14 + $0x3920] sm:$0xf]  ;;  %1152 = vst [vmem:[%s13008_s15 + $0x720] sm:$0xf] %v1151_v8 }
 0x1de   : > { %v1155_v10 = vld [vmem:[%s13003_s14 + $0x3940] sm:$0xf]  ;;  %1154 = vst [vmem:[%s13008_s15 + $0x724] sm:$0xf] %v1153_v9 }
 0x1df   : > { %v1157_v11 = vld [vmem:[%s13003_s14 + $0x3960] sm:$0xf]  ;;  %1156 = vst [vmem:[%s13008_s15 + $0x728] sm:$0xf] %v1155_v10 }
 0x1e0   : > { %v1159_v12 = vld [vmem:[%s13003_s14 + $0x3980] sm:$0xf]  ;;  %1158 = vst [vmem:[%s13008_s15 + $0x72c] sm:$0xf] %v1157_v11 }
 0x1e1   : > { %v1161_v13 = vld [vmem:[%s13003_s14 + $0x39a0] sm:$0xf]  ;;  %1160 = vst [vmem:[%s13008_s15 + $0x730] sm:$0xf] %v1159_v12 }
 0x1e2   : > { %v1163_v14 = vld [vmem:[%s13003_s14 + $0x39c0] sm:$0xf]  ;;  %1162 = vst [vmem:[%s13008_s15 + $0x734] sm:$0xf] %v1161_v13 }
 0x1e3   : > { %v1165_v15 = vld [vmem:[%s13003_s14 + $0x39e0] sm:$0xf]  ;;  %1164 = vst [vmem:[%s13008_s15 + $0x738] sm:$0xf] %v1163_v14 }
 0x1e4   : > { %v1167_v16 = vld [vmem:[%s13003_s14 + $0x3a00] sm:$0xf]  ;;  %1166 = vst [vmem:[%s13008_s15 + $0x73c] sm:$0xf] %v1165_v15 }
 0x1e5   : > { %v1169_v17 = vld [vmem:[%s13003_s14 + $0x3a20] sm:$0xf]  ;;  %1168 = vst [vmem:[%s13008_s15 + $0x740] sm:$0xf] %v1167_v16 }
 0x1e6   : > { %v1171_v18 = vld [vmem:[%s13003_s14 + $0x3a40] sm:$0xf]  ;;  %1170 = vst [vmem:[%s13008_s15 + $0x744] sm:$0xf] %v1169_v17 }
 0x1e7   : > { %v1173_v19 = vld [vmem:[%s13003_s14 + $0x3a60] sm:$0xf]  ;;  %1172 = vst [vmem:[%s13008_s15 + $0x748] sm:$0xf] %v1171_v18 }
 0x1e8   : > { %v1175_v20 = vld [vmem:[%s13003_s14 + $0x3a80] sm:$0xf]  ;;  %1174 = vst [vmem:[%s13008_s15 + $0x74c] sm:$0xf] %v1173_v19 }
 0x1e9   : > { %v1177_v21 = vld [vmem:[%s13003_s14 + $0x3aa0] sm:$0xf]  ;;  %1176 = vst [vmem:[%s13008_s15 + $0x750] sm:$0xf] %v1175_v20 }
 0x1ea   : > { %v1179_v22 = vld [vmem:[%s13003_s14 + $0x3ac0] sm:$0xf]  ;;  %1178 = vst [vmem:[%s13008_s15 + $0x754] sm:$0xf] %v1177_v21 }
 0x1eb   : > { %v1181_v23 = vld [vmem:[%s13003_s14 + $0x3ae0] sm:$0xf]  ;;  %1180 = vst [vmem:[%s13008_s15 + $0x758] sm:$0xf] %v1179_v22 }
 0x1ec   : > { %v1183_v24 = vld [vmem:[%s13003_s14 + $0x3b00] sm:$0xf]  ;;  %1182 = vst [vmem:[%s13008_s15 + $0x75c] sm:$0xf] %v1181_v23 }
 0x1ed   : > { %v1185_v25 = vld [vmem:[%s13003_s14 + $0x3b20] sm:$0xf]  ;;  %1184 = vst [vmem:[%s13008_s15 + $0x760] sm:$0xf] %v1183_v24 }
 0x1ee   : > { %v1187_v26 = vld [vmem:[%s13003_s14 + $0x3b40] sm:$0xf]  ;;  %1186 = vst [vmem:[%s13008_s15 + $0x764] sm:$0xf] %v1185_v25 }
 0x1ef   : > { %v1189_v27 = vld [vmem:[%s13003_s14 + $0x3b60] sm:$0xf]  ;;  %1188 = vst [vmem:[%s13008_s15 + $0x768] sm:$0xf] %v1187_v26 }
 0x1f0   : > { %v1191_v28 = vld [vmem:[%s13003_s14 + $0x3b80] sm:$0xf]  ;;  %1190 = vst [vmem:[%s13008_s15 + $0x76c] sm:$0xf] %v1189_v27 }
 0x1f1   : > { %v1193_v29 = vld [vmem:[%s13003_s14 + $0x3ba0] sm:$0xf]  ;;  %1192 = vst [vmem:[%s13008_s15 + $0x770] sm:$0xf] %v1191_v28 }
 0x1f2   : > { %v1195_v30 = vld [vmem:[%s13003_s14 + $0x3bc0] sm:$0xf]  ;;  %1194 = vst [vmem:[%s13008_s15 + $0x774] sm:$0xf] %v1193_v29 }
 0x1f3   : > { %v1197_v31 = vld [vmem:[%s13003_s14 + $0x3be0] sm:$0xf]  ;;  %1196 = vst [vmem:[%s13008_s15 + $0x778] sm:$0xf] %v1195_v30 }
 0x1f4   : > { %v1199_v32 = vld [vmem:[%s13003_s14 + $0x3c00] sm:$0xf]  ;;  %1198 = vst [vmem:[%s13008_s15 + $0x77c] sm:$0xf] %v1197_v31 }
 0x1f5   : > { %v1201_v33 = vld [vmem:[%s13003_s14 + $0x3c20] sm:$0xf]  ;;  %1200 = vst [vmem:[%s13008_s15 + $0x780] sm:$0xf] %v1199_v32 }
 0x1f6   : > { %v1203_v34 = vld [vmem:[%s13003_s14 + $0x3c40] sm:$0xf]  ;;  %1202 = vst [vmem:[%s13008_s15 + $0x784] sm:$0xf] %v1201_v33 }
 0x1f7   : > { %v1205_v35 = vld [vmem:[%s13003_s14 + $0x3c60] sm:$0xf]  ;;  %1204 = vst [vmem:[%s13008_s15 + $0x788] sm:$0xf] %v1203_v34 }
 0x1f8   : > { %v1207_v36 = vld [vmem:[%s13003_s14 + $0x3c80] sm:$0xf]  ;;  %1206 = vst [vmem:[%s13008_s15 + $0x78c] sm:$0xf] %v1205_v35 }
 0x1f9   : > { %v1209_v37 = vld [vmem:[%s13003_s14 + $0x3ca0] sm:$0xf]  ;;  %1208 = vst [vmem:[%s13008_s15 + $0x790] sm:$0xf] %v1207_v36 }
 0x1fa   : > { %v1211_v38 = vld [vmem:[%s13003_s14 + $0x3cc0] sm:$0xf]  ;;  %1210 = vst [vmem:[%s13008_s15 + $0x794] sm:$0xf] %v1209_v37 }
 0x1fb   : > { %v1213_v39 = vld [vmem:[%s13003_s14 + $0x3ce0] sm:$0xf]  ;;  %1212 = vst [vmem:[%s13008_s15 + $0x798] sm:$0xf] %v1211_v38 }
 0x1fc   : > { %v1215_v40 = vld [vmem:[%s13003_s14 + $0x3d00] sm:$0xf]  ;;  %1214 = vst [vmem:[%s13008_s15 + $0x79c] sm:$0xf] %v1213_v39 }
 0x1fd   : > { %v1217_v41 = vld [vmem:[%s13003_s14 + $0x3d20] sm:$0xf]  ;;  %1216 = vst [vmem:[%s13008_s15 + $0x7a0] sm:$0xf] %v1215_v40 }
 0x1fe   : > { %v1219_v42 = vld [vmem:[%s13003_s14 + $0x3d40] sm:$0xf]  ;;  %1218 = vst [vmem:[%s13008_s15 + $0x7a4] sm:$0xf] %v1217_v41 }
 0x1ff   : > { %v1221_v43 = vld [vmem:[%s13003_s14 + $0x3d60] sm:$0xf]  ;;  %1220 = vst [vmem:[%s13008_s15 + $0x7a8] sm:$0xf] %v1219_v42 }
 0x200   : > { %v1223_v44 = vld [vmem:[%s13003_s14 + $0x3d80] sm:$0xf]  ;;  %1222 = vst [vmem:[%s13008_s15 + $0x7ac] sm:$0xf] %v1221_v43 }
 0x201   : > { %v1225_v45 = vld [vmem:[%s13003_s14 + $0x3da0] sm:$0xf]  ;;  %1224 = vst [vmem:[%s13008_s15 + $0x7b0] sm:$0xf] %v1223_v44 }
 0x202   : > { %v1227_v46 = vld [vmem:[%s13003_s14 + $0x3dc0] sm:$0xf]  ;;  %1226 = vst [vmem:[%s13008_s15 + $0x7b4] sm:$0xf] %v1225_v45 }
 0x203   : > { %v1229_v47 = vld [vmem:[%s13003_s14 + $0x3de0] sm:$0xf]  ;;  %1228 = vst [vmem:[%s13008_s15 + $0x7b8] sm:$0xf] %v1227_v46 }
 0x204   : > { %v1231_v48 = vld [vmem:[%s13003_s14 + $0x3e00] sm:$0xf]  ;;  %1230 = vst [vmem:[%s13008_s15 + $0x7bc] sm:$0xf] %v1229_v47 }
 0x205   : > { %v1233_v49 = vld [vmem:[%s13003_s14 + $0x3e20] sm:$0xf]  ;;  %1232 = vst [vmem:[%s13008_s15 + $0x7c0] sm:$0xf] %v1231_v48 }
 0x206   : > { %v1235_v50 = vld [vmem:[%s13003_s14 + $0x3e40] sm:$0xf]  ;;  %1234 = vst [vmem:[%s13008_s15 + $0x7c4] sm:$0xf] %v1233_v49 }
 0x207   : > { %v1237_v51 = vld [vmem:[%s13003_s14 + $0x3e60] sm:$0xf]  ;;  %1236 = vst [vmem:[%s13008_s15 + $0x7c8] sm:$0xf] %v1235_v50 }
 0x208   : > { %v1239_v52 = vld [vmem:[%s13003_s14 + $0x3e80] sm:$0xf]  ;;  %1238 = vst [vmem:[%s13008_s15 + $0x7cc] sm:$0xf] %v1237_v51 }
 0x209   : > { %v1241_v53 = vld [vmem:[%s13003_s14 + $0x3ea0] sm:$0xf]  ;;  %1240 = vst [vmem:[%s13008_s15 + $0x7d0] sm:$0xf] %v1239_v52 }
 0x20a   : > { %v1243_v54 = vld [vmem:[%s13003_s14 + $0x3ec0] sm:$0xf]  ;;  %1242 = vst [vmem:[%s13008_s15 + $0x7d4] sm:$0xf] %v1241_v53 }
 0x20b   : > { %v1245_v55 = vld [vmem:[%s13003_s14 + $0x3ee0] sm:$0xf]  ;;  %1244 = vst [vmem:[%s13008_s15 + $0x7d8] sm:$0xf] %v1243_v54 }
 0x20c   : > { %v1247_v56 = vld [vmem:[%s13003_s14 + $0x3f00] sm:$0xf]  ;;  %1246 = vst [vmem:[%s13008_s15 + $0x7dc] sm:$0xf] %v1245_v55 }
 0x20d   : > { %v1249_v57 = vld [vmem:[%s13003_s14 + $0x3f20] sm:$0xf]  ;;  %1248 = vst [vmem:[%s13008_s15 + $0x7e0] sm:$0xf] %v1247_v56 }
 0x20e   : > { %v1251_v58 = vld [vmem:[%s13003_s14 + $0x3f40] sm:$0xf]  ;;  %1250 = vst [vmem:[%s13008_s15 + $0x7e4] sm:$0xf] %v1249_v57 }
 0x20f   : > { %v1253_v59 = vld [vmem:[%s13003_s14 + $0x3f60] sm:$0xf]  ;;  %1252 = vst [vmem:[%s13008_s15 + $0x7e8] sm:$0xf] %v1251_v58 }
 0x210   : > { %v1255_v60 = vld [vmem:[%s13003_s14 + $0x3f80] sm:$0xf]  ;;  %1254 = vst [vmem:[%s13008_s15 + $0x7ec] sm:$0xf] %v1253_v59 }
 0x211   : > { %v1257_v61 = vld [vmem:[%s13003_s14 + $0x3fa0] sm:$0xf]  ;;  %1256 = vst [vmem:[%s13008_s15 + $0x7f0] sm:$0xf] %v1255_v60 }
 0x212   : > { %v1259_v62 = vld [vmem:[%s13003_s14 + $0x3fc0] sm:$0xf]  ;;  %1258 = vst [vmem:[%s13008_s15 + $0x7f4] sm:$0xf] %v1257_v61 }
 0x213   : > { %v1261_v63 = vld [vmem:[%s13003_s14 + $0x3fe0] sm:$0xf]  ;;  %1260 = vst [vmem:[%s13008_s15 + $0x7f8] sm:$0xf] %v1259_v62 }
 0x214   : > { %v1263_v0 = vld [vmem:[%s13003_s14 + $0x4000] sm:$0xf]  ;;  %1262 = vst [vmem:[%s13008_s15 + $0x7fc] sm:$0xf] %v1261_v63 }
 0x215   : > { %v1265_v1 = vld [vmem:[%s13003_s14 + $0x4020] sm:$0xf]  ;;  %1264 = vst [vmem:[%s13008_s15 + $0x800] sm:$0xf] %v1263_v0 }
 0x216   : > { %v1267_v2 = vld [vmem:[%s13003_s14 + $0x4040] sm:$0xf]  ;;  %1266 = vst [vmem:[%s13008_s15 + $0x804] sm:$0xf] %v1265_v1 }
 0x217   : > { %v1269_v3 = vld [vmem:[%s13003_s14 + $0x4060] sm:$0xf]  ;;  %1268 = vst [vmem:[%s13008_s15 + $0x808] sm:$0xf] %v1267_v2 }
 0x218   : > { %v1271_v4 = vld [vmem:[%s13003_s14 + $0x4080] sm:$0xf]  ;;  %1270 = vst [vmem:[%s13008_s15 + $0x80c] sm:$0xf] %v1269_v3 }
 0x219   : > { %v1273_v5 = vld [vmem:[%s13003_s14 + $0x40a0] sm:$0xf]  ;;  %1272 = vst [vmem:[%s13008_s15 + $0x810] sm:$0xf] %v1271_v4 }
 0x21a   : > { %v1275_v6 = vld [vmem:[%s13003_s14 + $0x40c0] sm:$0xf]  ;;  %1274 = vst [vmem:[%s13008_s15 + $0x814] sm:$0xf] %v1273_v5 }
 0x21b   : > { %v1277_v7 = vld [vmem:[%s13003_s14 + $0x40e0] sm:$0xf]  ;;  %1276 = vst [vmem:[%s13008_s15 + $0x818] sm:$0xf] %v1275_v6 }
 0x21c   : > { %v1279_v8 = vld [vmem:[%s13003_s14 + $0x4100] sm:$0xf]  ;;  %1278 = vst [vmem:[%s13008_s15 + $0x81c] sm:$0xf] %v1277_v7 }
 0x21d   : > { %v1281_v9 = vld [vmem:[%s13003_s14 + $0x4120] sm:$0xf]  ;;  %1280 = vst [vmem:[%s13008_s15 + $0x820] sm:$0xf] %v1279_v8 }
 0x21e   : > { %v1283_v10 = vld [vmem:[%s13003_s14 + $0x4140] sm:$0xf]  ;;  %1282 = vst [vmem:[%s13008_s15 + $0x824] sm:$0xf] %v1281_v9 }
 0x21f   : > { %v1285_v11 = vld [vmem:[%s13003_s14 + $0x4160] sm:$0xf]  ;;  %1284 = vst [vmem:[%s13008_s15 + $0x828] sm:$0xf] %v1283_v10 }
 0x220   : > { %v1287_v12 = vld [vmem:[%s13003_s14 + $0x4180] sm:$0xf]  ;;  %1286 = vst [vmem:[%s13008_s15 + $0x82c] sm:$0xf] %v1285_v11 }
 0x221   : > { %v1289_v13 = vld [vmem:[%s13003_s14 + $0x41a0] sm:$0xf]  ;;  %1288 = vst [vmem:[%s13008_s15 + $0x830] sm:$0xf] %v1287_v12 }
 0x222   : > { %v1291_v14 = vld [vmem:[%s13003_s14 + $0x41c0] sm:$0xf]  ;;  %1290 = vst [vmem:[%s13008_s15 + $0x834] sm:$0xf] %v1289_v13 }
 0x223   : > { %v1293_v15 = vld [vmem:[%s13003_s14 + $0x41e0] sm:$0xf]  ;;  %1292 = vst [vmem:[%s13008_s15 + $0x838] sm:$0xf] %v1291_v14 }
 0x224   : > { %v1295_v16 = vld [vmem:[%s13003_s14 + $0x4200] sm:$0xf]  ;;  %1294 = vst [vmem:[%s13008_s15 + $0x83c] sm:$0xf] %v1293_v15 }
 0x225   : > { %v1297_v17 = vld [vmem:[%s13003_s14 + $0x4220] sm:$0xf]  ;;  %1296 = vst [vmem:[%s13008_s15 + $0x840] sm:$0xf] %v1295_v16 }
 0x226   : > { %v1299_v18 = vld [vmem:[%s13003_s14 + $0x4240] sm:$0xf]  ;;  %1298 = vst [vmem:[%s13008_s15 + $0x844] sm:$0xf] %v1297_v17 }
 0x227   : > { %v1301_v19 = vld [vmem:[%s13003_s14 + $0x4260] sm:$0xf]  ;;  %1300 = vst [vmem:[%s13008_s15 + $0x848] sm:$0xf] %v1299_v18 }
 0x228   : > { %v1303_v20 = vld [vmem:[%s13003_s14 + $0x4280] sm:$0xf]  ;;  %1302 = vst [vmem:[%s13008_s15 + $0x84c] sm:$0xf] %v1301_v19 }
 0x229   : > { %v1305_v21 = vld [vmem:[%s13003_s14 + $0x42a0] sm:$0xf]  ;;  %1304 = vst [vmem:[%s13008_s15 + $0x850] sm:$0xf] %v1303_v20 }
 0x22a   : > { %v1307_v22 = vld [vmem:[%s13003_s14 + $0x42c0] sm:$0xf]  ;;  %1306 = vst [vmem:[%s13008_s15 + $0x854] sm:$0xf] %v1305_v21 }
 0x22b   : > { %v1309_v23 = vld [vmem:[%s13003_s14 + $0x42e0] sm:$0xf]  ;;  %1308 = vst [vmem:[%s13008_s15 + $0x858] sm:$0xf] %v1307_v22 }
 0x22c   : > { %v1311_v24 = vld [vmem:[%s13003_s14 + $0x4300] sm:$0xf]  ;;  %1310 = vst [vmem:[%s13008_s15 + $0x85c] sm:$0xf] %v1309_v23 }
 0x22d   : > { %v1313_v25 = vld [vmem:[%s13003_s14 + $0x4320] sm:$0xf]  ;;  %1312 = vst [vmem:[%s13008_s15 + $0x860] sm:$0xf] %v1311_v24 }
 0x22e   : > { %v1315_v26 = vld [vmem:[%s13003_s14 + $0x4340] sm:$0xf]  ;;  %1314 = vst [vmem:[%s13008_s15 + $0x864] sm:$0xf] %v1313_v25 }
 0x22f   : > { %v1317_v27 = vld [vmem:[%s13003_s14 + $0x4360] sm:$0xf]  ;;  %1316 = vst [vmem:[%s13008_s15 + $0x868] sm:$0xf] %v1315_v26 }
 0x230   : > { %v1319_v28 = vld [vmem:[%s13003_s14 + $0x4380] sm:$0xf]  ;;  %1318 = vst [vmem:[%s13008_s15 + $0x86c] sm:$0xf] %v1317_v27 }
 0x231   : > { %v1321_v29 = vld [vmem:[%s13003_s14 + $0x43a0] sm:$0xf]  ;;  %1320 = vst [vmem:[%s13008_s15 + $0x870] sm:$0xf] %v1319_v28 }
 0x232   : > { %v1323_v30 = vld [vmem:[%s13003_s14 + $0x43c0] sm:$0xf]  ;;  %1322 = vst [vmem:[%s13008_s15 + $0x874] sm:$0xf] %v1321_v29 }
 0x233   : > { %v1325_v31 = vld [vmem:[%s13003_s14 + $0x43e0] sm:$0xf]  ;;  %1324 = vst [vmem:[%s13008_s15 + $0x878] sm:$0xf] %v1323_v30 }
 0x234   : > { %v1327_v32 = vld [vmem:[%s13003_s14 + $0x4400] sm:$0xf]  ;;  %1326 = vst [vmem:[%s13008_s15 + $0x87c] sm:$0xf] %v1325_v31 }
 0x235   : > { %v1329_v33 = vld [vmem:[%s13003_s14 + $0x4420] sm:$0xf]  ;;  %1328 = vst [vmem:[%s13008_s15 + $0x880] sm:$0xf] %v1327_v32 }
 0x236   : > { %v1331_v34 = vld [vmem:[%s13003_s14 + $0x4440] sm:$0xf]  ;;  %1330 = vst [vmem:[%s13008_s15 + $0x884] sm:$0xf] %v1329_v33 }
 0x237   : > { %v1333_v35 = vld [vmem:[%s13003_s14 + $0x4460] sm:$0xf]  ;;  %1332 = vst [vmem:[%s13008_s15 + $0x888] sm:$0xf] %v1331_v34 }
 0x238   : > { %v1335_v36 = vld [vmem:[%s13003_s14 + $0x4480] sm:$0xf]  ;;  %1334 = vst [vmem:[%s13008_s15 + $0x88c] sm:$0xf] %v1333_v35 }
 0x239   : > { %v1337_v37 = vld [vmem:[%s13003_s14 + $0x44a0] sm:$0xf]  ;;  %1336 = vst [vmem:[%s13008_s15 + $0x890] sm:$0xf] %v1335_v36 }
 0x23a   : > { %v1339_v38 = vld [vmem:[%s13003_s14 + $0x44c0] sm:$0xf]  ;;  %1338 = vst [vmem:[%s13008_s15 + $0x894] sm:$0xf] %v1337_v37 }
 0x23b   : > { %v1341_v39 = vld [vmem:[%s13003_s14 + $0x44e0] sm:$0xf]  ;;  %1340 = vst [vmem:[%s13008_s15 + $0x898] sm:$0xf] %v1339_v38 }
 0x23c   : > { %v1343_v40 = vld [vmem:[%s13003_s14 + $0x4500] sm:$0xf]  ;;  %1342 = vst [vmem:[%s13008_s15 + $0x89c] sm:$0xf] %v1341_v39 }
 0x23d   : > { %v1345_v41 = vld [vmem:[%s13003_s14 + $0x4520] sm:$0xf]  ;;  %1344 = vst [vmem:[%s13008_s15 + $0x8a0] sm:$0xf] %v1343_v40 }
 0x23e   : > { %v1347_v42 = vld [vmem:[%s13003_s14 + $0x4540] sm:$0xf]  ;;  %1346 = vst [vmem:[%s13008_s15 + $0x8a4] sm:$0xf] %v1345_v41 }
 0x23f   : > { %v1349_v43 = vld [vmem:[%s13003_s14 + $0x4560] sm:$0xf]  ;;  %1348 = vst [vmem:[%s13008_s15 + $0x8a8] sm:$0xf] %v1347_v42 }
 0x240   : > { %v1351_v44 = vld [vmem:[%s13003_s14 + $0x4580] sm:$0xf]  ;;  %1350 = vst [vmem:[%s13008_s15 + $0x8ac] sm:$0xf] %v1349_v43 }
 0x241   : > { %v1353_v45 = vld [vmem:[%s13003_s14 + $0x45a0] sm:$0xf]  ;;  %1352 = vst [vmem:[%s13008_s15 + $0x8b0] sm:$0xf] %v1351_v44 }
 0x242   : > { %v1355_v46 = vld [vmem:[%s13003_s14 + $0x45c0] sm:$0xf]  ;;  %1354 = vst [vmem:[%s13008_s15 + $0x8b4] sm:$0xf] %v1353_v45 }
 0x243   : > { %v1357_v47 = vld [vmem:[%s13003_s14 + $0x45e0] sm:$0xf]  ;;  %1356 = vst [vmem:[%s13008_s15 + $0x8b8] sm:$0xf] %v1355_v46 }
 0x244   : > { %v1359_v48 = vld [vmem:[%s13003_s14 + $0x4600] sm:$0xf]  ;;  %1358 = vst [vmem:[%s13008_s15 + $0x8bc] sm:$0xf] %v1357_v47 }
 0x245   : > { %v1361_v49 = vld [vmem:[%s13003_s14 + $0x4620] sm:$0xf]  ;;  %1360 = vst [vmem:[%s13008_s15 + $0x8c0] sm:$0xf] %v1359_v48 }
 0x246   : > { %v1363_v50 = vld [vmem:[%s13003_s14 + $0x4640] sm:$0xf]  ;;  %1362 = vst [vmem:[%s13008_s15 + $0x8c4] sm:$0xf] %v1361_v49 }
 0x247   : > { %v1365_v51 = vld [vmem:[%s13003_s14 + $0x4660] sm:$0xf]  ;;  %1364 = vst [vmem:[%s13008_s15 + $0x8c8] sm:$0xf] %v1363_v50 }
 0x248   : > { %v1367_v52 = vld [vmem:[%s13003_s14 + $0x4680] sm:$0xf]  ;;  %1366 = vst [vmem:[%s13008_s15 + $0x8cc] sm:$0xf] %v1365_v51 }
 0x249   : > { %v1369_v53 = vld [vmem:[%s13003_s14 + $0x46a0] sm:$0xf]  ;;  %1368 = vst [vmem:[%s13008_s15 + $0x8d0] sm:$0xf] %v1367_v52 }
 0x24a   : > { %v1371_v54 = vld [vmem:[%s13003_s14 + $0x46c0] sm:$0xf]  ;;  %1370 = vst [vmem:[%s13008_s15 + $0x8d4] sm:$0xf] %v1369_v53 }
 0x24b   : > { %v1373_v55 = vld [vmem:[%s13003_s14 + $0x46e0] sm:$0xf]  ;;  %1372 = vst [vmem:[%s13008_s15 + $0x8d8] sm:$0xf] %v1371_v54 }
 0x24c   : > { %v1375_v56 = vld [vmem:[%s13003_s14 + $0x4700] sm:$0xf]  ;;  %1374 = vst [vmem:[%s13008_s15 + $0x8dc] sm:$0xf] %v1373_v55 }
 0x24d   : > { %v1377_v57 = vld [vmem:[%s13003_s14 + $0x4720] sm:$0xf]  ;;  %1376 = vst [vmem:[%s13008_s15 + $0x8e0] sm:$0xf] %v1375_v56 }
 0x24e   : > { %v1379_v58 = vld [vmem:[%s13003_s14 + $0x4740] sm:$0xf]  ;;  %1378 = vst [vmem:[%s13008_s15 + $0x8e4] sm:$0xf] %v1377_v57 }
 0x24f   : > { %v1381_v59 = vld [vmem:[%s13003_s14 + $0x4760] sm:$0xf]  ;;  %1380 = vst [vmem:[%s13008_s15 + $0x8e8] sm:$0xf] %v1379_v58 }
 0x250   : > { %v1383_v60 = vld [vmem:[%s13003_s14 + $0x4780] sm:$0xf]  ;;  %1382 = vst [vmem:[%s13008_s15 + $0x8ec] sm:$0xf] %v1381_v59 }
 0x251   : > { %v1385_v61 = vld [vmem:[%s13003_s14 + $0x47a0] sm:$0xf]  ;;  %1384 = vst [vmem:[%s13008_s15 + $0x8f0] sm:$0xf] %v1383_v60 }
 0x252   : > { %v1387_v62 = vld [vmem:[%s13003_s14 + $0x47c0] sm:$0xf]  ;;  %1386 = vst [vmem:[%s13008_s15 + $0x8f4] sm:$0xf] %v1385_v61 }
 0x253   : > { %v1389_v63 = vld [vmem:[%s13003_s14 + $0x47e0] sm:$0xf]  ;;  %1388 = vst [vmem:[%s13008_s15 + $0x8f8] sm:$0xf] %v1387_v62 }
 0x254   : > { %v1391_v0 = vld [vmem:[%s13003_s14 + $0x4800] sm:$0xf]  ;;  %1390 = vst [vmem:[%s13008_s15 + $0x8fc] sm:$0xf] %v1389_v63 }
 0x255   : > { %v1393_v1 = vld [vmem:[%s13003_s14 + $0x4820] sm:$0xf]  ;;  %1392 = vst [vmem:[%s13008_s15 + $0x900] sm:$0xf] %v1391_v0 }
 0x256   : > { %v1395_v2 = vld [vmem:[%s13003_s14 + $0x4840] sm:$0xf]  ;;  %1394 = vst [vmem:[%s13008_s15 + $0x904] sm:$0xf] %v1393_v1 }
 0x257   : > { %v1397_v3 = vld [vmem:[%s13003_s14 + $0x4860] sm:$0xf]  ;;  %1396 = vst [vmem:[%s13008_s15 + $0x908] sm:$0xf] %v1395_v2 }
 0x258   : > { %v1399_v4 = vld [vmem:[%s13003_s14 + $0x4880] sm:$0xf]  ;;  %1398 = vst [vmem:[%s13008_s15 + $0x90c] sm:$0xf] %v1397_v3 }
 0x259   : > { %v1401_v5 = vld [vmem:[%s13003_s14 + $0x48a0] sm:$0xf]  ;;  %1400 = vst [vmem:[%s13008_s15 + $0x910] sm:$0xf] %v1399_v4 }
 0x25a   : > { %v1403_v6 = vld [vmem:[%s13003_s14 + $0x48c0] sm:$0xf]  ;;  %1402 = vst [vmem:[%s13008_s15 + $0x914] sm:$0xf] %v1401_v5 }
 0x25b   : > { %v1405_v7 = vld [vmem:[%s13003_s14 + $0x48e0] sm:$0xf]  ;;  %1404 = vst [vmem:[%s13008_s15 + $0x918] sm:$0xf] %v1403_v6 }
 0x25c   : > { %v1407_v8 = vld [vmem:[%s13003_s14 + $0x4900] sm:$0xf]  ;;  %1406 = vst [vmem:[%s13008_s15 + $0x91c] sm:$0xf] %v1405_v7 }
 0x25d   : > { %v1409_v9 = vld [vmem:[%s13003_s14 + $0x4920] sm:$0xf]  ;;  %1408 = vst [vmem:[%s13008_s15 + $0x920] sm:$0xf] %v1407_v8 }
 0x25e   : > { %v1411_v10 = vld [vmem:[%s13003_s14 + $0x4940] sm:$0xf]  ;;  %1410 = vst [vmem:[%s13008_s15 + $0x924] sm:$0xf] %v1409_v9 }
 0x25f   : > { %v1413_v11 = vld [vmem:[%s13003_s14 + $0x4960] sm:$0xf]  ;;  %1412 = vst [vmem:[%s13008_s15 + $0x928] sm:$0xf] %v1411_v10 }
 0x260   : > { %v1415_v12 = vld [vmem:[%s13003_s14 + $0x4980] sm:$0xf]  ;;  %1414 = vst [vmem:[%s13008_s15 + $0x92c] sm:$0xf] %v1413_v11 }
 0x261   : > { %v1417_v13 = vld [vmem:[%s13003_s14 + $0x49a0] sm:$0xf]  ;;  %1416 = vst [vmem:[%s13008_s15 + $0x930] sm:$0xf] %v1415_v12 }
 0x262   : > { %v1419_v14 = vld [vmem:[%s13003_s14 + $0x49c0] sm:$0xf]  ;;  %1418 = vst [vmem:[%s13008_s15 + $0x934] sm:$0xf] %v1417_v13 }
 0x263   : > { %v1421_v15 = vld [vmem:[%s13003_s14 + $0x49e0] sm:$0xf]  ;;  %1420 = vst [vmem:[%s13008_s15 + $0x938] sm:$0xf] %v1419_v14 }
 0x264   : > { %v1423_v16 = vld [vmem:[%s13003_s14 + $0x4a00] sm:$0xf]  ;;  %1422 = vst [vmem:[%s13008_s15 + $0x93c] sm:$0xf] %v1421_v15 }
 0x265   : > { %v1425_v17 = vld [vmem:[%s13003_s14 + $0x4a20] sm:$0xf]  ;;  %1424 = vst [vmem:[%s13008_s15 + $0x940] sm:$0xf] %v1423_v16 }
 0x266   : > { %v1427_v18 = vld [vmem:[%s13003_s14 + $0x4a40] sm:$0xf]  ;;  %1426 = vst [vmem:[%s13008_s15 + $0x944] sm:$0xf] %v1425_v17 }
 0x267   : > { %v1429_v19 = vld [vmem:[%s13003_s14 + $0x4a60] sm:$0xf]  ;;  %1428 = vst [vmem:[%s13008_s15 + $0x948] sm:$0xf] %v1427_v18 }
 0x268   : > { %v1431_v20 = vld [vmem:[%s13003_s14 + $0x4a80] sm:$0xf]  ;;  %1430 = vst [vmem:[%s13008_s15 + $0x94c] sm:$0xf] %v1429_v19 }
 0x269   : > { %v1433_v21 = vld [vmem:[%s13003_s14 + $0x4aa0] sm:$0xf]  ;;  %1432 = vst [vmem:[%s13008_s15 + $0x950] sm:$0xf] %v1431_v20 }
 0x26a   : > { %v1435_v22 = vld [vmem:[%s13003_s14 + $0x4ac0] sm:$0xf]  ;;  %1434 = vst [vmem:[%s13008_s15 + $0x954] sm:$0xf] %v1433_v21 }
 0x26b   : > { %v1437_v23 = vld [vmem:[%s13003_s14 + $0x4ae0] sm:$0xf]  ;;  %1436 = vst [vmem:[%s13008_s15 + $0x958] sm:$0xf] %v1435_v22 }
 0x26c   : > { %v1439_v24 = vld [vmem:[%s13003_s14 + $0x4b00] sm:$0xf]  ;;  %1438 = vst [vmem:[%s13008_s15 + $0x95c] sm:$0xf] %v1437_v23 }
 0x26d   : > { %v1441_v25 = vld [vmem:[%s13003_s14 + $0x4b20] sm:$0xf]  ;;  %1440 = vst [vmem:[%s13008_s15 + $0x960] sm:$0xf] %v1439_v24 }
 0x26e   : > { %v1443_v26 = vld [vmem:[%s13003_s14 + $0x4b40] sm:$0xf]  ;;  %1442 = vst [vmem:[%s13008_s15 + $0x964] sm:$0xf] %v1441_v25 }
 0x26f   : > { %v1445_v27 = vld [vmem:[%s13003_s14 + $0x4b60] sm:$0xf]  ;;  %1444 = vst [vmem:[%s13008_s15 + $0x968] sm:$0xf] %v1443_v26 }
 0x270   : > { %v1447_v28 = vld [vmem:[%s13003_s14 + $0x4b80] sm:$0xf]  ;;  %1446 = vst [vmem:[%s13008_s15 + $0x96c] sm:$0xf] %v1445_v27 }
 0x271   : > { %v1449_v29 = vld [vmem:[%s13003_s14 + $0x4ba0] sm:$0xf]  ;;  %1448 = vst [vmem:[%s13008_s15 + $0x970] sm:$0xf] %v1447_v28 }
 0x272   : > { %v1451_v30 = vld [vmem:[%s13003_s14 + $0x4bc0] sm:$0xf]  ;;  %1450 = vst [vmem:[%s13008_s15 + $0x974] sm:$0xf] %v1449_v29 }
 0x273   : > { %v1453_v31 = vld [vmem:[%s13003_s14 + $0x4be0] sm:$0xf]  ;;  %1452 = vst [vmem:[%s13008_s15 + $0x978] sm:$0xf] %v1451_v30 }
 0x274   : > { %v1455_v32 = vld [vmem:[%s13003_s14 + $0x4c00] sm:$0xf]  ;;  %1454 = vst [vmem:[%s13008_s15 + $0x97c] sm:$0xf] %v1453_v31 }
 0x275   : > { %v1457_v33 = vld [vmem:[%s13003_s14 + $0x4c20] sm:$0xf]  ;;  %1456 = vst [vmem:[%s13008_s15 + $0x980] sm:$0xf] %v1455_v32 }
 0x276   : > { %v1459_v34 = vld [vmem:[%s13003_s14 + $0x4c40] sm:$0xf]  ;;  %1458 = vst [vmem:[%s13008_s15 + $0x984] sm:$0xf] %v1457_v33 }
 0x277   : > { %v1461_v35 = vld [vmem:[%s13003_s14 + $0x4c60] sm:$0xf]  ;;  %1460 = vst [vmem:[%s13008_s15 + $0x988] sm:$0xf] %v1459_v34 }
 0x278   : > { %v1463_v36 = vld [vmem:[%s13003_s14 + $0x4c80] sm:$0xf]  ;;  %1462 = vst [vmem:[%s13008_s15 + $0x98c] sm:$0xf] %v1461_v35 }
 0x279   : > { %v1465_v37 = vld [vmem:[%s13003_s14 + $0x4ca0] sm:$0xf]  ;;  %1464 = vst [vmem:[%s13008_s15 + $0x990] sm:$0xf] %v1463_v36 }
 0x27a   : > { %v1467_v38 = vld [vmem:[%s13003_s14 + $0x4cc0] sm:$0xf]  ;;  %1466 = vst [vmem:[%s13008_s15 + $0x994] sm:$0xf] %v1465_v37 }
 0x27b   : > { %v1469_v39 = vld [vmem:[%s13003_s14 + $0x4ce0] sm:$0xf]  ;;  %1468 = vst [vmem:[%s13008_s15 + $0x998] sm:$0xf] %v1467_v38 }
 0x27c   : > { %v1471_v40 = vld [vmem:[%s13003_s14 + $0x4d00] sm:$0xf]  ;;  %1470 = vst [vmem:[%s13008_s15 + $0x99c] sm:$0xf] %v1469_v39 }
 0x27d   : > { %v1473_v41 = vld [vmem:[%s13003_s14 + $0x4d20] sm:$0xf]  ;;  %1472 = vst [vmem:[%s13008_s15 + $0x9a0] sm:$0xf] %v1471_v40 }
 0x27e   : > { %v1475_v42 = vld [vmem:[%s13003_s14 + $0x4d40] sm:$0xf]  ;;  %1474 = vst [vmem:[%s13008_s15 + $0x9a4] sm:$0xf] %v1473_v41 }
 0x27f   : > { %v1477_v43 = vld [vmem:[%s13003_s14 + $0x4d60] sm:$0xf]  ;;  %1476 = vst [vmem:[%s13008_s15 + $0x9a8] sm:$0xf] %v1475_v42 }
 0x280   : > { %v1479_v44 = vld [vmem:[%s13003_s14 + $0x4d80] sm:$0xf]  ;;  %1478 = vst [vmem:[%s13008_s15 + $0x9ac] sm:$0xf] %v1477_v43 }
 0x281   : > { %v1481_v45 = vld [vmem:[%s13003_s14 + $0x4da0] sm:$0xf]  ;;  %1480 = vst [vmem:[%s13008_s15 + $0x9b0] sm:$0xf] %v1479_v44 }
 0x282   : > { %v1483_v46 = vld [vmem:[%s13003_s14 + $0x4dc0] sm:$0xf]  ;;  %1482 = vst [vmem:[%s13008_s15 + $0x9b4] sm:$0xf] %v1481_v45 }
 0x283   : > { %v1485_v47 = vld [vmem:[%s13003_s14 + $0x4de0] sm:$0xf]  ;;  %1484 = vst [vmem:[%s13008_s15 + $0x9b8] sm:$0xf] %v1483_v46 }
 0x284   : > { %v1487_v48 = vld [vmem:[%s13003_s14 + $0x4e00] sm:$0xf]  ;;  %1486 = vst [vmem:[%s13008_s15 + $0x9bc] sm:$0xf] %v1485_v47 }
 0x285   : > { %v1489_v49 = vld [vmem:[%s13003_s14 + $0x4e20] sm:$0xf]  ;;  %1488 = vst [vmem:[%s13008_s15 + $0x9c0] sm:$0xf] %v1487_v48 }
 0x286   : > { %v1491_v50 = vld [vmem:[%s13003_s14 + $0x4e40] sm:$0xf]  ;;  %1490 = vst [vmem:[%s13008_s15 + $0x9c4] sm:$0xf] %v1489_v49 }
 0x287   : > { %v1493_v51 = vld [vmem:[%s13003_s14 + $0x4e60] sm:$0xf]  ;;  %1492 = vst [vmem:[%s13008_s15 + $0x9c8] sm:$0xf] %v1491_v50 }
 0x288   : > { %v1495_v52 = vld [vmem:[%s13003_s14 + $0x4e80] sm:$0xf]  ;;  %1494 = vst [vmem:[%s13008_s15 + $0x9cc] sm:$0xf] %v1493_v51 }
 0x289   : > { %v1497_v53 = vld [vmem:[%s13003_s14 + $0x4ea0] sm:$0xf]  ;;  %1496 = vst [vmem:[%s13008_s15 + $0x9d0] sm:$0xf] %v1495_v52 }
 0x28a   : > { %v1499_v54 = vld [vmem:[%s13003_s14 + $0x4ec0] sm:$0xf]  ;;  %1498 = vst [vmem:[%s13008_s15 + $0x9d4] sm:$0xf] %v1497_v53 }
 0x28b   : > { %v1501_v55 = vld [vmem:[%s13003_s14 + $0x4ee0] sm:$0xf]  ;;  %1500 = vst [vmem:[%s13008_s15 + $0x9d8] sm:$0xf] %v1499_v54 }
 0x28c   : > { %v1503_v56 = vld [vmem:[%s13003_s14 + $0x4f00] sm:$0xf]  ;;  %1502 = vst [vmem:[%s13008_s15 + $0x9dc] sm:$0xf] %v1501_v55 }
 0x28d   : > { %v1505_v57 = vld [vmem:[%s13003_s14 + $0x4f20] sm:$0xf]  ;;  %1504 = vst [vmem:[%s13008_s15 + $0x9e0] sm:$0xf] %v1503_v56 }
 0x28e   : > { %v1507_v58 = vld [vmem:[%s13003_s14 + $0x4f40] sm:$0xf]  ;;  %1506 = vst [vmem:[%s13008_s15 + $0x9e4] sm:$0xf] %v1505_v57 }
 0x28f   : > { %v1509_v59 = vld [vmem:[%s13003_s14 + $0x4f60] sm:$0xf]  ;;  %1508 = vst [vmem:[%s13008_s15 + $0x9e8] sm:$0xf] %v1507_v58 }
 0x290   : > { %v1511_v60 = vld [vmem:[%s13003_s14 + $0x4f80] sm:$0xf]  ;;  %1510 = vst [vmem:[%s13008_s15 + $0x9ec] sm:$0xf] %v1509_v59 }
 0x291   : > { %v1513_v61 = vld [vmem:[%s13003_s14 + $0x4fa0] sm:$0xf]  ;;  %1512 = vst [vmem:[%s13008_s15 + $0x9f0] sm:$0xf] %v1511_v60 }
 0x292   : > { %v1515_v62 = vld [vmem:[%s13003_s14 + $0x4fc0] sm:$0xf]  ;;  %1514 = vst [vmem:[%s13008_s15 + $0x9f4] sm:$0xf] %v1513_v61 }
 0x293   : > { %v1517_v63 = vld [vmem:[%s13003_s14 + $0x4fe0] sm:$0xf]  ;;  %1516 = vst [vmem:[%s13008_s15 + $0x9f8] sm:$0xf] %v1515_v62 }
 0x294   : > { %v1519_v0 = vld [vmem:[%s13003_s14 + $0x5000] sm:$0xf]  ;;  %1518 = vst [vmem:[%s13008_s15 + $0x9fc] sm:$0xf] %v1517_v63 }
 0x295   : > { %v1521_v1 = vld [vmem:[%s13003_s14 + $0x5020] sm:$0xf]  ;;  %1520 = vst [vmem:[%s13008_s15 + $0xa00] sm:$0xf] %v1519_v0 }
 0x296   : > { %v1523_v2 = vld [vmem:[%s13003_s14 + $0x5040] sm:$0xf]  ;;  %1522 = vst [vmem:[%s13008_s15 + $0xa04] sm:$0xf] %v1521_v1 }
 0x297   : > { %v1525_v3 = vld [vmem:[%s13003_s14 + $0x5060] sm:$0xf]  ;;  %1524 = vst [vmem:[%s13008_s15 + $0xa08] sm:$0xf] %v1523_v2 }
 0x298   : > { %v1527_v4 = vld [vmem:[%s13003_s14 + $0x5080] sm:$0xf]  ;;  %1526 = vst [vmem:[%s13008_s15 + $0xa0c] sm:$0xf] %v1525_v3 }
 0x299   : > { %v1529_v5 = vld [vmem:[%s13003_s14 + $0x50a0] sm:$0xf]  ;;  %1528 = vst [vmem:[%s13008_s15 + $0xa10] sm:$0xf] %v1527_v4 }
 0x29a   : > { %v1531_v6 = vld [vmem:[%s13003_s14 + $0x50c0] sm:$0xf]  ;;  %1530 = vst [vmem:[%s13008_s15 + $0xa14] sm:$0xf] %v1529_v5 }
 0x29b   : > { %v1533_v7 = vld [vmem:[%s13003_s14 + $0x50e0] sm:$0xf]  ;;  %1532 = vst [vmem:[%s13008_s15 + $0xa18] sm:$0xf] %v1531_v6 }
 0x29c   : > { %v1535_v8 = vld [vmem:[%s13003_s14 + $0x5100] sm:$0xf]  ;;  %1534 = vst [vmem:[%s13008_s15 + $0xa1c] sm:$0xf] %v1533_v7 }
 0x29d   : > { %v1537_v9 = vld [vmem:[%s13003_s14 + $0x5120] sm:$0xf]  ;;  %1536 = vst [vmem:[%s13008_s15 + $0xa20] sm:$0xf] %v1535_v8 }
 0x29e   : > { %v1539_v10 = vld [vmem:[%s13003_s14 + $0x5140] sm:$0xf]  ;;  %1538 = vst [vmem:[%s13008_s15 + $0xa24] sm:$0xf] %v1537_v9 }
 0x29f   : > { %v1541_v11 = vld [vmem:[%s13003_s14 + $0x5160] sm:$0xf]  ;;  %1540 = vst [vmem:[%s13008_s15 + $0xa28] sm:$0xf] %v1539_v10 }
 0x2a0   : > { %v1543_v12 = vld [vmem:[%s13003_s14 + $0x5180] sm:$0xf]  ;;  %1542 = vst [vmem:[%s13008_s15 + $0xa2c] sm:$0xf] %v1541_v11 }
 0x2a1   : > { %v1545_v13 = vld [vmem:[%s13003_s14 + $0x51a0] sm:$0xf]  ;;  %1544 = vst [vmem:[%s13008_s15 + $0xa30] sm:$0xf] %v1543_v12 }
 0x2a2   : > { %v1547_v14 = vld [vmem:[%s13003_s14 + $0x51c0] sm:$0xf]  ;;  %1546 = vst [vmem:[%s13008_s15 + $0xa34] sm:$0xf] %v1545_v13 }
 0x2a3   : > { %v1549_v15 = vld [vmem:[%s13003_s14 + $0x51e0] sm:$0xf]  ;;  %1548 = vst [vmem:[%s13008_s15 + $0xa38] sm:$0xf] %v1547_v14 }
 0x2a4   : > { %v1551_v16 = vld [vmem:[%s13003_s14 + $0x5200] sm:$0xf]  ;;  %1550 = vst [vmem:[%s13008_s15 + $0xa3c] sm:$0xf] %v1549_v15 }
 0x2a5   : > { %v1553_v17 = vld [vmem:[%s13003_s14 + $0x5220] sm:$0xf]  ;;  %1552 = vst [vmem:[%s13008_s15 + $0xa40] sm:$0xf] %v1551_v16 }
 0x2a6   : > { %v1555_v18 = vld [vmem:[%s13003_s14 + $0x5240] sm:$0xf]  ;;  %1554 = vst [vmem:[%s13008_s15 + $0xa44] sm:$0xf] %v1553_v17 }
 0x2a7   : > { %v1557_v19 = vld [vmem:[%s13003_s14 + $0x5260] sm:$0xf]  ;;  %1556 = vst [vmem:[%s13008_s15 + $0xa48] sm:$0xf] %v1555_v18 }
 0x2a8   : > { %v1559_v20 = vld [vmem:[%s13003_s14 + $0x5280] sm:$0xf]  ;;  %1558 = vst [vmem:[%s13008_s15 + $0xa4c] sm:$0xf] %v1557_v19 }
 0x2a9   : > { %v1561_v21 = vld [vmem:[%s13003_s14 + $0x52a0] sm:$0xf]  ;;  %1560 = vst [vmem:[%s13008_s15 + $0xa50] sm:$0xf] %v1559_v20 }
 0x2aa   : > { %v1563_v22 = vld [vmem:[%s13003_s14 + $0x52c0] sm:$0xf]  ;;  %1562 = vst [vmem:[%s13008_s15 + $0xa54] sm:$0xf] %v1561_v21 }
 0x2ab   : > { %v1565_v23 = vld [vmem:[%s13003_s14 + $0x52e0] sm:$0xf]  ;;  %1564 = vst [vmem:[%s13008_s15 + $0xa58] sm:$0xf] %v1563_v22 }
 0x2ac   : > { %v1567_v24 = vld [vmem:[%s13003_s14 + $0x5300] sm:$0xf]  ;;  %1566 = vst [vmem:[%s13008_s15 + $0xa5c] sm:$0xf] %v1565_v23 }
 0x2ad   : > { %v1569_v25 = vld [vmem:[%s13003_s14 + $0x5320] sm:$0xf]  ;;  %1568 = vst [vmem:[%s13008_s15 + $0xa60] sm:$0xf] %v1567_v24 }
 0x2ae   : > { %v1571_v26 = vld [vmem:[%s13003_s14 + $0x5340] sm:$0xf]  ;;  %1570 = vst [vmem:[%s13008_s15 + $0xa64] sm:$0xf] %v1569_v25 }
 0x2af   : > { %v1573_v27 = vld [vmem:[%s13003_s14 + $0x5360] sm:$0xf]  ;;  %1572 = vst [vmem:[%s13008_s15 + $0xa68] sm:$0xf] %v1571_v26 }
 0x2b0   : > { %v1575_v28 = vld [vmem:[%s13003_s14 + $0x5380] sm:$0xf]  ;;  %1574 = vst [vmem:[%s13008_s15 + $0xa6c] sm:$0xf] %v1573_v27 }
 0x2b1   : > { %v1577_v29 = vld [vmem:[%s13003_s14 + $0x53a0] sm:$0xf]  ;;  %1576 = vst [vmem:[%s13008_s15 + $0xa70] sm:$0xf] %v1575_v28 }
 0x2b2   : > { %v1579_v30 = vld [vmem:[%s13003_s14 + $0x53c0] sm:$0xf]  ;;  %1578 = vst [vmem:[%s13008_s15 + $0xa74] sm:$0xf] %v1577_v29 }
 0x2b3   : > { %v1581_v31 = vld [vmem:[%s13003_s14 + $0x53e0] sm:$0xf]  ;;  %1580 = vst [vmem:[%s13008_s15 + $0xa78] sm:$0xf] %v1579_v30 }
 0x2b4   : > { %v1583_v32 = vld [vmem:[%s13003_s14 + $0x5400] sm:$0xf]  ;;  %1582 = vst [vmem:[%s13008_s15 + $0xa7c] sm:$0xf] %v1581_v31 }
 0x2b5   : > { %v1585_v33 = vld [vmem:[%s13003_s14 + $0x5420] sm:$0xf]  ;;  %1584 = vst [vmem:[%s13008_s15 + $0xa80] sm:$0xf] %v1583_v32 }
 0x2b6   : > { %v1587_v34 = vld [vmem:[%s13003_s14 + $0x5440] sm:$0xf]  ;;  %1586 = vst [vmem:[%s13008_s15 + $0xa84] sm:$0xf] %v1585_v33 }
 0x2b7   : > { %v1589_v35 = vld [vmem:[%s13003_s14 + $0x5460] sm:$0xf]  ;;  %1588 = vst [vmem:[%s13008_s15 + $0xa88] sm:$0xf] %v1587_v34 }
 0x2b8   : > { %v1591_v36 = vld [vmem:[%s13003_s14 + $0x5480] sm:$0xf]  ;;  %1590 = vst [vmem:[%s13008_s15 + $0xa8c] sm:$0xf] %v1589_v35 }
 0x2b9   : > { %v1593_v37 = vld [vmem:[%s13003_s14 + $0x54a0] sm:$0xf]  ;;  %1592 = vst [vmem:[%s13008_s15 + $0xa90] sm:$0xf] %v1591_v36 }
 0x2ba   : > { %v1595_v38 = vld [vmem:[%s13003_s14 + $0x54c0] sm:$0xf]  ;;  %1594 = vst [vmem:[%s13008_s15 + $0xa94] sm:$0xf] %v1593_v37 }
 0x2bb   : > { %v1597_v39 = vld [vmem:[%s13003_s14 + $0x54e0] sm:$0xf]  ;;  %1596 = vst [vmem:[%s13008_s15 + $0xa98] sm:$0xf] %v1595_v38 }
 0x2bc   : > { %v1599_v40 = vld [vmem:[%s13003_s14 + $0x5500] sm:$0xf]  ;;  %1598 = vst [vmem:[%s13008_s15 + $0xa9c] sm:$0xf] %v1597_v39 }
 0x2bd   : > { %v1601_v41 = vld [vmem:[%s13003_s14 + $0x5520] sm:$0xf]  ;;  %1600 = vst [vmem:[%s13008_s15 + $0xaa0] sm:$0xf] %v1599_v40 }
 0x2be   : > { %v1603_v42 = vld [vmem:[%s13003_s14 + $0x5540] sm:$0xf]  ;;  %1602 = vst [vmem:[%s13008_s15 + $0xaa4] sm:$0xf] %v1601_v41 }
 0x2bf   : > { %v1605_v43 = vld [vmem:[%s13003_s14 + $0x5560] sm:$0xf]  ;;  %1604 = vst [vmem:[%s13008_s15 + $0xaa8] sm:$0xf] %v1603_v42 }
 0x2c0   : > { %v1607_v44 = vld [vmem:[%s13003_s14 + $0x5580] sm:$0xf]  ;;  %1606 = vst [vmem:[%s13008_s15 + $0xaac] sm:$0xf] %v1605_v43 }
 0x2c1   : > { %v1609_v45 = vld [vmem:[%s13003_s14 + $0x55a0] sm:$0xf]  ;;  %1608 = vst [vmem:[%s13008_s15 + $0xab0] sm:$0xf] %v1607_v44 }
 0x2c2   : > { %v1611_v46 = vld [vmem:[%s13003_s14 + $0x55c0] sm:$0xf]  ;;  %1610 = vst [vmem:[%s13008_s15 + $0xab4] sm:$0xf] %v1609_v45 }
 0x2c3   : > { %v1613_v47 = vld [vmem:[%s13003_s14 + $0x55e0] sm:$0xf]  ;;  %1612 = vst [vmem:[%s13008_s15 + $0xab8] sm:$0xf] %v1611_v46 }
 0x2c4   : > { %v1615_v48 = vld [vmem:[%s13003_s14 + $0x5600] sm:$0xf]  ;;  %1614 = vst [vmem:[%s13008_s15 + $0xabc] sm:$0xf] %v1613_v47 }
 0x2c5   : > { %v1617_v49 = vld [vmem:[%s13003_s14 + $0x5620] sm:$0xf]  ;;  %1616 = vst [vmem:[%s13008_s15 + $0xac0] sm:$0xf] %v1615_v48 }
 0x2c6   : > { %v1619_v50 = vld [vmem:[%s13003_s14 + $0x5640] sm:$0xf]  ;;  %1618 = vst [vmem:[%s13008_s15 + $0xac4] sm:$0xf] %v1617_v49 }
 0x2c7   : > { %v1621_v51 = vld [vmem:[%s13003_s14 + $0x5660] sm:$0xf]  ;;  %1620 = vst [vmem:[%s13008_s15 + $0xac8] sm:$0xf] %v1619_v50 }
 0x2c8   : > { %v1623_v52 = vld [vmem:[%s13003_s14 + $0x5680] sm:$0xf]  ;;  %1622 = vst [vmem:[%s13008_s15 + $0xacc] sm:$0xf] %v1621_v51 }
 0x2c9   : > { %v1625_v53 = vld [vmem:[%s13003_s14 + $0x56a0] sm:$0xf]  ;;  %1624 = vst [vmem:[%s13008_s15 + $0xad0] sm:$0xf] %v1623_v52 }
 0x2ca   : > { %v1627_v54 = vld [vmem:[%s13003_s14 + $0x56c0] sm:$0xf]  ;;  %1626 = vst [vmem:[%s13008_s15 + $0xad4] sm:$0xf] %v1625_v53 }
 0x2cb   : > { %v1629_v55 = vld [vmem:[%s13003_s14 + $0x56e0] sm:$0xf]  ;;  %1628 = vst [vmem:[%s13008_s15 + $0xad8] sm:$0xf] %v1627_v54 }
 0x2cc   : > { %v1631_v56 = vld [vmem:[%s13003_s14 + $0x5700] sm:$0xf]  ;;  %1630 = vst [vmem:[%s13008_s15 + $0xadc] sm:$0xf] %v1629_v55 }
 0x2cd   : > { %v1633_v57 = vld [vmem:[%s13003_s14 + $0x5720] sm:$0xf]  ;;  %1632 = vst [vmem:[%s13008_s15 + $0xae0] sm:$0xf] %v1631_v56 }
 0x2ce   : > { %v1635_v58 = vld [vmem:[%s13003_s14 + $0x5740] sm:$0xf]  ;;  %1634 = vst [vmem:[%s13008_s15 + $0xae4] sm:$0xf] %v1633_v57 }
 0x2cf   : > { %v1637_v59 = vld [vmem:[%s13003_s14 + $0x5760] sm:$0xf]  ;;  %1636 = vst [vmem:[%s13008_s15 + $0xae8] sm:$0xf] %v1635_v58 }
 0x2d0   : > { %v1639_v60 = vld [vmem:[%s13003_s14 + $0x5780] sm:$0xf]  ;;  %1638 = vst [vmem:[%s13008_s15 + $0xaec] sm:$0xf] %v1637_v59 }
 0x2d1   : > { %v1641_v61 = vld [vmem:[%s13003_s14 + $0x57a0] sm:$0xf]  ;;  %1640 = vst [vmem:[%s13008_s15 + $0xaf0] sm:$0xf] %v1639_v60 }
 0x2d2   : > { %v1643_v62 = vld [vmem:[%s13003_s14 + $0x57c0] sm:$0xf]  ;;  %1642 = vst [vmem:[%s13008_s15 + $0xaf4] sm:$0xf] %v1641_v61 }
 0x2d3   : > { %v1645_v63 = vld [vmem:[%s13003_s14 + $0x57e0] sm:$0xf]  ;;  %1644 = vst [vmem:[%s13008_s15 + $0xaf8] sm:$0xf] %v1643_v62 }
 0x2d4   : > { %v1647_v0 = vld [vmem:[%s13003_s14 + $0x5800] sm:$0xf]  ;;  %1646 = vst [vmem:[%s13008_s15 + $0xafc] sm:$0xf] %v1645_v63 }
 0x2d5   : > { %v1649_v1 = vld [vmem:[%s13003_s14 + $0x5820] sm:$0xf]  ;;  %1648 = vst [vmem:[%s13008_s15 + $0xb00] sm:$0xf] %v1647_v0 }
 0x2d6   : > { %v1651_v2 = vld [vmem:[%s13003_s14 + $0x5840] sm:$0xf]  ;;  %1650 = vst [vmem:[%s13008_s15 + $0xb04] sm:$0xf] %v1649_v1 }
 0x2d7   : > { %v1653_v3 = vld [vmem:[%s13003_s14 + $0x5860] sm:$0xf]  ;;  %1652 = vst [vmem:[%s13008_s15 + $0xb08] sm:$0xf] %v1651_v2 }
 0x2d8   : > { %v1655_v4 = vld [vmem:[%s13003_s14 + $0x5880] sm:$0xf]  ;;  %1654 = vst [vmem:[%s13008_s15 + $0xb0c] sm:$0xf] %v1653_v3 }
 0x2d9   : > { %v1657_v5 = vld [vmem:[%s13003_s14 + $0x58a0] sm:$0xf]  ;;  %1656 = vst [vmem:[%s13008_s15 + $0xb10] sm:$0xf] %v1655_v4 }
 0x2da   : > { %v1659_v6 = vld [vmem:[%s13003_s14 + $0x58c0] sm:$0xf]  ;;  %1658 = vst [vmem:[%s13008_s15 + $0xb14] sm:$0xf] %v1657_v5 }
 0x2db   : > { %v1661_v7 = vld [vmem:[%s13003_s14 + $0x58e0] sm:$0xf]  ;;  %1660 = vst [vmem:[%s13008_s15 + $0xb18] sm:$0xf] %v1659_v6 }
 0x2dc   : > { %v1663_v8 = vld [vmem:[%s13003_s14 + $0x5900] sm:$0xf]  ;;  %1662 = vst [vmem:[%s13008_s15 + $0xb1c] sm:$0xf] %v1661_v7 }
 0x2dd   : > { %v1665_v9 = vld [vmem:[%s13003_s14 + $0x5920] sm:$0xf]  ;;  %1664 = vst [vmem:[%s13008_s15 + $0xb20] sm:$0xf] %v1663_v8 }
 0x2de   : > { %v1667_v10 = vld [vmem:[%s13003_s14 + $0x5940] sm:$0xf]  ;;  %1666 = vst [vmem:[%s13008_s15 + $0xb24] sm:$0xf] %v1665_v9 }
 0x2df   : > { %v1669_v11 = vld [vmem:[%s13003_s14 + $0x5960] sm:$0xf]  ;;  %1668 = vst [vmem:[%s13008_s15 + $0xb28] sm:$0xf] %v1667_v10 }
 0x2e0   : > { %v1671_v12 = vld [vmem:[%s13003_s14 + $0x5980] sm:$0xf]  ;;  %1670 = vst [vmem:[%s13008_s15 + $0xb2c] sm:$0xf] %v1669_v11 }
 0x2e1   : > { %v1673_v13 = vld [vmem:[%s13003_s14 + $0x59a0] sm:$0xf]  ;;  %1672 = vst [vmem:[%s13008_s15 + $0xb30] sm:$0xf] %v1671_v12 }
 0x2e2   : > { %v1675_v14 = vld [vmem:[%s13003_s14 + $0x59c0] sm:$0xf]  ;;  %1674 = vst [vmem:[%s13008_s15 + $0xb34] sm:$0xf] %v1673_v13 }
 0x2e3   : > { %v1677_v15 = vld [vmem:[%s13003_s14 + $0x59e0] sm:$0xf]  ;;  %1676 = vst [vmem:[%s13008_s15 + $0xb38] sm:$0xf] %v1675_v14 }
 0x2e4   : > { %v1679_v16 = vld [vmem:[%s13003_s14 + $0x5a00] sm:$0xf]  ;;  %1678 = vst [vmem:[%s13008_s15 + $0xb3c] sm:$0xf] %v1677_v15 }
 0x2e5   : > { %v1681_v17 = vld [vmem:[%s13003_s14 + $0x5a20] sm:$0xf]  ;;  %1680 = vst [vmem:[%s13008_s15 + $0xb40] sm:$0xf] %v1679_v16 }
 0x2e6   : > { %v1683_v18 = vld [vmem:[%s13003_s14 + $0x5a40] sm:$0xf]  ;;  %1682 = vst [vmem:[%s13008_s15 + $0xb44] sm:$0xf] %v1681_v17 }
 0x2e7   : > { %v1685_v19 = vld [vmem:[%s13003_s14 + $0x5a60] sm:$0xf]  ;;  %1684 = vst [vmem:[%s13008_s15 + $0xb48] sm:$0xf] %v1683_v18 }
 0x2e8   : > { %v1687_v20 = vld [vmem:[%s13003_s14 + $0x5a80] sm:$0xf]  ;;  %1686 = vst [vmem:[%s13008_s15 + $0xb4c] sm:$0xf] %v1685_v19 }
 0x2e9   : > { %v1689_v21 = vld [vmem:[%s13003_s14 + $0x5aa0] sm:$0xf]  ;;  %1688 = vst [vmem:[%s13008_s15 + $0xb50] sm:$0xf] %v1687_v20 }
 0x2ea   : > { %v1691_v22 = vld [vmem:[%s13003_s14 + $0x5ac0] sm:$0xf]  ;;  %1690 = vst [vmem:[%s13008_s15 + $0xb54] sm:$0xf] %v1689_v21 }
 0x2eb   : > { %v1693_v23 = vld [vmem:[%s13003_s14 + $0x5ae0] sm:$0xf]  ;;  %1692 = vst [vmem:[%s13008_s15 + $0xb58] sm:$0xf] %v1691_v22 }
 0x2ec   : > { %v1695_v24 = vld [vmem:[%s13003_s14 + $0x5b00] sm:$0xf]  ;;  %1694 = vst [vmem:[%s13008_s15 + $0xb5c] sm:$0xf] %v1693_v23 }
 0x2ed   : > { %v1697_v25 = vld [vmem:[%s13003_s14 + $0x5b20] sm:$0xf]  ;;  %1696 = vst [vmem:[%s13008_s15 + $0xb60] sm:$0xf] %v1695_v24 }
 0x2ee   : > { %v1699_v26 = vld [vmem:[%s13003_s14 + $0x5b40] sm:$0xf]  ;;  %1698 = vst [vmem:[%s13008_s15 + $0xb64] sm:$0xf] %v1697_v25 }
 0x2ef   : > { %v1701_v27 = vld [vmem:[%s13003_s14 + $0x5b60] sm:$0xf]  ;;  %1700 = vst [vmem:[%s13008_s15 + $0xb68] sm:$0xf] %v1699_v26 }
 0x2f0   : > { %v1703_v28 = vld [vmem:[%s13003_s14 + $0x5b80] sm:$0xf]  ;;  %1702 = vst [vmem:[%s13008_s15 + $0xb6c] sm:$0xf] %v1701_v27 }
 0x2f1   : > { %v1705_v29 = vld [vmem:[%s13003_s14 + $0x5ba0] sm:$0xf]  ;;  %1704 = vst [vmem:[%s13008_s15 + $0xb70] sm:$0xf] %v1703_v28 }
 0x2f2   : > { %v1707_v30 = vld [vmem:[%s13003_s14 + $0x5bc0] sm:$0xf]  ;;  %1706 = vst [vmem:[%s13008_s15 + $0xb74] sm:$0xf] %v1705_v29 }
 0x2f3   : > { %v1709_v31 = vld [vmem:[%s13003_s14 + $0x5be0] sm:$0xf]  ;;  %1708 = vst [vmem:[%s13008_s15 + $0xb78] sm:$0xf] %v1707_v30 }
 0x2f4   : > { %v1711_v32 = vld [vmem:[%s13003_s14 + $0x5c00] sm:$0xf]  ;;  %1710 = vst [vmem:[%s13008_s15 + $0xb7c] sm:$0xf] %v1709_v31 }
 0x2f5   : > { %v1713_v33 = vld [vmem:[%s13003_s14 + $0x5c20] sm:$0xf]  ;;  %1712 = vst [vmem:[%s13008_s15 + $0xb80] sm:$0xf] %v1711_v32 }
 0x2f6   : > { %v1715_v34 = vld [vmem:[%s13003_s14 + $0x5c40] sm:$0xf]  ;;  %1714 = vst [vmem:[%s13008_s15 + $0xb84] sm:$0xf] %v1713_v33 }
 0x2f7   : > { %v1717_v35 = vld [vmem:[%s13003_s14 + $0x5c60] sm:$0xf]  ;;  %1716 = vst [vmem:[%s13008_s15 + $0xb88] sm:$0xf] %v1715_v34 }
 0x2f8   : > { %v1719_v36 = vld [vmem:[%s13003_s14 + $0x5c80] sm:$0xf]  ;;  %1718 = vst [vmem:[%s13008_s15 + $0xb8c] sm:$0xf] %v1717_v35 }
 0x2f9   : > { %v1721_v37 = vld [vmem:[%s13003_s14 + $0x5ca0] sm:$0xf]  ;;  %1720 = vst [vmem:[%s13008_s15 + $0xb90] sm:$0xf] %v1719_v36 }
 0x2fa   : > { %v1723_v38 = vld [vmem:[%s13003_s14 + $0x5cc0] sm:$0xf]  ;;  %1722 = vst [vmem:[%s13008_s15 + $0xb94] sm:$0xf] %v1721_v37 }
 0x2fb   : > { %v1725_v39 = vld [vmem:[%s13003_s14 + $0x5ce0] sm:$0xf]  ;;  %1724 = vst [vmem:[%s13008_s15 + $0xb98] sm:$0xf] %v1723_v38 }
 0x2fc   : > { %v1727_v40 = vld [vmem:[%s13003_s14 + $0x5d00] sm:$0xf]  ;;  %1726 = vst [vmem:[%s13008_s15 + $0xb9c] sm:$0xf] %v1725_v39 }
 0x2fd   : > { %v1729_v41 = vld [vmem:[%s13003_s14 + $0x5d20] sm:$0xf]  ;;  %1728 = vst [vmem:[%s13008_s15 + $0xba0] sm:$0xf] %v1727_v40 }
 0x2fe   : > { %v1731_v42 = vld [vmem:[%s13003_s14 + $0x5d40] sm:$0xf]  ;;  %1730 = vst [vmem:[%s13008_s15 + $0xba4] sm:$0xf] %v1729_v41 }
 0x2ff   : > { %v1733_v43 = vld [vmem:[%s13003_s14 + $0x5d60] sm:$0xf]  ;;  %1732 = vst [vmem:[%s13008_s15 + $0xba8] sm:$0xf] %v1731_v42 }
 0x300   : > { %v1735_v44 = vld [vmem:[%s13003_s14 + $0x5d80] sm:$0xf]  ;;  %1734 = vst [vmem:[%s13008_s15 + $0xbac] sm:$0xf] %v1733_v43 }
 0x301   : > { %v1737_v45 = vld [vmem:[%s13003_s14 + $0x5da0] sm:$0xf]  ;;  %1736 = vst [vmem:[%s13008_s15 + $0xbb0] sm:$0xf] %v1735_v44 }
 0x302   : > { %v1739_v46 = vld [vmem:[%s13003_s14 + $0x5dc0] sm:$0xf]  ;;  %1738 = vst [vmem:[%s13008_s15 + $0xbb4] sm:$0xf] %v1737_v45 }
 0x303   : > { %v1741_v47 = vld [vmem:[%s13003_s14 + $0x5de0] sm:$0xf]  ;;  %1740 = vst [vmem:[%s13008_s15 + $0xbb8] sm:$0xf] %v1739_v46 }
 0x304   : > { %v1743_v48 = vld [vmem:[%s13003_s14 + $0x5e00] sm:$0xf]  ;;  %1742 = vst [vmem:[%s13008_s15 + $0xbbc] sm:$0xf] %v1741_v47 }
 0x305   : > { %v1745_v49 = vld [vmem:[%s13003_s14 + $0x5e20] sm:$0xf]  ;;  %1744 = vst [vmem:[%s13008_s15 + $0xbc0] sm:$0xf] %v1743_v48 }
 0x306   : > { %v1747_v50 = vld [vmem:[%s13003_s14 + $0x5e40] sm:$0xf]  ;;  %1746 = vst [vmem:[%s13008_s15 + $0xbc4] sm:$0xf] %v1745_v49 }
 0x307   : > { %v1749_v51 = vld [vmem:[%s13003_s14 + $0x5e60] sm:$0xf]  ;;  %1748 = vst [vmem:[%s13008_s15 + $0xbc8] sm:$0xf] %v1747_v50 }
 0x308   : > { %v1751_v52 = vld [vmem:[%s13003_s14 + $0x5e80] sm:$0xf]  ;;  %1750 = vst [vmem:[%s13008_s15 + $0xbcc] sm:$0xf] %v1749_v51 }
 0x309   : > { %v1753_v53 = vld [vmem:[%s13003_s14 + $0x5ea0] sm:$0xf]  ;;  %1752 = vst [vmem:[%s13008_s15 + $0xbd0] sm:$0xf] %v1751_v52 }
 0x30a   : > { %v1755_v54 = vld [vmem:[%s13003_s14 + $0x5ec0] sm:$0xf]  ;;  %1754 = vst [vmem:[%s13008_s15 + $0xbd4] sm:$0xf] %v1753_v53 }
 0x30b   : > { %v1757_v55 = vld [vmem:[%s13003_s14 + $0x5ee0] sm:$0xf]  ;;  %1756 = vst [vmem:[%s13008_s15 + $0xbd8] sm:$0xf] %v1755_v54 }
 0x30c   : > { %v1759_v56 = vld [vmem:[%s13003_s14 + $0x5f00] sm:$0xf]  ;;  %1758 = vst [vmem:[%s13008_s15 + $0xbdc] sm:$0xf] %v1757_v55 }
 0x30d   : > { %v1761_v57 = vld [vmem:[%s13003_s14 + $0x5f20] sm:$0xf]  ;;  %1760 = vst [vmem:[%s13008_s15 + $0xbe0] sm:$0xf] %v1759_v56 }
 0x30e   : > { %v1763_v58 = vld [vmem:[%s13003_s14 + $0x5f40] sm:$0xf]  ;;  %1762 = vst [vmem:[%s13008_s15 + $0xbe4] sm:$0xf] %v1761_v57 }
 0x30f   : > { %v1765_v59 = vld [vmem:[%s13003_s14 + $0x5f60] sm:$0xf]  ;;  %1764 = vst [vmem:[%s13008_s15 + $0xbe8] sm:$0xf] %v1763_v58 }
 0x310   : > { %v1767_v60 = vld [vmem:[%s13003_s14 + $0x5f80] sm:$0xf]  ;;  %1766 = vst [vmem:[%s13008_s15 + $0xbec] sm:$0xf] %v1765_v59 }
 0x311   : > { %v1769_v61 = vld [vmem:[%s13003_s14 + $0x5fa0] sm:$0xf]  ;;  %1768 = vst [vmem:[%s13008_s15 + $0xbf0] sm:$0xf] %v1767_v60 }
 0x312   : > { %v1771_v62 = vld [vmem:[%s13003_s14 + $0x5fc0] sm:$0xf]  ;;  %1770 = vst [vmem:[%s13008_s15 + $0xbf4] sm:$0xf] %v1769_v61 }
 0x313   : > { %v1773_v63 = vld [vmem:[%s13003_s14 + $0x5fe0] sm:$0xf]  ;;  %1772 = vst [vmem:[%s13008_s15 + $0xbf8] sm:$0xf] %v1771_v62 }
 0x314   : > { %v1775_v0 = vld [vmem:[%s13003_s14 + $0x6000] sm:$0xf]  ;;  %1774 = vst [vmem:[%s13008_s15 + $0xbfc] sm:$0xf] %v1773_v63 }
 0x315   : > { %v1777_v1 = vld [vmem:[%s13003_s14 + $0x6020] sm:$0xf]  ;;  %1776 = vst [vmem:[%s13008_s15 + $0xc00] sm:$0xf] %v1775_v0 }
 0x316   : > { %v1779_v2 = vld [vmem:[%s13003_s14 + $0x6040] sm:$0xf]  ;;  %1778 = vst [vmem:[%s13008_s15 + $0xc04] sm:$0xf] %v1777_v1 }
 0x317   : > { %v1781_v3 = vld [vmem:[%s13003_s14 + $0x6060] sm:$0xf]  ;;  %1780 = vst [vmem:[%s13008_s15 + $0xc08] sm:$0xf] %v1779_v2 }
 0x318   : > { %v1783_v4 = vld [vmem:[%s13003_s14 + $0x6080] sm:$0xf]  ;;  %1782 = vst [vmem:[%s13008_s15 + $0xc0c] sm:$0xf] %v1781_v3 }
 0x319   : > { %v1785_v5 = vld [vmem:[%s13003_s14 + $0x60a0] sm:$0xf]  ;;  %1784 = vst [vmem:[%s13008_s15 + $0xc10] sm:$0xf] %v1783_v4 }
 0x31a   : > { %v1787_v6 = vld [vmem:[%s13003_s14 + $0x60c0] sm:$0xf]  ;;  %1786 = vst [vmem:[%s13008_s15 + $0xc14] sm:$0xf] %v1785_v5 }
 0x31b   : > { %v1789_v7 = vld [vmem:[%s13003_s14 + $0x60e0] sm:$0xf]  ;;  %1788 = vst [vmem:[%s13008_s15 + $0xc18] sm:$0xf] %v1787_v6 }
 0x31c   : > { %v1791_v8 = vld [vmem:[%s13003_s14 + $0x6100] sm:$0xf]  ;;  %1790 = vst [vmem:[%s13008_s15 + $0xc1c] sm:$0xf] %v1789_v7 }
 0x31d   : > { %v1793_v9 = vld [vmem:[%s13003_s14 + $0x6120] sm:$0xf]  ;;  %1792 = vst [vmem:[%s13008_s15 + $0xc20] sm:$0xf] %v1791_v8 }
 0x31e   : > { %v1795_v10 = vld [vmem:[%s13003_s14 + $0x6140] sm:$0xf]  ;;  %1794 = vst [vmem:[%s13008_s15 + $0xc24] sm:$0xf] %v1793_v9 }
 0x31f   : > { %v1797_v11 = vld [vmem:[%s13003_s14 + $0x6160] sm:$0xf]  ;;  %1796 = vst [vmem:[%s13008_s15 + $0xc28] sm:$0xf] %v1795_v10 }
 0x320   : > { %v1799_v12 = vld [vmem:[%s13003_s14 + $0x6180] sm:$0xf]  ;;  %1798 = vst [vmem:[%s13008_s15 + $0xc2c] sm:$0xf] %v1797_v11 }
 0x321   : > { %v1801_v13 = vld [vmem:[%s13003_s14 + $0x61a0] sm:$0xf]  ;;  %1800 = vst [vmem:[%s13008_s15 + $0xc30] sm:$0xf] %v1799_v12 }
 0x322   : > { %v1803_v14 = vld [vmem:[%s13003_s14 + $0x61c0] sm:$0xf]  ;;  %1802 = vst [vmem:[%s13008_s15 + $0xc34] sm:$0xf] %v1801_v13 }
 0x323   : > { %v1805_v15 = vld [vmem:[%s13003_s14 + $0x61e0] sm:$0xf]  ;;  %1804 = vst [vmem:[%s13008_s15 + $0xc38] sm:$0xf] %v1803_v14 }
 0x324   : > { %1806 = vst [vmem:[%s13008_s15 + $0xc3c] sm:$0xf] %v1805_v15 }
 0x325 PF: > { %p10823_p7 = scmp.ge.s32.totalorder %s12912_s24, 1  ;;  %p6589_p8 = scmp.lt.s32.totalorder %s12912_s24, 9 }
 0x327   : > { %p6590_p9 = pnand %p10823_p7, %p6589_p8 }
 0x328   : > { %s6596_s16 = sand.u32 (!%p6590_p9), 1, %s12888_s18   ;;  %p6660_p10 = scmp.lt.s32.totalorder (!%p6590_p9), %s12900_s21, 1 }
 0x329   : > { %6593 = sbr.rel (%p6590_p9) target bundleno = 1551 (0x60f), region = 88  ;;  %p12396_p12 = scmp.ne.s32.totalorder (!%p6590_p9), %s12896_s20, 0 }
 0x32a   : > { %s12793_s17 = smul.u32 (!%p6590_p9), 3136, %s6596_s16 }
 0x32c   : > { %s14580_s29 = scalar_lea.vmem (!%p6590_p9), [#allocation2], %s12793_s17 }
 0x32e   : > { %s6661_s27 = scalar_select %p6660_p10, %s12900_s21, 1  ;;  %v12407_v16 = vld [vmem:[%s14580_s29 + $0x38] sm:$0xff]  ;;  %v12406_v20 = vld [vmem:[%s14580_s29 + $0x30] sm:$0xff]  ;;  %v12405_v24 = vld [vmem:[%s14580_s29 + $0x28] sm:$0xff] }
 0x32f   : > { %v12423_v17 = vld [vmem:[%s14580_s29 + $0xb8] sm:$0xff]  ;;  %9997 = vmatpush.bf16.msra.mxu0 %v12407_v16  ;;  %v12422_v21 = vld [vmem:[%s14580_s29 + $0xb0] sm:$0xff]  ;;  %v12421_v25 = vld [vmem:[%s14580_s29 + $0xa8] sm:$0xff] }
 0x330   : > { %s10827_s28 = sshll.u32 %s6661_s27, 3  ;;  %v12415_v18 = vld [vmem:[%s14580_s29 + $0x78] sm:$0xff]  ;;  %10023 = vmatpush.bf16.msra.mxu2 %v12423_v17  ;;  %v12414_v22 = vld [vmem:[%s14580_s29 + $0x70] sm:$0xff]  ;;  %v12413_v26 = vld [vmem:[%s14580_s29 + $0x68] sm:$0xff] }
 0x331   : > { %s14588_s6 = scalar_lea.vmem %s15134_s5, %s10827_s28  ;;  %v12431_v19 = vld [vmem:[%s14580_s29 + $0xf8] sm:$0xff]  ;;  %10010 = vmatpush.bf16.msra.mxu1 %v12415_v18  ;;  %v12430_v23 = vld [vmem:[%s14580_s29 + $0xf0] sm:$0xff]  ;;  %v12429_v27 = vld [vmem:[%s14580_s29 + $0xe8] sm:$0xff] }
 0x332   : > { %10036 = vmatpush.bf16.msra.mxu3 %v12431_v19  ;;  %v12404_v28 = vld [vmem:[%s14580_s29 + $0x20] sm:$0xff]  ;;  %v12403_v32 = vld [vmem:[%s14580_s29 + $0x18] sm:$0xff]  ;;  %v12402_v36 = vld [vmem:[%s14580_s29 + $0x10] sm:$0xff] }
 0x333   : > { %9998 = vmatpush.bf16.msra.mxu0 %v12406_v20  ;;  %v12420_v29 = vld [vmem:[%s14580_s29 + $0xa0] sm:$0xff]  ;;  %v12419_v33 = vld [vmem:[%s14580_s29 + $0x98] sm:$0xff]  ;;  %v12418_v37 = vld [vmem:[%s14580_s29 + $0x90] sm:$0xff] }
 0x334   : > { %10024 = vmatpush.bf16.msra.mxu2 %v12422_v21  ;;  %v12412_v30 = vld [vmem:[%s14580_s29 + $0x60] sm:$0xff]  ;;  %v12411_v34 = vld [vmem:[%s14580_s29 + $0x58] sm:$0xff]  ;;  %v12410_v38 = vld [vmem:[%s14580_s29 + $0x50] sm:$0xff] }
 0x335   : > { %10011 = vmatpush.bf16.msra.mxu1 %v12414_v22  ;;  %v12428_v31 = vld [vmem:[%s14580_s29 + $0xe0] sm:$0xff]  ;;  %v12427_v35 = vld [vmem:[%s14580_s29 + $0xd8] sm:$0xff]  ;;  %v12426_v39 = vld [vmem:[%s14580_s29 + $0xd0] sm:$0xff] }
 0x336   : > { %10037 = vmatpush.bf16.msra.mxu3 %v12430_v23  ;;  %v12401_v40 = vld [vmem:[%s14580_s29 + $0x8] sm:$0xff]  ;;  %v6664_v45 = vld [vmem:[%s15129_s0] sm:$0xff]  ;;  %v12439_v50 = vld [vmem:[%s14580_s29 + $0x138] sm:$0xff] }
 0x337   : > { %9999 = vmatpush.bf16.msra.mxu0 %v12405_v24  ;;  %v12417_v41 = vld [vmem:[%s14580_s29 + $0x88] sm:$0xff]  ;;  %v12400_v46 = vld [vmem:[%s14580_s29] sm:$0xff]  ;;  %v7498_v49 = vunpack.c.l.b16 %v6664_v45  ;;  %v12455_v51 = vld [vmem:[%s14580_s29 + $0x1b8] sm:$0xff]  ;;  %v7499_v55 = vunpack.c.h.b16 %v6664_v45 }
 0x338   : > { %10025 = vmatpush.bf16.msra.mxu2 %v12421_v25  ;;  %v12409_v42 = vld [vmem:[%s14580_s29 + $0x48] sm:$0xff]  ;;  %v12416_v47 = vld [vmem:[%s14580_s29 + $0x80] sm:$0xff]  ;;  %v12447_v56 = vld [vmem:[%s14580_s29 + $0x178] sm:$0xff] }
 0x339   : > { %10012 = vmatpush.bf16.msra.mxu1 %v12413_v26  ;;  %v12425_v43 = vld [vmem:[%s14580_s29 + $0xc8] sm:$0xff]  ;;  %v12408_v52 = vld [vmem:[%s14580_s29 + $0x40] sm:$0xff]  ;;  %v12463_v57 = vld [vmem:[%s14580_s29 + $0x1f8] sm:$0xff]  ;;  %v7547_v59 = vpack.c.b16 %v7498_v49, %v7498_v49  ;;  %v7548_v63 = vpack.c.b16 %v7499_v55, %v7499_v55 }
 0x33a   : > { %10038 = vmatpush.bf16.msra.mxu3 %v12429_v27  ;;  %v6665_v44 = vld [vmem:[%s15129_s0 + $0x8] sm:$0xff]  ;;  %v12424_v53 = vld [vmem:[%s14580_s29 + $0xc0] sm:$0xff]  ;;  %v12438_v60 = vld [vmem:[%s14580_s29 + $0x130] sm:$0xff] }
 0x33b   : > { %10000 = vmatpush.bf16.msra.mxu0 %v12404_v28  ;;  %v7500_v48 = vunpack.c.l.b16 %v6665_v44  ;;  %v7501_v54 = vunpack.c.h.b16 %v6665_v44  ;;  %v12454_v61 = vld [vmem:[%s14580_s29 + $0x1b0] sm:$0xff]  ;;  %v12437_v2 = vld [vmem:[%s14580_s29 + $0x128] sm:$0xff]  ;;  %v12436_v6 = vld [vmem:[%s14580_s29 + $0x120] sm:$0xff] }
 0x33c   : > { %10026 = vmatpush.bf16.msra.mxu2 %v12420_v29  ;;  %v12446_v0 = vld [vmem:[%s14580_s29 + $0x170] sm:$0xff]  ;;  %v12453_v3 = vld [vmem:[%s14580_s29 + $0x1a8] sm:$0xff]  ;;  %v12452_v7 = vld [vmem:[%s14580_s29 + $0x1a0] sm:$0xff] }
 0x33d   : > { %10013 = vmatpush.bf16.msra.mxu1 %v12412_v30  ;;  %v7549_v58 = vpack.c.b16 %v7500_v48, %v7500_v48  ;;  %v7550_v62 = vpack.c.b16 %v7501_v54, %v7501_v54  ;;  %v12462_v1 = vld [vmem:[%s14580_s29 + $0x1f0] sm:$0xff]  ;;  %v12445_v4 = vld [vmem:[%s14580_s29 + $0x168] sm:$0xff]  ;;  %v12444_v8 = vld [vmem:[%s14580_s29 + $0x160] sm:$0xff] }
 0x33e   : > { %10039 = vmatpush.bf16.msra.mxu3 %v12428_v31  ;;  %v12461_v5 = vld [vmem:[%s14580_s29 + $0x1e8] sm:$0xff]  ;;  %v12460_v9 = vld [vmem:[%s14580_s29 + $0x1e0] sm:$0xff]  ;;  %v12435_v10 = vld [vmem:[%s14580_s29 + $0x118] sm:$0xff] }
 0x33f   : > { %10001 = vmatpush.bf16.msra.mxu0 %v12403_v32  ;;  %v12451_v11 = vld [vmem:[%s14580_s29 + $0x198] sm:$0xff]  ;;  %v12434_v14 = vld [vmem:[%s14580_s29 + $0x110] sm:$0xff]  ;;  %v12433_v18 = vld [vmem:[%s14580_s29 + $0x108] sm:$0xff] }
 0x340   : > { %10027 = vmatpush.bf16.msra.mxu2 %v12419_v33  ;;  %v12443_v12 = vld [vmem:[%s14580_s29 + $0x158] sm:$0xff]  ;;  %v12450_v15 = vld [vmem:[%s14580_s29 + $0x190] sm:$0xff]  ;;  %v12449_v19 = vld [vmem:[%s14580_s29 + $0x188] sm:$0xff] }
 0x341   : > { %10014 = vmatpush.bf16.msra.mxu1 %v12411_v34  ;;  %v12459_v13 = vld [vmem:[%s14580_s29 + $0x1d8] sm:$0xff]  ;;  %v12442_v16 = vld [vmem:[%s14580_s29 + $0x150] sm:$0xff]  ;;  %v12441_v22 = vld [vmem:[%s14580_s29 + $0x148] sm:$0xff] }
 0x342   : > { %10040 = vmatpush.bf16.msra.mxu3 %v12427_v35  ;;  %v12458_v17 = vld [vmem:[%s14580_s29 + $0x1d0] sm:$0xff]  ;;  %v6667_v20 = vld [vmem:[%s15129_s0 + $0x18] sm:$0xff]  ;;  %v12457_v23 = vld [vmem:[%s14580_s29 + $0x1c8] sm:$0xff] }
 0x343   : > { %10002 = vmatpush.bf16.msra.mxu0 %v12402_v36  ;;  %v6666_v21 = vld [vmem:[%s15129_s0 + $0x10] sm:$0xff]  ;;  %v12432_v24 = vld [vmem:[%s14580_s29 + $0x100] sm:$0xff]  ;;  %v7504_v26 = vunpack.c.l.b16 %v6667_v20  ;;  %v12471_v28 = vld [vmem:[%s14580_s29 + $0x238] sm:$0xff]  ;;  %v7505_v32 = vunpack.c.h.b16 %v6667_v20 }
 0x344   : > { %10028 = vmatpush.bf16.msra.mxu2 %v12418_v37  ;;  %v12448_v25 = vld [vmem:[%s14580_s29 + $0x180] sm:$0xff]  ;;  %v7502_v27 = vunpack.c.l.b16 %v6666_v21  ;;  %v12487_v29 = vld [vmem:[%s14580_s29 + $0x2b8] sm:$0xff]  ;;  %v7503_v33 = vunpack.c.h.b16 %v6666_v21  ;;  %v12469_v44 = vld [vmem:[%s14580_s29 + $0x228] sm:$0xff] }
 0x345   : > { %10015 = vmatpush.bf16.msra.mxu1 %v12410_v38  ;;  %v12440_v30 = vld [vmem:[%s14580_s29 + $0x140] sm:$0xff]  ;;  %v12479_v34 = vld [vmem:[%s14580_s29 + $0x278] sm:$0xff]  ;;  %v7553_v36 = vpack.c.b16 %v7504_v26, %v7504_v26  ;;  %v12470_v38 = vld [vmem:[%s14580_s29 + $0x230] sm:$0xff] }
 0x346   : > { %10041 = vmatpush.bf16.msra.mxu3 %v12426_v39  ;;  %v12456_v31 = vld [vmem:[%s14580_s29 + $0x1c0] sm:$0xff]  ;;  %v12495_v35 = vld [vmem:[%s14580_s29 + $0x2f8] sm:$0xff]  ;;  %v7551_v37 = vpack.c.b16 %v7502_v27, %v7502_v27  ;;  %v12486_v39 = vld [vmem:[%s14580_s29 + $0x2b0] sm:$0xff] }
 0x347   : > { %10003 = vmatpush.bf16.msra.mxu0 %v12401_v40  ;;  %v7554_v40 = vpack.c.b16 %v7505_v32, %v7505_v32  ;;  %v12485_v45 = vld [vmem:[%s14580_s29 + $0x2a8] sm:$0xff]  ;;  %v12468_v48 = vld [vmem:[%s14580_s29 + $0x220] sm:$0xff]  ;;  %v12475_v54 = vld [vmem:[%s14580_s29 + $0x258] sm:$0xff] }
 0x348   : > { %10029 = vmatpush.bf16.msra.mxu2 %v12417_v41  ;;  %v7552_v41 = vpack.c.b16 %v7503_v33, %v7503_v33  ;;  %v12484_v49 = vld [vmem:[%s14580_s29 + $0x2a0] sm:$0xff]  ;;  %v12491_v55 = vld [vmem:[%s14580_s29 + $0x2d8] sm:$0xff]  ;;  %v12510_v20 = vld [vmem:[%s14580_s29 + $0x370] sm:$0xff] }
 0x349   : > { %10016 = vmatpush.bf16.msra.mxu1 %v12409_v42  ;;  %v12478_v42 = vld [vmem:[%s14580_s29 + $0x270] sm:$0xff]  ;;  %v12500_v26 = vld [vmem:[%s14580_s29 + $0x320] sm:$0xff]  ;;  %v12507_v32 = vld [vmem:[%s14580_s29 + $0x358] sm:$0xff] }
 0x34a   : > { %10042 = vmatpush.bf16.msra.mxu3 %v12425_v43  ;;  %v12494_v43 = vld [vmem:[%s14580_s29 + $0x2f0] sm:$0xff]  ;;  %v12516_v27 = vld [vmem:[%s14580_s29 + $0x3a0] sm:$0xff]  ;;  %v12523_v33 = vld [vmem:[%s14580_s29 + $0x3d8] sm:$0xff] }
 0x34b   : > { %10004 = vmatpush.bf16.msra.mxu0 %v12400_v46  ;;  %v12477_v46 = vld [vmem:[%s14580_s29 + $0x268] sm:$0xff]  ;;  %v12526_v21 = vld [vmem:[%s14580_s29 + $0x3f0] sm:$0xff] }
 0x34c   : > { %10030 = vmatpush.bf16.msra.mxu2 %v12416_v47  ;;  %v12493_v47 = vld [vmem:[%s14580_s29 + $0x2e8] sm:$0xff] }
 0x34d   : > { %10017 = vmatpush.bf16.msra.mxu1 %v12408_v52  ;;  %v12467_v52 = vld [vmem:[%s14580_s29 + $0x218] sm:$0xff] }
 0x34e   : > { %10043 = vmatpush.bf16.msra.mxu3 %v12424_v53  ;;  %10005 = vmatmul.bf16.vlgmr.msra.gmra.mxu0 %v7547_v59  ;;  %v12483_v53 = vld [vmem:[%s14580_s29 + $0x298] sm:$0xff]  ;;  %v12490_v59 = vld [vmem:[%s14580_s29 + $0x2d0] sm:$0xff] }
 0x34f   : > { %10049 = vmatpush.bf16.msrb.mxu0 %v12439_v50  ;;  %10031 = vmatmul.bf16.vlgmr.msra.gmra.mxu2 %v7549_v58  ;;  %v12476_v50 = vld [vmem:[%s14580_s29 + $0x260] sm:$0xff]  ;;  %v12474_v58 = vld [vmem:[%s14580_s29 + $0x250] sm:$0xff] }
 0x350   : > { %10075 = vmatpush.bf16.msrb.mxu2 %v12455_v51  ;;  %10018 = vmatmul.bf16.vlgmr.msra.gmra.mxu1 %v7548_v63  ;;  %v12492_v51 = vld [vmem:[%s14580_s29 + $0x2e0] sm:$0xff]  ;;  %v6669_v63 = vld [vmem:[%s15129_s0 + $0x28] sm:$0xff] }
 0x351   : > { %10062 = vmatpush.bf16.msrb.mxu1 %v12447_v56  ;;  %10044 = vmatmul.bf16.vlgmr.msra.gmra.mxu3 %v7550_v62  ;;  %v12466_v56 = vld [vmem:[%s14580_s29 + $0x210] sm:$0xff]  ;;  %v6668_v62 = vld [vmem:[%s15129_s0 + $0x20] sm:$0xff] }
 0x352   : > { %10088 = vmatpush.bf16.msrb.mxu3 %v12463_v57  ;;  %v12482_v57 = vld [vmem:[%s14580_s29 + $0x290] sm:$0xff] }
 0x353   : > { %10050 = vmatpush.bf16.msrb.mxu0 %v12438_v60  ;;  %v12465_v60 = vld [vmem:[%s14580_s29 + $0x208] sm:$0xff] }
 0x354   : > { %10076 = vmatpush.bf16.msrb.mxu2 %v12454_v61  ;;  %v12481_v61 = vld [vmem:[%s14580_s29 + $0x288] sm:$0xff] }
 0x355   : > { %10063 = vmatpush.bf16.msrb.mxu1 %v12446_v0  ;;  %v12473_v0 = vld [vmem:[%s14580_s29 + $0x248] sm:$0xff] }
 0x356   : > { %10089 = vmatpush.bf16.msrb.mxu3 %v12462_v1  ;;  %v12489_v1 = vld [vmem:[%s14580_s29 + $0x2c8] sm:$0xff] }
 0x357   : > { %10051 = vmatpush.bf16.msrb.mxu0 %v12437_v2  ;;  %v7506_v2 = vunpack.c.l.b16 %v6668_v62 }
 0x358   : > { %10077 = vmatpush.bf16.msrb.mxu2 %v12453_v3  ;;  %v7508_v3 = vunpack.c.l.b16 %v6669_v63 }
 0x359   : > { %10064 = vmatpush.bf16.msrb.mxu1 %v12445_v4  ;;  %v12464_v4 = vld [vmem:[%s14580_s29 + $0x200] sm:$0xff] }
 0x35a   : > { %10090 = vmatpush.bf16.msrb.mxu3 %v12461_v5  ;;  %v12480_v5 = vld [vmem:[%s14580_s29 + $0x280] sm:$0xff] }
 0x35b   : > { %10052 = vmatpush.bf16.msrb.mxu0 %v12436_v6  ;;  %v12503_v6 = vld [vmem:[%s14580_s29 + $0x338] sm:$0xff] }
 0x35c   : > { %10078 = vmatpush.bf16.msrb.mxu2 %v12452_v7  ;;  %v12519_v7 = vld [vmem:[%s14580_s29 + $0x3b8] sm:$0xff] }
 0x35d   : > { %10065 = vmatpush.bf16.msrb.mxu1 %v12444_v8  ;;  %v7507_v8 = vunpack.c.h.b16 %v6668_v62  ;;  %v12542_v62 = vld [vmem:[%s14580_s29 + $0x470] sm:$0xff] }
 0x35e   : > { %10091 = vmatpush.bf16.msrb.mxu3 %v12460_v9  ;;  %v7509_v9 = vunpack.c.h.b16 %v6669_v63  ;;  %v12558_v63 = vld [vmem:[%s14580_s29 + $0x4f0] sm:$0xff] }
 0x35f   : > { %10053 = vmatpush.bf16.msrb.mxu0 %v12435_v10  ;;  %v12472_v10 = vld [vmem:[%s14580_s29 + $0x240] sm:$0xff] }
 0x360   : > { %10079 = vmatpush.bf16.msrb.mxu2 %v12451_v11  ;;  %v12488_v11 = vld [vmem:[%s14580_s29 + $0x2c0] sm:$0xff] }
 0x361   : > { %10066 = vmatpush.bf16.msrb.mxu1 %v12443_v12  ;;  %v7555_v12 = vpack.c.b16 %v7506_v2, %v7506_v2  ;;  %v12541_v2 = vld [vmem:[%s14580_s29 + $0x468] sm:$0xff] }
 0x362   : > { %10092 = vmatpush.bf16.msrb.mxu3 %v12459_v13  ;;  %v7557_v13 = vpack.c.b16 %v7508_v3, %v7508_v3  ;;  %v12557_v3 = vld [vmem:[%s14580_s29 + $0x4e8] sm:$0xff] }
 0x363   : > { %10054 = vmatpush.bf16.msrb.mxu0 %v12434_v14  ;;  %v12511_v14 = vld [vmem:[%s14580_s29 + $0x378] sm:$0xff] }
 0x364   : > { %10080 = vmatpush.bf16.msrb.mxu2 %v12450_v15  ;;  %v12527_v15 = vld [vmem:[%s14580_s29 + $0x3f8] sm:$0xff] }
 0x365   : > { %10067 = vmatpush.bf16.msrb.mxu1 %v12442_v16  ;;  %v7556_v16 = vpack.c.b16 %v7507_v8, %v7507_v8  ;;  %v12531_v8 = vld [vmem:[%s14580_s29 + $0x418] sm:$0xff] }
 0x366   : > { %10093 = vmatpush.bf16.msrb.mxu3 %v12458_v17  ;;  %v7558_v17 = vpack.c.b16 %v7509_v9, %v7509_v9  ;;  %v12547_v9 = vld [vmem:[%s14580_s29 + $0x498] sm:$0xff] }
 0x367   : > { %10055 = vmatpush.bf16.msrb.mxu0 %v12433_v18  ;;  %v12502_v18 = vld [vmem:[%s14580_s29 + $0x330] sm:$0xff] }
 0x368   : > { %10081 = vmatpush.bf16.msrb.mxu2 %v12449_v19  ;;  %v12518_v19 = vld [vmem:[%s14580_s29 + $0x3b0] sm:$0xff] }
 0x369   : > { %10068 = vmatpush.bf16.msrb.mxu1 %v12441_v22  ;;  %v12501_v22 = vld [vmem:[%s14580_s29 + $0x328] sm:$0xff] }
 0x36a   : > { %10094 = vmatpush.bf16.msrb.mxu3 %v12457_v23  ;;  %v12517_v23 = vld [vmem:[%s14580_s29 + $0x3a8] sm:$0xff] }
 0x36b   : > { %10056 = vmatpush.bf16.msrb.mxu0 %v12432_v24  ;;  %v12509_v24 = vld [vmem:[%s14580_s29 + $0x368] sm:$0xff] }
 0x36c   : > { %10082 = vmatpush.bf16.msrb.mxu2 %v12448_v25  ;;  %v12525_v25 = vld [vmem:[%s14580_s29 + $0x3e8] sm:$0xff] }
 0x36d   : > { %10069 = vmatpush.bf16.msrb.mxu1 %v12440_v30  ;;  %v12499_v30 = vld [vmem:[%s14580_s29 + $0x318] sm:$0xff] }
 0x36e   : > { %10095 = vmatpush.bf16.msrb.mxu3 %v12456_v31  ;;  %10057 = vmatmul.bf16.vlgmr.msrb.gmra.mxu0 %v7551_v37  ;;  %v12515_v31 = vld [vmem:[%s14580_s29 + $0x398] sm:$0xff]  ;;  %v12522_v37 = vld [vmem:[%s14580_s29 + $0x3d0] sm:$0xff] }
 0x36f   : > { %10101 = vmatpush.bf16.msra.mxu0 %v12471_v28  ;;  %10083 = vmatmul.bf16.vlgmr.msrb.gmra.mxu2 %v7553_v36  ;;  %v12508_v28 = vld [vmem:[%s14580_s29 + $0x360] sm:$0xff]  ;;  %v12506_v36 = vld [vmem:[%s14580_s29 + $0x350] sm:$0xff] }
 0x370   : > { %10127 = vmatpush.bf16.msra.mxu2 %v12487_v29  ;;  %10070 = vmatmul.bf16.vlgmr.msrb.gmra.mxu1 %v7552_v41  ;;  %v12524_v29 = vld [vmem:[%s14580_s29 + $0x3e0] sm:$0xff]  ;;  %v6671_v41 = vld [vmem:[%s15129_s0 + $0x38] sm:$0xff] }
 0x371   : > { %10114 = vmatpush.bf16.msra.mxu1 %v12479_v34  ;;  %10096 = vmatmul.bf16.vlgmr.msrb.gmra.mxu3 %v7554_v40  ;;  %v12498_v34 = vld [vmem:[%s14580_s29 + $0x310] sm:$0xff] }
 0x372   : > { %10140 = vmatpush.bf16.msra.mxu3 %v12495_v35  ;;  %v12514_v35 = vld [vmem:[%s14580_s29 + $0x390] sm:$0xff] }
 0x373   : > { %10102 = vmatpush.bf16.msra.mxu0 %v12470_v38  ;;  %v12497_v38 = vld [vmem:[%s14580_s29 + $0x308] sm:$0xff]  ;;  %v6670_v40 = vld [vmem:[%s15129_s0 + $0x30] sm:$0xff] }
 0x374   : > { %10128 = vmatpush.bf16.msra.mxu2 %v12486_v39  ;;  %v12513_v39 = vld [vmem:[%s14580_s29 + $0x388] sm:$0xff] }
 0x375   : > { %10115 = vmatpush.bf16.msra.mxu1 %v12478_v42  ;;  %v12505_v42 = vld [vmem:[%s14580_s29 + $0x348] sm:$0xff] }
 0x376   : > { %10141 = vmatpush.bf16.msra.mxu3 %v12494_v43  ;;  %v12521_v43 = vld [vmem:[%s14580_s29 + $0x3c8] sm:$0xff] }
 0x377   : > { %10103 = vmatpush.bf16.msra.mxu0 %v12469_v44  ;;  %v7510_v44 = vunpack.c.l.b16 %v6670_v40 }
 0x378   : > { %10129 = vmatpush.bf16.msra.mxu2 %v12485_v45  ;;  %v7512_v45 = vunpack.c.l.b16 %v6671_v41 }
 0x379   : > { %10116 = vmatpush.bf16.msra.mxu1 %v12477_v46  ;;  %v12496_v46 = vld [vmem:[%s14580_s29 + $0x300] sm:$0xff] }
 0x37a   : > { %10142 = vmatpush.bf16.msra.mxu3 %v12493_v47  ;;  %v12512_v47 = vld [vmem:[%s14580_s29 + $0x380] sm:$0xff] }
 0x37b   : > { %10104 = vmatpush.bf16.msra.mxu0 %v12468_v48  ;;  %v12535_v48 = vld [vmem:[%s14580_s29 + $0x438] sm:$0xff] }
 0x37c   : > { %10130 = vmatpush.bf16.msra.mxu2 %v12484_v49  ;;  %v12551_v49 = vld [vmem:[%s14580_s29 + $0x4b8] sm:$0xff] }
 0x37d   : > { %10117 = vmatpush.bf16.msra.mxu1 %v12476_v50  ;;  %v7511_v50 = vunpack.c.h.b16 %v6670_v40  ;;  %v12574_v40 = vld [vmem:[%s14580_s29 + $0x570] sm:$0xff] }
 0x37e   : > { %10143 = vmatpush.bf16.msra.mxu3 %v12492_v51  ;;  %v7513_v51 = vunpack.c.h.b16 %v6671_v41  ;;  %v12590_v41 = vld [vmem:[%s14580_s29 + $0x5f0] sm:$0xff] }
 0x37f   : > { %10105 = vmatpush.bf16.msra.mxu0 %v12467_v52  ;;  %v12504_v52 = vld [vmem:[%s14580_s29 + $0x340] sm:$0xff] }
 0x380   : > { %10131 = vmatpush.bf16.msra.mxu2 %v12483_v53  ;;  %v12520_v53 = vld [vmem:[%s14580_s29 + $0x3c0] sm:$0xff] }
 0x381   : > { %10118 = vmatpush.bf16.msra.mxu1 %v12475_v54  ;;  %v7559_v54 = vpack.c.b16 %v7510_v44, %v7510_v44  ;;  %v12573_v44 = vld [vmem:[%s14580_s29 + $0x568] sm:$0xff] }
 0x382   : > { %10144 = vmatpush.bf16.msra.mxu3 %v12491_v55  ;;  %v7561_v55 = vpack.c.b16 %v7512_v45, %v7512_v45  ;;  %v12589_v45 = vld [vmem:[%s14580_s29 + $0x5e8] sm:$0xff] }
 0x383   : > { %10106 = vmatpush.bf16.msra.mxu0 %v12466_v56  ;;  %v12543_v56 = vld [vmem:[%s14580_s29 + $0x478] sm:$0xff] }
 0x384   : > { %10132 = vmatpush.bf16.msra.mxu2 %v12482_v57  ;;  %v12559_v57 = vld [vmem:[%s14580_s29 + $0x4f8] sm:$0xff] }
 0x385   : > { %10119 = vmatpush.bf16.msra.mxu1 %v12474_v58  ;;  %v7560_v58 = vpack.c.b16 %v7511_v50, %v7511_v50  ;;  %v12588_v50 = vld [vmem:[%s14580_s29 + $0x5e0] sm:$0xff] }
 0x386   : > { %10145 = vmatpush.bf16.msra.mxu3 %v12490_v59  ;;  %v7562_v59 = vpack.c.b16 %v7513_v51, %v7513_v51 }
 0x387   : > { %10107 = vmatpush.bf16.msra.mxu0 %v12465_v60  ;;  %v12534_v60 = vld [vmem:[%s14580_s29 + $0x430] sm:$0xff] }
 0x388   : > { %10133 = vmatpush.bf16.msra.mxu2 %v12481_v61  ;;  %v12550_v61 = vld [vmem:[%s14580_s29 + $0x4b0] sm:$0xff] }
 0x389   : > { %10120 = vmatpush.bf16.msra.mxu1 %v12473_v0  ;;  %v12533_v0 = vld [vmem:[%s14580_s29 + $0x428] sm:$0xff] }
 0x38a   : > { %10146 = vmatpush.bf16.msra.mxu3 %v12489_v1  ;;  %v12549_v1 = vld [vmem:[%s14580_s29 + $0x4a8] sm:$0xff] }
 0x38b   : > { %10108 = vmatpush.bf16.msra.mxu0 %v12464_v4  ;;  %v12532_v4 = vld [vmem:[%s14580_s29 + $0x420] sm:$0xff] }
 0x38c   : > { %10134 = vmatpush.bf16.msra.mxu2 %v12480_v5  ;;  %v12548_v5 = vld [vmem:[%s14580_s29 + $0x4a0] sm:$0xff] }
 0x38d   : > { %10121 = vmatpush.bf16.msra.mxu1 %v12472_v10  ;;  %v12539_v10 = vld [vmem:[%s14580_s29 + $0x458] sm:$0xff] }
 0x38e   : > { %10147 = vmatpush.bf16.msra.mxu3 %v12488_v11  ;;  %10109 = vmatmul.bf16.vlgmr.msra.gmra.mxu0 %v7555_v12  ;;  %v12555_v11 = vld [vmem:[%s14580_s29 + $0x4d8] sm:$0xff]  ;;  %v12530_v12 = vld [vmem:[%s14580_s29 + $0x410] sm:$0xff] }
 0x38f   : > { %10153 = vmatpush.bf16.msrb.mxu0 %v12503_v6  ;;  %10135 = vmatmul.bf16.vlgmr.msra.gmra.mxu2 %v7557_v13  ;;  %v12540_v6 = vld [vmem:[%s14580_s29 + $0x460] sm:$0xff]  ;;  %v12546_v13 = vld [vmem:[%s14580_s29 + $0x490] sm:$0xff] }
 0x390   : > { %10179 = vmatpush.bf16.msrb.mxu2 %v12519_v7  ;;  %10122 = vmatmul.bf16.vlgmr.msra.gmra.mxu1 %v7556_v16  ;;  %v12556_v7 = vld [vmem:[%s14580_s29 + $0x4e0] sm:$0xff]  ;;  %v12529_v16 = vld [vmem:[%s14580_s29 + $0x408] sm:$0xff] }
 0x391   : > { %10166 = vmatpush.bf16.msrb.mxu1 %v12511_v14  ;;  %10148 = vmatmul.bf16.vlgmr.msra.gmra.mxu3 %v7558_v17  ;;  %v12538_v14 = vld [vmem:[%s14580_s29 + $0x450] sm:$0xff]  ;;  %v12545_v17 = vld [vmem:[%s14580_s29 + $0x488] sm:$0xff] }
 0x392   : > { %10192 = vmatpush.bf16.msrb.mxu3 %v12527_v15  ;;  %v12554_v15 = vld [vmem:[%s14580_s29 + $0x4d0] sm:$0xff] }
 0x393   : > { %10154 = vmatpush.bf16.msrb.mxu0 %v12502_v18  ;;  %v6672_v18 = vld [vmem:[%s15129_s0 + $0x40] sm:$0xff] }
 0x394   : > { %10180 = vmatpush.bf16.msrb.mxu2 %v12518_v19  ;;  %v6673_v19 = vld [vmem:[%s15129_s0 + $0x48] sm:$0xff] }
 0x395   : > { %10167 = vmatpush.bf16.msrb.mxu1 %v12510_v20  ;;  %v12537_v20 = vld [vmem:[%s14580_s29 + $0x448] sm:$0xff] }
 0x396   : > { %10193 = vmatpush.bf16.msrb.mxu3 %v12526_v21  ;;  %v12553_v21 = vld [vmem:[%s14580_s29 + $0x4c8] sm:$0xff] }
 0x397   : > { %10155 = vmatpush.bf16.msrb.mxu0 %v12501_v22  ;;  %v7514_v22 = vunpack.c.l.b16 %v6672_v18 }
 0x398   : > { %10181 = vmatpush.bf16.msrb.mxu2 %v12517_v23  ;;  %v7516_v23 = vunpack.c.l.b16 %v6673_v19 }
 0x399   : > { %10168 = vmatpush.bf16.msrb.mxu1 %v12509_v24  ;;  %v12528_v24 = vld [vmem:[%s14580_s29 + $0x400] sm:$0xff] }
 0x39a   : > { %10194 = vmatpush.bf16.msrb.mxu3 %v12525_v25  ;;  %v12544_v25 = vld [vmem:[%s14580_s29 + $0x480] sm:$0xff] }
 0x39b   : > { %10156 = vmatpush.bf16.msrb.mxu0 %v12500_v26  ;;  %v12567_v26 = vld [vmem:[%s14580_s29 + $0x538] sm:$0xff] }
 0x39c   : > { %10182 = vmatpush.bf16.msrb.mxu2 %v12516_v27  ;;  %v12583_v27 = vld [vmem:[%s14580_s29 + $0x5b8] sm:$0xff] }
 0x39d   : > { %10169 = vmatpush.bf16.msrb.mxu1 %v12508_v28  ;;  %v7515_v28 = vunpack.c.h.b16 %v6672_v18 }
 0x39e   : > { %10195 = vmatpush.bf16.msrb.mxu3 %v12524_v29  ;;  %v7517_v29 = vunpack.c.h.b16 %v6673_v19  ;;  %v12568_v19 = vld [vmem:[%s14580_s29 + $0x540] sm:$0xff] }
 0x39f   : > { %10157 = vmatpush.bf16.msrb.mxu0 %v12499_v30  ;;  %v12536_v30 = vld [vmem:[%s14580_s29 + $0x440] sm:$0xff] }
 0x3a0   : > { %10183 = vmatpush.bf16.msrb.mxu2 %v12515_v31  ;;  %v12552_v31 = vld [vmem:[%s14580_s29 + $0x4c0] sm:$0xff] }
 0x3a1   : > { %10170 = vmatpush.bf16.msrb.mxu1 %v12507_v32  ;;  %v7563_v32 = vpack.c.b16 %v7514_v22, %v7514_v22 }
 0x3a2   : > { %10196 = vmatpush.bf16.msrb.mxu3 %v12523_v33  ;;  %v7565_v33 = vpack.c.b16 %v7516_v23, %v7516_v23  ;;  %v12607_v23 = vld [vmem:[%s14580_s29 + $0x678] sm:$0xff] }
 0x3a3   : > { %10158 = vmatpush.bf16.msrb.mxu0 %v12498_v34  ;;  %v12575_v34 = vld [vmem:[%s14580_s29 + $0x578] sm:$0xff] }
 0x3a4   : > { %10184 = vmatpush.bf16.msrb.mxu2 %v12514_v35  ;;  %v12591_v35 = vld [vmem:[%s14580_s29 + $0x5f8] sm:$0xff] }
 0x3a5   : > { %10171 = vmatpush.bf16.msrb.mxu1 %v12506_v36  ;;  %v7564_v36 = vpack.c.b16 %v7515_v28, %v7515_v28  ;;  %v12614_v28 = vld [vmem:[%s14580_s29 + $0x6b0] sm:$0xff] }
 0x3a6   : > { %10197 = vmatpush.bf16.msrb.mxu3 %v12522_v37  ;;  %v7566_v37 = vpack.c.b16 %v7517_v29, %v7517_v29  ;;  %v12606_v29 = vld [vmem:[%s14580_s29 + $0x670] sm:$0xff] }
 0x3a7   : > { %10159 = vmatpush.bf16.msrb.mxu0 %v12497_v38  ;;  %v12566_v38 = vld [vmem:[%s14580_s29 + $0x530] sm:$0xff] }
 0x3a8   : > { %10185 = vmatpush.bf16.msrb.mxu2 %v12513_v39  ;;  %v12582_v39 = vld [vmem:[%s14580_s29 + $0x5b0] sm:$0xff] }
 0x3a9   : > { %10172 = vmatpush.bf16.msrb.mxu1 %v12505_v42  ;;  %v12565_v42 = vld [vmem:[%s14580_s29 + $0x528] sm:$0xff] }
 0x3aa   : > { %10198 = vmatpush.bf16.msrb.mxu3 %v12521_v43  ;;  %v12581_v43 = vld [vmem:[%s14580_s29 + $0x5a8] sm:$0xff] }
 0x3ab   : > { %10160 = vmatpush.bf16.msrb.mxu0 %v12496_v46  ;;  %v12564_v46 = vld [vmem:[%s14580_s29 + $0x520] sm:$0xff] }
 0x3ac   : > { %10186 = vmatpush.bf16.msrb.mxu2 %v12512_v47  ;;  %v12580_v47 = vld [vmem:[%s14580_s29 + $0x5a0] sm:$0xff] }
 0x3ad   : > { %10173 = vmatpush.bf16.msrb.mxu1 %v12504_v52  ;;  %v12563_v52 = vld [vmem:[%s14580_s29 + $0x518] sm:$0xff] }
 0x3ae   : > { %10199 = vmatpush.bf16.msrb.mxu3 %v12520_v53  ;;  %10161 = vmatmul.bf16.vlgmr.msrb.gmra.mxu0 %v7559_v54  ;;  %v12579_v53 = vld [vmem:[%s14580_s29 + $0x598] sm:$0xff] }
 0x3af   : > { %10205 = vmatpush.bf16.msra.mxu0 %v12535_v48  ;;  %10187 = vmatmul.bf16.vlgmr.msrb.gmra.mxu2 %v7561_v55  ;;  %v12571_v55 = vld [vmem:[%s14580_s29 + $0x558] sm:$0xff] }
 0x3b0   : > { %10231 = vmatpush.bf16.msra.mxu2 %v12551_v49  ;;  %10174 = vmatmul.bf16.vlgmr.msrb.gmra.mxu1 %v7560_v58  ;;  %v12572_v49 = vld [vmem:[%s14580_s29 + $0x560] sm:$0xff]  ;;  %v12562_v58 = vld [vmem:[%s14580_s29 + $0x510] sm:$0xff] }
 0x3b1   : > { %10218 = vmatpush.bf16.msra.mxu1 %v12543_v56  ;;  %10200 = vmatmul.bf16.vlgmr.msrb.gmra.mxu3 %v7562_v59  ;;  %v12587_v56 = vld [vmem:[%s14580_s29 + $0x5d8] sm:$0xff]  ;;  %v12578_v59 = vld [vmem:[%s14580_s29 + $0x590] sm:$0xff] }
 0x3b2   : > { %10244 = vmatpush.bf16.msra.mxu3 %v12559_v57 }
 0x3b3   : > { %10206 = vmatpush.bf16.msra.mxu0 %v12534_v60 }
 0x3b4   : > { %10232 = vmatpush.bf16.msra.mxu2 %v12550_v61 }
 0x3b5   : > { %10219 = vmatpush.bf16.msra.mxu1 %v12542_v62 }
 0x3b6   : > { %10245 = vmatpush.bf16.msra.mxu3 %v12558_v63  ;;  %v12570_v63 = vld [vmem:[%s14580_s29 + $0x550] sm:$0xff] }
 0x3b7   : > { %10207 = vmatpush.bf16.msra.mxu0 %v12533_v0  ;;  %v12586_v0 = vld [vmem:[%s14580_s29 + $0x5d0] sm:$0xff] }
 0x3b8   : > { %10233 = vmatpush.bf16.msra.mxu2 %v12549_v1 }
 0x3b9   : > { %10220 = vmatpush.bf16.msra.mxu1 %v12541_v2  ;;  %v12561_v2 = vld [vmem:[%s14580_s29 + $0x508] sm:$0xff] }
 0x3ba   : > { %10246 = vmatpush.bf16.msra.mxu3 %v12557_v3 }
 0x3bb   : > { %10208 = vmatpush.bf16.msra.mxu0 %v12532_v4  ;;  %v12577_v4 = vld [vmem:[%s14580_s29 + $0x588] sm:$0xff] }
 0x3bc   : > { %10234 = vmatpush.bf16.msra.mxu2 %v12548_v5  ;;  %v6674_v5 = vld [vmem:[%s15129_s0 + $0x50] sm:$0xff] }
 0x3bd   : > { %10221 = vmatpush.bf16.msra.mxu1 %v12540_v6  ;;  %v6675_v6 = vld [vmem:[%s15129_s0 + $0x58] sm:$0xff] }
 0x3be   : > { %10247 = vmatpush.bf16.msra.mxu3 %v12556_v7  ;;  %v12569_v7 = vld [vmem:[%s14580_s29 + $0x548] sm:$0xff] }
 0x3bf   : > { %10209 = vmatpush.bf16.msra.mxu0 %v12531_v8  ;;  %v12585_v8 = vld [vmem:[%s14580_s29 + $0x5c8] sm:$0xff] }
 0x3c0   : > { %10235 = vmatpush.bf16.msra.mxu2 %v12547_v9  ;;  %v7518_v9 = vunpack.c.l.b16 %v6674_v5 }
 0x3c1   : > { %10222 = vmatpush.bf16.msra.mxu1 %v12539_v10  ;;  %v7520_v10 = vunpack.c.l.b16 %v6675_v6 }
 0x3c2   : > { %10248 = vmatpush.bf16.msra.mxu3 %v12555_v11 }
 0x3c3   : > { %10210 = vmatpush.bf16.msra.mxu0 %v12530_v12  ;;  %v12560_v12 = vld [vmem:[%s14580_s29 + $0x500] sm:$0xff]  ;;  %v7569_v22 = vpack.c.b16 %v7520_v10, %v7520_v10 }
 0x3c4   : > { %10236 = vmatpush.bf16.msra.mxu2 %v12546_v13  ;;  %v12576_v13 = vld [vmem:[%s14580_s29 + $0x580] sm:$0xff] }
 0x3c5   : > { %10223 = vmatpush.bf16.msra.mxu1 %v12538_v14  ;;  %v12599_v14 = vld [vmem:[%s14580_s29 + $0x638] sm:$0xff]  ;;  %v12616_v10 = vld [vmem:[%s14580_s29 + $0x6c0] sm:$0xff] }
 0x3c6   : > { %10249 = vmatpush.bf16.msra.mxu3 %v12554_v15  ;;  %v12615_v15 = vld [vmem:[%s14580_s29 + $0x6b8] sm:$0xff] }
 0x3c7   : > { %10211 = vmatpush.bf16.msra.mxu0 %v12529_v16  ;;  %v7519_v16 = vunpack.c.h.b16 %v6674_v5  ;;  %v12631_v5 = vld [vmem:[%s14580_s29 + $0x738] sm:$0xff] }
 0x3c8   : > { %10237 = vmatpush.bf16.msra.mxu2 %v12545_v17  ;;  %v7521_v17 = vunpack.c.h.b16 %v6675_v6  ;;  %v12647_v6 = vld [vmem:[%s14580_s29 + $0x7b8] sm:$0xff] }
 0x3c9   : > { %10224 = vmatpush.bf16.msra.mxu1 %v12537_v20  ;;  %v12584_v20 = vld [vmem:[%s14580_s29 + $0x5c0] sm:$0xff] }
 0x3ca   : > { %10250 = vmatpush.bf16.msra.mxu3 %v12553_v21  ;;  %v7567_v21 = vpack.c.b16 %v7518_v9, %v7518_v9  ;;  %v12600_v9 = vld [vmem:[%s14580_s29 + $0x640] sm:$0xff] }
 0x3cb   : > { %10212 = vmatpush.bf16.msra.mxu0 %v12528_v24  ;;  %v10006_v48 = vpop.f32.mrf.mxu0  ;;  %v12623_v24 = vld [vmem:[%s14580_s29 + $0x6f8] sm:$0xff] }
 0x3cc   : > { %10238 = vmatpush.bf16.msra.mxu2 %v12544_v25  ;;  %v7568_v25 = vpack.c.b16 %v7519_v16, %v7519_v16 }
 0x3cd   : > { %10225 = vmatpush.bf16.msra.mxu1 %v12536_v30  ;;  %v10019_v51 = vpop.f32.mrf.mxu1  ;;  %v12622_v30 = vld [vmem:[%s14580_s29 + $0x6f0] sm:$0xff] }
 0x3ce   : > { %10251 = vmatpush.bf16.msra.mxu3 %v12552_v31  ;;  %10213 = vmatmul.bf16.vlgmr.msra.gmra.mxu0 %v7563_v32  ;;  %v10020_v54 = vadd.f32 %v10019_v51, %v10006_v48  ;;  %v12597_v31 = vld [vmem:[%s14580_s29 + $0x628] sm:$0xff] }
 0x3cf   : > { %10257 = vmatpush.bf16.msrb.mxu0 %v12567_v26  ;;  %10239 = vmatmul.bf16.vlgmr.msra.gmra.mxu2 %v7565_v33  ;;  %v7570_v26 = vpack.c.b16 %v7521_v17, %v7521_v17  ;;  %v12613_v32 = vld [vmem:[%s14580_s29 + $0x6a8] sm:$0xff]  ;;  %v12630_v17 = vld [vmem:[%s14580_s29 + $0x730] sm:$0xff] }
 0x3d0   : > { %10283 = vmatpush.bf16.msrb.mxu2 %v12583_v27  ;;  %10226 = vmatmul.bf16.vlgmr.msra.gmra.mxu1 %v7564_v36  ;;  %v12598_v27 = vld [vmem:[%s14580_s29 + $0x630] sm:$0xff]  ;;  %v12605_v33 = vld [vmem:[%s14580_s29 + $0x668] sm:$0xff]  ;;  %v12612_v36 = vld [vmem:[%s14580_s29 + $0x6a0] sm:$0xff] }
 0x3d1   : > { %10270 = vmatpush.bf16.msrb.mxu1 %v12575_v34  ;;  %10252 = vmatmul.bf16.vlgmr.msra.gmra.mxu3 %v7566_v37  ;;  %v12621_v34 = vld [vmem:[%s14580_s29 + $0x6e8] sm:$0xff] }
 0x3d2   : > { %10296 = vmatpush.bf16.msrb.mxu3 %v12591_v35  ;;  %v10032_v57 = vpop.f32.mrf.mxu2  ;;  %v12596_v35 = vld [vmem:[%s14580_s29 + $0x620] sm:$0xff] }
 0x3d3   : > { %10258 = vmatpush.bf16.msrb.mxu0 %v12566_v38  ;;  %v10033_v60 = vadd.f32 %v10032_v57, %v10020_v54  ;;  %v10008_v62 = vpop.f32.mrf.mxu0  ;;  %v12602_v54 = vld [vmem:[%s14580_s29 + $0x650] sm:$0xff]  ;;  %v12593_v57 = vld [vmem:[%s14580_s29 + $0x608] sm:$0xff] }
 0x3d4   : > { %10284 = vmatpush.bf16.msrb.mxu2 %v12582_v39  ;;  %v10045_v61 = vpop.f32.mrf.mxu3  ;;  %v12604_v39 = vld [vmem:[%s14580_s29 + $0x660] sm:$0xff]  ;;  %v12617_v62 = vld [vmem:[%s14580_s29 + $0x6c8] sm:$0xff] }
 0x3d5   : > { %10271 = vmatpush.bf16.msrb.mxu1 %v12574_v40  ;;  %v14801_v1 = vadd.f32 %v10045_v61, %v10033_v60  ;;  %v10021_v3 = vpop.f32.mrf.mxu1  ;;  %v12620_v40 = vld [vmem:[%s14580_s29 + $0x6e0] sm:$0xff]  ;;  %v6677_v60 = vld [vmem:[%s15129_s0 + $0x68] sm:$0xff] }
 0x3d6   : > { %10297 = vmatpush.bf16.msrb.mxu3 %v12590_v41  ;;  %v12601_v61 = vld [vmem:[%s14580_s29 + $0x648] sm:$0xff]  ;;  %v12608_v3 = vld [vmem:[%s14580_s29 + $0x680] sm:$0xff] }
 0x3d7   : > { %10259 = vmatpush.bf16.msrb.mxu0 %v12565_v42 }
 0x3d8   : > { %10285 = vmatpush.bf16.msrb.mxu2 %v12581_v43  ;;  %v12595_v43 = vld [vmem:[%s14580_s29 + $0x618] sm:$0xff] }
 0x3d9   : > { %10272 = vmatpush.bf16.msrb.mxu1 %v12573_v44  ;;  %v12611_v44 = vld [vmem:[%s14580_s29 + $0x698] sm:$0xff] }
 0x3da   : > { %10298 = vmatpush.bf16.msrb.mxu3 %v12589_v45  ;;  %v10034_v11 = vpop.f32.mrf.mxu2  ;;  %v12603_v45 = vld [vmem:[%s14580_s29 + $0x658] sm:$0xff] }
 0x3db   : > { %10260 = vmatpush.bf16.msrb.mxu0 %v12564_v46  ;;  %v12619_v46 = vld [vmem:[%s14580_s29 + $0x6d8] sm:$0xff] }
 0x3dc   : > { %10286 = vmatpush.bf16.msrb.mxu2 %v12580_v47  ;;  %v10047_v18 = vpop.f32.mrf.mxu3 }
 0x3dd   : > { %10273 = vmatpush.bf16.msrb.mxu1 %v12572_v49  ;;  %v12594_v49 = vld [vmem:[%s14580_s29 + $0x610] sm:$0xff] }
 0x3de   : > { %10299 = vmatpush.bf16.msrb.mxu3 %v12588_v50  ;;  %v12610_v50 = vld [vmem:[%s14580_s29 + $0x690] sm:$0xff] }
 0x3df   : > { %10261 = vmatpush.bf16.msrb.mxu0 %v12563_v52  ;;  %v12646_v18 = vld [vmem:[%s14580_s29 + $0x7b0] sm:$0xff] }
 0x3e0   : > { %10287 = vmatpush.bf16.msrb.mxu2 %v12579_v53 }
 0x3e1   : > { %10274 = vmatpush.bf16.msrb.mxu1 %v12571_v55  ;;  %v12618_v55 = vld [vmem:[%s14580_s29 + $0x6d0] sm:$0xff] }
 0x3e2   : > { %10300 = vmatpush.bf16.msrb.mxu3 %v12587_v56 }
 0x3e3   : > { %10262 = vmatpush.bf16.msrb.mxu0 %v12562_v58  ;;  %v12609_v58 = vld [vmem:[%s14580_s29 + $0x688] sm:$0xff] }
 0x3e4   : > { %10288 = vmatpush.bf16.msrb.mxu2 %v12578_v59  ;;  %v6676_v59 = vld [vmem:[%s15129_s0 + $0x60] sm:$0xff] }
 0x3e5   : > { %10275 = vmatpush.bf16.msrb.mxu1 %v12570_v63 }
 0x3e6   : > { %10301 = vmatpush.bf16.msrb.mxu3 %v12586_v0  ;;  %v7522_v0 = vunpack.c.l.b16 %v6676_v59 }
 0x3e7   : > { %10263 = vmatpush.bf16.msrb.mxu0 %v12561_v2  ;;  %v12592_v2 = vld [vmem:[%s14580_s29 + $0x600] sm:$0xff] }
 0x3e8   : > { %10289 = vmatpush.bf16.msrb.mxu2 %v12577_v4  ;;  %v7571_v11 = vpack.c.b16 %v7522_v0, %v7522_v0  ;;  %v12648_v0 = vld [vmem:[%s14580_s29 + $0x7c0] sm:$0xff] }
 0x3e9   : > { %10276 = vmatpush.bf16.msrb.mxu1 %v12569_v7  ;;  %v7523_v7 = vunpack.c.h.b16 %v6676_v59  ;;  %v12663_v59 = vld [vmem:[%s14580_s29 + $0x838] sm:$0xff] }
 0x3ea   : > { %10302 = vmatpush.bf16.msrb.mxu3 %v12585_v8  ;;  %v7525_v8 = vunpack.c.h.b16 %v6677_v60 }
 0x3eb   : > { %10264 = vmatpush.bf16.msrb.mxu0 %v12560_v12  ;;  %v10058_v37 = vpop.f32.mrf.mxu0 }
 0x3ec   : > { %10290 = vmatpush.bf16.msrb.mxu2 %v12576_v13  ;;  %v10059_v38 = vadd.f32 %v10058_v37, %v14801_v1  ;;  %v7524_v1 = vunpack.c.l.b16 %v6677_v60  ;;  %v12639_v13 = vld [vmem:[%s14580_s29 + $0x778] sm:$0xff]  ;;  %v7574_v16 = vpack.c.b16 %v7525_v8, %v7525_v8  ;;  %v12678_v8 = vld [vmem:[%s14580_s29 + $0x8b0] sm:$0xff] }
 0x3ed   : > { %10277 = vmatpush.bf16.msrb.mxu1 %v12568_v19  ;;  %v10071_v41 = vpop.f32.mrf.mxu1  ;;  %v12638_v19 = vld [vmem:[%s14580_s29 + $0x770] sm:$0xff]  ;;  %v12635_v37 = vld [vmem:[%s14580_s29 + $0x758] sm:$0xff] }
 0x3ee   : > { %10303 = vmatpush.bf16.msrb.mxu3 %v12584_v20  ;;  %10265 = vmatmul.bf16.vlgmr.msrb.gmra.mxu0 %v7567_v21  ;;  %v10072_v42 = vadd.f32 %v10071_v41, %v10059_v38  ;;  %v7573_v12 = vpack.c.b16 %v7524_v1, %v7524_v1  ;;  %v12654_v20 = vld [vmem:[%s14580_s29 + $0x7f0] sm:$0xff]  ;;  %v12629_v21 = vld [vmem:[%s14580_s29 + $0x728] sm:$0xff]  ;;  %v12651_v38 = vld [vmem:[%s14580_s29 + $0x7d8] sm:$0xff] }
 0x3ef   : > { %10309 = vmatpush.bf16.msra.mxu0 %v12599_v14  ;;  %10291 = vmatmul.bf16.vlgmr.msrb.gmra.mxu2 %v7569_v22  ;;  %v12655_v14 = vld [vmem:[%s14580_s29 + $0x7f8] sm:$0xff]  ;;  %v12645_v22 = vld [vmem:[%s14580_s29 + $0x7a8] sm:$0xff] }
 0x3f0   : > { %10335 = vmatpush.bf16.msra.mxu2 %v12615_v15  ;;  %10278 = vmatmul.bf16.vlgmr.msrb.gmra.mxu1 %v7568_v25  ;;  %v7572_v15 = vpack.c.b16 %v7523_v7, %v7523_v7  ;;  %v12679_v60 = vld [vmem:[%s14580_s29 + $0x8b8] sm:$0xff]  ;;  %v12662_v7 = vld [vmem:[%s14580_s29 + $0x830] sm:$0xff] }
 0x3f1   : > { %10322 = vmatpush.bf16.msra.mxu1 %v12607_v23  ;;  %10304 = vmatmul.bf16.vlgmr.msrb.gmra.mxu3 %v7570_v26  ;;  %v12637_v23 = vld [vmem:[%s14580_s29 + $0x768] sm:$0xff] }
 0x3f2   : > { %10348 = vmatpush.bf16.msra.mxu3 %v12623_v24  ;;  %v10084_v47 = vpop.f32.mrf.mxu2  ;;  %v12653_v24 = vld [vmem:[%s14580_s29 + $0x7e8] sm:$0xff] }
 0x3f3   : > { %10310 = vmatpush.bf16.msra.mxu0 %v12598_v27  ;;  %v10085_v48 = vadd.f32 %v10084_v47, %v10072_v42  ;;  %v10060_v52 = vpop.f32.mrf.mxu0  ;;  %v12628_v27 = vld [vmem:[%s14580_s29 + $0x720] sm:$0xff]  ;;  %v12626_v42 = vld [vmem:[%s14580_s29 + $0x710] sm:$0xff]  ;;  %v12625_v47 = vld [vmem:[%s14580_s29 + $0x708] sm:$0xff] }
 0x3f4   : > { %10336 = vmatpush.bf16.msra.mxu2 %v12614_v28  ;;  %v10097_v51 = vpop.f32.mrf.mxu3  ;;  %v12644_v28 = vld [vmem:[%s14580_s29 + $0x7a0] sm:$0xff]  ;;  %v12633_v52 = vld [vmem:[%s14580_s29 + $0x748] sm:$0xff] }
 0x3f5   : > { %10323 = vmatpush.bf16.msra.mxu1 %v12606_v29  ;;  %v14840_v53 = vadd.f32 %v10097_v51, %v10085_v48  ;;  %v10073_v56 = vpop.f32.mrf.mxu1  ;;  %v12641_v48 = vld [vmem:[%s14580_s29 + $0x788] sm:$0xff] }
 0x3f6   : > { %10349 = vmatpush.bf16.msra.mxu3 %v12622_v30 }
 0x3f7   : > { %10311 = vmatpush.bf16.msra.mxu0 %v12597_v31  ;;  %v12636_v31 = vld [vmem:[%s14580_s29 + $0x760] sm:$0xff] }
 0x3f8   : > { %10337 = vmatpush.bf16.msra.mxu2 %v12613_v32  ;;  %v12652_v32 = vld [vmem:[%s14580_s29 + $0x7e0] sm:$0xff] }
 0x3f9   : > { %10324 = vmatpush.bf16.msra.mxu1 %v12605_v33  ;;  %v12627_v33 = vld [vmem:[%s14580_s29 + $0x718] sm:$0xff] }
 0x3fa   : > { %10350 = vmatpush.bf16.msra.mxu3 %v12621_v34  ;;  %v10086_v63 = vpop.f32.mrf.mxu2  ;;  %v12643_v34 = vld [vmem:[%s14580_s29 + $0x798] sm:$0xff] }
 0x3fb   : > { %10312 = vmatpush.bf16.msra.mxu0 %v12596_v35  ;;  %v12632_v63 = vld [vmem:[%s14580_s29 + $0x740] sm:$0xff] }
 0x3fc   : > { %10338 = vmatpush.bf16.msra.mxu2 %v12612_v36  ;;  %v10099_v4 = vpop.f32.mrf.mxu3 }
 0x3fd   : > { %10325 = vmatpush.bf16.msra.mxu1 %v12604_v39  ;;  %v12687_v4 = vld [vmem:[%s14580_s29 + $0x8f8] sm:$0xff] }
 0x3fe   : > { %10351 = vmatpush.bf16.msra.mxu3 %v12620_v40 }
 0x3ff   : > { %10313 = vmatpush.bf16.msra.mxu0 %v12595_v43  ;;  %v12642_v43 = vld [vmem:[%s14580_s29 + $0x790] sm:$0xff] }
 0x400   : > { %10339 = vmatpush.bf16.msra.mxu2 %v12611_v44 }
 0x401   : > { %10326 = vmatpush.bf16.msra.mxu1 %v12603_v45  ;;  %v12634_v45 = vld [vmem:[%s14580_s29 + $0x750] sm:$0xff] }
 0x402   : > { %10352 = vmatpush.bf16.msra.mxu3 %v12619_v46  ;;  %v12650_v46 = vld [vmem:[%s14580_s29 + $0x7d0] sm:$0xff] }
 0x403   : > { %10314 = vmatpush.bf16.msra.mxu0 %v12594_v49  ;;  %v6678_v49 = vld [vmem:[%s15129_s0 + $0x70] sm:$0xff] }
 0x404   : > { %10340 = vmatpush.bf16.msra.mxu2 %v12610_v50  ;;  %v6679_v50 = vld [vmem:[%s15129_s0 + $0x78] sm:$0xff] }
 0x405   : > { %10327 = vmatpush.bf16.msra.mxu1 %v12602_v54  ;;  %v7528_v56 = vunpack.c.l.b16 %v6679_v50 }
 0x406   : > { %10353 = vmatpush.bf16.msra.mxu3 %v12618_v55  ;;  %v7526_v55 = vunpack.c.l.b16 %v6678_v49 }
 0x407   : > { %10315 = vmatpush.bf16.msra.mxu0 %v12593_v57  ;;  %v12624_v57 = vld [vmem:[%s14580_s29 + $0x700] sm:$0xff] }
 0x408   : > { %10341 = vmatpush.bf16.msra.mxu2 %v12609_v58  ;;  %v12640_v58 = vld [vmem:[%s14580_s29 + $0x780] sm:$0xff]  ;;  %v7575_v1 = vpack.c.b16 %v7526_v55, %v7526_v55 }
 0x409   : > { %10328 = vmatpush.bf16.msra.mxu1 %v12601_v61  ;;  %v7527_v61 = vunpack.c.h.b16 %v6678_v49  ;;  %v12695_v49 = vld [vmem:[%s14580_s29 + $0x938] sm:$0xff] }
 0x40a   : > { %10354 = vmatpush.bf16.msra.mxu3 %v12617_v62  ;;  %v7529_v62 = vunpack.c.h.b16 %v6679_v50  ;;  %v12711_v50 = vld [vmem:[%s14580_s29 + $0x9b8] sm:$0xff] }
 0x40b   : > { %10316 = vmatpush.bf16.msra.mxu0 %v12592_v2  ;;  %v10110_v25 = vpop.f32.mrf.mxu0  ;;  %v7577_v2 = vpack.c.b16 %v7528_v56, %v7528_v56 }
 0x40c   : > { %10342 = vmatpush.bf16.msra.mxu2 %v12608_v3  ;;  %v10111_v26 = vadd.f32 %v10110_v25, %v14840_v53  ;;  %v12649_v53 = vld [vmem:[%s14580_s29 + $0x7c8] sm:$0xff]  ;;  %v12671_v3 = vld [vmem:[%s14580_s29 + $0x878] sm:$0xff] }
 0x40d   : > { %10329 = vmatpush.bf16.msra.mxu1 %v12600_v9  ;;  %v10123_v29 = vpop.f32.mrf.mxu1  ;;  %v12670_v9 = vld [vmem:[%s14580_s29 + $0x870] sm:$0xff] }
 0x40e   : > { %10355 = vmatpush.bf16.msra.mxu3 %v12616_v10  ;;  %10317 = vmatmul.bf16.vlgmr.msra.gmra.mxu0 %v7571_v11  ;;  %v10124_v30 = vadd.f32 %v10123_v29, %v10111_v26  ;;  %v12686_v10 = vld [vmem:[%s14580_s29 + $0x8f0] sm:$0xff]  ;;  %v12661_v11 = vld [vmem:[%s14580_s29 + $0x828] sm:$0xff] }
 0x40f   : > { %10361 = vmatpush.bf16.msrb.mxu0 %v12631_v5  ;;  %10343 = vmatmul.bf16.vlgmr.msra.gmra.mxu2 %v7573_v12  ;;  %v7576_v5 = vpack.c.b16 %v7527_v61, %v7527_v61  ;;  %v12677_v12 = vld [vmem:[%s14580_s29 + $0x8a8] sm:$0xff]  ;;  %v12694_v61 = vld [vmem:[%s14580_s29 + $0x930] sm:$0xff] }
 0x410   : > { %10387 = vmatpush.bf16.msrb.mxu2 %v12647_v6  ;;  %10330 = vmatmul.bf16.vlgmr.msra.gmra.mxu1 %v7572_v15  ;;  %v7578_v6 = vpack.c.b16 %v7529_v62, %v7529_v62  ;;  %v12710_v62 = vld [vmem:[%s14580_s29 + $0x9b0] sm:$0xff] }
 0x411   : > { %10374 = vmatpush.bf16.msrb.mxu1 %v12639_v13  ;;  %10356 = vmatmul.bf16.vlgmr.msra.gmra.mxu3 %v7574_v16  ;;  %v12669_v13 = vld [vmem:[%s14580_s29 + $0x868] sm:$0xff] }
 0x412   : > { %10400 = vmatpush.bf16.msrb.mxu3 %v12655_v14  ;;  %v10136_v35 = vpop.f32.mrf.mxu2  ;;  %v12685_v14 = vld [vmem:[%s14580_s29 + $0x8e8] sm:$0xff] }
 0x413   : > { %10362 = vmatpush.bf16.msrb.mxu0 %v12630_v17  ;;  %v10137_v36 = vadd.f32 %v10136_v35, %v10124_v30  ;;  %v10112_v40 = vpop.f32.mrf.mxu0  ;;  %v12660_v17 = vld [vmem:[%s14580_s29 + $0x820] sm:$0xff]  ;;  %v12666_v35 = vld [vmem:[%s14580_s29 + $0x850] sm:$0xff] }
 0x414   : > { %10388 = vmatpush.bf16.msrb.mxu2 %v12646_v18  ;;  %v10149_v39 = vpop.f32.mrf.mxu3  ;;  %v12676_v18 = vld [vmem:[%s14580_s29 + $0x8a0] sm:$0xff]  ;;  %v6681_v40 = vld [vmem:[%s15129_s0 + $0x88] sm:$0xff] }
 0x415   : > { %10375 = vmatpush.bf16.msrb.mxu1 %v12638_v19  ;;  %v14879_v41 = vadd.f32 %v10149_v39, %v10137_v36  ;;  %v10125_v44 = vpop.f32.mrf.mxu1  ;;  %v12682_v36 = vld [vmem:[%s14580_s29 + $0x8d0] sm:$0xff]  ;;  %v6680_v39 = vld [vmem:[%s15129_s0 + $0x80] sm:$0xff] }
 0x416   : > { %10401 = vmatpush.bf16.msrb.mxu3 %v12654_v20 }
 0x417   : > { %10363 = vmatpush.bf16.msrb.mxu0 %v12629_v21  ;;  %v12668_v21 = vld [vmem:[%s14580_s29 + $0x860] sm:$0xff] }
 0x418   : > { %10389 = vmatpush.bf16.msrb.mxu2 %v12645_v22  ;;  %v12684_v22 = vld [vmem:[%s14580_s29 + $0x8e0] sm:$0xff] }
 0x419   : > { %10376 = vmatpush.bf16.msrb.mxu1 %v12637_v23  ;;  %v12659_v23 = vld [vmem:[%s14580_s29 + $0x818] sm:$0xff] }
 0x41a   : > { %10402 = vmatpush.bf16.msrb.mxu3 %v12653_v24  ;;  %v10138_v51 = vpop.f32.mrf.mxu2  ;;  %v12675_v24 = vld [vmem:[%s14580_s29 + $0x898] sm:$0xff] }
 0x41b   : > { %10364 = vmatpush.bf16.msrb.mxu0 %v12628_v27  ;;  %v12667_v27 = vld [vmem:[%s14580_s29 + $0x858] sm:$0xff]  ;;  %v7531_v51 = vunpack.c.h.b16 %v6680_v39 }
 0x41c   : > { %10390 = vmatpush.bf16.msrb.mxu2 %v12644_v28  ;;  %v10151_v54 = vpop.f32.mrf.mxu3  ;;  %v12683_v28 = vld [vmem:[%s14580_s29 + $0x8d8] sm:$0xff] }
 0x41d   : > { %10377 = vmatpush.bf16.msrb.mxu1 %v12636_v31  ;;  %v12680_v54 = vld [vmem:[%s14580_s29 + $0x8c0] sm:$0xff] }
 0x41e   : > { %10403 = vmatpush.bf16.msrb.mxu3 %v12652_v32  ;;  %v12658_v32 = vld [vmem:[%s14580_s29 + $0x810] sm:$0xff] }
 0x41f   : > { %10365 = vmatpush.bf16.msrb.mxu0 %v12627_v33  ;;  %v12674_v33 = vld [vmem:[%s14580_s29 + $0x890] sm:$0xff] }
 0x420   : > { %10391 = vmatpush.bf16.msrb.mxu2 %v12643_v34 }
 0x421   : > { %10378 = vmatpush.bf16.msrb.mxu1 %v12635_v37  ;;  %v12657_v37 = vld [vmem:[%s14580_s29 + $0x808] sm:$0xff] }
 0x422   : > { %10404 = vmatpush.bf16.msrb.mxu3 %v12651_v38  ;;  %v12673_v38 = vld [vmem:[%s14580_s29 + $0x888] sm:$0xff] }
 0x423   : > { %10366 = vmatpush.bf16.msrb.mxu0 %v12626_v42  ;;  %v12665_v42 = vld [vmem:[%s14580_s29 + $0x848] sm:$0xff] }
 0x424   : > { %10392 = vmatpush.bf16.msrb.mxu2 %v12642_v43  ;;  %v12681_v43 = vld [vmem:[%s14580_s29 + $0x8c8] sm:$0xff] }
 0x425   : > { %10379 = vmatpush.bf16.msrb.mxu1 %v12634_v45  ;;  %v7530_v45 = vunpack.c.l.b16 %v6680_v39  ;;  %v12727_v39 = vld [vmem:[%s14580_s29 + $0xa38] sm:$0xff] }
 0x426   : > { %10405 = vmatpush.bf16.msrb.mxu3 %v12650_v46  ;;  %v7532_v46 = vunpack.c.l.b16 %v6681_v40 }
 0x427   : > { %10367 = vmatpush.bf16.msrb.mxu0 %v12625_v47  ;;  %v12656_v47 = vld [vmem:[%s14580_s29 + $0x800] sm:$0xff]  ;;  %v7579_v55 = vpack.c.b16 %v7530_v45, %v7530_v45 }
 0x428   : > { %10393 = vmatpush.bf16.msrb.mxu2 %v12641_v48  ;;  %v12672_v48 = vld [vmem:[%s14580_s29 + $0x880] sm:$0xff]  ;;  %v7581_v56 = vpack.c.b16 %v7532_v46, %v7532_v46 }
 0x429   : > { %10380 = vmatpush.bf16.msrb.mxu1 %v12633_v52  ;;  %v7533_v52 = vunpack.c.h.b16 %v6681_v40  ;;  %v12743_v40 = vld [vmem:[%s14580_s29 + $0xab8] sm:$0xff] }
 0x42a   : > { %10406 = vmatpush.bf16.msrb.mxu3 %v12649_v53  ;;  %v12664_v53 = vld [vmem:[%s14580_s29 + $0x840] sm:$0xff] }
 0x42b   : > { %10368 = vmatpush.bf16.msrb.mxu0 %v12624_v57  ;;  %v10162_v15 = vpop.f32.mrf.mxu0  ;;  %v12703_v57 = vld [vmem:[%s14580_s29 + $0x978] sm:$0xff] }
 0x42c   : > { %10394 = vmatpush.bf16.msrb.mxu2 %v12640_v58  ;;  %v10163_v16 = vadd.f32 %v10162_v15, %v14879_v41  ;;  %v12719_v58 = vld [vmem:[%s14580_s29 + $0x9f8] sm:$0xff] }
 0x42d   : > { %10381 = vmatpush.bf16.msrb.mxu1 %v12632_v63  ;;  %v10175_v19 = vpop.f32.mrf.mxu1  ;;  %v12702_v63 = vld [vmem:[%s14580_s29 + $0x970] sm:$0xff] }
 0x42e   : > { %10407 = vmatpush.bf16.msrb.mxu3 %v12648_v0  ;;  %10369 = vmatmul.bf16.vlgmr.msrb.gmra.mxu0 %v7575_v1  ;;  %v10176_v20 = vadd.f32 %v10175_v19, %v10163_v16  ;;  %v12718_v0 = vld [vmem:[%s14580_s29 + $0x9f0] sm:$0xff]  ;;  %v12693_v1 = vld [vmem:[%s14580_s29 + $0x928] sm:$0xff] }
 0x42f   : > { %10413 = vmatpush.bf16.msra.mxu0 %v12663_v59  ;;  %10395 = vmatmul.bf16.vlgmr.msrb.gmra.mxu2 %v7577_v2  ;;  %v7580_v59 = vpack.c.b16 %v7531_v51, %v7531_v51  ;;  %v12709_v2 = vld [vmem:[%s14580_s29 + $0x9a8] sm:$0xff]  ;;  %v12726_v51 = vld [vmem:[%s14580_s29 + $0xa30] sm:$0xff] }
 0x430   : > { %10439 = vmatpush.bf16.msra.mxu2 %v12679_v60  ;;  %10382 = vmatmul.bf16.vlgmr.msrb.gmra.mxu1 %v7576_v5  ;;  %v7582_v60 = vpack.c.b16 %v7533_v52, %v7533_v52  ;;  %v12742_v52 = vld [vmem:[%s14580_s29 + $0xab0] sm:$0xff] }
 0x431   : > { %10426 = vmatpush.bf16.msra.mxu1 %v12671_v3  ;;  %10408 = vmatmul.bf16.vlgmr.msrb.gmra.mxu3 %v7578_v6  ;;  %v12701_v3 = vld [vmem:[%s14580_s29 + $0x968] sm:$0xff] }
 0x432   : > { %10452 = vmatpush.bf16.msra.mxu3 %v12687_v4  ;;  %v10188_v25 = vpop.f32.mrf.mxu2  ;;  %v12717_v4 = vld [vmem:[%s14580_s29 + $0x9e8] sm:$0xff] }
 0x433   : > { %10414 = vmatpush.bf16.msra.mxu0 %v12662_v7  ;;  %v10189_v26 = vadd.f32 %v10188_v25, %v10176_v20  ;;  %v10164_v30 = vpop.f32.mrf.mxu0  ;;  %v12692_v7 = vld [vmem:[%s14580_s29 + $0x920] sm:$0xff]  ;;  %v12698_v25 = vld [vmem:[%s14580_s29 + $0x950] sm:$0xff] }
 0x434   : > { %10440 = vmatpush.bf16.msra.mxu2 %v12678_v8  ;;  %v10201_v29 = vpop.f32.mrf.mxu3  ;;  %v12708_v8 = vld [vmem:[%s14580_s29 + $0x9a0] sm:$0xff]  ;;  %v6683_v30 = vld [vmem:[%s15129_s0 + $0x98] sm:$0xff] }
 0x435   : > { %10427 = vmatpush.bf16.msra.mxu1 %v12670_v9  ;;  %v14920_v31 = vadd.f32 %v10201_v29, %v10189_v26  ;;  %v10177_v34 = vpop.f32.mrf.mxu1  ;;  %v12714_v26 = vld [vmem:[%s14580_s29 + $0x9d0] sm:$0xff] }
 0x436   : > { %10453 = vmatpush.bf16.msra.mxu3 %v12686_v10  ;;  %v6682_v29 = vld [vmem:[%s15129_s0 + $0x90] sm:$0xff] }
 0x437   : > { %10415 = vmatpush.bf16.msra.mxu0 %v12661_v11  ;;  %v12700_v11 = vld [vmem:[%s14580_s29 + $0x960] sm:$0xff] }
 0x438   : > { %10441 = vmatpush.bf16.msra.mxu2 %v12677_v12  ;;  %v12716_v12 = vld [vmem:[%s14580_s29 + $0x9e0] sm:$0xff] }
 0x439   : > { %10428 = vmatpush.bf16.msra.mxu1 %v12669_v13  ;;  %v12691_v13 = vld [vmem:[%s14580_s29 + $0x918] sm:$0xff] }
 0x43a   : > { %10454 = vmatpush.bf16.msra.mxu3 %v12685_v14  ;;  %v10190_v41 = vpop.f32.mrf.mxu2  ;;  %v12707_v14 = vld [vmem:[%s14580_s29 + $0x998] sm:$0xff] }
 0x43b   : > { %10416 = vmatpush.bf16.msra.mxu0 %v12660_v17  ;;  %v12699_v17 = vld [vmem:[%s14580_s29 + $0x958] sm:$0xff]  ;;  %v7535_v41 = vunpack.c.h.b16 %v6682_v29 }
 0x43c   : > { %10442 = vmatpush.bf16.msra.mxu2 %v12676_v18  ;;  %v10203_v44 = vpop.f32.mrf.mxu3  ;;  %v12715_v18 = vld [vmem:[%s14580_s29 + $0x9d8] sm:$0xff] }
 0x43d   : > { %10429 = vmatpush.bf16.msra.mxu1 %v12668_v21  ;;  %v12712_v44 = vld [vmem:[%s14580_s29 + $0x9c0] sm:$0xff] }
 0x43e   : > { %10455 = vmatpush.bf16.msra.mxu3 %v12684_v22  ;;  %v12690_v22 = vld [vmem:[%s14580_s29 + $0x910] sm:$0xff] }
 0x43f   : > { %10417 = vmatpush.bf16.msra.mxu0 %v12659_v23  ;;  %v12706_v23 = vld [vmem:[%s14580_s29 + $0x990] sm:$0xff] }
 0x440   : > { %10443 = vmatpush.bf16.msra.mxu2 %v12675_v24 }
 0x441   : > { %10430 = vmatpush.bf16.msra.mxu1 %v12667_v27  ;;  %v12689_v27 = vld [vmem:[%s14580_s29 + $0x908] sm:$0xff] }
 0x442   : > { %10456 = vmatpush.bf16.msra.mxu3 %v12683_v28  ;;  %v12705_v28 = vld [vmem:[%s14580_s29 + $0x988] sm:$0xff] }
 0x443   : > { %10418 = vmatpush.bf16.msra.mxu0 %v12658_v32  ;;  %v12697_v32 = vld [vmem:[%s14580_s29 + $0x948] sm:$0xff] }
 0x444   : > { %10444 = vmatpush.bf16.msra.mxu2 %v12674_v33  ;;  %v12713_v33 = vld [vmem:[%s14580_s29 + $0x9c8] sm:$0xff] }
 0x445   : > { %10431 = vmatpush.bf16.msra.mxu1 %v12666_v35  ;;  %v7534_v35 = vunpack.c.l.b16 %v6682_v29  ;;  %v12759_v29 = vld [vmem:[%s14580_s29 + $0xb38] sm:$0xff] }
 0x446   : > { %10457 = vmatpush.bf16.msra.mxu3 %v12682_v36  ;;  %v7536_v36 = vunpack.c.l.b16 %v6683_v30 }
 0x447   : > { %10419 = vmatpush.bf16.msra.mxu0 %v12657_v37  ;;  %v12688_v37 = vld [vmem:[%s14580_s29 + $0x900] sm:$0xff]  ;;  %v7583_v45 = vpack.c.b16 %v7534_v35, %v7534_v35 }
 0x448   : > { %10445 = vmatpush.bf16.msra.mxu2 %v12673_v38  ;;  %v12704_v38 = vld [vmem:[%s14580_s29 + $0x980] sm:$0xff]  ;;  %v7585_v46 = vpack.c.b16 %v7536_v36, %v7536_v36 }
 0x449   : > { %10432 = vmatpush.bf16.msra.mxu1 %v12665_v42  ;;  %v7537_v42 = vunpack.c.h.b16 %v6683_v30  ;;  %v12775_v30 = vld [vmem:[%s14580_s29 + $0xbb8] sm:$0xff] }
 0x44a   : > { %10458 = vmatpush.bf16.msra.mxu3 %v12681_v43  ;;  %v12696_v43 = vld [vmem:[%s14580_s29 + $0x940] sm:$0xff] }
 0x44b   : > { %10420 = vmatpush.bf16.msra.mxu0 %v12656_v47  ;;  %v10214_v5 = vpop.f32.mrf.mxu0  ;;  %v12735_v47 = vld [vmem:[%s14580_s29 + $0xa78] sm:$0xff] }
 0x44c   : > { %10446 = vmatpush.bf16.msra.mxu2 %v12672_v48  ;;  %v10215_v6 = vadd.f32 %v10214_v5, %v14920_v31  ;;  %v12751_v48 = vld [vmem:[%s14580_s29 + $0xaf8] sm:$0xff] }
 0x44d   : > { %10433 = vmatpush.bf16.msra.mxu1 %v12664_v53  ;;  %v10227_v9 = vpop.f32.mrf.mxu1  ;;  %v12734_v53 = vld [vmem:[%s14580_s29 + $0xa70] sm:$0xff] }
 0x44e   : > { %10459 = vmatpush.bf16.msra.mxu3 %v12680_v54  ;;  %10421 = vmatmul.bf16.vlgmr.msra.gmra.mxu0 %v7579_v55  ;;  %v10228_v10 = vadd.f32 %v10227_v9, %v10215_v6  ;;  %v12750_v54 = vld [vmem:[%s14580_s29 + $0xaf0] sm:$0xff]  ;;  %v12725_v55 = vld [vmem:[%s14580_s29 + $0xa28] sm:$0xff] }
 0x44f   : > { %10465 = vmatpush.bf16.msrb.mxu0 %v12695_v49  ;;  %10447 = vmatmul.bf16.vlgmr.msra.gmra.mxu2 %v7581_v56  ;;  %v7584_v49 = vpack.c.b16 %v7535_v41, %v7535_v41  ;;  %v12741_v56 = vld [vmem:[%s14580_s29 + $0xaa8] sm:$0xff]  ;;  %v12758_v41 = vld [vmem:[%s14580_s29 + $0xb30] sm:$0xff] }
 0x450   : > { %10491 = vmatpush.bf16.msrb.mxu2 %v12711_v50  ;;  %10434 = vmatmul.bf16.vlgmr.msra.gmra.mxu1 %v7580_v59  ;;  %v7586_v50 = vpack.c.b16 %v7537_v42, %v7537_v42  ;;  %v12774_v42 = vld [vmem:[%s14580_s29 + $0xbb0] sm:$0xff] }
 0x451   : > { %10478 = vmatpush.bf16.msrb.mxu1 %v12703_v57  ;;  %10460 = vmatmul.bf16.vlgmr.msra.gmra.mxu3 %v7582_v60  ;;  %v12733_v57 = vld [vmem:[%s14580_s29 + $0xa68] sm:$0xff] }
 0x452   : > { %10504 = vmatpush.bf16.msrb.mxu3 %v12719_v58  ;;  %v10240_v15 = vpop.f32.mrf.mxu2  ;;  %v12749_v58 = vld [vmem:[%s14580_s29 + $0xae8] sm:$0xff] }
 0x453   : > { %10466 = vmatpush.bf16.msrb.mxu0 %v12694_v61  ;;  %v10241_v16 = vadd.f32 %v10240_v15, %v10228_v10  ;;  %v10216_v20 = vpop.f32.mrf.mxu0  ;;  %v12724_v61 = vld [vmem:[%s14580_s29 + $0xa20] sm:$0xff]  ;;  %v12730_v15 = vld [vmem:[%s14580_s29 + $0xa50] sm:$0xff] }
 0x454   : > { %10492 = vmatpush.bf16.msrb.mxu2 %v12710_v62  ;;  %v10253_v19 = vpop.f32.mrf.mxu3  ;;  %v12740_v62 = vld [vmem:[%s14580_s29 + $0xaa0] sm:$0xff]  ;;  %v6685_v20 = vld [vmem:[%s15129_s0 + $0xa8] sm:$0xff] }
 0x455   : > { %10479 = vmatpush.bf16.msrb.mxu1 %v12702_v63  ;;  %v14961_v21 = vadd.f32 %v10253_v19, %v10241_v16  ;;  %v10229_v24 = vpop.f32.mrf.mxu1  ;;  %v12746_v16 = vld [vmem:[%s14580_s29 + $0xad0] sm:$0xff]  ;;  %v6684_v19 = vld [vmem:[%s15129_s0 + $0xa0] sm:$0xff] }
 0x456   : > { %10505 = vmatpush.bf16.msrb.mxu3 %v12718_v0 }
 0x457   : > { %10467 = vmatpush.bf16.msrb.mxu0 %v12693_v1  ;;  %v12732_v1 = vld [vmem:[%s14580_s29 + $0xa60] sm:$0xff] }
 0x458   : > { %10493 = vmatpush.bf16.msrb.mxu2 %v12709_v2  ;;  %v12748_v2 = vld [vmem:[%s14580_s29 + $0xae0] sm:$0xff] }
 0x459   : > { %10480 = vmatpush.bf16.msrb.mxu1 %v12701_v3  ;;  %v12723_v3 = vld [vmem:[%s14580_s29 + $0xa18] sm:$0xff] }
 0x45a   : > { %10506 = vmatpush.bf16.msrb.mxu3 %v12717_v4  ;;  %v10242_v31 = vpop.f32.mrf.mxu2  ;;  %v12739_v4 = vld [vmem:[%s14580_s29 + $0xa98] sm:$0xff] }
 0x45b   : > { %10468 = vmatpush.bf16.msrb.mxu0 %v12692_v7  ;;  %v12731_v7 = vld [vmem:[%s14580_s29 + $0xa58] sm:$0xff]  ;;  %v7539_v31 = vunpack.c.h.b16 %v6684_v19 }
 0x45c   : > { %10494 = vmatpush.bf16.msrb.mxu2 %v12708_v8  ;;  %v10255_v34 = vpop.f32.mrf.mxu3  ;;  %v12747_v8 = vld [vmem:[%s14580_s29 + $0xad8] sm:$0xff] }
 0x45d   : > { %10481 = vmatpush.bf16.msrb.mxu1 %v12700_v11  ;;  %v12744_v34 = vld [vmem:[%s14580_s29 + $0xac0] sm:$0xff] }
 0x45e   : > { %10507 = vmatpush.bf16.msrb.mxu3 %v12716_v12  ;;  %v12722_v12 = vld [vmem:[%s14580_s29 + $0xa10] sm:$0xff] }
 0x45f   : > { %10469 = vmatpush.bf16.msrb.mxu0 %v12691_v13  ;;  %v12738_v13 = vld [vmem:[%s14580_s29 + $0xa90] sm:$0xff] }
 0x460   : > { %10495 = vmatpush.bf16.msrb.mxu2 %v12707_v14 }
 0x461   : > { %10482 = vmatpush.bf16.msrb.mxu1 %v12699_v17  ;;  %v12721_v17 = vld [vmem:[%s14580_s29 + $0xa08] sm:$0xff] }
 0x462   : > { %10508 = vmatpush.bf16.msrb.mxu3 %v12715_v18  ;;  %v12737_v18 = vld [vmem:[%s14580_s29 + $0xa88] sm:$0xff] }
 0x463   : > { %10470 = vmatpush.bf16.msrb.mxu0 %v12690_v22  ;;  %v12729_v22 = vld [vmem:[%s14580_s29 + $0xa48] sm:$0xff] }
 0x464   : > { %10496 = vmatpush.bf16.msrb.mxu2 %v12706_v23  ;;  %v12745_v23 = vld [vmem:[%s14580_s29 + $0xac8] sm:$0xff] }
 0x465   : > { %10483 = vmatpush.bf16.msrb.mxu1 %v12698_v25  ;;  %v7538_v25 = vunpack.c.l.b16 %v6684_v19  ;;  %v12791_v19 = vld [vmem:[%s14580_s29 + $0xc38] sm:$0xff] }
 0x466   : > { %10509 = vmatpush.bf16.msrb.mxu3 %v12714_v26  ;;  %v7540_v26 = vunpack.c.l.b16 %v6685_v20 }
 0x467   : > { %10471 = vmatpush.bf16.msrb.mxu0 %v12689_v27  ;;  %v12720_v27 = vld [vmem:[%s14580_s29 + $0xa00] sm:$0xff]  ;;  %v7587_v35 = vpack.c.b16 %v7538_v25, %v7538_v25 }
 0x468   : > { %10497 = vmatpush.bf16.msrb.mxu2 %v12705_v28  ;;  %v12736_v28 = vld [vmem:[%s14580_s29 + $0xa80] sm:$0xff]  ;;  %v7589_v36 = vpack.c.b16 %v7540_v26, %v7540_v26 }
 0x469   : > { %10484 = vmatpush.bf16.msrb.mxu1 %v12697_v32  ;;  %v7541_v32 = vunpack.c.h.b16 %v6685_v20 }
 0x46a   : > { %10510 = vmatpush.bf16.msrb.mxu3 %v12713_v33  ;;  %v12728_v33 = vld [vmem:[%s14580_s29 + $0xa40] sm:$0xff] }
 0x46b   : > { %10472 = vmatpush.bf16.msrb.mxu0 %v12688_v37  ;;  %v10266_v59 = vpop.f32.mrf.mxu0  ;;  %v12767_v37 = vld [vmem:[%s14580_s29 + $0xb78] sm:$0xff] }
 0x46c   : > { %10498 = vmatpush.bf16.msrb.mxu2 %v12704_v38  ;;  %v10267_v60 = vadd.f32 %v10266_v59, %v14961_v21  ;;  %v12783_v38 = vld [vmem:[%s14580_s29 + $0xbf8] sm:$0xff] }
 0x46d   : > { %10485 = vmatpush.bf16.msrb.mxu1 %v12696_v43  ;;  %v10279_v63 = vpop.f32.mrf.mxu1  ;;  %v12766_v43 = vld [vmem:[%s14580_s29 + $0xb70] sm:$0xff] }
 0x46e   : > { %10511 = vmatpush.bf16.msrb.mxu3 %v12712_v44  ;;  %10473 = vmatmul.bf16.vlgmr.msrb.gmra.mxu0 %v7583_v45  ;;  %v10280_v0 = vadd.f32 %v10279_v63, %v10267_v60  ;;  %v12782_v44 = vld [vmem:[%s14580_s29 + $0xbf0] sm:$0xff]  ;;  %v12757_v45 = vld [vmem:[%s14580_s29 + $0xb28] sm:$0xff] }
 0x46f   : > { %10517 = vmatpush.bf16.msra.mxu0 %v12727_v39  ;;  %10499 = vmatmul.bf16.vlgmr.msrb.gmra.mxu2 %v7585_v46  ;;  %v7588_v39 = vpack.c.b16 %v7539_v31, %v7539_v31  ;;  %v12773_v46 = vld [vmem:[%s14580_s29 + $0xba8] sm:$0xff] }
 0x470   : > { %10543 = vmatpush.bf16.msra.mxu2 %v12743_v40  ;;  %10486 = vmatmul.bf16.vlgmr.msrb.gmra.mxu1 %v7584_v49  ;;  %v7590_v40 = vpack.c.b16 %v7541_v32, %v7541_v32  ;;  %v12788_v32 = vld [vmem:[%s14580_s29 + $0xc20] sm:$0xff] }
 0x471   : > { %10530 = vmatpush.bf16.msra.mxu1 %v12735_v47  ;;  %10512 = vmatmul.bf16.vlgmr.msrb.gmra.mxu3 %v7586_v50  ;;  %v12765_v47 = vld [vmem:[%s14580_s29 + $0xb68] sm:$0xff] }
 0x472   : > { %10556 = vmatpush.bf16.msra.mxu3 %v12751_v48  ;;  %v10292_v5 = vpop.f32.mrf.mxu2  ;;  %v12781_v48 = vld [vmem:[%s14580_s29 + $0xbe8] sm:$0xff] }
 0x473   : > { %10518 = vmatpush.bf16.msra.mxu0 %v12726_v51  ;;  %v10293_v6 = vadd.f32 %v10292_v5, %v10280_v0  ;;  %v10268_v10 = vpop.f32.mrf.mxu0  ;;  %v12756_v51 = vld [vmem:[%s14580_s29 + $0xb20] sm:$0xff]  ;;  %v12762_v5 = vld [vmem:[%s14580_s29 + $0xb50] sm:$0xff] }
 0x474   : > { %10544 = vmatpush.bf16.msra.mxu2 %v12742_v52  ;;  %v10305_v9 = vpop.f32.mrf.mxu3  ;;  %v12772_v52 = vld [vmem:[%s14580_s29 + $0xba0] sm:$0xff]  ;;  %v6687_v10 = vld [vmem:[%s15129_s0 + $0xb8] sm:$0xff] }
 0x475   : > { %10531 = vmatpush.bf16.msra.mxu1 %v12734_v53  ;;  %v15002_v11 = vadd.f32 %v10305_v9, %v10293_v6  ;;  %v10281_v14 = vpop.f32.mrf.mxu1  ;;  %v12778_v6 = vld [vmem:[%s14580_s29 + $0xbd0] sm:$0xff] }
 0x476   : > { %10557 = vmatpush.bf16.msra.mxu3 %v12750_v54  ;;  %v6686_v9 = vld [vmem:[%s15129_s0 + $0xb0] sm:$0xff] }
 0x477   : > { %10519 = vmatpush.bf16.msra.mxu0 %v12725_v55  ;;  %v12764_v55 = vld [vmem:[%s14580_s29 + $0xb60] sm:$0xff]  ;;  %v7543_v20 = vunpack.c.h.b16 %v6686_v9 }
 0x478   : > { %10545 = vmatpush.bf16.msra.mxu2 %v12741_v56  ;;  %v12780_v56 = vld [vmem:[%s14580_s29 + $0xbe0] sm:$0xff] }
 0x479   : > { %10532 = vmatpush.bf16.msra.mxu1 %v12733_v57  ;;  %v12755_v57 = vld [vmem:[%s14580_s29 + $0xb18] sm:$0xff]  ;;  %v7592_v26 = vpack.c.b16 %v7543_v20, %v7543_v20 }
 0x47a   : > { %10558 = vmatpush.bf16.msra.mxu3 %v12749_v58  ;;  %v10294_v21 = vpop.f32.mrf.mxu2  ;;  %v12771_v58 = vld [vmem:[%s14580_s29 + $0xb98] sm:$0xff] }
 0x47b   : > { %10520 = vmatpush.bf16.msra.mxu0 %v12724_v61  ;;  %v12763_v61 = vld [vmem:[%s14580_s29 + $0xb58] sm:$0xff]  ;;  %v7545_v21 = vunpack.c.h.b16 %v6687_v10 }
 0x47c   : > { %10546 = vmatpush.bf16.msra.mxu2 %v12740_v62  ;;  %v10307_v24 = vpop.f32.mrf.mxu3  ;;  %v12779_v62 = vld [vmem:[%s14580_s29 + $0xbd8] sm:$0xff] }
 0x47d   : > { %10533 = vmatpush.bf16.msra.mxu1 %v12732_v1 }
 0x47e   : > { %10559 = vmatpush.bf16.msra.mxu3 %v12748_v2  ;;  %v12754_v2 = vld [vmem:[%s14580_s29 + $0xb10] sm:$0xff] }
 0x47f   : > { %10521 = vmatpush.bf16.msra.mxu0 %v12723_v3  ;;  %v12770_v3 = vld [vmem:[%s14580_s29 + $0xb90] sm:$0xff] }
 0x480   : > { %10547 = vmatpush.bf16.msra.mxu2 %v12739_v4 }
 0x481   : > { %10534 = vmatpush.bf16.msra.mxu1 %v12731_v7  ;;  %v12753_v7 = vld [vmem:[%s14580_s29 + $0xb08] sm:$0xff] }
 0x482   : > { %10560 = vmatpush.bf16.msra.mxu3 %v12747_v8  ;;  %v12769_v8 = vld [vmem:[%s14580_s29 + $0xb88] sm:$0xff] }
 0x483   : > { %10522 = vmatpush.bf16.msra.mxu0 %v12722_v12  ;;  %v12761_v12 = vld [vmem:[%s14580_s29 + $0xb48] sm:$0xff] }
 0x484   : > { %10548 = vmatpush.bf16.msra.mxu2 %v12738_v13  ;;  %v12777_v13 = vld [vmem:[%s14580_s29 + $0xbc8] sm:$0xff] }
 0x485   : > { %10535 = vmatpush.bf16.msra.mxu1 %v12730_v15  ;;  %v7542_v15 = vunpack.c.l.b16 %v6686_v9 }
 0x486   : > { %10561 = vmatpush.bf16.msra.mxu3 %v12746_v16  ;;  %v7544_v16 = vunpack.c.l.b16 %v6687_v10 }
 0x487   : > { %10523 = vmatpush.bf16.msra.mxu0 %v12721_v17  ;;  %v12752_v17 = vld [vmem:[%s14580_s29 + $0xb00] sm:$0xff]  ;;  %v7591_v24 = vpack.c.b16 %v7542_v15, %v7542_v15 }
 0x488   : > { %10549 = vmatpush.bf16.msra.mxu2 %v12737_v18  ;;  %v12768_v18 = vld [vmem:[%s14580_s29 + $0xb80] sm:$0xff]  ;;  %v7593_v25 = vpack.c.b16 %v7544_v16, %v7544_v16 }
 0x489   : > { %10536 = vmatpush.bf16.msra.mxu1 %v12729_v22  ;;  %v12760_v22 = vld [vmem:[%s14580_s29 + $0xb40] sm:$0xff] }
 0x48a   : > { %10562 = vmatpush.bf16.msra.mxu3 %v12745_v23  ;;  %v12776_v23 = vld [vmem:[%s14580_s29 + $0xbc0] sm:$0xff] }
 0x48b   : > { %10524 = vmatpush.bf16.msra.mxu0 %v12720_v27  ;;  %v10318_v49 = vpop.f32.mrf.mxu0  ;;  %v7594_v27 = vpack.c.b16 %v7545_v21, %v7545_v21 }
 0x48c   : > { %10550 = vmatpush.bf16.msra.mxu2 %v12736_v28  ;;  %v10319_v50 = vadd.f32 %v10318_v49, %v15002_v11  ;;  %v12790_v28 = vld [vmem:[%s14580_s29 + $0xc30] sm:$0xff] }
 0x48d   : > { %10537 = vmatpush.bf16.msra.mxu1 %v12728_v33  ;;  %v10331_v53 = vpop.f32.mrf.mxu1 }
 0x48e   : > { %10563 = vmatpush.bf16.msra.mxu3 %v12744_v34  ;;  %10525 = vmatmul.bf16.vlgmr.msra.gmra.mxu0 %v7587_v35  ;;  %v10332_v54 = vadd.f32 %v10331_v53, %v10319_v50  ;;  %v12787_v35 = vld [vmem:[%s14580_s29 + $0xc18] sm:$0xff] }
 0x48f   : > { %10569 = vmatpush.bf16.msrb.mxu0 %v12759_v29  ;;  %10551 = vmatmul.bf16.vlgmr.msra.gmra.mxu2 %v7589_v36  ;;  %v12789_v29 = vld [vmem:[%s14580_s29 + $0xc28] sm:$0xff] }
 0x490   : > { %10595 = vmatpush.bf16.msrb.mxu2 %v12775_v30  ;;  %10538 = vmatmul.bf16.vlgmr.msra.gmra.mxu1 %v7588_v39 }
 0x491   : > { %10582 = vmatpush.bf16.msrb.mxu1 %v12767_v37  ;;  %10564 = vmatmul.bf16.vlgmr.msra.gmra.mxu3 %v7590_v40 }
 0x492   : > { %10608 = vmatpush.bf16.msrb.mxu3 %v12783_v38  ;;  %v10344_v59 = vpop.f32.mrf.mxu2 }
 0x493   : > { %10570 = vmatpush.bf16.msrb.mxu0 %v12758_v41  ;;  %v10345_v60 = vadd.f32 %v10344_v59, %v10332_v54  ;;  %v10320_v0 = vpop.f32.mrf.mxu0  ;;  %v12786_v41 = vld [vmem:[%s14580_s29 + $0xc10] sm:$0xff] }
 0x494   : > { %10596 = vmatpush.bf16.msrb.mxu2 %v12774_v42  ;;  %v10357_v63 = vpop.f32.mrf.mxu3 }
 0x495   : > { %10583 = vmatpush.bf16.msrb.mxu1 %v12766_v43  ;;  %v10358_v1 = vadd.f32 %v10357_v63, %v10345_v60  ;;  %v10333_v4 = vpop.f32.mrf.mxu1  ;;  %v12785_v43 = vld [vmem:[%s14580_s29 + $0xc08] sm:$0xff] }
 0x496   : > { %10609 = vmatpush.bf16.msrb.mxu3 %v12782_v44  ;;  %v6688_v44 = vld [vmem:[%s15129_s0 + $0xc0] sm:$0xf] }
 0x497   : > { %10571 = vmatpush.bf16.msrb.mxu0 %v12757_v45 }
 0x498   : > { %10597 = vmatpush.bf16.msrb.mxu2 %v12773_v46 }
 0x499   : > { %10584 = vmatpush.bf16.msrb.mxu1 %v12765_v47  ;;  %v7546_v47 = vunpack.c.l.b16 %v6688_v44 }
 0x49a   : > { %10610 = vmatpush.bf16.msrb.mxu3 %v12781_v48  ;;  %v10346_v11 = vpop.f32.mrf.mxu2  ;;  %v12784_v48 = vld [vmem:[%s14580_s29 + $0xc00] sm:$0xff]  ;;  %s10824_s29 = sshll.u32 %s12900_s21, 2 }
 0x49b   : > { %10572 = vmatpush.bf16.msrb.mxu0 %v12756_v51  ;;  %v7595_v49 = vpack.c.b16 %v7546_v47, %v7546_v47  ;;  %s6640_s16 = sadd.s32 %s12896_s20, %s10824_s29 }
 0x49c   : > { %10598 = vmatpush.bf16.msrb.mxu2 %v12772_v52  ;;  %v10359_v14 = vpop.f32.mrf.mxu3  ;;  %p6641_p11 = scmp.lt.s32.totalorder %s6640_s16, 7 }
 0x49d   : > { %10585 = vmatpush.bf16.msrb.mxu1 %v12764_v55 }
 0x49e   : > { %10611 = vmatpush.bf16.msrb.mxu3 %v12780_v56  ;;  %s15148_s16 = smov (!%p6641_p11, %s6640_s16), 7 }
 0x49f   : > { %10573 = vmatpush.bf16.msrb.mxu0 %v12755_v57  ;;  %s6643_s28 = scalar_lea.vmem %s15131_s2, %s15148_s16  ;;  %s6650_s7 = scalar_lea.vmem %s15132_s3, %s15148_s16 }
 0x4a0   : > { %10599 = vmatpush.bf16.msrb.mxu2 %v12771_v58  ;;  %s6657_s21 = scalar_lea.vmem %s15133_s4, %s15148_s16 }
 0x4a1   : > { %10586 = vmatpush.bf16.msrb.mxu1 %v12763_v61 }
 0x4a2   : > { %10612 = vmatpush.bf16.msrb.mxu3 %v12779_v62 }
 0x4a3   : > { %10574 = vmatpush.bf16.msrb.mxu0 %v12754_v2 }
 0x4a4   : > { %10600 = vmatpush.bf16.msrb.mxu2 %v12770_v3 }
 0x4a5   : > { %10587 = vmatpush.bf16.msrb.mxu1 %v12762_v5 }
 0x4a6   : > { %10613 = vmatpush.bf16.msrb.mxu3 %v12778_v6 }
 0x4a7   : > { %10575 = vmatpush.bf16.msrb.mxu0 %v12753_v7 }
 0x4a8   : > { %10601 = vmatpush.bf16.msrb.mxu2 %v12769_v8 }
 0x4a9   : > { %10588 = vmatpush.bf16.msrb.mxu1 %v12761_v12 }
 0x4aa   : > { %10614 = vmatpush.bf16.msrb.mxu3 %v12777_v13 }
 0x4ab   : > { %10576 = vmatpush.bf16.msrb.mxu0 %v12752_v17  ;;  %v10370_v30 = vpop.f32.mrf.mxu0 }
 0x4ac   : > { %10602 = vmatpush.bf16.msrb.mxu2 %v12768_v18  ;;  %v10371_v31 = vadd.f32 %v10370_v30, %v10358_v1  ;;  %v12914_v30 = vmov 8.0  }
 0x4ad   : > { %10589 = vmatpush.bf16.msrb.mxu1 %v12760_v22  ;;  %v10383_v33 = vpop.f32.mrf.mxu1  ;;  %12854 = vrcp.f32 %v12914_v30 }
 0x4ae   : > { %10615 = vmatpush.bf16.msrb.mxu3 %v12776_v23  ;;  %10577 = vmatmul.bf16.vlgmr.msrb.gmra.mxu0 %v7591_v24  ;;  %v10384_v34 = vadd.f32 %v10383_v33, %v10371_v31 }
 0x4af   : > { %10621 = vmatpush.bf16.msra.mxu0 %v12791_v19  ;;  %10603 = vmatmul.bf16.vlgmr.msrb.gmra.mxu2 %v7593_v25 }
 0x4b0   : > { %10590 = vmatmul.bf16.vlgmr.msrb.gmra.mxu1 %v7592_v26 }
 0x4b1   : > { %10616 = vmatmul.bf16.vlgmr.msrb.gmra.mxu3 %v7594_v27 }
 0x4b2   : > { %v10396_v36 = vpop.f32.mrf.mxu2 }
 0x4b3   : > { %10622 = vmatpush.bf16.msra.mxu0 %v12790_v28  ;;  %v10397_v37 = vadd.f32 %v10396_v36, %v10384_v34  ;;  %v10372_v39 = vpop.f32.mrf.mxu0 }
 0x4b4   : > { %v10409_v38 = vpop.f32.mrf.mxu3 }
 0x4b5   : > { %v10410_v40 = vadd.f32 %v10409_v38, %v10397_v37  ;;  %v10385_v42 = vpop.f32.mrf.mxu1 }
 0x4b7   : > { %10623 = vmatpush.bf16.msra.mxu0 %v12789_v29 }
 0x4ba   : > { %v10398_v45 = vpop.f32.mrf.mxu2 }
 0x4bb   : > { %10624 = vmatpush.bf16.msra.mxu0 %v12788_v32  ;;  %v12855_v32 = vpop.eup %12854 }
 0x4bc   : > { %v10411_v46 = vpop.f32.mrf.mxu3  ;;  %vm10645_vm0 = vweird.f32 %v12855_v32 }
 0x4bf   : > { %10625 = vmatpush.bf16.msra.mxu0 %v12787_v35  ;;  %v10641_v35 = vmul.f32 8.0, %v12855_v32 }
 0x4c1   : > { %v10642_v38 = vsub.f32 1.0, %v10641_v35 }
 0x4c3   : > { %10626 = vmatpush.bf16.msra.mxu0 %v12786_v41  ;;  %v10643_v41 = vmul.f32 %v12855_v32, %v10642_v38 }
 0x4c5   : > { %v10644_v44 = vadd.f32 %v12855_v32, %v10643_v41 }
 0x4c7   : > { %10627 = vmatpush.bf16.msra.mxu0 %v12785_v43 }
 0x4cb   : > { %10628 = vmatpush.bf16.msra.mxu0 %v12784_v48  ;;  %v10422_v50 = vpop.f32.mrf.mxu0  ;;  %v10646_v48 = vsel %vm10645_vm0, %v12855_v32, %v10644_v44 }
 0x4cc   : > { %v10423_v51 = vadd.f32 %v10422_v50, %v10410_v40 }
 0x4cd   : > { %v10435_v52 = vpop.f32.mrf.mxu1 }
 0x4ce   : > { %10629 = vmatmul.bf16.vlgmr.msra.gmra.mxu0 %v7595_v49  ;;  %v10436_v53 = vadd.f32 %v10435_v52, %v10423_v51 }
 0x4d2   : > { %v10448_v54 = vpop.f32.mrf.mxu2 }
 0x4d3   : > { %v10449_v55 = vadd.f32 %v10448_v54, %v10436_v53  ;;  %v10424_v57 = vpop.f32.mrf.mxu0 }
 0x4d4   : > { %v10461_v56 = vpop.f32.mrf.mxu3 }
 0x4d5   : > { %v10462_v58 = vadd.f32 %v10461_v56, %v10449_v55  ;;  %v10437_v59 = vpop.f32.mrf.mxu1 }
 0x4da   : > { %v10450_v60 = vpop.f32.mrf.mxu2 }
 0x4dc   : > { %v10463_v61 = vpop.f32.mrf.mxu3 }
 0x4eb   : > { %v10474_v62 = vpop.f32.mrf.mxu0 }
 0x4ec   : > { %v10475_v63 = vadd.f32 %v10474_v62, %v10462_v58 }
 0x4ed   : > { %v10487_v0 = vpop.f32.mrf.mxu1 }
 0x4ee   : > { %v10488_v1 = vadd.f32 %v10487_v0, %v10475_v63 }
 0x4f2   : > { %v10500_v2 = vpop.f32.mrf.mxu2 }
 0x4f3   : > { %v10501_v3 = vadd.f32 %v10500_v2, %v10488_v1  ;;  %v10476_v5 = vpop.f32.mrf.mxu0 }
 0x4f4   : > { %v10513_v4 = vpop.f32.mrf.mxu3 }
 0x4f5   : > { %v10514_v6 = vadd.f32 %v10513_v4, %v10501_v3  ;;  %v10489_v7 = vpop.f32.mrf.mxu1  ;;  %v12851_v3 = vld [vmem:[%s6643_s28] ss:$0 sm:$0xff] }
 0x4fa   : > { %v10502_v8 = vpop.f32.mrf.mxu2 }
 0x4fc   : > { %v10515_v9 = vpop.f32.mrf.mxu3 }
 0x50b   : > { %v10526_v10 = vpop.f32.mrf.mxu0 }
 0x50c   : > { %v10527_v21 = vadd.f32 %v10526_v10, %v10514_v6  ;;  %v12852_v6 = vld [vmem:[%s6650_s7] ss:$0 sm:$0xff] }
 0x50d   : > { %v10539_v11 = vpop.f32.mrf.mxu1  ;;  %v12853_v10 = vld [vmem:[%s6657_s21] ss:$0 sm:$0xff] }
 0x50e   : > { %v10540_v25 = vadd.f32 %v10539_v11, %v10527_v21 }
 0x512   : > { %v10552_v12 = vpop.f32.mrf.mxu2 }
 0x513   : > { %v10528_v14 = vpop.f32.mrf.mxu0  ;;  %v10553_v26 = vadd.f32 %v10552_v12, %v10540_v25 }
 0x514   : > { %v10565_v13 = vpop.f32.mrf.mxu3 }
 0x515   : > { %v10541_v15 = vpop.f32.mrf.mxu1  ;;  %v10566_v29 = vadd.f32 %v10565_v13, %v10553_v26 }
 0x51a   : > { %v10554_v16 = vpop.f32.mrf.mxu2 }
 0x51c   : > { %v10567_v17 = vpop.f32.mrf.mxu3 }
 0x52b   : > { %v10578_v18 = vpop.f32.mrf.mxu0 }
 0x52c   : > { %v10579_v31 = vadd.f32 %v10578_v18, %v10566_v29 }
 0x52d   : > { %v10591_v19 = vpop.f32.mrf.mxu1 }
 0x52e   : > { %v10592_v33 = vadd.f32 %v10591_v19, %v10579_v31 }
 0x532   : > { %v10604_v20 = vpop.f32.mrf.mxu2 }
 0x533   : > { %v10580_v23 = vpop.f32.mrf.mxu0  ;;  %v10605_v34 = vadd.f32 %v10604_v20, %v10592_v33 }
 0x534   : > { %v10617_v22 = vpop.f32.mrf.mxu3 }
 0x535   : > { %v10593_v24 = vpop.f32.mrf.mxu1  ;;  %v10618_v36 = vadd.f32 %v10617_v22, %v10605_v34 }
 0x53a   : > { %v10606_v27 = vpop.f32.mrf.mxu2 }
 0x53c   : > { %v10619_v28 = vpop.f32.mrf.mxu3 }
 0x54b   : > { %v10630_v37 = vpop.f32.mrf.mxu0 }
 0x54c   : > { %v10631_v39 = vadd.f32 %v10630_v37, %v10618_v36 }
 0x54e   : > { %v10634_v40 = vrot.slane %v10631_v39, 4 }
 0x550   : > { %v10635_v42 = vadd.f32 %v10634_v40, %v10631_v39 }
 0x552   : > { %v10636_v43 = vrot.slane %v10635_v42, 2 }
 0x553   : > { %v10632_v45 = vpop.f32.mrf.mxu0 }
 0x554   : > { %v10637_v46 = vadd.f32 %v10636_v43, %v10635_v42 }
 0x556   : > { %v10638_v47 = vrot.slane %v10637_v46, 1 }
 0x558   : > { %v10639_v49 = vadd.f32 %v10638_v47, %v10637_v46 }
 0x55a   : > { %v10647_v50 = vmul.f32 %v10646_v48, %v10639_v49 }
 0x55c   : > { %v10648_v51 = vsub.f32 %v10631_v39, %v10647_v50 }
 0x55e   : > { %v10649_v52 = vmul.f32 %v10648_v51, %v10648_v51 }
 0x560   : > { %v10650_v53 = vrot.slane %v10649_v52, 4 }
 0x562   : > { %v10651_v54 = vadd.f32 %v10650_v53, %v10649_v52 }
 0x564   : > { %v10652_v55 = vrot.slane %v10651_v54, 2 }
 0x566   : > { %v10653_v56 = vadd.f32 %v10652_v55, %v10651_v54 }
 0x568   : > { %v10654_v57 = vrot.slane %v10653_v56, 1 }
 0x56a   : > { %v10655_v58 = vadd.f32 %v10654_v57, %v10653_v56 }
 0x56c   : > { %v10656_v59 = vmul.f32 %v10655_v58, %v10646_v48 }
 0x56e   : > { %v10657_v60 = vadd.f32 1e-05, %v10656_v59 }
 0x570   : > { %12856 = vrsqrt.f32 %v10657_v60  ;;  %vm10664_vm2 = vweird.f32 %v10657_v60 }
 0x576   : > { %v12857_v61 = vpop.eup %12856 }
 0x577   : > { %v10659_v62 = vmul.f32 %v12857_v61, %v10657_v60  ;;  %vm10665_vm1 = vweird.f32 %v12857_v61 }
 0x578   : > { %vm10666_vm3 = vmor %vm10664_vm2, %vm10665_vm1 }
 0x579   : > { %v10660_v63 = vmul.f32 %v12857_v61, %v10659_v62 }
 0x57b   : > { %v10661_v0 = vmul.f32 0.5, %v10660_v63 }
 0x57d   : > { %v10662_v1 = vsub.f32 1.5, %v10661_v0 }
 0x57f   : > { %v10663_v2 = vmul.f32 %v12857_v61, %v10662_v1 }
 0x581   : > { %v10667_v4 = vsel %vm10666_vm3, %v12857_v61, %v10663_v2 }
 0x582   : > { %v10668_v5 = vmul.f32 %v10667_v4, %v10648_v51 }
 0x584   : > { %v10673_v7 = vmul.f32 %v12851_v3, %v10668_v5 }
 0x586   : > { %v10678_v8 = vadd.f32 %v12852_v6, %v10673_v7 }
 0x588   : > { %v10679_v9 = vmul.f32 0.2, %v10678_v8 }
 0x58a   : > { %v10680_v11 = vmax.f32 %v10678_v8, %v10679_v9 }
 0x58c   : > { %v10685_v12 = vmul.f32 %v12853_v10, %v10680_v11 }
 0x58e   : > { %10686 = vadd.xlane.f32.xlu0 %v10685_v12 }
 0x5fd   : > { %10691 = sbr.rel (%p12396_p12) target bundleno = 1540 (0x604), region = 96 }
 0x601   : > { %v10687_v13 = vpop.xlane.xlu0 %10686 }
 0x602   : > { %vm10692_vm4 = vcmask 7168  }
 0x603   : > { %10693 = vst.msk [vmem:[%s14588_s6] sm:$0xff] %vm10692_vm4, %v10687_v13 }
 0x604 PF: > { %p12397_p13 = scmp.le.s32.totalorder %s12896_s20, 0 }
 0x606   : > { %10697 = sbr.rel (%p12397_p13) target bundleno = 1551 (0x60f), region = 100 }
 0x60b   : > { %v10698_v14 = vld [vmem:[%s14588_s6] sm:$0xff]  ;;  %vm10700_vm5 = vcmask 7168  }
 0x60c   : > { %v10699_v15 = vadd.f32 %v10698_v14, %v10687_v13 }
 0x60e   : > { %10701 = vst.msk [vmem:[%s14588_s6] sm:$0xff] %vm10700_vm5, %v10699_v15 }
 0x60f PF: > { %s15_s24 = sadd.s32 1, %s12912_s24   ;;  %s15135_s18 = smov %s12892_s19 }
 0x610   : > { %p12_p0 = scmp.ge.s32.totalorder %s15_s24, 10   ;;  %s15136_s19 = smov %s12996_s8 }
 0x611   : > { %s15137_s20 = smov %s12904_s22  ;;  %s15138_s21 = smov %s12908_s23 }
 0x612   : > { %s15139_s22 = smov %s15142_s25  ;;  %s15140_s23 = smov %s15146_s26 }
 0x613   :  { %14 = sbr.rel (!%p12_p0) target bundleno = 4 (0x4), region = 148 }

</bundles_post_ra>
